<compile_context>
chip_gen: v7x
topology: tpu7x:2x2x1
jax: 0.10.0
libtpu: 0.0.40
codegen_flags: <defaults>
</compile_context>

<pallas_src>
import functools

import jax
import jax.numpy as jnp
from jax.experimental import pallas as pl
from jax.experimental.pallas import tpu as pltpu

_EPS = 1e-5

CFG = dict(
    num_frames=16,      # img_size[0]
    num_landmarks=16,   # img_size[1]  (token sequence length L)
    in_chans=2,
    embed_dim=32, depth=2, num_heads=4,
    dec_embed_dim=64, dec_depth=2, dec_num_heads=4,
    mlp_ratio=4.0,
)

_BLOCK_KEYS = ("ln1_g", "ln1_b", "wq", "bq", "wk", "bk", "wv", "bv",
               "wpr", "bpr", "ln2_g", "ln2_b", "w1", "b1", "w2", "b2")


# ----------------------------- kernel helpers ------------------------------

def _ln(x, g, b):
    m = jnp.mean(x, axis=-1, keepdims=True)
    v = jnp.mean((x - m) ** 2, axis=-1, keepdims=True)
    return (x - m) * jax.lax.rsqrt(v + _EPS) * g + b


def _gelu_tanh(x):
    # TODO(synk): reference timm Block uses erf GELU; tanh approximation kept
    # (native EUP tanh, guaranteed Mosaic lowering). Small numeric divergence.
    return 0.5 * x * (1.0 + jnp.tanh(0.7978845608028654 * (x + 0.044715 * x ** 3)))


def _transformer_block(x, li, wrefs, num_heads):
    """Pre-LN transformer block; per-head weights are stacked on a leading
    (layer*head) axis so no lane-offset slicing / head concat is needed."""
    (ln1g, ln1b, wq, bq, wk, bk, wv, bv, wpr, bpr,
     ln2g, ln2b, w1, b1, w2, b2) = wrefs
    dh = wq.shape[-1]
    scale = 1.0 / (dh ** 0.5)

    # --- attention ---
    h = _ln(x, ln1g[li], ln1b[li])
    attn = None
    for hi in range(num_heads):
        hd = li * num_heads + hi
        qh = jnp.dot(h, wq[hd], preferred_element_type=jnp.float32) + bq[hd]
        kh = jnp.dot(h, wk[hd], preferred_element_type=jnp.float32) + bk[hd]
        vh = jnp.dot(h, wv[hd], preferred_element_type=jnp.float32) + bv[hd]
        s = jax.lax.dot_general(qh, kh, (((1,), (1,)), ((), ())),
                                preferred_element_type=jnp.float32) * scale
        s = s - jnp.max(s, axis=-1, keepdims=True)
        p = jnp.exp(s)
        p = p * pl.reciprocal(jnp.sum(p, axis=-1, keepdims=True), approx=True)
        oh = jnp.dot(p, vh, preferred_element_type=jnp.float32)           # (T, dh)
        c = jnp.dot(oh, wpr[hd], preferred_element_type=jnp.float32)      # (T, D)
        attn = c if attn is None else attn + c
    x = x + attn + bpr[li]

    # --- MLP ---
    h2 = _ln(x, ln2g[li], ln2b[li])
    h2 = jnp.dot(h2, w1[li], preferred_element_type=jnp.float32) + b1[li]
    h2 = _gelu_tanh(h2)
    h2 = jnp.dot(h2, w2[li], preferred_element_type=jnp.float32) + b2[li]
    return x + h2


# ------------------------- fused MAE forward kernel -------------------------

def _mae_kernel(tok_ref, idk_ref, idr_ref, pos_ref, pw_ref, pb_ref, *rest,
                enc_depth, enc_heads, dec_depth, dec_heads, keep):
    enc_w = rest[0:16]
    enc_ng, enc_nb = rest[16], rest[17]
    dew_ref, deb_ref, mtok_ref, dpos_ref = rest[18:22]
    dec_w = rest[22:38]
    dec_ng, dec_nb = rest[38], rest[39]
    prw_ref, prb_ref = rest[40], rest[41]
    pred_ref, tloss_ref = rest[42], rest[43]

    tok = tok_ref[0].astype(jnp.float32)                         # (L, Fin)
    L = tok.shape[0]

    # ---------------- encoder ----------------
    # TODO(synk): TDCNN PatchEmbed class is not defined in the reference
    # module; approximated by a linear projection (matches patchify shapes).
    x_all = (jnp.dot(tok, pw_ref[...], preferred_element_type=jnp.float32)
             + pb_ref[...] + pos_ref[...])                       # (L, E)

    # masked-token gather: one-hot built from column ids vs. lane iota
    idk_col = idk_ref[0]                                         # (keep, 1) int32
    lane_k = jax.lax.broadcasted_iota(jnp.int32, (keep, L), 1)
    g_keep = (idk_col == lane_k).astype(jnp.float32)             # (keep, L)
    x = jnp.dot(g_keep, x_all, preferred_element_type=jnp.float32)   # (keep, E)

    for li in range(enc_depth):
        x = _transformer_block(x, li, enc_w, enc_heads)
    x = _ln(x, enc_ng[...], enc_nb[...])

    # ---------------- decoder ----------------
    xk = jnp.dot(x, dew_ref[...], preferred_element_type=jnp.float32) + deb_ref[...]
    Dd = xk.shape[-1]

    # unshuffle: cat(x[1:], mask_tokens) gathered by ids_restore, then prepend
    # x[0] (mirrors the reference forward_decoder exactly, incl. "cls" slot)
    n_mask = L + 1 - keep
    src = jnp.concatenate(
        [xk[1:, :], jnp.broadcast_to(mtok_ref[...], (n_mask, Dd))], axis=0)   # (L, Dd)
    idr_col = idr_ref[0]                                         # (L, 1) int32
    lane_r = jax.lax.broadcasted_iota(jnp.int32, (L, L), 1)
    g_rest = (idr_col == lane_r).astype(jnp.float32)             # (L, L)
    x_rest = jnp.dot(g_rest, src, preferred_element_type=jnp.float32)         # (L, Dd)
    xd = jnp.concatenate([xk[:1, :], x_rest], axis=0) + dpos_ref[...]         # (L+1, Dd)

    for li in range(dec_depth):
        xd = _transformer_block(xd, li, dec_w, dec_heads)
    xd = _ln(xd, dec_ng[...], dec_nb[...])
    pred_full = jnp.dot(xd, prw_ref[...], preferred_element_type=jnp.float32) + prb_ref[...]
    pred = pred_full[1:, :]                                      # drop "cls" row → (L, Pout)
    pred_ref[0] = pred.astype(pred_ref.dtype)

    # ---------------- masked per-token MSE partial ----------------
    mask_col = (idr_col >= keep).astype(jnp.float32)             # (L, 1): 1 == masked
    diff = pred - tok                                            # Pout == Fin
    per_tok = jnp.sum(diff * diff, axis=-1, keepdims=True) * (1.0 / pred.shape[-1])
    tloss_ref[0] = (per_tok * mask_col).astype(tloss_ref.dtype)  # (L, 1)


# ------------------------------ call wrapper --------------------------------

def _const_spec(a):
    ndim = a.ndim
    return pl.BlockSpec(a.shape, lambda b, _n=ndim: (0,) * _n)


def mae_pallas(tokens, ids_keep, ids_restore, params, cfg):
    N, L, Fin = tokens.shape
    keep = ids_keep.shape[1]
    pred_out = params["pred_w"].shape[1]

    enc_blk = [params["enc_stack"][k] for k in _BLOCK_KEYS]
    dec_blk = [params["dec_stack"][k] for k in _BLOCK_KEYS]

    # ids as per-sample column vectors so the one-hot build needs no transpose
    idk = ids_keep.reshape(N, keep, 1)
    idr = ids_restore.reshape(N, L, 1)

    weight_ins = [
        params["pos_embed"][0, 1:, :], params["patch_w"], params["patch_b"],
        *enc_blk, params["norm_g"], params["norm_b"],
        params["dec_embed_w"], params["dec_embed_b"],
        params["mask_token"][0], params["dec_pos_embed"][0],
        *dec_blk, params["dec_norm_g"], params["dec_norm_b"],
        params["pred_w"], params["pred_b"],
    ]

    in_specs = [
        pl.BlockSpec((1, L, Fin), lambda b: (b, 0, 0)),
        pl.BlockSpec((1, keep, 1), lambda b: (b, 0, 0)),
        pl.BlockSpec((1, L, 1), lambda b: (b, 0, 0)),
    ] + [_const_spec(a) for a in weight_ins]

    out_specs = [
        pl.BlockSpec((1, L, pred_out), lambda b: (b, 0, 0)),
        pl.BlockSpec((1, L, 1), lambda b: (b, 0, 0)),
    ]

    kernel = functools.partial(
        _mae_kernel,
        enc_depth=cfg["depth"], enc_heads=cfg["num_heads"],
        dec_depth=cfg["dec_depth"], dec_heads=cfg["dec_num_heads"],
        keep=keep)

    pred, tok_loss = pl.pallas_call(
        kernel,
        out_shape=(jax.ShapeDtypeStruct((N, L, pred_out), jnp.float32),
                   jax.ShapeDtypeStruct((N, L, 1), jnp.float32)),
        grid=(N,),
        in_specs=in_specs,
        out_specs=out_specs,
        compiler_params=pltpu.CompilerParams(dimension_semantics=("parallel",)),
    )(tokens, idk, idr, *weight_ins)
    return pred, tok_loss


# ------------------------------- parameters --------------------------------

def _stack_blocks(blocks, num_heads):
    """Convert per-block param dicts (torch-like layout) to the kernel layout:
    q/k/v/proj weights split per head and stacked over (layer*head); the rest
    stacked over layer. All stacked arrays are <=3-D."""
    per = {k: [] for k in _BLOCK_KEYS}
    for bp in blocks:
        D = bp["wproj"].shape[0]
        dh = D // num_heads
        wqkv, bqkv = bp["wqkv"], bp["bqkv"]
        for name, idx in (("wq", 0), ("wk", 1), ("wv", 2)):
            w = wqkv[:, idx * D:(idx + 1) * D]
            per[name].append(w.reshape(D, num_heads, dh).transpose(1, 0, 2))   # (H,D,dh)
            bvec = bqkv[:, idx * D:(idx + 1) * D]
            per["b" + name[1]].append(bvec.reshape(num_heads, 1, dh))          # (H,1,dh)
        per["wpr"].append(bp["wproj"].reshape(num_heads, dh, D))               # (H,dh,D)
        per["bpr"].append(bp["bproj"])
        for k in ("ln1_g", "ln1_b", "ln2_g", "ln2_b", "w1", "b1", "w2", "b2"):
            per[k].append(bp[k])
    out = {}
    for k, vals in per.items():
        stacked = jnp.stack(vals, axis=0)                    # (depth, ...)
        if k in ("wq", "wk", "wv", "bq", "bk", "bv", "wpr"):
            stacked = stacked.reshape((-1,) + stacked.shape[2:])   # (depth*H, ...)
        out[k] = stacked
    return out


def init_params(key, cfg):
    L = cfg["num_landmarks"]
    E = cfg["embed_dim"]
    Dd = cfg["dec_embed_dim"]
    Fin = cfg["in_chans"] * cfg["num_frames"]
    pred_out = cfg["num_frames"] * cfg["in_chans"]

    keys = iter(jax.random.split(key, 256))

    def xavier(shape):
        fan_in, fan_out = shape[-2], shape[-1]
        lim = (6.0 / (fan_in + fan_out)) ** 0.5
        return jax.random.uniform(next(keys), shape, jnp.float32, -lim, lim)

    zeros = lambda s: jnp.zeros(s, jnp.float32)
    ones = lambda s: jnp.ones(s, jnp.float32)

    def block_params(D):
        hid = int(cfg["mlp_ratio"] * D)
        return dict(
            ln1_g=ones((1, D)), ln1_b=zeros((1, D)),
            wqkv=xavier((D, 3 * D)), bqkv=zeros((1, 3 * D)),
            wproj=xavier((D, D)), bproj=zeros((1, D)),
            ln2_g=ones((1, D)), ln2_b=zeros((1, D)),
            w1=xavier((D, hid)), b1=zeros((1, hid)),
            w2=xavier((hid, D)), b2=zeros((1, D)),
        )

    p = dict(
        patch_w=xavier((Fin, E)), patch_b=zeros((1, E)),
        pos_embed=xavier((1, L + 1, E)),
        norm_g=ones((1, E)), norm_b=zeros((1, E)),
        dec_embed_w=xavier((E, Dd)), dec_embed_b=zeros((1, Dd)),
        mask_token=0.02 * jax.random.normal(next(keys), (1, 1, Dd), jnp.float32),
        dec_pos_embed=xavier((1, L + 1, Dd)),
        dec_norm_g=ones((1, Dd)), dec_norm_b=zeros((1, Dd)),
        pred_w=xavier((Dd, pred_out)), pred_b=zeros((1, pred_out)),
    )
    p["enc_stack"] = _stack_blocks(
        [block_params(E) for _ in range(cfg["depth"])], cfg["num_heads"])
    p["dec_stack"] = _stack_blocks(
        [block_params(Dd) for _ in range(cfg["dec_depth"])], cfg["dec_num_heads"])
    return p


# -------------------------------- forward ----------------------------------

def mae_forward(params, imgs, mask_ratio, rng, cfg=CFG):
    N, nF, L, C = imgs.shape
    len_keep = int(L * (1 - mask_ratio))

    # patchify: raw reshape, same semantics as torch .reshape in the reference
    tokens = imgs.reshape(N, L, C * nF)

    # random masking indices (plain-JAX glue; mirrors torch.rand / argsort)
    noise = jax.random.uniform(rng, (N, L))
    ids_shuffle = jnp.argsort(noise, axis=1)
    ids_restore = jnp.argsort(ids_shuffle, axis=1).astype(jnp.int32)
    ids_keep = ids_shuffle[:, :len_keep].astype(jnp.int32)
    mask = jnp.ones((N, L), jnp.float32).at[:, :len_keep].set(0.0)
    mask = jnp.take_along_axis(mask, ids_restore, axis=1)

    # fused encoder + decoder + per-token masked-MSE (one kernel launch)
    pred, tok_loss = mae_pallas(tokens, ids_keep, ids_restore, params, cfg)

    loss = jnp.sum(tok_loss) / jnp.sum(mask)
    return loss, pred, mask


# --------------------------------- main -------------------------------------

if __name__ == "__main__":
    key = jax.random.PRNGKey(0)
    k_param, k_img, k_mask = jax.random.split(key, 3)

    params = init_params(k_param, CFG)
    imgs = jax.random.normal(
        k_img,
        (2, CFG["num_frames"], CFG["num_landmarks"], CFG["in_chans"]),
        jnp.float32,
    )

    fwd = jax.jit(mae_forward, static_argnums=(2,))
    loss, pred, mask = fwd(params, imgs, 0.75, k_mask)
    jax.block_until_ready((loss, pred, mask))

    assert pred.shape == (2, CFG["num_landmarks"], CFG["num_frames"] * CFG["in_chans"])
    assert mask.shape == (2, CFG["num_landmarks"])
    assert loss.shape == ()
    print("KERNEL_OK")
</pallas_src>

<mosaic_0001>
module attributes {stable_mosaic.version = 11 : i64} {
  func.func @_mae_kernel(%arg0: i32, %arg1: memref<1x16x32xf32, #tpu.memory_space<vmem>>, %arg2: memref<1x4x1xi32, #tpu.memory_space<vmem>>, %arg3: memref<1x16x1xi32, #tpu.memory_space<vmem>>, %arg4: memref<16x32xf32, #tpu.memory_space<vmem>>, %arg5: memref<32x32xf32, #tpu.memory_space<vmem>>, %arg6: memref<1x32xf32, #tpu.memory_space<vmem>>, %arg7: memref<2x1x32xf32, #tpu.memory_space<vmem>>, %arg8: memref<2x1x32xf32, #tpu.memory_space<vmem>>, %arg9: memref<8x32x8xf32, #tpu.memory_space<vmem>>, %arg10: memref<8x1x8xf32, #tpu.memory_space<vmem>>, %arg11: memref<8x32x8xf32, #tpu.memory_space<vmem>>, %arg12: memref<8x1x8xf32, #tpu.memory_space<vmem>>, %arg13: memref<8x32x8xf32, #tpu.memory_space<vmem>>, %arg14: memref<8x1x8xf32, #tpu.memory_space<vmem>>, %arg15: memref<8x8x32xf32, #tpu.memory_space<vmem>>, %arg16: memref<2x1x32xf32, #tpu.memory_space<vmem>>, %arg17: memref<2x1x32xf32, #tpu.memory_space<vmem>>, %arg18: memref<2x1x32xf32, #tpu.memory_space<vmem>>, %arg19: memref<2x32x128xf32, #tpu.memory_space<vmem>>, %arg20: memref<2x1x128xf32, #tpu.memory_space<vmem>>, %arg21: memref<2x128x32xf32, #tpu.memory_space<vmem>>, %arg22: memref<2x1x32xf32, #tpu.memory_space<vmem>>, %arg23: memref<1x32xf32, #tpu.memory_space<vmem>>, %arg24: memref<1x32xf32, #tpu.memory_space<vmem>>, %arg25: memref<32x64xf32, #tpu.memory_space<vmem>>, %arg26: memref<1x64xf32, #tpu.memory_space<vmem>>, %arg27: memref<1x64xf32, #tpu.memory_space<vmem>>, %arg28: memref<17x64xf32, #tpu.memory_space<vmem>>, %arg29: memref<2x1x64xf32, #tpu.memory_space<vmem>>, %arg30: memref<2x1x64xf32, #tpu.memory_space<vmem>>, %arg31: memref<8x64x16xf32, #tpu.memory_space<vmem>>, %arg32: memref<8x1x16xf32, #tpu.memory_space<vmem>>, %arg33: memref<8x64x16xf32, #tpu.memory_space<vmem>>, %arg34: memref<8x1x16xf32, #tpu.memory_space<vmem>>, %arg35: memref<8x64x16xf32, #tpu.memory_space<vmem>>, %arg36: memref<8x1x16xf32, #tpu.memory_space<vmem>>, %arg37: memref<8x16x64xf32, #tpu.memory_space<vmem>>, %arg38: memref<2x1x64xf32, #tpu.memory_space<vmem>>, %arg39: memref<2x1x64xf32, #tpu.memory_space<vmem>>, %arg40: memref<2x1x64xf32, #tpu.memory_space<vmem>>, %arg41: memref<2x64x256xf32, #tpu.memory_space<vmem>>, %arg42: memref<2x1x256xf32, #tpu.memory_space<vmem>>, %arg43: memref<2x256x64xf32, #tpu.memory_space<vmem>>, %arg44: memref<2x1x64xf32, #tpu.memory_space<vmem>>, %arg45: memref<1x64xf32, #tpu.memory_space<vmem>>, %arg46: memref<1x64xf32, #tpu.memory_space<vmem>>, %arg47: memref<64x32xf32, #tpu.memory_space<vmem>>, %arg48: memref<1x32xf32, #tpu.memory_space<vmem>>, %arg49: memref<1x16x32xf32, #tpu.memory_space<vmem>>, %arg50: memref<1x16x1xf32, #tpu.memory_space<vmem>>) attributes {dimension_semantics = [#tpu.dimension_semantics<parallel>], iteration_bounds = array<i64: 2>, scalar_prefetch = 0 : i64, scratch_operands = 0 : i64, tpu.core_type = #tpu.core_type<tc>, window_params = [{transform_indices = @transform_0, window_bounds = array<i64: 1, 16, 32>}, {transform_indices = @transform_1, window_bounds = array<i64: 1, 4, 1>}, {transform_indices = @transform_2, window_bounds = array<i64: 1, 16, 1>}, {pipeline_mode = #tpu.pipeline_mode<synchronous>, transform_indices = @transform_3, window_bounds = array<i64: 16, 32>}, {pipeline_mode = #tpu.pipeline_mode<synchronous>, transform_indices = @transform_4, window_bounds = array<i64: 32, 32>}, {pipeline_mode = #tpu.pipeline_mode<synchronous>, transform_indices = @transform_5, window_bounds = array<i64: 1, 32>}, {pipeline_mode = #tpu.pipeline_mode<synchronous>, transform_indices = @transform_6, window_bounds = array<i64: 2, 1, 32>}, {pipeline_mode = #tpu.pipeline_mode<synchronous>, transform_indices = @transform_7, window_bounds = array<i64: 2, 1, 32>}, {pipeline_mode = #tpu.pipeline_mode<synchronous>, transform_indices = @transform_8, window_bounds = array<i64: 8, 32, 8>}, {pipeline_mode = #tpu.pipeline_mode<synchronous>, transform_indices = @transform_9, window_bounds = array<i64: 8, 1, 8>}, {pipeline_mode = #tpu.pipeline_mode<synchronous>, transform_indices = @transform_10, window_bounds = array<i64: 8, 32, 8>}, {pipeline_mode = #tpu.pipeline_mode<synchronous>, transform_indices = @transform_11, window_bounds = array<i64: 8, 1, 8>}, {pipeline_mode = #tpu.pipeline_mode<synchronous>, transform_indices = @transform_12, window_bounds = array<i64: 8, 32, 8>}, {pipeline_mode = #tpu.pipeline_mode<synchronous>, transform_indices = @transform_13, window_bounds = array<i64: 8, 1, 8>}, {pipeline_mode = #tpu.pipeline_mode<synchronous>, transform_indices = @transform_14, window_bounds = array<i64: 8, 8, 32>}, {pipeline_mode = #tpu.pipeline_mode<synchronous>, transform_indices = @transform_15, window_bounds = array<i64: 2, 1, 32>}, {pipeline_mode = #tpu.pipeline_mode<synchronous>, transform_indices = @transform_16, window_bounds = array<i64: 2, 1, 32>}, {pipeline_mode = #tpu.pipeline_mode<synchronous>, transform_indices = @transform_17, window_bounds = array<i64: 2, 1, 32>}, {pipeline_mode = #tpu.pipeline_mode<synchronous>, transform_indices = @transform_18, window_bounds = array<i64: 2, 32, 128>}, {pipeline_mode = #tpu.pipeline_mode<synchronous>, transform_indices = @transform_19, window_bounds = array<i64: 2, 1, 128>}, {pipeline_mode = #tpu.pipeline_mode<synchronous>, transform_indices = @transform_20, window_bounds = array<i64: 2, 128, 32>}, {pipeline_mode = #tpu.pipeline_mode<synchronous>, transform_indices = @transform_21, window_bounds = array<i64: 2, 1, 32>}, {pipeline_mode = #tpu.pipeline_mode<synchronous>, transform_indices = @transform_22, window_bounds = array<i64: 1, 32>}, {pipeline_mode = #tpu.pipeline_mode<synchronous>, transform_indices = @transform_23, window_bounds = array<i64: 1, 32>}, {pipeline_mode = #tpu.pipeline_mode<synchronous>, transform_indices = @transform_24, window_bounds = array<i64: 32, 64>}, {pipeline_mode = #tpu.pipeline_mode<synchronous>, transform_indices = @transform_25, window_bounds = array<i64: 1, 64>}, {pipeline_mode = #tpu.pipeline_mode<synchronous>, transform_indices = @transform_26, window_bounds = array<i64: 1, 64>}, {pipeline_mode = #tpu.pipeline_mode<synchronous>, transform_indices = @transform_27, window_bounds = array<i64: 17, 64>}, {pipeline_mode = #tpu.pipeline_mode<synchronous>, transform_indices = @transform_28, window_bounds = array<i64: 2, 1, 64>}, {pipeline_mode = #tpu.pipeline_mode<synchronous>, transform_indices = @transform_29, window_bounds = array<i64: 2, 1, 64>}, {pipeline_mode = #tpu.pipeline_mode<synchronous>, transform_indices = @transform_30, window_bounds = array<i64: 8, 64, 16>}, {pipeline_mode = #tpu.pipeline_mode<synchronous>, transform_indices = @transform_31, window_bounds = array<i64: 8, 1, 16>}, {pipeline_mode = #tpu.pipeline_mode<synchronous>, transform_indices = @transform_32, window_bounds = array<i64: 8, 64, 16>}, {pipeline_mode = #tpu.pipeline_mode<synchronous>, transform_indices = @transform_33, window_bounds = array<i64: 8, 1, 16>}, {pipeline_mode = #tpu.pipeline_mode<synchronous>, transform_indices = @transform_34, window_bounds = array<i64: 8, 64, 16>}, {pipeline_mode = #tpu.pipeline_mode<synchronous>, transform_indices = @transform_35, window_bounds = array<i64: 8, 1, 16>}, {pipeline_mode = #tpu.pipeline_mode<synchronous>, transform_indices = @transform_36, window_bounds = array<i64: 8, 16, 64>}, {pipeline_mode = #tpu.pipeline_mode<synchronous>, transform_indices = @transform_37, window_bounds = array<i64: 2, 1, 64>}, {pipeline_mode = #tpu.pipeline_mode<synchronous>, transform_indices = @transform_38, window_bounds = array<i64: 2, 1, 64>}, {pipeline_mode = #tpu.pipeline_mode<synchronous>, transform_indices = @transform_39, window_bounds = array<i64: 2, 1, 64>}, {pipeline_mode = #tpu.pipeline_mode<synchronous>, transform_indices = @transform_40, window_bounds = array<i64: 2, 64, 256>}, {pipeline_mode = #tpu.pipeline_mode<synchronous>, transform_indices = @transform_41, window_bounds = array<i64: 2, 1, 256>}, {pipeline_mode = #tpu.pipeline_mode<synchronous>, transform_indices = @transform_42, window_bounds = array<i64: 2, 256, 64>}, {pipeline_mode = #tpu.pipeline_mode<synchronous>, transform_indices = @transform_43, window_bounds = array<i64: 2, 1, 64>}, {pipeline_mode = #tpu.pipeline_mode<synchronous>, transform_indices = @transform_44, window_bounds = array<i64: 1, 64>}, {pipeline_mode = #tpu.pipeline_mode<synchronous>, transform_indices = @transform_45, window_bounds = array<i64: 1, 64>}, {pipeline_mode = #tpu.pipeline_mode<synchronous>, transform_indices = @transform_46, window_bounds = array<i64: 64, 32>}, {pipeline_mode = #tpu.pipeline_mode<synchronous>, transform_indices = @transform_47, window_bounds = array<i64: 1, 32>}, {transform_indices = @transform_48, window_bounds = array<i64: 1, 16, 32>}, {transform_indices = @transform_49, window_bounds = array<i64: 1, 16, 1>}]} {
    %c0 = arith.constant 0 : index
    %c0_0 = arith.constant 0 : index
    %c0_1 = arith.constant 0 : index
    %0 = vector.load %arg1[%c0, %c0_0, %c0_1] : memref<1x16x32xf32, #tpu.memory_space<vmem>>, vector<1x16x32xf32>
    %1 = vector.shape_cast %0 : vector<1x16x32xf32> to vector<16x32xf32>
    %c0_2 = arith.constant 0 : index
    %c0_3 = arith.constant 0 : index
    %2 = vector.load %arg5[%c0_2, %c0_3] : memref<32x32xf32, #tpu.memory_space<vmem>>, vector<32x32xf32>
    %cst = arith.constant dense<0.000000e+00> : vector<16x32xf32>
    %3 = tpu.matmul %1, %2, %cst {dimension_numbers = #tpu.dot_dimension_numbers<[1], [0], [0], [1], [0, 0, 1, 1], [], []>} : vector<16x32xf32>, vector<32x32xf32>, vector<16x32xf32> -> vector<16x32xf32>
    %c0_4 = arith.constant 0 : index
    %c0_5 = arith.constant 0 : index
    %4 = vector.load %arg6[%c0_4, %c0_5] : memref<1x32xf32, #tpu.memory_space<vmem>>, vector<1x32xf32>
    %5 = vector.broadcast %4 : vector<1x32xf32> to vector<16x32xf32>
    %6 = arith.addf %3, %5 : vector<16x32xf32>
    %c0_6 = arith.constant 0 : index
    %c0_7 = arith.constant 0 : index
    %7 = vector.load %arg4[%c0_6, %c0_7] : memref<16x32xf32, #tpu.memory_space<vmem>>, vector<16x32xf32>
    %8 = arith.addf %6, %7 : vector<16x32xf32>
    %c0_8 = arith.constant 0 : index
    %c0_9 = arith.constant 0 : index
    %c0_10 = arith.constant 0 : index
    %9 = vector.load %arg2[%c0_8, %c0_9, %c0_10] : memref<1x4x1xi32, #tpu.memory_space<vmem>>, vector<1x4x1xi32>
    %10 = vector.shape_cast %9 : vector<1x4x1xi32> to vector<4x1xi32>
    %11 = tpu.iota {dimensions = array<i32: 1>} : vector<4x16xi32>
    %12 = vector.broadcast %10 : vector<4x1xi32> to vector<4x16xi32>
    %13 = arith.cmpi eq, %12, %11 : vector<4x16xi32>
    %14 = arith.extui %13 : vector<4x16xi1> to vector<4x16xi32>
    %15 = arith.sitofp %14 : vector<4x16xi32> to vector<4x16xf32>
    %cst_11 = arith.constant dense<0.000000e+00> : vector<4x32xf32>
    %16 = tpu.matmul %15, %8, %cst_11 {dimension_numbers = #tpu.dot_dimension_numbers<[1], [0], [0], [1], [0, 0, 1, 1], [], []>} : vector<4x16xf32>, vector<16x32xf32>, vector<4x32xf32> -> vector<4x32xf32>
    %c0_12 = arith.constant 0 : index
    %c0_13 = arith.constant 0 : index
    %c0_14 = arith.constant 0 : index
    %17 = vector.load %arg7[%c0_12, %c0_13, %c0_14] : memref<2x1x32xf32, #tpu.memory_space<vmem>>, vector<1x1x32xf32>
    %18 = vector.shape_cast %17 : vector<1x1x32xf32> to vector<1x32xf32>
    %c0_15 = arith.constant 0 : index
    %c0_16 = arith.constant 0 : index
    %c0_17 = arith.constant 0 : index
    %19 = vector.load %arg8[%c0_15, %c0_16, %c0_17] : memref<2x1x32xf32, #tpu.memory_space<vmem>>, vector<1x1x32xf32>
    %20 = vector.shape_cast %19 : vector<1x1x32xf32> to vector<1x32xf32>
    %cst_18 = arith.constant dense<0.000000e+00> : vector<4xf32>
    %21 = vector.multi_reduction <add>, %16, %cst_18 [1] : vector<4x32xf32> to vector<4xf32>
    %22 = vector.shape_cast %21 : vector<4xf32> to vector<4x1xf32>
    %cst_19 = arith.constant 3.200000e+01 : f32
    %23 = vector.broadcast %cst_19 : f32 to vector<4x1xf32>
    %24 = arith.divf %22, %23 : vector<4x1xf32>
    %25 = vector.broadcast %24 : vector<4x1xf32> to vector<4x32xf32>
    %26 = arith.subf %16, %25 : vector<4x32xf32>
    %27 = arith.mulf %26, %26 : vector<4x32xf32>
    %cst_20 = arith.constant dense<0.000000e+00> : vector<4xf32>
    %28 = vector.multi_reduction <add>, %27, %cst_20 [1] : vector<4x32xf32> to vector<4xf32>
    %29 = vector.shape_cast %28 : vector<4xf32> to vector<4x1xf32>
    %cst_21 = arith.constant 3.200000e+01 : f32
    %30 = vector.broadcast %cst_21 : f32 to vector<4x1xf32>
    %31 = arith.divf %29, %30 : vector<4x1xf32>
    %32 = vector.broadcast %24 : vector<4x1xf32> to vector<4x32xf32>
    %33 = arith.subf %16, %32 : vector<4x32xf32>
    %cst_22 = arith.constant 9.99999974E-6 : f32
    %34 = vector.broadcast %cst_22 : f32 to vector<4x1xf32>
    %35 = arith.addf %31, %34 : vector<4x1xf32>
    %36 = math.rsqrt %35 : vector<4x1xf32>
    %37 = vector.broadcast %36 : vector<4x1xf32> to vector<4x32xf32>
    %38 = arith.mulf %33, %37 : vector<4x32xf32>
    %39 = vector.broadcast %18 : vector<1x32xf32> to vector<4x32xf32>
    %40 = arith.mulf %38, %39 : vector<4x32xf32>
    %41 = vector.broadcast %20 : vector<1x32xf32> to vector<4x32xf32>
    %42 = arith.addf %40, %41 : vector<4x32xf32>
    %c0_23 = arith.constant 0 : index
    %c0_24 = arith.constant 0 : index
    %c0_25 = arith.constant 0 : index
    %43 = vector.load %arg9[%c0_23, %c0_24, %c0_25] : memref<8x32x8xf32, #tpu.memory_space<vmem>>, vector<1x32x8xf32>
    %44 = vector.shape_cast %43 : vector<1x32x8xf32> to vector<32x8xf32>
    %cst_26 = arith.constant dense<0.000000e+00> : vector<4x8xf32>
    %45 = tpu.matmul %42, %44, %cst_26 {dimension_numbers = #tpu.dot_dimension_numbers<[1], [0], [0], [1], [0, 0, 1, 1], [], []>} : vector<4x32xf32>, vector<32x8xf32>, vector<4x8xf32> -> vector<4x8xf32>
    %c0_27 = arith.constant 0 : index
    %c0_28 = arith.constant 0 : index
    %c0_29 = arith.constant 0 : index
    %46 = vector.load %arg10[%c0_27, %c0_28, %c0_29] : memref<8x1x8xf32, #tpu.memory_space<vmem>>, vector<1x1x8xf32>
    %47 = vector.shape_cast %46 : vector<1x1x8xf32> to vector<1x8xf32>
    %48 = vector.broadcast %47 : vector<1x8xf32> to vector<4x8xf32>
    %49 = arith.addf %45, %48 : vector<4x8xf32>
    %c0_30 = arith.constant 0 : index
    %c0_31 = arith.constant 0 : index
    %c0_32 = arith.constant 0 : index
    %50 = vector.load %arg11[%c0_30, %c0_31, %c0_32] : memref<8x32x8xf32, #tpu.memory_space<vmem>>, vector<1x32x8xf32>
    %51 = vector.shape_cast %50 : vector<1x32x8xf32> to vector<32x8xf32>
    %cst_33 = arith.constant dense<0.000000e+00> : vector<4x8xf32>
    %52 = tpu.matmul %42, %51, %cst_33 {dimension_numbers = #tpu.dot_dimension_numbers<[1], [0], [0], [1], [0, 0, 1, 1], [], []>} : vector<4x32xf32>, vector<32x8xf32>, vector<4x8xf32> -> vector<4x8xf32>
    %c0_34 = arith.constant 0 : index
    %c0_35 = arith.constant 0 : index
    %c0_36 = arith.constant 0 : index
    %53 = vector.load %arg12[%c0_34, %c0_35, %c0_36] : memref<8x1x8xf32, #tpu.memory_space<vmem>>, vector<1x1x8xf32>
    %54 = vector.shape_cast %53 : vector<1x1x8xf32> to vector<1x8xf32>
    %55 = vector.broadcast %54 : vector<1x8xf32> to vector<4x8xf32>
    %56 = arith.addf %52, %55 : vector<4x8xf32>
    %c0_37 = arith.constant 0 : index
    %c0_38 = arith.constant 0 : index
    %c0_39 = arith.constant 0 : index
    %57 = vector.load %arg13[%c0_37, %c0_38, %c0_39] : memref<8x32x8xf32, #tpu.memory_space<vmem>>, vector<1x32x8xf32>
    %58 = vector.shape_cast %57 : vector<1x32x8xf32> to vector<32x8xf32>
    %cst_40 = arith.constant dense<0.000000e+00> : vector<4x8xf32>
    %59 = tpu.matmul %42, %58, %cst_40 {dimension_numbers = #tpu.dot_dimension_numbers<[1], [0], [0], [1], [0, 0, 1, 1], [], []>} : vector<4x32xf32>, vector<32x8xf32>, vector<4x8xf32> -> vector<4x8xf32>
    %c0_41 = arith.constant 0 : index
    %c0_42 = arith.constant 0 : index
    %c0_43 = arith.constant 0 : index
    %60 = vector.load %arg14[%c0_41, %c0_42, %c0_43] : memref<8x1x8xf32, #tpu.memory_space<vmem>>, vector<1x1x8xf32>
    %61 = vector.shape_cast %60 : vector<1x1x8xf32> to vector<1x8xf32>
    %62 = vector.broadcast %61 : vector<1x8xf32> to vector<4x8xf32>
    %63 = arith.addf %59, %62 : vector<4x8xf32>
    %cst_44 = arith.constant dense<0.000000e+00> : vector<4x4xf32>
    %64 = tpu.matmul %49, %56, %cst_44 {dimension_numbers = #tpu.dot_dimension_numbers<[1], [1], [0], [0], [0, 0, 1, 0], [], []>} : vector<4x8xf32>, vector<4x8xf32>, vector<4x4xf32> -> vector<4x4xf32>
    %cst_45 = arith.constant 0.353553385 : f32
    %65 = vector.broadcast %cst_45 : f32 to vector<4x4xf32>
    %66 = arith.mulf %64, %65 : vector<4x4xf32>
    %cst_46 = arith.constant dense<0xFF800000> : vector<4xf32>
    %67 = vector.multi_reduction <maximumf>, %66, %cst_46 [1] : vector<4x4xf32> to vector<4xf32>
    %68 = vector.shape_cast %67 : vector<4xf32> to vector<4x1xf32>
    %69 = vector.broadcast %68 : vector<4x1xf32> to vector<4x4xf32>
    %70 = arith.subf %66, %69 : vector<4x4xf32>
    %71 = math.exp %70 : vector<4x4xf32>
    %cst_47 = arith.constant dense<0.000000e+00> : vector<4xf32>
    %72 = vector.multi_reduction <add>, %71, %cst_47 [1] : vector<4x4xf32> to vector<4xf32>
    %73 = vector.shape_cast %72 : vector<4xf32> to vector<4x1xf32>
    %74 = tpu.reciprocal %73 {approx = true} : vector<4x1xf32> -> vector<4x1xf32>
    %75 = vector.broadcast %74 : vector<4x1xf32> to vector<4x4xf32>
    %76 = arith.mulf %71, %75 : vector<4x4xf32>
    %cst_48 = arith.constant dense<0.000000e+00> : vector<4x8xf32>
    %77 = tpu.matmul %76, %63, %cst_48 {dimension_numbers = #tpu.dot_dimension_numbers<[1], [0], [0], [1], [0, 0, 1, 1], [], []>} : vector<4x4xf32>, vector<4x8xf32>, vector<4x8xf32> -> vector<4x8xf32>
    %c0_49 = arith.constant 0 : index
    %c0_50 = arith.constant 0 : index
    %c0_51 = arith.constant 0 : index
    %78 = vector.load %arg15[%c0_49, %c0_50, %c0_51] : memref<8x8x32xf32, #tpu.memory_space<vmem>>, vector<1x8x32xf32>
    %79 = vector.shape_cast %78 : vector<1x8x32xf32> to vector<8x32xf32>
    %cst_52 = arith.constant dense<0.000000e+00> : vector<4x32xf32>
    %80 = tpu.matmul %77, %79, %cst_52 {dimension_numbers = #tpu.dot_dimension_numbers<[1], [0], [0], [1], [0, 0, 1, 1], [], []>} : vector<4x8xf32>, vector<8x32xf32>, vector<4x32xf32> -> vector<4x32xf32>
    %c1 = arith.constant 1 : index
    %c0_53 = arith.constant 0 : index
    %c0_54 = arith.constant 0 : index
    %81 = vector.load %arg9[%c1, %c0_53, %c0_54] : memref<8x32x8xf32, #tpu.memory_space<vmem>>, vector<1x32x8xf32>
    %82 = vector.shape_cast %81 : vector<1x32x8xf32> to vector<32x8xf32>
    %cst_55 = arith.constant dense<0.000000e+00> : vector<4x8xf32>
    %83 = tpu.matmul %42, %82, %cst_55 {dimension_numbers = #tpu.dot_dimension_numbers<[1], [0], [0], [1], [0, 0, 1, 1], [], []>} : vector<4x32xf32>, vector<32x8xf32>, vector<4x8xf32> -> vector<4x8xf32>
    %c1_56 = arith.constant 1 : index
    %c0_57 = arith.constant 0 : index
    %c0_58 = arith.constant 0 : index
    %84 = vector.load %arg10[%c1_56, %c0_57, %c0_58] : memref<8x1x8xf32, #tpu.memory_space<vmem>>, vector<1x1x8xf32>
    %85 = vector.shape_cast %84 : vector<1x1x8xf32> to vector<1x8xf32>
    %86 = vector.broadcast %85 : vector<1x8xf32> to vector<4x8xf32>
    %87 = arith.addf %83, %86 : vector<4x8xf32>
    %c1_59 = arith.constant 1 : index
    %c0_60 = arith.constant 0 : index
    %c0_61 = arith.constant 0 : index
    %88 = vector.load %arg11[%c1_59, %c0_60, %c0_61] : memref<8x32x8xf32, #tpu.memory_space<vmem>>, vector<1x32x8xf32>
    %89 = vector.shape_cast %88 : vector<1x32x8xf32> to vector<32x8xf32>
    %cst_62 = arith.constant dense<0.000000e+00> : vector<4x8xf32>
    %90 = tpu.matmul %42, %89, %cst_62 {dimension_numbers = #tpu.dot_dimension_numbers<[1], [0], [0], [1], [0, 0, 1, 1], [], []>} : vector<4x32xf32>, vector<32x8xf32>, vector<4x8xf32> -> vector<4x8xf32>
    %c1_63 = arith.constant 1 : index
    %c0_64 = arith.constant 0 : index
    %c0_65 = arith.constant 0 : index
    %91 = vector.load %arg12[%c1_63, %c0_64, %c0_65] : memref<8x1x8xf32, #tpu.memory_space<vmem>>, vector<1x1x8xf32>
    %92 = vector.shape_cast %91 : vector<1x1x8xf32> to vector<1x8xf32>
    %93 = vector.broadcast %92 : vector<1x8xf32> to vector<4x8xf32>
    %94 = arith.addf %90, %93 : vector<4x8xf32>
    %c1_66 = arith.constant 1 : index
    %c0_67 = arith.constant 0 : index
    %c0_68 = arith.constant 0 : index
    %95 = vector.load %arg13[%c1_66, %c0_67, %c0_68] : memref<8x32x8xf32, #tpu.memory_space<vmem>>, vector<1x32x8xf32>
    %96 = vector.shape_cast %95 : vector<1x32x8xf32> to vector<32x8xf32>
    %cst_69 = arith.constant dense<0.000000e+00> : vector<4x8xf32>
    %97 = tpu.matmul %42, %96, %cst_69 {dimension_numbers = #tpu.dot_dimension_numbers<[1], [0], [0], [1], [0, 0, 1, 1], [], []>} : vector<4x32xf32>, vector<32x8xf32>, vector<4x8xf32> -> vector<4x8xf32>
    %c1_70 = arith.constant 1 : index
    %c0_71 = arith.constant 0 : index
    %c0_72 = arith.constant 0 : index
    %98 = vector.load %arg14[%c1_70, %c0_71, %c0_72] : memref<8x1x8xf32, #tpu.memory_space<vmem>>, vector<1x1x8xf32>
    %99 = vector.shape_cast %98 : vector<1x1x8xf32> to vector<1x8xf32>
    %100 = vector.broadcast %99 : vector<1x8xf32> to vector<4x8xf32>
    %101 = arith.addf %97, %100 : vector<4x8xf32>
    %cst_73 = arith.constant dense<0.000000e+00> : vector<4x4xf32>
    %102 = tpu.matmul %87, %94, %cst_73 {dimension_numbers = #tpu.dot_dimension_numbers<[1], [1], [0], [0], [0, 0, 1, 0], [], []>} : vector<4x8xf32>, vector<4x8xf32>, vector<4x4xf32> -> vector<4x4xf32>
    %cst_74 = arith.constant 0.353553385 : f32
    %103 = vector.broadcast %cst_74 : f32 to vector<4x4xf32>
    %104 = arith.mulf %102, %103 : vector<4x4xf32>
    %cst_75 = arith.constant dense<0xFF800000> : vector<4xf32>
    %105 = vector.multi_reduction <maximumf>, %104, %cst_75 [1] : vector<4x4xf32> to vector<4xf32>
    %106 = vector.shape_cast %105 : vector<4xf32> to vector<4x1xf32>
    %107 = vector.broadcast %106 : vector<4x1xf32> to vector<4x4xf32>
    %108 = arith.subf %104, %107 : vector<4x4xf32>
    %109 = math.exp %108 : vector<4x4xf32>
    %cst_76 = arith.constant dense<0.000000e+00> : vector<4xf32>
    %110 = vector.multi_reduction <add>, %109, %cst_76 [1] : vector<4x4xf32> to vector<4xf32>
    %111 = vector.shape_cast %110 : vector<4xf32> to vector<4x1xf32>
    %112 = tpu.reciprocal %111 {approx = true} : vector<4x1xf32> -> vector<4x1xf32>
    %113 = vector.broadcast %112 : vector<4x1xf32> to vector<4x4xf32>
    %114 = arith.mulf %109, %113 : vector<4x4xf32>
    %cst_77 = arith.constant dense<0.000000e+00> : vector<4x8xf32>
    %115 = tpu.matmul %114, %101, %cst_77 {dimension_numbers = #tpu.dot_dimension_numbers<[1], [0], [0], [1], [0, 0, 1, 1], [], []>} : vector<4x4xf32>, vector<4x8xf32>, vector<4x8xf32> -> vector<4x8xf32>
    %c1_78 = arith.constant 1 : index
    %c0_79 = arith.constant 0 : index
    %c0_80 = arith.constant 0 : index
    %116 = vector.load %arg15[%c1_78, %c0_79, %c0_80] : memref<8x8x32xf32, #tpu.memory_space<vmem>>, vector<1x8x32xf32>
    %117 = vector.shape_cast %116 : vector<1x8x32xf32> to vector<8x32xf32>
    %cst_81 = arith.constant dense<0.000000e+00> : vector<4x32xf32>
    %118 = tpu.matmul %115, %117, %cst_81 {dimension_numbers = #tpu.dot_dimension_numbers<[1], [0], [0], [1], [0, 0, 1, 1], [], []>} : vector<4x8xf32>, vector<8x32xf32>, vector<4x32xf32> -> vector<4x32xf32>
    %119 = arith.addf %80, %118 : vector<4x32xf32>
    %c2 = arith.constant 2 : index
    %c0_82 = arith.constant 0 : index
    %c0_83 = arith.constant 0 : index
    %120 = vector.load %arg9[%c2, %c0_82, %c0_83] : memref<8x32x8xf32, #tpu.memory_space<vmem>>, vector<1x32x8xf32>
    %121 = vector.shape_cast %120 : vector<1x32x8xf32> to vector<32x8xf32>
    %cst_84 = arith.constant dense<0.000000e+00> : vector<4x8xf32>
    %122 = tpu.matmul %42, %121, %cst_84 {dimension_numbers = #tpu.dot_dimension_numbers<[1], [0], [0], [1], [0, 0, 1, 1], [], []>} : vector<4x32xf32>, vector<32x8xf32>, vector<4x8xf32> -> vector<4x8xf32>
    %c2_85 = arith.constant 2 : index
    %c0_86 = arith.constant 0 : index
    %c0_87 = arith.constant 0 : index
    %123 = vector.load %arg10[%c2_85, %c0_86, %c0_87] : memref<8x1x8xf32, #tpu.memory_space<vmem>>, vector<1x1x8xf32>
    %124 = vector.shape_cast %123 : vector<1x1x8xf32> to vector<1x8xf32>
    %125 = vector.broadcast %124 : vector<1x8xf32> to vector<4x8xf32>
    %126 = arith.addf %122, %125 : vector<4x8xf32>
    %c2_88 = arith.constant 2 : index
    %c0_89 = arith.constant 0 : index
    %c0_90 = arith.constant 0 : index
    %127 = vector.load %arg11[%c2_88, %c0_89, %c0_90] : memref<8x32x8xf32, #tpu.memory_space<vmem>>, vector<1x32x8xf32>
    %128 = vector.shape_cast %127 : vector<1x32x8xf32> to vector<32x8xf32>
    %cst_91 = arith.constant dense<0.000000e+00> : vector<4x8xf32>
    %129 = tpu.matmul %42, %128, %cst_91 {dimension_numbers = #tpu.dot_dimension_numbers<[1], [0], [0], [1], [0, 0, 1, 1], [], []>} : vector<4x32xf32>, vector<32x8xf32>, vector<4x8xf32> -> vector<4x8xf32>
    %c2_92 = arith.constant 2 : index
    %c0_93 = arith.constant 0 : index
    %c0_94 = arith.constant 0 : index
    %130 = vector.load %arg12[%c2_92, %c0_93, %c0_94] : memref<8x1x8xf32, #tpu.memory_space<vmem>>, vector<1x1x8xf32>
    %131 = vector.shape_cast %130 : vector<1x1x8xf32> to vector<1x8xf32>
    %132 = vector.broadcast %131 : vector<1x8xf32> to vector<4x8xf32>
    %133 = arith.addf %129, %132 : vector<4x8xf32>
    %c2_95 = arith.constant 2 : index
    %c0_96 = arith.constant 0 : index
    %c0_97 = arith.constant 0 : index
    %134 = vector.load %arg13[%c2_95, %c0_96, %c0_97] : memref<8x32x8xf32, #tpu.memory_space<vmem>>, vector<1x32x8xf32>
    %135 = vector.shape_cast %134 : vector<1x32x8xf32> to vector<32x8xf32>
    %cst_98 = arith.constant dense<0.000000e+00> : vector<4x8xf32>
    %136 = tpu.matmul %42, %135, %cst_98 {dimension_numbers = #tpu.dot_dimension_numbers<[1], [0], [0], [1], [0, 0, 1, 1], [], []>} : vector<4x32xf32>, vector<32x8xf32>, vector<4x8xf32> -> vector<4x8xf32>
    %c2_99 = arith.constant 2 : index
    %c0_100 = arith.constant 0 : index
    %c0_101 = arith.constant 0 : index
    %137 = vector.load %arg14[%c2_99, %c0_100, %c0_101] : memref<8x1x8xf32, #tpu.memory_space<vmem>>, vector<1x1x8xf32>
    %138 = vector.shape_cast %137 : vector<1x1x8xf32> to vector<1x8xf32>
    %139 = vector.broadcast %138 : vector<1x8xf32> to vector<4x8xf32>
    %140 = arith.addf %136, %139 : vector<4x8xf32>
    %cst_102 = arith.constant dense<0.000000e+00> : vector<4x4xf32>
    %141 = tpu.matmul %126, %133, %cst_102 {dimension_numbers = #tpu.dot_dimension_numbers<[1], [1], [0], [0], [0, 0, 1, 0], [], []>} : vector<4x8xf32>, vector<4x8xf32>, vector<4x4xf32> -> vector<4x4xf32>
    %cst_103 = arith.constant 0.353553385 : f32
    %142 = vector.broadcast %cst_103 : f32 to vector<4x4xf32>
    %143 = arith.mulf %141, %142 : vector<4x4xf32>
    %cst_104 = arith.constant dense<0xFF800000> : vector<4xf32>
    %144 = vector.multi_reduction <maximumf>, %143, %cst_104 [1] : vector<4x4xf32> to vector<4xf32>
    %145 = vector.shape_cast %144 : vector<4xf32> to vector<4x1xf32>
    %146 = vector.broadcast %145 : vector<4x1xf32> to vector<4x4xf32>
    %147 = arith.subf %143, %146 : vector<4x4xf32>
    %148 = math.exp %147 : vector<4x4xf32>
    %cst_105 = arith.constant dense<0.000000e+00> : vector<4xf32>
    %149 = vector.multi_reduction <add>, %148, %cst_105 [1] : vector<4x4xf32> to vector<4xf32>
    %150 = vector.shape_cast %149 : vector<4xf32> to vector<4x1xf32>
    %151 = tpu.reciprocal %150 {approx = true} : vector<4x1xf32> -> vector<4x1xf32>
    %152 = vector.broadcast %151 : vector<4x1xf32> to vector<4x4xf32>
    %153 = arith.mulf %148, %152 : vector<4x4xf32>
    %cst_106 = arith.constant dense<0.000000e+00> : vector<4x8xf32>
    %154 = tpu.matmul %153, %140, %cst_106 {dimension_numbers = #tpu.dot_dimension_numbers<[1], [0], [0], [1], [0, 0, 1, 1], [], []>} : vector<4x4xf32>, vector<4x8xf32>, vector<4x8xf32> -> vector<4x8xf32>
    %c2_107 = arith.constant 2 : index
    %c0_108 = arith.constant 0 : index
    %c0_109 = arith.constant 0 : index
    %155 = vector.load %arg15[%c2_107, %c0_108, %c0_109] : memref<8x8x32xf32, #tpu.memory_space<vmem>>, vector<1x8x32xf32>
    %156 = vector.shape_cast %155 : vector<1x8x32xf32> to vector<8x32xf32>
    %cst_110 = arith.constant dense<0.000000e+00> : vector<4x32xf32>
    %157 = tpu.matmul %154, %156, %cst_110 {dimension_numbers = #tpu.dot_dimension_numbers<[1], [0], [0], [1], [0, 0, 1, 1], [], []>} : vector<4x8xf32>, vector<8x32xf32>, vector<4x32xf32> -> vector<4x32xf32>
    %158 = arith.addf %119, %157 : vector<4x32xf32>
    %c3 = arith.constant 3 : index
    %c0_111 = arith.constant 0 : index
    %c0_112 = arith.constant 0 : index
    %159 = vector.load %arg9[%c3, %c0_111, %c0_112] : memref<8x32x8xf32, #tpu.memory_space<vmem>>, vector<1x32x8xf32>
    %160 = vector.shape_cast %159 : vector<1x32x8xf32> to vector<32x8xf32>
    %cst_113 = arith.constant dense<0.000000e+00> : vector<4x8xf32>
    %161 = tpu.matmul %42, %160, %cst_113 {dimension_numbers = #tpu.dot_dimension_numbers<[1], [0], [0], [1], [0, 0, 1, 1], [], []>} : vector<4x32xf32>, vector<32x8xf32>, vector<4x8xf32> -> vector<4x8xf32>
    %c3_114 = arith.constant 3 : index
    %c0_115 = arith.constant 0 : index
    %c0_116 = arith.constant 0 : index
    %162 = vector.load %arg10[%c3_114, %c0_115, %c0_116] : memref<8x1x8xf32, #tpu.memory_space<vmem>>, vector<1x1x8xf32>
    %163 = vector.shape_cast %162 : vector<1x1x8xf32> to vector<1x8xf32>
    %164 = vector.broadcast %163 : vector<1x8xf32> to vector<4x8xf32>
    %165 = arith.addf %161, %164 : vector<4x8xf32>
    %c3_117 = arith.constant 3 : index
    %c0_118 = arith.constant 0 : index
    %c0_119 = arith.constant 0 : index
    %166 = vector.load %arg11[%c3_117, %c0_118, %c0_119] : memref<8x32x8xf32, #tpu.memory_space<vmem>>, vector<1x32x8xf32>
    %167 = vector.shape_cast %166 : vector<1x32x8xf32> to vector<32x8xf32>
    %cst_120 = arith.constant dense<0.000000e+00> : vector<4x8xf32>
    %168 = tpu.matmul %42, %167, %cst_120 {dimension_numbers = #tpu.dot_dimension_numbers<[1], [0], [0], [1], [0, 0, 1, 1], [], []>} : vector<4x32xf32>, vector<32x8xf32>, vector<4x8xf32> -> vector<4x8xf32>
    %c3_121 = arith.constant 3 : index
    %c0_122 = arith.constant 0 : index
    %c0_123 = arith.constant 0 : index
    %169 = vector.load %arg12[%c3_121, %c0_122, %c0_123] : memref<8x1x8xf32, #tpu.memory_space<vmem>>, vector<1x1x8xf32>
    %170 = vector.shape_cast %169 : vector<1x1x8xf32> to vector<1x8xf32>
    %171 = vector.broadcast %170 : vector<1x8xf32> to vector<4x8xf32>
    %172 = arith.addf %168, %171 : vector<4x8xf32>
    %c3_124 = arith.constant 3 : index
    %c0_125 = arith.constant 0 : index
    %c0_126 = arith.constant 0 : index
    %173 = vector.load %arg13[%c3_124, %c0_125, %c0_126] : memref<8x32x8xf32, #tpu.memory_space<vmem>>, vector<1x32x8xf32>
    %174 = vector.shape_cast %173 : vector<1x32x8xf32> to vector<32x8xf32>
    %cst_127 = arith.constant dense<0.000000e+00> : vector<4x8xf32>
    %175 = tpu.matmul %42, %174, %cst_127 {dimension_numbers = #tpu.dot_dimension_numbers<[1], [0], [0], [1], [0, 0, 1, 1], [], []>} : vector<4x32xf32>, vector<32x8xf32>, vector<4x8xf32> -> vector<4x8xf32>
    %c3_128 = arith.constant 3 : index
    %c0_129 = arith.constant 0 : index
    %c0_130 = arith.constant 0 : index
    %176 = vector.load %arg14[%c3_128, %c0_129, %c0_130] : memref<8x1x8xf32, #tpu.memory_space<vmem>>, vector<1x1x8xf32>
    %177 = vector.shape_cast %176 : vector<1x1x8xf32> to vector<1x8xf32>
    %178 = vector.broadcast %177 : vector<1x8xf32> to vector<4x8xf32>
    %179 = arith.addf %175, %178 : vector<4x8xf32>
    %cst_131 = arith.constant dense<0.000000e+00> : vector<4x4xf32>
    %180 = tpu.matmul %165, %172, %cst_131 {dimension_numbers = #tpu.dot_dimension_numbers<[1], [1], [0], [0], [0, 0, 1, 0], [], []>} : vector<4x8xf32>, vector<4x8xf32>, vector<4x4xf32> -> vector<4x4xf32>
    %cst_132 = arith.constant 0.353553385 : f32
    %181 = vector.broadcast %cst_132 : f32 to vector<4x4xf32>
    %182 = arith.mulf %180, %181 : vector<4x4xf32>
    %cst_133 = arith.constant dense<0xFF800000> : vector<4xf32>
    %183 = vector.multi_reduction <maximumf>, %182, %cst_133 [1] : vector<4x4xf32> to vector<4xf32>
    %184 = vector.shape_cast %183 : vector<4xf32> to vector<4x1xf32>
    %185 = vector.broadcast %184 : vector<4x1xf32> to vector<4x4xf32>
    %186 = arith.subf %182, %185 : vector<4x4xf32>
    %187 = math.exp %186 : vector<4x4xf32>
    %cst_134 = arith.constant dense<0.000000e+00> : vector<4xf32>
    %188 = vector.multi_reduction <add>, %187, %cst_134 [1] : vector<4x4xf32> to vector<4xf32>
    %189 = vector.shape_cast %188 : vector<4xf32> to vector<4x1xf32>
    %190 = tpu.reciprocal %189 {approx = true} : vector<4x1xf32> -> vector<4x1xf32>
    %191 = vector.broadcast %190 : vector<4x1xf32> to vector<4x4xf32>
    %192 = arith.mulf %187, %191 : vector<4x4xf32>
    %cst_135 = arith.constant dense<0.000000e+00> : vector<4x8xf32>
    %193 = tpu.matmul %192, %179, %cst_135 {dimension_numbers = #tpu.dot_dimension_numbers<[1], [0], [0], [1], [0, 0, 1, 1], [], []>} : vector<4x4xf32>, vector<4x8xf32>, vector<4x8xf32> -> vector<4x8xf32>
    %c3_136 = arith.constant 3 : index
    %c0_137 = arith.constant 0 : index
    %c0_138 = arith.constant 0 : index
    %194 = vector.load %arg15[%c3_136, %c0_137, %c0_138] : memref<8x8x32xf32, #tpu.memory_space<vmem>>, vector<1x8x32xf32>
    %195 = vector.shape_cast %194 : vector<1x8x32xf32> to vector<8x32xf32>
    %cst_139 = arith.constant dense<0.000000e+00> : vector<4x32xf32>
    %196 = tpu.matmul %193, %195, %cst_139 {dimension_numbers = #tpu.dot_dimension_numbers<[1], [0], [0], [1], [0, 0, 1, 1], [], []>} : vector<4x8xf32>, vector<8x32xf32>, vector<4x32xf32> -> vector<4x32xf32>
    %197 = arith.addf %158, %196 : vector<4x32xf32>
    %198 = arith.addf %16, %197 : vector<4x32xf32>
    %c0_140 = arith.constant 0 : index
    %c0_141 = arith.constant 0 : index
    %c0_142 = arith.constant 0 : index
    %199 = vector.load %arg16[%c0_140, %c0_141, %c0_142] : memref<2x1x32xf32, #tpu.memory_space<vmem>>, vector<1x1x32xf32>
    %200 = vector.shape_cast %199 : vector<1x1x32xf32> to vector<1x32xf32>
    %201 = vector.broadcast %200 : vector<1x32xf32> to vector<4x32xf32>
    %202 = arith.addf %198, %201 : vector<4x32xf32>
    %c0_143 = arith.constant 0 : index
    %c0_144 = arith.constant 0 : index
    %c0_145 = arith.constant 0 : index
    %203 = vector.load %arg17[%c0_143, %c0_144, %c0_145] : memref<2x1x32xf32, #tpu.memory_space<vmem>>, vector<1x1x32xf32>
    %204 = vector.shape_cast %203 : vector<1x1x32xf32> to vector<1x32xf32>
    %c0_146 = arith.constant 0 : index
    %c0_147 = arith.constant 0 : index
    %c0_148 = arith.constant 0 : index
    %205 = vector.load %arg18[%c0_146, %c0_147, %c0_148] : memref<2x1x32xf32, #tpu.memory_space<vmem>>, vector<1x1x32xf32>
    %206 = vector.shape_cast %205 : vector<1x1x32xf32> to vector<1x32xf32>
    %cst_149 = arith.constant dense<0.000000e+00> : vector<4xf32>
    %207 = vector.multi_reduction <add>, %202, %cst_149 [1] : vector<4x32xf32> to vector<4xf32>
    %208 = vector.shape_cast %207 : vector<4xf32> to vector<4x1xf32>
    %cst_150 = arith.constant 3.200000e+01 : f32
    %209 = vector.broadcast %cst_150 : f32 to vector<4x1xf32>
    %210 = arith.divf %208, %209 : vector<4x1xf32>
    %211 = vector.broadcast %210 : vector<4x1xf32> to vector<4x32xf32>
    %212 = arith.subf %202, %211 : vector<4x32xf32>
    %213 = arith.mulf %212, %212 : vector<4x32xf32>
    %cst_151 = arith.constant dense<0.000000e+00> : vector<4xf32>
    %214 = vector.multi_reduction <add>, %213, %cst_151 [1] : vector<4x32xf32> to vector<4xf32>
    %215 = vector.shape_cast %214 : vector<4xf32> to vector<4x1xf32>
    %cst_152 = arith.constant 3.200000e+01 : f32
    %216 = vector.broadcast %cst_152 : f32 to vector<4x1xf32>
    %217 = arith.divf %215, %216 : vector<4x1xf32>
    %218 = vector.broadcast %210 : vector<4x1xf32> to vector<4x32xf32>
    %219 = arith.subf %202, %218 : vector<4x32xf32>
    %cst_153 = arith.constant 9.99999974E-6 : f32
    %220 = vector.broadcast %cst_153 : f32 to vector<4x1xf32>
    %221 = arith.addf %217, %220 : vector<4x1xf32>
    %222 = math.rsqrt %221 : vector<4x1xf32>
    %223 = vector.broadcast %222 : vector<4x1xf32> to vector<4x32xf32>
    %224 = arith.mulf %219, %223 : vector<4x32xf32>
    %225 = vector.broadcast %204 : vector<1x32xf32> to vector<4x32xf32>
    %226 = arith.mulf %224, %225 : vector<4x32xf32>
    %227 = vector.broadcast %206 : vector<1x32xf32> to vector<4x32xf32>
    %228 = arith.addf %226, %227 : vector<4x32xf32>
    %c0_154 = arith.constant 0 : index
    %c0_155 = arith.constant 0 : index
    %c0_156 = arith.constant 0 : index
    %229 = vector.load %arg19[%c0_154, %c0_155, %c0_156] : memref<2x32x128xf32, #tpu.memory_space<vmem>>, vector<1x32x128xf32>
    %230 = vector.shape_cast %229 : vector<1x32x128xf32> to vector<32x128xf32>
    %cst_157 = arith.constant dense<0.000000e+00> : vector<4x128xf32>
    %231 = tpu.matmul %228, %230, %cst_157 {dimension_numbers = #tpu.dot_dimension_numbers<[1], [0], [0], [1], [0, 0, 1, 1], [], []>} : vector<4x32xf32>, vector<32x128xf32>, vector<4x128xf32> -> vector<4x128xf32>
    %c0_158 = arith.constant 0 : index
    %c0_159 = arith.constant 0 : index
    %c0_160 = arith.constant 0 : index
    %232 = vector.load %arg20[%c0_158, %c0_159, %c0_160] : memref<2x1x128xf32, #tpu.memory_space<vmem>>, vector<1x1x128xf32>
    %233 = vector.shape_cast %232 : vector<1x1x128xf32> to vector<1x128xf32>
    %234 = vector.broadcast %233 : vector<1x128xf32> to vector<4x128xf32>
    %235 = arith.addf %231, %234 : vector<4x128xf32>
    %cst_161 = arith.constant 5.000000e-01 : f32
    %236 = vector.broadcast %cst_161 : f32 to vector<4x128xf32>
    %237 = arith.mulf %236, %235 : vector<4x128xf32>
    %238 = arith.mulf %235, %235 : vector<4x128xf32>
    %239 = arith.mulf %235, %238 : vector<4x128xf32>
    %cst_162 = arith.constant 4.471500e-02 : f32
    %240 = vector.broadcast %cst_162 : f32 to vector<4x128xf32>
    %241 = arith.mulf %240, %239 : vector<4x128xf32>
    %242 = arith.addf %235, %241 : vector<4x128xf32>
    %cst_163 = arith.constant 0.797884583 : f32
    %243 = vector.broadcast %cst_163 : f32 to vector<4x128xf32>
    %244 = arith.mulf %243, %242 : vector<4x128xf32>
    %245 = math.tanh %244 : vector<4x128xf32>
    %cst_164 = arith.constant 1.000000e+00 : f32
    %246 = vector.broadcast %cst_164 : f32 to vector<4x128xf32>
    %247 = arith.addf %246, %245 : vector<4x128xf32>
    %248 = arith.mulf %237, %247 : vector<4x128xf32>
    %c0_165 = arith.constant 0 : index
    %c0_166 = arith.constant 0 : index
    %c0_167 = arith.constant 0 : index
    %249 = vector.load %arg21[%c0_165, %c0_166, %c0_167] : memref<2x128x32xf32, #tpu.memory_space<vmem>>, vector<1x128x32xf32>
    %250 = vector.shape_cast %249 : vector<1x128x32xf32> to vector<128x32xf32>
    %cst_168 = arith.constant dense<0.000000e+00> : vector<4x32xf32>
    %251 = tpu.matmul %248, %250, %cst_168 {dimension_numbers = #tpu.dot_dimension_numbers<[1], [0], [0], [1], [0, 0, 1, 1], [], []>} : vector<4x128xf32>, vector<128x32xf32>, vector<4x32xf32> -> vector<4x32xf32>
    %c0_169 = arith.constant 0 : index
    %c0_170 = arith.constant 0 : index
    %c0_171 = arith.constant 0 : index
    %252 = vector.load %arg22[%c0_169, %c0_170, %c0_171] : memref<2x1x32xf32, #tpu.memory_space<vmem>>, vector<1x1x32xf32>
    %253 = vector.shape_cast %252 : vector<1x1x32xf32> to vector<1x32xf32>
    %254 = vector.broadcast %253 : vector<1x32xf32> to vector<4x32xf32>
    %255 = arith.addf %251, %254 : vector<4x32xf32>
    %256 = arith.addf %202, %255 : vector<4x32xf32>
    %c1_172 = arith.constant 1 : index
    %c0_173 = arith.constant 0 : index
    %c0_174 = arith.constant 0 : index
    %257 = vector.load %arg7[%c1_172, %c0_173, %c0_174] : memref<2x1x32xf32, #tpu.memory_space<vmem>>, vector<1x1x32xf32>
    %258 = vector.shape_cast %257 : vector<1x1x32xf32> to vector<1x32xf32>
    %c1_175 = arith.constant 1 : index
    %c0_176 = arith.constant 0 : index
    %c0_177 = arith.constant 0 : index
    %259 = vector.load %arg8[%c1_175, %c0_176, %c0_177] : memref<2x1x32xf32, #tpu.memory_space<vmem>>, vector<1x1x32xf32>
    %260 = vector.shape_cast %259 : vector<1x1x32xf32> to vector<1x32xf32>
    %cst_178 = arith.constant dense<0.000000e+00> : vector<4xf32>
    %261 = vector.multi_reduction <add>, %256, %cst_178 [1] : vector<4x32xf32> to vector<4xf32>
    %262 = vector.shape_cast %261 : vector<4xf32> to vector<4x1xf32>
    %cst_179 = arith.constant 3.200000e+01 : f32
    %263 = vector.broadcast %cst_179 : f32 to vector<4x1xf32>
    %264 = arith.divf %262, %263 : vector<4x1xf32>
    %265 = vector.broadcast %264 : vector<4x1xf32> to vector<4x32xf32>
    %266 = arith.subf %256, %265 : vector<4x32xf32>
    %267 = arith.mulf %266, %266 : vector<4x32xf32>
    %cst_180 = arith.constant dense<0.000000e+00> : vector<4xf32>
    %268 = vector.multi_reduction <add>, %267, %cst_180 [1] : vector<4x32xf32> to vector<4xf32>
    %269 = vector.shape_cast %268 : vector<4xf32> to vector<4x1xf32>
    %cst_181 = arith.constant 3.200000e+01 : f32
    %270 = vector.broadcast %cst_181 : f32 to vector<4x1xf32>
    %271 = arith.divf %269, %270 : vector<4x1xf32>
    %272 = vector.broadcast %264 : vector<4x1xf32> to vector<4x32xf32>
    %273 = arith.subf %256, %272 : vector<4x32xf32>
    %cst_182 = arith.constant 9.99999974E-6 : f32
    %274 = vector.broadcast %cst_182 : f32 to vector<4x1xf32>
    %275 = arith.addf %271, %274 : vector<4x1xf32>
    %276 = math.rsqrt %275 : vector<4x1xf32>
    %277 = vector.broadcast %276 : vector<4x1xf32> to vector<4x32xf32>
    %278 = arith.mulf %273, %277 : vector<4x32xf32>
    %279 = vector.broadcast %258 : vector<1x32xf32> to vector<4x32xf32>
    %280 = arith.mulf %278, %279 : vector<4x32xf32>
    %281 = vector.broadcast %260 : vector<1x32xf32> to vector<4x32xf32>
    %282 = arith.addf %280, %281 : vector<4x32xf32>
    %c4 = arith.constant 4 : index
    %c0_183 = arith.constant 0 : index
    %c0_184 = arith.constant 0 : index
    %283 = vector.load %arg9[%c4, %c0_183, %c0_184] : memref<8x32x8xf32, #tpu.memory_space<vmem>>, vector<1x32x8xf32>
    %284 = vector.shape_cast %283 : vector<1x32x8xf32> to vector<32x8xf32>
    %cst_185 = arith.constant dense<0.000000e+00> : vector<4x8xf32>
    %285 = tpu.matmul %282, %284, %cst_185 {dimension_numbers = #tpu.dot_dimension_numbers<[1], [0], [0], [1], [0, 0, 1, 1], [], []>} : vector<4x32xf32>, vector<32x8xf32>, vector<4x8xf32> -> vector<4x8xf32>
    %c4_186 = arith.constant 4 : index
    %c0_187 = arith.constant 0 : index
    %c0_188 = arith.constant 0 : index
    %286 = vector.load %arg10[%c4_186, %c0_187, %c0_188] : memref<8x1x8xf32, #tpu.memory_space<vmem>>, vector<1x1x8xf32>
    %287 = vector.shape_cast %286 : vector<1x1x8xf32> to vector<1x8xf32>
    %288 = vector.broadcast %287 : vector<1x8xf32> to vector<4x8xf32>
    %289 = arith.addf %285, %288 : vector<4x8xf32>
    %c4_189 = arith.constant 4 : index
    %c0_190 = arith.constant 0 : index
    %c0_191 = arith.constant 0 : index
    %290 = vector.load %arg11[%c4_189, %c0_190, %c0_191] : memref<8x32x8xf32, #tpu.memory_space<vmem>>, vector<1x32x8xf32>
    %291 = vector.shape_cast %290 : vector<1x32x8xf32> to vector<32x8xf32>
    %cst_192 = arith.constant dense<0.000000e+00> : vector<4x8xf32>
    %292 = tpu.matmul %282, %291, %cst_192 {dimension_numbers = #tpu.dot_dimension_numbers<[1], [0], [0], [1], [0, 0, 1, 1], [], []>} : vector<4x32xf32>, vector<32x8xf32>, vector<4x8xf32> -> vector<4x8xf32>
    %c4_193 = arith.constant 4 : index
    %c0_194 = arith.constant 0 : index
    %c0_195 = arith.constant 0 : index
    %293 = vector.load %arg12[%c4_193, %c0_194, %c0_195] : memref<8x1x8xf32, #tpu.memory_space<vmem>>, vector<1x1x8xf32>
    %294 = vector.shape_cast %293 : vector<1x1x8xf32> to vector<1x8xf32>
    %295 = vector.broadcast %294 : vector<1x8xf32> to vector<4x8xf32>
    %296 = arith.addf %292, %295 : vector<4x8xf32>
    %c4_196 = arith.constant 4 : index
    %c0_197 = arith.constant 0 : index
    %c0_198 = arith.constant 0 : index
    %297 = vector.load %arg13[%c4_196, %c0_197, %c0_198] : memref<8x32x8xf32, #tpu.memory_space<vmem>>, vector<1x32x8xf32>
    %298 = vector.shape_cast %297 : vector<1x32x8xf32> to vector<32x8xf32>
    %cst_199 = arith.constant dense<0.000000e+00> : vector<4x8xf32>
    %299 = tpu.matmul %282, %298, %cst_199 {dimension_numbers = #tpu.dot_dimension_numbers<[1], [0], [0], [1], [0, 0, 1, 1], [], []>} : vector<4x32xf32>, vector<32x8xf32>, vector<4x8xf32> -> vector<4x8xf32>
    %c4_200 = arith.constant 4 : index
    %c0_201 = arith.constant 0 : index
    %c0_202 = arith.constant 0 : index
    %300 = vector.load %arg14[%c4_200, %c0_201, %c0_202] : memref<8x1x8xf32, #tpu.memory_space<vmem>>, vector<1x1x8xf32>
    %301 = vector.shape_cast %300 : vector<1x1x8xf32> to vector<1x8xf32>
    %302 = vector.broadcast %301 : vector<1x8xf32> to vector<4x8xf32>
    %303 = arith.addf %299, %302 : vector<4x8xf32>
    %cst_203 = arith.constant dense<0.000000e+00> : vector<4x4xf32>
    %304 = tpu.matmul %289, %296, %cst_203 {dimension_numbers = #tpu.dot_dimension_numbers<[1], [1], [0], [0], [0, 0, 1, 0], [], []>} : vector<4x8xf32>, vector<4x8xf32>, vector<4x4xf32> -> vector<4x4xf32>
    %cst_204 = arith.constant 0.353553385 : f32
    %305 = vector.broadcast %cst_204 : f32 to vector<4x4xf32>
    %306 = arith.mulf %304, %305 : vector<4x4xf32>
    %cst_205 = arith.constant dense<0xFF800000> : vector<4xf32>
    %307 = vector.multi_reduction <maximumf>, %306, %cst_205 [1] : vector<4x4xf32> to vector<4xf32>
    %308 = vector.shape_cast %307 : vector<4xf32> to vector<4x1xf32>
    %309 = vector.broadcast %308 : vector<4x1xf32> to vector<4x4xf32>
    %310 = arith.subf %306, %309 : vector<4x4xf32>
    %311 = math.exp %310 : vector<4x4xf32>
    %cst_206 = arith.constant dense<0.000000e+00> : vector<4xf32>
    %312 = vector.multi_reduction <add>, %311, %cst_206 [1] : vector<4x4xf32> to vector<4xf32>
    %313 = vector.shape_cast %312 : vector<4xf32> to vector<4x1xf32>
    %314 = tpu.reciprocal %313 {approx = true} : vector<4x1xf32> -> vector<4x1xf32>
    %315 = vector.broadcast %314 : vector<4x1xf32> to vector<4x4xf32>
    %316 = arith.mulf %311, %315 : vector<4x4xf32>
    %cst_207 = arith.constant dense<0.000000e+00> : vector<4x8xf32>
    %317 = tpu.matmul %316, %303, %cst_207 {dimension_numbers = #tpu.dot_dimension_numbers<[1], [0], [0], [1], [0, 0, 1, 1], [], []>} : vector<4x4xf32>, vector<4x8xf32>, vector<4x8xf32> -> vector<4x8xf32>
    %c4_208 = arith.constant 4 : index
    %c0_209 = arith.constant 0 : index
    %c0_210 = arith.constant 0 : index
    %318 = vector.load %arg15[%c4_208, %c0_209, %c0_210] : memref<8x8x32xf32, #tpu.memory_space<vmem>>, vector<1x8x32xf32>
    %319 = vector.shape_cast %318 : vector<1x8x32xf32> to vector<8x32xf32>
    %cst_211 = arith.constant dense<0.000000e+00> : vector<4x32xf32>
    %320 = tpu.matmul %317, %319, %cst_211 {dimension_numbers = #tpu.dot_dimension_numbers<[1], [0], [0], [1], [0, 0, 1, 1], [], []>} : vector<4x8xf32>, vector<8x32xf32>, vector<4x32xf32> -> vector<4x32xf32>
    %c5 = arith.constant 5 : index
    %c0_212 = arith.constant 0 : index
    %c0_213 = arith.constant 0 : index
    %321 = vector.load %arg9[%c5, %c0_212, %c0_213] : memref<8x32x8xf32, #tpu.memory_space<vmem>>, vector<1x32x8xf32>
    %322 = vector.shape_cast %321 : vector<1x32x8xf32> to vector<32x8xf32>
    %cst_214 = arith.constant dense<0.000000e+00> : vector<4x8xf32>
    %323 = tpu.matmul %282, %322, %cst_214 {dimension_numbers = #tpu.dot_dimension_numbers<[1], [0], [0], [1], [0, 0, 1, 1], [], []>} : vector<4x32xf32>, vector<32x8xf32>, vector<4x8xf32> -> vector<4x8xf32>
    %c5_215 = arith.constant 5 : index
    %c0_216 = arith.constant 0 : index
    %c0_217 = arith.constant 0 : index
    %324 = vector.load %arg10[%c5_215, %c0_216, %c0_217] : memref<8x1x8xf32, #tpu.memory_space<vmem>>, vector<1x1x8xf32>
    %325 = vector.shape_cast %324 : vector<1x1x8xf32> to vector<1x8xf32>
    %326 = vector.broadcast %325 : vector<1x8xf32> to vector<4x8xf32>
    %327 = arith.addf %323, %326 : vector<4x8xf32>
    %c5_218 = arith.constant 5 : index
    %c0_219 = arith.constant 0 : index
    %c0_220 = arith.constant 0 : index
    %328 = vector.load %arg11[%c5_218, %c0_219, %c0_220] : memref<8x32x8xf32, #tpu.memory_space<vmem>>, vector<1x32x8xf32>
    %329 = vector.shape_cast %328 : vector<1x32x8xf32> to vector<32x8xf32>
    %cst_221 = arith.constant dense<0.000000e+00> : vector<4x8xf32>
    %330 = tpu.matmul %282, %329, %cst_221 {dimension_numbers = #tpu.dot_dimension_numbers<[1], [0], [0], [1], [0, 0, 1, 1], [], []>} : vector<4x32xf32>, vector<32x8xf32>, vector<4x8xf32> -> vector<4x8xf32>
    %c5_222 = arith.constant 5 : index
    %c0_223 = arith.constant 0 : index
    %c0_224 = arith.constant 0 : index
    %331 = vector.load %arg12[%c5_222, %c0_223, %c0_224] : memref<8x1x8xf32, #tpu.memory_space<vmem>>, vector<1x1x8xf32>
    %332 = vector.shape_cast %331 : vector<1x1x8xf32> to vector<1x8xf32>
    %333 = vector.broadcast %332 : vector<1x8xf32> to vector<4x8xf32>
    %334 = arith.addf %330, %333 : vector<4x8xf32>
    %c5_225 = arith.constant 5 : index
    %c0_226 = arith.constant 0 : index
    %c0_227 = arith.constant 0 : index
    %335 = vector.load %arg13[%c5_225, %c0_226, %c0_227] : memref<8x32x8xf32, #tpu.memory_space<vmem>>, vector<1x32x8xf32>
    %336 = vector.shape_cast %335 : vector<1x32x8xf32> to vector<32x8xf32>
    %cst_228 = arith.constant dense<0.000000e+00> : vector<4x8xf32>
    %337 = tpu.matmul %282, %336, %cst_228 {dimension_numbers = #tpu.dot_dimension_numbers<[1], [0], [0], [1], [0, 0, 1, 1], [], []>} : vector<4x32xf32>, vector<32x8xf32>, vector<4x8xf32> -> vector<4x8xf32>
    %c5_229 = arith.constant 5 : index
    %c0_230 = arith.constant 0 : index
    %c0_231 = arith.constant 0 : index
    %338 = vector.load %arg14[%c5_229, %c0_230, %c0_231] : memref<8x1x8xf32, #tpu.memory_space<vmem>>, vector<1x1x8xf32>
    %339 = vector.shape_cast %338 : vector<1x1x8xf32> to vector<1x8xf32>
    %340 = vector.broadcast %339 : vector<1x8xf32> to vector<4x8xf32>
    %341 = arith.addf %337, %340 : vector<4x8xf32>
    %cst_232 = arith.constant dense<0.000000e+00> : vector<4x4xf32>
    %342 = tpu.matmul %327, %334, %cst_232 {dimension_numbers = #tpu.dot_dimension_numbers<[1], [1], [0], [0], [0, 0, 1, 0], [], []>} : vector<4x8xf32>, vector<4x8xf32>, vector<4x4xf32> -> vector<4x4xf32>
    %cst_233 = arith.constant 0.353553385 : f32
    %343 = vector.broadcast %cst_233 : f32 to vector<4x4xf32>
    %344 = arith.mulf %342, %343 : vector<4x4xf32>
    %cst_234 = arith.constant dense<0xFF800000> : vector<4xf32>
    %345 = vector.multi_reduction <maximumf>, %344, %cst_234 [1] : vector<4x4xf32> to vector<4xf32>
    %346 = vector.shape_cast %345 : vector<4xf32> to vector<4x1xf32>
    %347 = vector.broadcast %346 : vector<4x1xf32> to vector<4x4xf32>
    %348 = arith.subf %344, %347 : vector<4x4xf32>
    %349 = math.exp %348 : vector<4x4xf32>
    %cst_235 = arith.constant dense<0.000000e+00> : vector<4xf32>
    %350 = vector.multi_reduction <add>, %349, %cst_235 [1] : vector<4x4xf32> to vector<4xf32>
    %351 = vector.shape_cast %350 : vector<4xf32> to vector<4x1xf32>
    %352 = tpu.reciprocal %351 {approx = true} : vector<4x1xf32> -> vector<4x1xf32>
    %353 = vector.broadcast %352 : vector<4x1xf32> to vector<4x4xf32>
    %354 = arith.mulf %349, %353 : vector<4x4xf32>
    %cst_236 = arith.constant dense<0.000000e+00> : vector<4x8xf32>
    %355 = tpu.matmul %354, %341, %cst_236 {dimension_numbers = #tpu.dot_dimension_numbers<[1], [0], [0], [1], [0, 0, 1, 1], [], []>} : vector<4x4xf32>, vector<4x8xf32>, vector<4x8xf32> -> vector<4x8xf32>
    %c5_237 = arith.constant 5 : index
    %c0_238 = arith.constant 0 : index
    %c0_239 = arith.constant 0 : index
    %356 = vector.load %arg15[%c5_237, %c0_238, %c0_239] : memref<8x8x32xf32, #tpu.memory_space<vmem>>, vector<1x8x32xf32>
    %357 = vector.shape_cast %356 : vector<1x8x32xf32> to vector<8x32xf32>
    %cst_240 = arith.constant dense<0.000000e+00> : vector<4x32xf32>
    %358 = tpu.matmul %355, %357, %cst_240 {dimension_numbers = #tpu.dot_dimension_numbers<[1], [0], [0], [1], [0, 0, 1, 1], [], []>} : vector<4x8xf32>, vector<8x32xf32>, vector<4x32xf32> -> vector<4x32xf32>
    %359 = arith.addf %320, %358 : vector<4x32xf32>
    %c6 = arith.constant 6 : index
    %c0_241 = arith.constant 0 : index
    %c0_242 = arith.constant 0 : index
    %360 = vector.load %arg9[%c6, %c0_241, %c0_242] : memref<8x32x8xf32, #tpu.memory_space<vmem>>, vector<1x32x8xf32>
    %361 = vector.shape_cast %360 : vector<1x32x8xf32> to vector<32x8xf32>
    %cst_243 = arith.constant dense<0.000000e+00> : vector<4x8xf32>
    %362 = tpu.matmul %282, %361, %cst_243 {dimension_numbers = #tpu.dot_dimension_numbers<[1], [0], [0], [1], [0, 0, 1, 1], [], []>} : vector<4x32xf32>, vector<32x8xf32>, vector<4x8xf32> -> vector<4x8xf32>
    %c6_244 = arith.constant 6 : index
    %c0_245 = arith.constant 0 : index
    %c0_246 = arith.constant 0 : index
    %363 = vector.load %arg10[%c6_244, %c0_245, %c0_246] : memref<8x1x8xf32, #tpu.memory_space<vmem>>, vector<1x1x8xf32>
    %364 = vector.shape_cast %363 : vector<1x1x8xf32> to vector<1x8xf32>
    %365 = vector.broadcast %364 : vector<1x8xf32> to vector<4x8xf32>
    %366 = arith.addf %362, %365 : vector<4x8xf32>
    %c6_247 = arith.constant 6 : index
    %c0_248 = arith.constant 0 : index
    %c0_249 = arith.constant 0 : index
    %367 = vector.load %arg11[%c6_247, %c0_248, %c0_249] : memref<8x32x8xf32, #tpu.memory_space<vmem>>, vector<1x32x8xf32>
    %368 = vector.shape_cast %367 : vector<1x32x8xf32> to vector<32x8xf32>
    %cst_250 = arith.constant dense<0.000000e+00> : vector<4x8xf32>
    %369 = tpu.matmul %282, %368, %cst_250 {dimension_numbers = #tpu.dot_dimension_numbers<[1], [0], [0], [1], [0, 0, 1, 1], [], []>} : vector<4x32xf32>, vector<32x8xf32>, vector<4x8xf32> -> vector<4x8xf32>
    %c6_251 = arith.constant 6 : index
    %c0_252 = arith.constant 0 : index
    %c0_253 = arith.constant 0 : index
    %370 = vector.load %arg12[%c6_251, %c0_252, %c0_253] : memref<8x1x8xf32, #tpu.memory_space<vmem>>, vector<1x1x8xf32>
    %371 = vector.shape_cast %370 : vector<1x1x8xf32> to vector<1x8xf32>
    %372 = vector.broadcast %371 : vector<1x8xf32> to vector<4x8xf32>
    %373 = arith.addf %369, %372 : vector<4x8xf32>
    %c6_254 = arith.constant 6 : index
    %c0_255 = arith.constant 0 : index
    %c0_256 = arith.constant 0 : index
    %374 = vector.load %arg13[%c6_254, %c0_255, %c0_256] : memref<8x32x8xf32, #tpu.memory_space<vmem>>, vector<1x32x8xf32>
    %375 = vector.shape_cast %374 : vector<1x32x8xf32> to vector<32x8xf32>
    %cst_257 = arith.constant dense<0.000000e+00> : vector<4x8xf32>
    %376 = tpu.matmul %282, %375, %cst_257 {dimension_numbers = #tpu.dot_dimension_numbers<[1], [0], [0], [1], [0, 0, 1, 1], [], []>} : vector<4x32xf32>, vector<32x8xf32>, vector<4x8xf32> -> vector<4x8xf32>
    %c6_258 = arith.constant 6 : index
    %c0_259 = arith.constant 0 : index
    %c0_260 = arith.constant 0 : index
    %377 = vector.load %arg14[%c6_258, %c0_259, %c0_260] : memref<8x1x8xf32, #tpu.memory_space<vmem>>, vector<1x1x8xf32>
    %378 = vector.shape_cast %377 : vector<1x1x8xf32> to vector<1x8xf32>
    %379 = vector.broadcast %378 : vector<1x8xf32> to vector<4x8xf32>
    %380 = arith.addf %376, %379 : vector<4x8xf32>
    %cst_261 = arith.constant dense<0.000000e+00> : vector<4x4xf32>
    %381 = tpu.matmul %366, %373, %cst_261 {dimension_numbers = #tpu.dot_dimension_numbers<[1], [1], [0], [0], [0, 0, 1, 0], [], []>} : vector<4x8xf32>, vector<4x8xf32>, vector<4x4xf32> -> vector<4x4xf32>
    %cst_262 = arith.constant 0.353553385 : f32
    %382 = vector.broadcast %cst_262 : f32 to vector<4x4xf32>
    %383 = arith.mulf %381, %382 : vector<4x4xf32>
    %cst_263 = arith.constant dense<0xFF800000> : vector<4xf32>
    %384 = vector.multi_reduction <maximumf>, %383, %cst_263 [1] : vector<4x4xf32> to vector<4xf32>
    %385 = vector.shape_cast %384 : vector<4xf32> to vector<4x1xf32>
    %386 = vector.broadcast %385 : vector<4x1xf32> to vector<4x4xf32>
    %387 = arith.subf %383, %386 : vector<4x4xf32>
    %388 = math.exp %387 : vector<4x4xf32>
    %cst_264 = arith.constant dense<0.000000e+00> : vector<4xf32>
    %389 = vector.multi_reduction <add>, %388, %cst_264 [1] : vector<4x4xf32> to vector<4xf32>
    %390 = vector.shape_cast %389 : vector<4xf32> to vector<4x1xf32>
    %391 = tpu.reciprocal %390 {approx = true} : vector<4x1xf32> -> vector<4x1xf32>
    %392 = vector.broadcast %391 : vector<4x1xf32> to vector<4x4xf32>
    %393 = arith.mulf %388, %392 : vector<4x4xf32>
    %cst_265 = arith.constant dense<0.000000e+00> : vector<4x8xf32>
    %394 = tpu.matmul %393, %380, %cst_265 {dimension_numbers = #tpu.dot_dimension_numbers<[1], [0], [0], [1], [0, 0, 1, 1], [], []>} : vector<4x4xf32>, vector<4x8xf32>, vector<4x8xf32> -> vector<4x8xf32>
    %c6_266 = arith.constant 6 : index
    %c0_267 = arith.constant 0 : index
    %c0_268 = arith.constant 0 : index
    %395 = vector.load %arg15[%c6_266, %c0_267, %c0_268] : memref<8x8x32xf32, #tpu.memory_space<vmem>>, vector<1x8x32xf32>
    %396 = vector.shape_cast %395 : vector<1x8x32xf32> to vector<8x32xf32>
    %cst_269 = arith.constant dense<0.000000e+00> : vector<4x32xf32>
    %397 = tpu.matmul %394, %396, %cst_269 {dimension_numbers = #tpu.dot_dimension_numbers<[1], [0], [0], [1], [0, 0, 1, 1], [], []>} : vector<4x8xf32>, vector<8x32xf32>, vector<4x32xf32> -> vector<4x32xf32>
    %398 = arith.addf %359, %397 : vector<4x32xf32>
    %c7 = arith.constant 7 : index
    %c0_270 = arith.constant 0 : index
    %c0_271 = arith.constant 0 : index
    %399 = vector.load %arg9[%c7, %c0_270, %c0_271] : memref<8x32x8xf32, #tpu.memory_space<vmem>>, vector<1x32x8xf32>
    %400 = vector.shape_cast %399 : vector<1x32x8xf32> to vector<32x8xf32>
    %cst_272 = arith.constant dense<0.000000e+00> : vector<4x8xf32>
    %401 = tpu.matmul %282, %400, %cst_272 {dimension_numbers = #tpu.dot_dimension_numbers<[1], [0], [0], [1], [0, 0, 1, 1], [], []>} : vector<4x32xf32>, vector<32x8xf32>, vector<4x8xf32> -> vector<4x8xf32>
    %c7_273 = arith.constant 7 : index
    %c0_274 = arith.constant 0 : index
    %c0_275 = arith.constant 0 : index
    %402 = vector.load %arg10[%c7_273, %c0_274, %c0_275] : memref<8x1x8xf32, #tpu.memory_space<vmem>>, vector<1x1x8xf32>
    %403 = vector.shape_cast %402 : vector<1x1x8xf32> to vector<1x8xf32>
    %404 = vector.broadcast %403 : vector<1x8xf32> to vector<4x8xf32>
    %405 = arith.addf %401, %404 : vector<4x8xf32>
    %c7_276 = arith.constant 7 : index
    %c0_277 = arith.constant 0 : index
    %c0_278 = arith.constant 0 : index
    %406 = vector.load %arg11[%c7_276, %c0_277, %c0_278] : memref<8x32x8xf32, #tpu.memory_space<vmem>>, vector<1x32x8xf32>
    %407 = vector.shape_cast %406 : vector<1x32x8xf32> to vector<32x8xf32>
    %cst_279 = arith.constant dense<0.000000e+00> : vector<4x8xf32>
    %408 = tpu.matmul %282, %407, %cst_279 {dimension_numbers = #tpu.dot_dimension_numbers<[1], [0], [0], [1], [0, 0, 1, 1], [], []>} : vector<4x32xf32>, vector<32x8xf32>, vector<4x8xf32> -> vector<4x8xf32>
    %c7_280 = arith.constant 7 : index
    %c0_281 = arith.constant 0 : index
    %c0_282 = arith.constant 0 : index
    %409 = vector.load %arg12[%c7_280, %c0_281, %c0_282] : memref<8x1x8xf32, #tpu.memory_space<vmem>>, vector<1x1x8xf32>
    %410 = vector.shape_cast %409 : vector<1x1x8xf32> to vector<1x8xf32>
    %411 = vector.broadcast %410 : vector<1x8xf32> to vector<4x8xf32>
    %412 = arith.addf %408, %411 : vector<4x8xf32>
    %c7_283 = arith.constant 7 : index
    %c0_284 = arith.constant 0 : index
    %c0_285 = arith.constant 0 : index
    %413 = vector.load %arg13[%c7_283, %c0_284, %c0_285] : memref<8x32x8xf32, #tpu.memory_space<vmem>>, vector<1x32x8xf32>
    %414 = vector.shape_cast %413 : vector<1x32x8xf32> to vector<32x8xf32>
    %cst_286 = arith.constant dense<0.000000e+00> : vector<4x8xf32>
    %415 = tpu.matmul %282, %414, %cst_286 {dimension_numbers = #tpu.dot_dimension_numbers<[1], [0], [0], [1], [0, 0, 1, 1], [], []>} : vector<4x32xf32>, vector<32x8xf32>, vector<4x8xf32> -> vector<4x8xf32>
    %c7_287 = arith.constant 7 : index
    %c0_288 = arith.constant 0 : index
    %c0_289 = arith.constant 0 : index
    %416 = vector.load %arg14[%c7_287, %c0_288, %c0_289] : memref<8x1x8xf32, #tpu.memory_space<vmem>>, vector<1x1x8xf32>
    %417 = vector.shape_cast %416 : vector<1x1x8xf32> to vector<1x8xf32>
    %418 = vector.broadcast %417 : vector<1x8xf32> to vector<4x8xf32>
    %419 = arith.addf %415, %418 : vector<4x8xf32>
    %cst_290 = arith.constant dense<0.000000e+00> : vector<4x4xf32>
    %420 = tpu.matmul %405, %412, %cst_290 {dimension_numbers = #tpu.dot_dimension_numbers<[1], [1], [0], [0], [0, 0, 1, 0], [], []>} : vector<4x8xf32>, vector<4x8xf32>, vector<4x4xf32> -> vector<4x4xf32>
    %cst_291 = arith.constant 0.353553385 : f32
    %421 = vector.broadcast %cst_291 : f32 to vector<4x4xf32>
    %422 = arith.mulf %420, %421 : vector<4x4xf32>
    %cst_292 = arith.constant dense<0xFF800000> : vector<4xf32>
    %423 = vector.multi_reduction <maximumf>, %422, %cst_292 [1] : vector<4x4xf32> to vector<4xf32>
    %424 = vector.shape_cast %423 : vector<4xf32> to vector<4x1xf32>
    %425 = vector.broadcast %424 : vector<4x1xf32> to vector<4x4xf32>
    %426 = arith.subf %422, %425 : vector<4x4xf32>
    %427 = math.exp %426 : vector<4x4xf32>
    %cst_293 = arith.constant dense<0.000000e+00> : vector<4xf32>
    %428 = vector.multi_reduction <add>, %427, %cst_293 [1] : vector<4x4xf32> to vector<4xf32>
    %429 = vector.shape_cast %428 : vector<4xf32> to vector<4x1xf32>
    %430 = tpu.reciprocal %429 {approx = true} : vector<4x1xf32> -> vector<4x1xf32>
    %431 = vector.broadcast %430 : vector<4x1xf32> to vector<4x4xf32>
    %432 = arith.mulf %427, %431 : vector<4x4xf32>
    %cst_294 = arith.constant dense<0.000000e+00> : vector<4x8xf32>
    %433 = tpu.matmul %432, %419, %cst_294 {dimension_numbers = #tpu.dot_dimension_numbers<[1], [0], [0], [1], [0, 0, 1, 1], [], []>} : vector<4x4xf32>, vector<4x8xf32>, vector<4x8xf32> -> vector<4x8xf32>
    %c7_295 = arith.constant 7 : index
    %c0_296 = arith.constant 0 : index
    %c0_297 = arith.constant 0 : index
    %434 = vector.load %arg15[%c7_295, %c0_296, %c0_297] : memref<8x8x32xf32, #tpu.memory_space<vmem>>, vector<1x8x32xf32>
    %435 = vector.shape_cast %434 : vector<1x8x32xf32> to vector<8x32xf32>
    %cst_298 = arith.constant dense<0.000000e+00> : vector<4x32xf32>
    %436 = tpu.matmul %433, %435, %cst_298 {dimension_numbers = #tpu.dot_dimension_numbers<[1], [0], [0], [1], [0, 0, 1, 1], [], []>} : vector<4x8xf32>, vector<8x32xf32>, vector<4x32xf32> -> vector<4x32xf32>
    %437 = arith.addf %398, %436 : vector<4x32xf32>
    %438 = arith.addf %256, %437 : vector<4x32xf32>
    %c1_299 = arith.constant 1 : index
    %c0_300 = arith.constant 0 : index
    %c0_301 = arith.constant 0 : index
    %439 = vector.load %arg16[%c1_299, %c0_300, %c0_301] : memref<2x1x32xf32, #tpu.memory_space<vmem>>, vector<1x1x32xf32>
    %440 = vector.shape_cast %439 : vector<1x1x32xf32> to vector<1x32xf32>
    %441 = vector.broadcast %440 : vector<1x32xf32> to vector<4x32xf32>
    %442 = arith.addf %438, %441 : vector<4x32xf32>
    %c1_302 = arith.constant 1 : index
    %c0_303 = arith.constant 0 : index
    %c0_304 = arith.constant 0 : index
    %443 = vector.load %arg17[%c1_302, %c0_303, %c0_304] : memref<2x1x32xf32, #tpu.memory_space<vmem>>, vector<1x1x32xf32>
    %444 = vector.shape_cast %443 : vector<1x1x32xf32> to vector<1x32xf32>
    %c1_305 = arith.constant 1 : index
    %c0_306 = arith.constant 0 : index
    %c0_307 = arith.constant 0 : index
    %445 = vector.load %arg18[%c1_305, %c0_306, %c0_307] : memref<2x1x32xf32, #tpu.memory_space<vmem>>, vector<1x1x32xf32>
    %446 = vector.shape_cast %445 : vector<1x1x32xf32> to vector<1x32xf32>
    %cst_308 = arith.constant dense<0.000000e+00> : vector<4xf32>
    %447 = vector.multi_reduction <add>, %442, %cst_308 [1] : vector<4x32xf32> to vector<4xf32>
    %448 = vector.shape_cast %447 : vector<4xf32> to vector<4x1xf32>
    %cst_309 = arith.constant 3.200000e+01 : f32
    %449 = vector.broadcast %cst_309 : f32 to vector<4x1xf32>
    %450 = arith.divf %448, %449 : vector<4x1xf32>
    %451 = vector.broadcast %450 : vector<4x1xf32> to vector<4x32xf32>
    %452 = arith.subf %442, %451 : vector<4x32xf32>
    %453 = arith.mulf %452, %452 : vector<4x32xf32>
    %cst_310 = arith.constant dense<0.000000e+00> : vector<4xf32>
    %454 = vector.multi_reduction <add>, %453, %cst_310 [1] : vector<4x32xf32> to vector<4xf32>
    %455 = vector.shape_cast %454 : vector<4xf32> to vector<4x1xf32>
    %cst_311 = arith.constant 3.200000e+01 : f32
    %456 = vector.broadcast %cst_311 : f32 to vector<4x1xf32>
    %457 = arith.divf %455, %456 : vector<4x1xf32>
    %458 = vector.broadcast %450 : vector<4x1xf32> to vector<4x32xf32>
    %459 = arith.subf %442, %458 : vector<4x32xf32>
    %cst_312 = arith.constant 9.99999974E-6 : f32
    %460 = vector.broadcast %cst_312 : f32 to vector<4x1xf32>
    %461 = arith.addf %457, %460 : vector<4x1xf32>
    %462 = math.rsqrt %461 : vector<4x1xf32>
    %463 = vector.broadcast %462 : vector<4x1xf32> to vector<4x32xf32>
    %464 = arith.mulf %459, %463 : vector<4x32xf32>
    %465 = vector.broadcast %444 : vector<1x32xf32> to vector<4x32xf32>
    %466 = arith.mulf %464, %465 : vector<4x32xf32>
    %467 = vector.broadcast %446 : vector<1x32xf32> to vector<4x32xf32>
    %468 = arith.addf %466, %467 : vector<4x32xf32>
    %c1_313 = arith.constant 1 : index
    %c0_314 = arith.constant 0 : index
    %c0_315 = arith.constant 0 : index
    %469 = vector.load %arg19[%c1_313, %c0_314, %c0_315] : memref<2x32x128xf32, #tpu.memory_space<vmem>>, vector<1x32x128xf32>
    %470 = vector.shape_cast %469 : vector<1x32x128xf32> to vector<32x128xf32>
    %cst_316 = arith.constant dense<0.000000e+00> : vector<4x128xf32>
    %471 = tpu.matmul %468, %470, %cst_316 {dimension_numbers = #tpu.dot_dimension_numbers<[1], [0], [0], [1], [0, 0, 1, 1], [], []>} : vector<4x32xf32>, vector<32x128xf32>, vector<4x128xf32> -> vector<4x128xf32>
    %c1_317 = arith.constant 1 : index
    %c0_318 = arith.constant 0 : index
    %c0_319 = arith.constant 0 : index
    %472 = vector.load %arg20[%c1_317, %c0_318, %c0_319] : memref<2x1x128xf32, #tpu.memory_space<vmem>>, vector<1x1x128xf32>
    %473 = vector.shape_cast %472 : vector<1x1x128xf32> to vector<1x128xf32>
    %474 = vector.broadcast %473 : vector<1x128xf32> to vector<4x128xf32>
    %475 = arith.addf %471, %474 : vector<4x128xf32>
    %cst_320 = arith.constant 5.000000e-01 : f32
    %476 = vector.broadcast %cst_320 : f32 to vector<4x128xf32>
    %477 = arith.mulf %476, %475 : vector<4x128xf32>
    %478 = arith.mulf %475, %475 : vector<4x128xf32>
    %479 = arith.mulf %475, %478 : vector<4x128xf32>
    %cst_321 = arith.constant 4.471500e-02 : f32
    %480 = vector.broadcast %cst_321 : f32 to vector<4x128xf32>
    %481 = arith.mulf %480, %479 : vector<4x128xf32>
    %482 = arith.addf %475, %481 : vector<4x128xf32>
    %cst_322 = arith.constant 0.797884583 : f32
    %483 = vector.broadcast %cst_322 : f32 to vector<4x128xf32>
    %484 = arith.mulf %483, %482 : vector<4x128xf32>
    %485 = math.tanh %484 : vector<4x128xf32>
    %cst_323 = arith.constant 1.000000e+00 : f32
    %486 = vector.broadcast %cst_323 : f32 to vector<4x128xf32>
    %487 = arith.addf %486, %485 : vector<4x128xf32>
    %488 = arith.mulf %477, %487 : vector<4x128xf32>
    %c1_324 = arith.constant 1 : index
    %c0_325 = arith.constant 0 : index
    %c0_326 = arith.constant 0 : index
    %489 = vector.load %arg21[%c1_324, %c0_325, %c0_326] : memref<2x128x32xf32, #tpu.memory_space<vmem>>, vector<1x128x32xf32>
    %490 = vector.shape_cast %489 : vector<1x128x32xf32> to vector<128x32xf32>
    %cst_327 = arith.constant dense<0.000000e+00> : vector<4x32xf32>
    %491 = tpu.matmul %488, %490, %cst_327 {dimension_numbers = #tpu.dot_dimension_numbers<[1], [0], [0], [1], [0, 0, 1, 1], [], []>} : vector<4x128xf32>, vector<128x32xf32>, vector<4x32xf32> -> vector<4x32xf32>
    %c1_328 = arith.constant 1 : index
    %c0_329 = arith.constant 0 : index
    %c0_330 = arith.constant 0 : index
    %492 = vector.load %arg22[%c1_328, %c0_329, %c0_330] : memref<2x1x32xf32, #tpu.memory_space<vmem>>, vector<1x1x32xf32>
    %493 = vector.shape_cast %492 : vector<1x1x32xf32> to vector<1x32xf32>
    %494 = vector.broadcast %493 : vector<1x32xf32> to vector<4x32xf32>
    %495 = arith.addf %491, %494 : vector<4x32xf32>
    %496 = arith.addf %442, %495 : vector<4x32xf32>
    %c0_331 = arith.constant 0 : index
    %c0_332 = arith.constant 0 : index
    %497 = vector.load %arg23[%c0_331, %c0_332] : memref<1x32xf32, #tpu.memory_space<vmem>>, vector<1x32xf32>
    %c0_333 = arith.constant 0 : index
    %c0_334 = arith.constant 0 : index
    %498 = vector.load %arg24[%c0_333, %c0_334] : memref<1x32xf32, #tpu.memory_space<vmem>>, vector<1x32xf32>
    %cst_335 = arith.constant dense<0.000000e+00> : vector<4xf32>
    %499 = vector.multi_reduction <add>, %496, %cst_335 [1] : vector<4x32xf32> to vector<4xf32>
    %500 = vector.shape_cast %499 : vector<4xf32> to vector<4x1xf32>
    %cst_336 = arith.constant 3.200000e+01 : f32
    %501 = vector.broadcast %cst_336 : f32 to vector<4x1xf32>
    %502 = arith.divf %500, %501 : vector<4x1xf32>
    %503 = vector.broadcast %502 : vector<4x1xf32> to vector<4x32xf32>
    %504 = arith.subf %496, %503 : vector<4x32xf32>
    %505 = arith.mulf %504, %504 : vector<4x32xf32>
    %cst_337 = arith.constant dense<0.000000e+00> : vector<4xf32>
    %506 = vector.multi_reduction <add>, %505, %cst_337 [1] : vector<4x32xf32> to vector<4xf32>
    %507 = vector.shape_cast %506 : vector<4xf32> to vector<4x1xf32>
    %cst_338 = arith.constant 3.200000e+01 : f32
    %508 = vector.broadcast %cst_338 : f32 to vector<4x1xf32>
    %509 = arith.divf %507, %508 : vector<4x1xf32>
    %510 = vector.broadcast %502 : vector<4x1xf32> to vector<4x32xf32>
    %511 = arith.subf %496, %510 : vector<4x32xf32>
    %cst_339 = arith.constant 9.99999974E-6 : f32
    %512 = vector.broadcast %cst_339 : f32 to vector<4x1xf32>
    %513 = arith.addf %509, %512 : vector<4x1xf32>
    %514 = math.rsqrt %513 : vector<4x1xf32>
    %515 = vector.broadcast %514 : vector<4x1xf32> to vector<4x32xf32>
    %516 = arith.mulf %511, %515 : vector<4x32xf32>
    %517 = vector.broadcast %497 : vector<1x32xf32> to vector<4x32xf32>
    %518 = arith.mulf %516, %517 : vector<4x32xf32>
    %519 = vector.broadcast %498 : vector<1x32xf32> to vector<4x32xf32>
    %520 = arith.addf %518, %519 : vector<4x32xf32>
    %c0_340 = arith.constant 0 : index
    %c0_341 = arith.constant 0 : index
    %521 = vector.load %arg25[%c0_340, %c0_341] : memref<32x64xf32, #tpu.memory_space<vmem>>, vector<32x64xf32>
    %cst_342 = arith.constant dense<0.000000e+00> : vector<4x64xf32>
    %522 = tpu.matmul %520, %521, %cst_342 {dimension_numbers = #tpu.dot_dimension_numbers<[1], [0], [0], [1], [0, 0, 1, 1], [], []>} : vector<4x32xf32>, vector<32x64xf32>, vector<4x64xf32> -> vector<4x64xf32>
    %c0_343 = arith.constant 0 : index
    %c0_344 = arith.constant 0 : index
    %523 = vector.load %arg26[%c0_343, %c0_344] : memref<1x64xf32, #tpu.memory_space<vmem>>, vector<1x64xf32>
    %524 = vector.broadcast %523 : vector<1x64xf32> to vector<4x64xf32>
    %525 = arith.addf %522, %524 : vector<4x64xf32>
    %526 = vector.extract_strided_slice %525 {offsets = [1, 0], sizes = [3, 64], strides = [1, 1]} : vector<4x64xf32> to vector<3x64xf32>
    %c0_345 = arith.constant 0 : index
    %c0_346 = arith.constant 0 : index
    %527 = vector.load %arg27[%c0_345, %c0_346] : memref<1x64xf32, #tpu.memory_space<vmem>>, vector<1x64xf32>
    %528 = vector.shape_cast %527 : vector<1x64xf32> to vector<1x64xf32>
    %529 = vector.broadcast %528 : vector<1x64xf32> to vector<13x64xf32>
    %530 = tpu.concatenate %526, %529 in 0 : vector<3x64xf32>, vector<13x64xf32> -> vector<16x64xf32>
    %c0_347 = arith.constant 0 : index
    %c0_348 = arith.constant 0 : index
    %c0_349 = arith.constant 0 : index
    %531 = vector.load %arg3[%c0_347, %c0_348, %c0_349] : memref<1x16x1xi32, #tpu.memory_space<vmem>>, vector<1x16x1xi32>
    %532 = vector.shape_cast %531 : vector<1x16x1xi32> to vector<16x1xi32>
    %533 = tpu.iota {dimensions = array<i32: 1>} : vector<16x16xi32>
    %534 = vector.broadcast %532 : vector<16x1xi32> to vector<16x16xi32>
    %535 = arith.cmpi eq, %534, %533 : vector<16x16xi32>
    %536 = arith.extui %535 : vector<16x16xi1> to vector<16x16xi32>
    %537 = arith.sitofp %536 : vector<16x16xi32> to vector<16x16xf32>
    %cst_350 = arith.constant dense<0.000000e+00> : vector<16x64xf32>
    %538 = tpu.matmul %537, %530, %cst_350 {dimension_numbers = #tpu.dot_dimension_numbers<[1], [0], [0], [1], [0, 0, 1, 1], [], []>} : vector<16x16xf32>, vector<16x64xf32>, vector<16x64xf32> -> vector<16x64xf32>
    %539 = vector.extract_strided_slice %525 {offsets = [0, 0], sizes = [1, 64], strides = [1, 1]} : vector<4x64xf32> to vector<1x64xf32>
    %540 = tpu.concatenate %539, %538 in 0 : vector<1x64xf32>, vector<16x64xf32> -> vector<17x64xf32>
    %c0_351 = arith.constant 0 : index
    %c0_352 = arith.constant 0 : index
    %541 = vector.load %arg28[%c0_351, %c0_352] : memref<17x64xf32, #tpu.memory_space<vmem>>, vector<17x64xf32>
    %542 = arith.addf %540, %541 : vector<17x64xf32>
    %c0_353 = arith.constant 0 : index
    %c0_354 = arith.constant 0 : index
    %c0_355 = arith.constant 0 : index
    %543 = vector.load %arg29[%c0_353, %c0_354, %c0_355] : memref<2x1x64xf32, #tpu.memory_space<vmem>>, vector<1x1x64xf32>
    %544 = vector.shape_cast %543 : vector<1x1x64xf32> to vector<1x64xf32>
    %c0_356 = arith.constant 0 : index
    %c0_357 = arith.constant 0 : index
    %c0_358 = arith.constant 0 : index
    %545 = vector.load %arg30[%c0_356, %c0_357, %c0_358] : memref<2x1x64xf32, #tpu.memory_space<vmem>>, vector<1x1x64xf32>
    %546 = vector.shape_cast %545 : vector<1x1x64xf32> to vector<1x64xf32>
    %cst_359 = arith.constant dense<0.000000e+00> : vector<17xf32>
    %547 = vector.multi_reduction <add>, %542, %cst_359 [1] : vector<17x64xf32> to vector<17xf32>
    %548 = vector.shape_cast %547 : vector<17xf32> to vector<17x1xf32>
    %cst_360 = arith.constant 6.400000e+01 : f32
    %549 = vector.broadcast %cst_360 : f32 to vector<17x1xf32>
    %550 = arith.divf %548, %549 : vector<17x1xf32>
    %551 = vector.broadcast %550 : vector<17x1xf32> to vector<17x64xf32>
    %552 = arith.subf %542, %551 : vector<17x64xf32>
    %553 = arith.mulf %552, %552 : vector<17x64xf32>
    %cst_361 = arith.constant dense<0.000000e+00> : vector<17xf32>
    %554 = vector.multi_reduction <add>, %553, %cst_361 [1] : vector<17x64xf32> to vector<17xf32>
    %555 = vector.shape_cast %554 : vector<17xf32> to vector<17x1xf32>
    %cst_362 = arith.constant 6.400000e+01 : f32
    %556 = vector.broadcast %cst_362 : f32 to vector<17x1xf32>
    %557 = arith.divf %555, %556 : vector<17x1xf32>
    %558 = vector.broadcast %550 : vector<17x1xf32> to vector<17x64xf32>
    %559 = arith.subf %542, %558 : vector<17x64xf32>
    %cst_363 = arith.constant 9.99999974E-6 : f32
    %560 = vector.broadcast %cst_363 : f32 to vector<17x1xf32>
    %561 = arith.addf %557, %560 : vector<17x1xf32>
    %562 = math.rsqrt %561 : vector<17x1xf32>
    %563 = vector.broadcast %562 : vector<17x1xf32> to vector<17x64xf32>
    %564 = arith.mulf %559, %563 : vector<17x64xf32>
    %565 = vector.broadcast %544 : vector<1x64xf32> to vector<17x64xf32>
    %566 = arith.mulf %564, %565 : vector<17x64xf32>
    %567 = vector.broadcast %546 : vector<1x64xf32> to vector<17x64xf32>
    %568 = arith.addf %566, %567 : vector<17x64xf32>
    %c0_364 = arith.constant 0 : index
    %c0_365 = arith.constant 0 : index
    %c0_366 = arith.constant 0 : index
    %569 = vector.load %arg31[%c0_364, %c0_365, %c0_366] : memref<8x64x16xf32, #tpu.memory_space<vmem>>, vector<1x64x16xf32>
    %570 = vector.shape_cast %569 : vector<1x64x16xf32> to vector<64x16xf32>
    %cst_367 = arith.constant dense<0.000000e+00> : vector<17x16xf32>
    %571 = tpu.matmul %568, %570, %cst_367 {dimension_numbers = #tpu.dot_dimension_numbers<[1], [0], [0], [1], [0, 0, 1, 1], [], []>} : vector<17x64xf32>, vector<64x16xf32>, vector<17x16xf32> -> vector<17x16xf32>
    %c0_368 = arith.constant 0 : index
    %c0_369 = arith.constant 0 : index
    %c0_370 = arith.constant 0 : index
    %572 = vector.load %arg32[%c0_368, %c0_369, %c0_370] : memref<8x1x16xf32, #tpu.memory_space<vmem>>, vector<1x1x16xf32>
    %573 = vector.shape_cast %572 : vector<1x1x16xf32> to vector<1x16xf32>
    %574 = vector.broadcast %573 : vector<1x16xf32> to vector<17x16xf32>
    %575 = arith.addf %571, %574 : vector<17x16xf32>
    %c0_371 = arith.constant 0 : index
    %c0_372 = arith.constant 0 : index
    %c0_373 = arith.constant 0 : index
    %576 = vector.load %arg33[%c0_371, %c0_372, %c0_373] : memref<8x64x16xf32, #tpu.memory_space<vmem>>, vector<1x64x16xf32>
    %577 = vector.shape_cast %576 : vector<1x64x16xf32> to vector<64x16xf32>
    %cst_374 = arith.constant dense<0.000000e+00> : vector<17x16xf32>
    %578 = tpu.matmul %568, %577, %cst_374 {dimension_numbers = #tpu.dot_dimension_numbers<[1], [0], [0], [1], [0, 0, 1, 1], [], []>} : vector<17x64xf32>, vector<64x16xf32>, vector<17x16xf32> -> vector<17x16xf32>
    %c0_375 = arith.constant 0 : index
    %c0_376 = arith.constant 0 : index
    %c0_377 = arith.constant 0 : index
    %579 = vector.load %arg34[%c0_375, %c0_376, %c0_377] : memref<8x1x16xf32, #tpu.memory_space<vmem>>, vector<1x1x16xf32>
    %580 = vector.shape_cast %579 : vector<1x1x16xf32> to vector<1x16xf32>
    %581 = vector.broadcast %580 : vector<1x16xf32> to vector<17x16xf32>
    %582 = arith.addf %578, %581 : vector<17x16xf32>
    %c0_378 = arith.constant 0 : index
    %c0_379 = arith.constant 0 : index
    %c0_380 = arith.constant 0 : index
    %583 = vector.load %arg35[%c0_378, %c0_379, %c0_380] : memref<8x64x16xf32, #tpu.memory_space<vmem>>, vector<1x64x16xf32>
    %584 = vector.shape_cast %583 : vector<1x64x16xf32> to vector<64x16xf32>
    %cst_381 = arith.constant dense<0.000000e+00> : vector<17x16xf32>
    %585 = tpu.matmul %568, %584, %cst_381 {dimension_numbers = #tpu.dot_dimension_numbers<[1], [0], [0], [1], [0, 0, 1, 1], [], []>} : vector<17x64xf32>, vector<64x16xf32>, vector<17x16xf32> -> vector<17x16xf32>
    %c0_382 = arith.constant 0 : index
    %c0_383 = arith.constant 0 : index
    %c0_384 = arith.constant 0 : index
    %586 = vector.load %arg36[%c0_382, %c0_383, %c0_384] : memref<8x1x16xf32, #tpu.memory_space<vmem>>, vector<1x1x16xf32>
    %587 = vector.shape_cast %586 : vector<1x1x16xf32> to vector<1x16xf32>
    %588 = vector.broadcast %587 : vector<1x16xf32> to vector<17x16xf32>
    %589 = arith.addf %585, %588 : vector<17x16xf32>
    %cst_385 = arith.constant dense<0.000000e+00> : vector<17x17xf32>
    %590 = tpu.matmul %575, %582, %cst_385 {dimension_numbers = #tpu.dot_dimension_numbers<[1], [1], [0], [0], [0, 0, 1, 0], [], []>} : vector<17x16xf32>, vector<17x16xf32>, vector<17x17xf32> -> vector<17x17xf32>
    %cst_386 = arith.constant 2.500000e-01 : f32
    %591 = vector.broadcast %cst_386 : f32 to vector<17x17xf32>
    %592 = arith.mulf %590, %591 : vector<17x17xf32>
    %cst_387 = arith.constant dense<0xFF800000> : vector<17xf32>
    %593 = vector.multi_reduction <maximumf>, %592, %cst_387 [1] : vector<17x17xf32> to vector<17xf32>
    %594 = vector.shape_cast %593 : vector<17xf32> to vector<17x1xf32>
    %595 = vector.broadcast %594 : vector<17x1xf32> to vector<17x17xf32>
    %596 = arith.subf %592, %595 : vector<17x17xf32>
    %597 = math.exp %596 : vector<17x17xf32>
    %cst_388 = arith.constant dense<0.000000e+00> : vector<17xf32>
    %598 = vector.multi_reduction <add>, %597, %cst_388 [1] : vector<17x17xf32> to vector<17xf32>
    %599 = vector.shape_cast %598 : vector<17xf32> to vector<17x1xf32>
    %600 = tpu.reciprocal %599 {approx = true} : vector<17x1xf32> -> vector<17x1xf32>
    %601 = vector.broadcast %600 : vector<17x1xf32> to vector<17x17xf32>
    %602 = arith.mulf %597, %601 : vector<17x17xf32>
    %cst_389 = arith.constant dense<0.000000e+00> : vector<17x16xf32>
    %603 = tpu.matmul %602, %589, %cst_389 {dimension_numbers = #tpu.dot_dimension_numbers<[1], [0], [0], [1], [0, 0, 1, 1], [], []>} : vector<17x17xf32>, vector<17x16xf32>, vector<17x16xf32> -> vector<17x16xf32>
    %c0_390 = arith.constant 0 : index
    %c0_391 = arith.constant 0 : index
    %c0_392 = arith.constant 0 : index
    %604 = vector.load %arg37[%c0_390, %c0_391, %c0_392] : memref<8x16x64xf32, #tpu.memory_space<vmem>>, vector<1x16x64xf32>
    %605 = vector.shape_cast %604 : vector<1x16x64xf32> to vector<16x64xf32>
    %cst_393 = arith.constant dense<0.000000e+00> : vector<17x64xf32>
    %606 = tpu.matmul %603, %605, %cst_393 {dimension_numbers = #tpu.dot_dimension_numbers<[1], [0], [0], [1], [0, 0, 1, 1], [], []>} : vector<17x16xf32>, vector<16x64xf32>, vector<17x64xf32> -> vector<17x64xf32>
    %c1_394 = arith.constant 1 : index
    %c0_395 = arith.constant 0 : index
    %c0_396 = arith.constant 0 : index
    %607 = vector.load %arg31[%c1_394, %c0_395, %c0_396] : memref<8x64x16xf32, #tpu.memory_space<vmem>>, vector<1x64x16xf32>
    %608 = vector.shape_cast %607 : vector<1x64x16xf32> to vector<64x16xf32>
    %cst_397 = arith.constant dense<0.000000e+00> : vector<17x16xf32>
    %609 = tpu.matmul %568, %608, %cst_397 {dimension_numbers = #tpu.dot_dimension_numbers<[1], [0], [0], [1], [0, 0, 1, 1], [], []>} : vector<17x64xf32>, vector<64x16xf32>, vector<17x16xf32> -> vector<17x16xf32>
    %c1_398 = arith.constant 1 : index
    %c0_399 = arith.constant 0 : index
    %c0_400 = arith.constant 0 : index
    %610 = vector.load %arg32[%c1_398, %c0_399, %c0_400] : memref<8x1x16xf32, #tpu.memory_space<vmem>>, vector<1x1x16xf32>
    %611 = vector.shape_cast %610 : vector<1x1x16xf32> to vector<1x16xf32>
    %612 = vector.broadcast %611 : vector<1x16xf32> to vector<17x16xf32>
    %613 = arith.addf %609, %612 : vector<17x16xf32>
    %c1_401 = arith.constant 1 : index
    %c0_402 = arith.constant 0 : index
    %c0_403 = arith.constant 0 : index
    %614 = vector.load %arg33[%c1_401, %c0_402, %c0_403] : memref<8x64x16xf32, #tpu.memory_space<vmem>>, vector<1x64x16xf32>
    %615 = vector.shape_cast %614 : vector<1x64x16xf32> to vector<64x16xf32>
    %cst_404 = arith.constant dense<0.000000e+00> : vector<17x16xf32>
    %616 = tpu.matmul %568, %615, %cst_404 {dimension_numbers = #tpu.dot_dimension_numbers<[1], [0], [0], [1], [0, 0, 1, 1], [], []>} : vector<17x64xf32>, vector<64x16xf32>, vector<17x16xf32> -> vector<17x16xf32>
    %c1_405 = arith.constant 1 : index
    %c0_406 = arith.constant 0 : index
    %c0_407 = arith.constant 0 : index
    %617 = vector.load %arg34[%c1_405, %c0_406, %c0_407] : memref<8x1x16xf32, #tpu.memory_space<vmem>>, vector<1x1x16xf32>
    %618 = vector.shape_cast %617 : vector<1x1x16xf32> to vector<1x16xf32>
    %619 = vector.broadcast %618 : vector<1x16xf32> to vector<17x16xf32>
    %620 = arith.addf %616, %619 : vector<17x16xf32>
    %c1_408 = arith.constant 1 : index
    %c0_409 = arith.constant 0 : index
    %c0_410 = arith.constant 0 : index
    %621 = vector.load %arg35[%c1_408, %c0_409, %c0_410] : memref<8x64x16xf32, #tpu.memory_space<vmem>>, vector<1x64x16xf32>
    %622 = vector.shape_cast %621 : vector<1x64x16xf32> to vector<64x16xf32>
    %cst_411 = arith.constant dense<0.000000e+00> : vector<17x16xf32>
    %623 = tpu.matmul %568, %622, %cst_411 {dimension_numbers = #tpu.dot_dimension_numbers<[1], [0], [0], [1], [0, 0, 1, 1], [], []>} : vector<17x64xf32>, vector<64x16xf32>, vector<17x16xf32> -> vector<17x16xf32>
    %c1_412 = arith.constant 1 : index
    %c0_413 = arith.constant 0 : index
    %c0_414 = arith.constant 0 : index
    %624 = vector.load %arg36[%c1_412, %c0_413, %c0_414] : memref<8x1x16xf32, #tpu.memory_space<vmem>>, vector<1x1x16xf32>
    %625 = vector.shape_cast %624 : vector<1x1x16xf32> to vector<1x16xf32>
    %626 = vector.broadcast %625 : vector<1x16xf32> to vector<17x16xf32>
    %627 = arith.addf %623, %626 : vector<17x16xf32>
    %cst_415 = arith.constant dense<0.000000e+00> : vector<17x17xf32>
    %628 = tpu.matmul %613, %620, %cst_415 {dimension_numbers = #tpu.dot_dimension_numbers<[1], [1], [0], [0], [0, 0, 1, 0], [], []>} : vector<17x16xf32>, vector<17x16xf32>, vector<17x17xf32> -> vector<17x17xf32>
    %cst_416 = arith.constant 2.500000e-01 : f32
    %629 = vector.broadcast %cst_416 : f32 to vector<17x17xf32>
    %630 = arith.mulf %628, %629 : vector<17x17xf32>
    %cst_417 = arith.constant dense<0xFF800000> : vector<17xf32>
    %631 = vector.multi_reduction <maximumf>, %630, %cst_417 [1] : vector<17x17xf32> to vector<17xf32>
    %632 = vector.shape_cast %631 : vector<17xf32> to vector<17x1xf32>
    %633 = vector.broadcast %632 : vector<17x1xf32> to vector<17x17xf32>
    %634 = arith.subf %630, %633 : vector<17x17xf32>
    %635 = math.exp %634 : vector<17x17xf32>
    %cst_418 = arith.constant dense<0.000000e+00> : vector<17xf32>
    %636 = vector.multi_reduction <add>, %635, %cst_418 [1] : vector<17x17xf32> to vector<17xf32>
    %637 = vector.shape_cast %636 : vector<17xf32> to vector<17x1xf32>
    %638 = tpu.reciprocal %637 {approx = true} : vector<17x1xf32> -> vector<17x1xf32>
    %639 = vector.broadcast %638 : vector<17x1xf32> to vector<17x17xf32>
    %640 = arith.mulf %635, %639 : vector<17x17xf32>
    %cst_419 = arith.constant dense<0.000000e+00> : vector<17x16xf32>
    %641 = tpu.matmul %640, %627, %cst_419 {dimension_numbers = #tpu.dot_dimension_numbers<[1], [0], [0], [1], [0, 0, 1, 1], [], []>} : vector<17x17xf32>, vector<17x16xf32>, vector<17x16xf32> -> vector<17x16xf32>
    %c1_420 = arith.constant 1 : index
    %c0_421 = arith.constant 0 : index
    %c0_422 = arith.constant 0 : index
    %642 = vector.load %arg37[%c1_420, %c0_421, %c0_422] : memref<8x16x64xf32, #tpu.memory_space<vmem>>, vector<1x16x64xf32>
    %643 = vector.shape_cast %642 : vector<1x16x64xf32> to vector<16x64xf32>
    %cst_423 = arith.constant dense<0.000000e+00> : vector<17x64xf32>
    %644 = tpu.matmul %641, %643, %cst_423 {dimension_numbers = #tpu.dot_dimension_numbers<[1], [0], [0], [1], [0, 0, 1, 1], [], []>} : vector<17x16xf32>, vector<16x64xf32>, vector<17x64xf32> -> vector<17x64xf32>
    %645 = arith.addf %606, %644 : vector<17x64xf32>
    %c2_424 = arith.constant 2 : index
    %c0_425 = arith.constant 0 : index
    %c0_426 = arith.constant 0 : index
    %646 = vector.load %arg31[%c2_424, %c0_425, %c0_426] : memref<8x64x16xf32, #tpu.memory_space<vmem>>, vector<1x64x16xf32>
    %647 = vector.shape_cast %646 : vector<1x64x16xf32> to vector<64x16xf32>
    %cst_427 = arith.constant dense<0.000000e+00> : vector<17x16xf32>
    %648 = tpu.matmul %568, %647, %cst_427 {dimension_numbers = #tpu.dot_dimension_numbers<[1], [0], [0], [1], [0, 0, 1, 1], [], []>} : vector<17x64xf32>, vector<64x16xf32>, vector<17x16xf32> -> vector<17x16xf32>
    %c2_428 = arith.constant 2 : index
    %c0_429 = arith.constant 0 : index
    %c0_430 = arith.constant 0 : index
    %649 = vector.load %arg32[%c2_428, %c0_429, %c0_430] : memref<8x1x16xf32, #tpu.memory_space<vmem>>, vector<1x1x16xf32>
    %650 = vector.shape_cast %649 : vector<1x1x16xf32> to vector<1x16xf32>
    %651 = vector.broadcast %650 : vector<1x16xf32> to vector<17x16xf32>
    %652 = arith.addf %648, %651 : vector<17x16xf32>
    %c2_431 = arith.constant 2 : index
    %c0_432 = arith.constant 0 : index
    %c0_433 = arith.constant 0 : index
    %653 = vector.load %arg33[%c2_431, %c0_432, %c0_433] : memref<8x64x16xf32, #tpu.memory_space<vmem>>, vector<1x64x16xf32>
    %654 = vector.shape_cast %653 : vector<1x64x16xf32> to vector<64x16xf32>
    %cst_434 = arith.constant dense<0.000000e+00> : vector<17x16xf32>
    %655 = tpu.matmul %568, %654, %cst_434 {dimension_numbers = #tpu.dot_dimension_numbers<[1], [0], [0], [1], [0, 0, 1, 1], [], []>} : vector<17x64xf32>, vector<64x16xf32>, vector<17x16xf32> -> vector<17x16xf32>
    %c2_435 = arith.constant 2 : index
    %c0_436 = arith.constant 0 : index
    %c0_437 = arith.constant 0 : index
    %656 = vector.load %arg34[%c2_435, %c0_436, %c0_437] : memref<8x1x16xf32, #tpu.memory_space<vmem>>, vector<1x1x16xf32>
    %657 = vector.shape_cast %656 : vector<1x1x16xf32> to vector<1x16xf32>
    %658 = vector.broadcast %657 : vector<1x16xf32> to vector<17x16xf32>
    %659 = arith.addf %655, %658 : vector<17x16xf32>
    %c2_438 = arith.constant 2 : index
    %c0_439 = arith.constant 0 : index
    %c0_440 = arith.constant 0 : index
    %660 = vector.load %arg35[%c2_438, %c0_439, %c0_440] : memref<8x64x16xf32, #tpu.memory_space<vmem>>, vector<1x64x16xf32>
    %661 = vector.shape_cast %660 : vector<1x64x16xf32> to vector<64x16xf32>
    %cst_441 = arith.constant dense<0.000000e+00> : vector<17x16xf32>
    %662 = tpu.matmul %568, %661, %cst_441 {dimension_numbers = #tpu.dot_dimension_numbers<[1], [0], [0], [1], [0, 0, 1, 1], [], []>} : vector<17x64xf32>, vector<64x16xf32>, vector<17x16xf32> -> vector<17x16xf32>
    %c2_442 = arith.constant 2 : index
    %c0_443 = arith.constant 0 : index
    %c0_444 = arith.constant 0 : index
    %663 = vector.load %arg36[%c2_442, %c0_443, %c0_444] : memref<8x1x16xf32, #tpu.memory_space<vmem>>, vector<1x1x16xf32>
    %664 = vector.shape_cast %663 : vector<1x1x16xf32> to vector<1x16xf32>
    %665 = vector.broadcast %664 : vector<1x16xf32> to vector<17x16xf32>
    %666 = arith.addf %662, %665 : vector<17x16xf32>
    %cst_445 = arith.constant dense<0.000000e+00> : vector<17x17xf32>
    %667 = tpu.matmul %652, %659, %cst_445 {dimension_numbers = #tpu.dot_dimension_numbers<[1], [1], [0], [0], [0, 0, 1, 0], [], []>} : vector<17x16xf32>, vector<17x16xf32>, vector<17x17xf32> -> vector<17x17xf32>
    %cst_446 = arith.constant 2.500000e-01 : f32
    %668 = vector.broadcast %cst_446 : f32 to vector<17x17xf32>
    %669 = arith.mulf %667, %668 : vector<17x17xf32>
    %cst_447 = arith.constant dense<0xFF800000> : vector<17xf32>
    %670 = vector.multi_reduction <maximumf>, %669, %cst_447 [1] : vector<17x17xf32> to vector<17xf32>
    %671 = vector.shape_cast %670 : vector<17xf32> to vector<17x1xf32>
    %672 = vector.broadcast %671 : vector<17x1xf32> to vector<17x17xf32>
    %673 = arith.subf %669, %672 : vector<17x17xf32>
    %674 = math.exp %673 : vector<17x17xf32>
    %cst_448 = arith.constant dense<0.000000e+00> : vector<17xf32>
    %675 = vector.multi_reduction <add>, %674, %cst_448 [1] : vector<17x17xf32> to vector<17xf32>
    %676 = vector.shape_cast %675 : vector<17xf32> to vector<17x1xf32>
    %677 = tpu.reciprocal %676 {approx = true} : vector<17x1xf32> -> vector<17x1xf32>
    %678 = vector.broadcast %677 : vector<17x1xf32> to vector<17x17xf32>
    %679 = arith.mulf %674, %678 : vector<17x17xf32>
    %cst_449 = arith.constant dense<0.000000e+00> : vector<17x16xf32>
    %680 = tpu.matmul %679, %666, %cst_449 {dimension_numbers = #tpu.dot_dimension_numbers<[1], [0], [0], [1], [0, 0, 1, 1], [], []>} : vector<17x17xf32>, vector<17x16xf32>, vector<17x16xf32> -> vector<17x16xf32>
    %c2_450 = arith.constant 2 : index
    %c0_451 = arith.constant 0 : index
    %c0_452 = arith.constant 0 : index
    %681 = vector.load %arg37[%c2_450, %c0_451, %c0_452] : memref<8x16x64xf32, #tpu.memory_space<vmem>>, vector<1x16x64xf32>
    %682 = vector.shape_cast %681 : vector<1x16x64xf32> to vector<16x64xf32>
    %cst_453 = arith.constant dense<0.000000e+00> : vector<17x64xf32>
    %683 = tpu.matmul %680, %682, %cst_453 {dimension_numbers = #tpu.dot_dimension_numbers<[1], [0], [0], [1], [0, 0, 1, 1], [], []>} : vector<17x16xf32>, vector<16x64xf32>, vector<17x64xf32> -> vector<17x64xf32>
    %684 = arith.addf %645, %683 : vector<17x64xf32>
    %c3_454 = arith.constant 3 : index
    %c0_455 = arith.constant 0 : index
    %c0_456 = arith.constant 0 : index
    %685 = vector.load %arg31[%c3_454, %c0_455, %c0_456] : memref<8x64x16xf32, #tpu.memory_space<vmem>>, vector<1x64x16xf32>
    %686 = vector.shape_cast %685 : vector<1x64x16xf32> to vector<64x16xf32>
    %cst_457 = arith.constant dense<0.000000e+00> : vector<17x16xf32>
    %687 = tpu.matmul %568, %686, %cst_457 {dimension_numbers = #tpu.dot_dimension_numbers<[1], [0], [0], [1], [0, 0, 1, 1], [], []>} : vector<17x64xf32>, vector<64x16xf32>, vector<17x16xf32> -> vector<17x16xf32>
    %c3_458 = arith.constant 3 : index
    %c0_459 = arith.constant 0 : index
    %c0_460 = arith.constant 0 : index
    %688 = vector.load %arg32[%c3_458, %c0_459, %c0_460] : memref<8x1x16xf32, #tpu.memory_space<vmem>>, vector<1x1x16xf32>
    %689 = vector.shape_cast %688 : vector<1x1x16xf32> to vector<1x16xf32>
    %690 = vector.broadcast %689 : vector<1x16xf32> to vector<17x16xf32>
    %691 = arith.addf %687, %690 : vector<17x16xf32>
    %c3_461 = arith.constant 3 : index
    %c0_462 = arith.constant 0 : index
    %c0_463 = arith.constant 0 : index
    %692 = vector.load %arg33[%c3_461, %c0_462, %c0_463] : memref<8x64x16xf32, #tpu.memory_space<vmem>>, vector<1x64x16xf32>
    %693 = vector.shape_cast %692 : vector<1x64x16xf32> to vector<64x16xf32>
    %cst_464 = arith.constant dense<0.000000e+00> : vector<17x16xf32>
    %694 = tpu.matmul %568, %693, %cst_464 {dimension_numbers = #tpu.dot_dimension_numbers<[1], [0], [0], [1], [0, 0, 1, 1], [], []>} : vector<17x64xf32>, vector<64x16xf32>, vector<17x16xf32> -> vector<17x16xf32>
    %c3_465 = arith.constant 3 : index
    %c0_466 = arith.constant 0 : index
    %c0_467 = arith.constant 0 : index
    %695 = vector.load %arg34[%c3_465, %c0_466, %c0_467] : memref<8x1x16xf32, #tpu.memory_space<vmem>>, vector<1x1x16xf32>
    %696 = vector.shape_cast %695 : vector<1x1x16xf32> to vector<1x16xf32>
    %697 = vector.broadcast %696 : vector<1x16xf32> to vector<17x16xf32>
    %698 = arith.addf %694, %697 : vector<17x16xf32>
    %c3_468 = arith.constant 3 : index
    %c0_469 = arith.constant 0 : index
    %c0_470 = arith.constant 0 : index
    %699 = vector.load %arg35[%c3_468, %c0_469, %c0_470] : memref<8x64x16xf32, #tpu.memory_space<vmem>>, vector<1x64x16xf32>
    %700 = vector.shape_cast %699 : vector<1x64x16xf32> to vector<64x16xf32>
    %cst_471 = arith.constant dense<0.000000e+00> : vector<17x16xf32>
    %701 = tpu.matmul %568, %700, %cst_471 {dimension_numbers = #tpu.dot_dimension_numbers<[1], [0], [0], [1], [0, 0, 1, 1], [], []>} : vector<17x64xf32>, vector<64x16xf32>, vector<17x16xf32> -> vector<17x16xf32>
    %c3_472 = arith.constant 3 : index
    %c0_473 = arith.constant 0 : index
    %c0_474 = arith.constant 0 : index
    %702 = vector.load %arg36[%c3_472, %c0_473, %c0_474] : memref<8x1x16xf32, #tpu.memory_space<vmem>>, vector<1x1x16xf32>
    %703 = vector.shape_cast %702 : vector<1x1x16xf32> to vector<1x16xf32>
    %704 = vector.broadcast %703 : vector<1x16xf32> to vector<17x16xf32>
    %705 = arith.addf %701, %704 : vector<17x16xf32>
    %cst_475 = arith.constant dense<0.000000e+00> : vector<17x17xf32>
    %706 = tpu.matmul %691, %698, %cst_475 {dimension_numbers = #tpu.dot_dimension_numbers<[1], [1], [0], [0], [0, 0, 1, 0], [], []>} : vector<17x16xf32>, vector<17x16xf32>, vector<17x17xf32> -> vector<17x17xf32>
    %cst_476 = arith.constant 2.500000e-01 : f32
    %707 = vector.broadcast %cst_476 : f32 to vector<17x17xf32>
    %708 = arith.mulf %706, %707 : vector<17x17xf32>
    %cst_477 = arith.constant dense<0xFF800000> : vector<17xf32>
    %709 = vector.multi_reduction <maximumf>, %708, %cst_477 [1] : vector<17x17xf32> to vector<17xf32>
    %710 = vector.shape_cast %709 : vector<17xf32> to vector<17x1xf32>
    %711 = vector.broadcast %710 : vector<17x1xf32> to vector<17x17xf32>
    %712 = arith.subf %708, %711 : vector<17x17xf32>
    %713 = math.exp %712 : vector<17x17xf32>
    %cst_478 = arith.constant dense<0.000000e+00> : vector<17xf32>
    %714 = vector.multi_reduction <add>, %713, %cst_478 [1] : vector<17x17xf32> to vector<17xf32>
    %715 = vector.shape_cast %714 : vector<17xf32> to vector<17x1xf32>
    %716 = tpu.reciprocal %715 {approx = true} : vector<17x1xf32> -> vector<17x1xf32>
    %717 = vector.broadcast %716 : vector<17x1xf32> to vector<17x17xf32>
    %718 = arith.mulf %713, %717 : vector<17x17xf32>
    %cst_479 = arith.constant dense<0.000000e+00> : vector<17x16xf32>
    %719 = tpu.matmul %718, %705, %cst_479 {dimension_numbers = #tpu.dot_dimension_numbers<[1], [0], [0], [1], [0, 0, 1, 1], [], []>} : vector<17x17xf32>, vector<17x16xf32>, vector<17x16xf32> -> vector<17x16xf32>
    %c3_480 = arith.constant 3 : index
    %c0_481 = arith.constant 0 : index
    %c0_482 = arith.constant 0 : index
    %720 = vector.load %arg37[%c3_480, %c0_481, %c0_482] : memref<8x16x64xf32, #tpu.memory_space<vmem>>, vector<1x16x64xf32>
    %721 = vector.shape_cast %720 : vector<1x16x64xf32> to vector<16x64xf32>
    %cst_483 = arith.constant dense<0.000000e+00> : vector<17x64xf32>
    %722 = tpu.matmul %719, %721, %cst_483 {dimension_numbers = #tpu.dot_dimension_numbers<[1], [0], [0], [1], [0, 0, 1, 1], [], []>} : vector<17x16xf32>, vector<16x64xf32>, vector<17x64xf32> -> vector<17x64xf32>
    %723 = arith.addf %684, %722 : vector<17x64xf32>
    %724 = arith.addf %542, %723 : vector<17x64xf32>
    %c0_484 = arith.constant 0 : index
    %c0_485 = arith.constant 0 : index
    %c0_486 = arith.constant 0 : index
    %725 = vector.load %arg38[%c0_484, %c0_485, %c0_486] : memref<2x1x64xf32, #tpu.memory_space<vmem>>, vector<1x1x64xf32>
    %726 = vector.shape_cast %725 : vector<1x1x64xf32> to vector<1x64xf32>
    %727 = vector.broadcast %726 : vector<1x64xf32> to vector<17x64xf32>
    %728 = arith.addf %724, %727 : vector<17x64xf32>
    %c0_487 = arith.constant 0 : index
    %c0_488 = arith.constant 0 : index
    %c0_489 = arith.constant 0 : index
    %729 = vector.load %arg39[%c0_487, %c0_488, %c0_489] : memref<2x1x64xf32, #tpu.memory_space<vmem>>, vector<1x1x64xf32>
    %730 = vector.shape_cast %729 : vector<1x1x64xf32> to vector<1x64xf32>
    %c0_490 = arith.constant 0 : index
    %c0_491 = arith.constant 0 : index
    %c0_492 = arith.constant 0 : index
    %731 = vector.load %arg40[%c0_490, %c0_491, %c0_492] : memref<2x1x64xf32, #tpu.memory_space<vmem>>, vector<1x1x64xf32>
    %732 = vector.shape_cast %731 : vector<1x1x64xf32> to vector<1x64xf32>
    %cst_493 = arith.constant dense<0.000000e+00> : vector<17xf32>
    %733 = vector.multi_reduction <add>, %728, %cst_493 [1] : vector<17x64xf32> to vector<17xf32>
    %734 = vector.shape_cast %733 : vector<17xf32> to vector<17x1xf32>
    %cst_494 = arith.constant 6.400000e+01 : f32
    %735 = vector.broadcast %cst_494 : f32 to vector<17x1xf32>
    %736 = arith.divf %734, %735 : vector<17x1xf32>
    %737 = vector.broadcast %736 : vector<17x1xf32> to vector<17x64xf32>
    %738 = arith.subf %728, %737 : vector<17x64xf32>
    %739 = arith.mulf %738, %738 : vector<17x64xf32>
    %cst_495 = arith.constant dense<0.000000e+00> : vector<17xf32>
    %740 = vector.multi_reduction <add>, %739, %cst_495 [1] : vector<17x64xf32> to vector<17xf32>
    %741 = vector.shape_cast %740 : vector<17xf32> to vector<17x1xf32>
    %cst_496 = arith.constant 6.400000e+01 : f32
    %742 = vector.broadcast %cst_496 : f32 to vector<17x1xf32>
    %743 = arith.divf %741, %742 : vector<17x1xf32>
    %744 = vector.broadcast %736 : vector<17x1xf32> to vector<17x64xf32>
    %745 = arith.subf %728, %744 : vector<17x64xf32>
    %cst_497 = arith.constant 9.99999974E-6 : f32
    %746 = vector.broadcast %cst_497 : f32 to vector<17x1xf32>
    %747 = arith.addf %743, %746 : vector<17x1xf32>
    %748 = math.rsqrt %747 : vector<17x1xf32>
    %749 = vector.broadcast %748 : vector<17x1xf32> to vector<17x64xf32>
    %750 = arith.mulf %745, %749 : vector<17x64xf32>
    %751 = vector.broadcast %730 : vector<1x64xf32> to vector<17x64xf32>
    %752 = arith.mulf %750, %751 : vector<17x64xf32>
    %753 = vector.broadcast %732 : vector<1x64xf32> to vector<17x64xf32>
    %754 = arith.addf %752, %753 : vector<17x64xf32>
    %c0_498 = arith.constant 0 : index
    %c0_499 = arith.constant 0 : index
    %c0_500 = arith.constant 0 : index
    %755 = vector.load %arg41[%c0_498, %c0_499, %c0_500] : memref<2x64x256xf32, #tpu.memory_space<vmem>>, vector<1x64x256xf32>
    %756 = vector.shape_cast %755 : vector<1x64x256xf32> to vector<64x256xf32>
    %cst_501 = arith.constant dense<0.000000e+00> : vector<17x256xf32>
    %757 = tpu.matmul %754, %756, %cst_501 {dimension_numbers = #tpu.dot_dimension_numbers<[1], [0], [0], [1], [0, 0, 1, 1], [], []>} : vector<17x64xf32>, vector<64x256xf32>, vector<17x256xf32> -> vector<17x256xf32>
    %c0_502 = arith.constant 0 : index
    %c0_503 = arith.constant 0 : index
    %c0_504 = arith.constant 0 : index
    %758 = vector.load %arg42[%c0_502, %c0_503, %c0_504] : memref<2x1x256xf32, #tpu.memory_space<vmem>>, vector<1x1x256xf32>
    %759 = vector.shape_cast %758 : vector<1x1x256xf32> to vector<1x256xf32>
    %760 = vector.broadcast %759 : vector<1x256xf32> to vector<17x256xf32>
    %761 = arith.addf %757, %760 : vector<17x256xf32>
    %cst_505 = arith.constant 5.000000e-01 : f32
    %762 = vector.broadcast %cst_505 : f32 to vector<17x256xf32>
    %763 = arith.mulf %762, %761 : vector<17x256xf32>
    %764 = arith.mulf %761, %761 : vector<17x256xf32>
    %765 = arith.mulf %761, %764 : vector<17x256xf32>
    %cst_506 = arith.constant 4.471500e-02 : f32
    %766 = vector.broadcast %cst_506 : f32 to vector<17x256xf32>
    %767 = arith.mulf %766, %765 : vector<17x256xf32>
    %768 = arith.addf %761, %767 : vector<17x256xf32>
    %cst_507 = arith.constant 0.797884583 : f32
    %769 = vector.broadcast %cst_507 : f32 to vector<17x256xf32>
    %770 = arith.mulf %769, %768 : vector<17x256xf32>
    %771 = math.tanh %770 : vector<17x256xf32>
    %cst_508 = arith.constant 1.000000e+00 : f32
    %772 = vector.broadcast %cst_508 : f32 to vector<17x256xf32>
    %773 = arith.addf %772, %771 : vector<17x256xf32>
    %774 = arith.mulf %763, %773 : vector<17x256xf32>
    %c0_509 = arith.constant 0 : index
    %c0_510 = arith.constant 0 : index
    %c0_511 = arith.constant 0 : index
    %775 = vector.load %arg43[%c0_509, %c0_510, %c0_511] : memref<2x256x64xf32, #tpu.memory_space<vmem>>, vector<1x256x64xf32>
    %776 = vector.shape_cast %775 : vector<1x256x64xf32> to vector<256x64xf32>
    %cst_512 = arith.constant dense<0.000000e+00> : vector<17x64xf32>
    %777 = tpu.matmul %774, %776, %cst_512 {dimension_numbers = #tpu.dot_dimension_numbers<[1], [0], [0], [1], [0, 0, 1, 1], [], []>} : vector<17x256xf32>, vector<256x64xf32>, vector<17x64xf32> -> vector<17x64xf32>
    %c0_513 = arith.constant 0 : index
    %c0_514 = arith.constant 0 : index
    %c0_515 = arith.constant 0 : index
    %778 = vector.load %arg44[%c0_513, %c0_514, %c0_515] : memref<2x1x64xf32, #tpu.memory_space<vmem>>, vector<1x1x64xf32>
    %779 = vector.shape_cast %778 : vector<1x1x64xf32> to vector<1x64xf32>
    %780 = vector.broadcast %779 : vector<1x64xf32> to vector<17x64xf32>
    %781 = arith.addf %777, %780 : vector<17x64xf32>
    %782 = arith.addf %728, %781 : vector<17x64xf32>
    %c1_516 = arith.constant 1 : index
    %c0_517 = arith.constant 0 : index
    %c0_518 = arith.constant 0 : index
    %783 = vector.load %arg29[%c1_516, %c0_517, %c0_518] : memref<2x1x64xf32, #tpu.memory_space<vmem>>, vector<1x1x64xf32>
    %784 = vector.shape_cast %783 : vector<1x1x64xf32> to vector<1x64xf32>
    %c1_519 = arith.constant 1 : index
    %c0_520 = arith.constant 0 : index
    %c0_521 = arith.constant 0 : index
    %785 = vector.load %arg30[%c1_519, %c0_520, %c0_521] : memref<2x1x64xf32, #tpu.memory_space<vmem>>, vector<1x1x64xf32>
    %786 = vector.shape_cast %785 : vector<1x1x64xf32> to vector<1x64xf32>
    %cst_522 = arith.constant dense<0.000000e+00> : vector<17xf32>
    %787 = vector.multi_reduction <add>, %782, %cst_522 [1] : vector<17x64xf32> to vector<17xf32>
    %788 = vector.shape_cast %787 : vector<17xf32> to vector<17x1xf32>
    %cst_523 = arith.constant 6.400000e+01 : f32
    %789 = vector.broadcast %cst_523 : f32 to vector<17x1xf32>
    %790 = arith.divf %788, %789 : vector<17x1xf32>
    %791 = vector.broadcast %790 : vector<17x1xf32> to vector<17x64xf32>
    %792 = arith.subf %782, %791 : vector<17x64xf32>
    %793 = arith.mulf %792, %792 : vector<17x64xf32>
    %cst_524 = arith.constant dense<0.000000e+00> : vector<17xf32>
    %794 = vector.multi_reduction <add>, %793, %cst_524 [1] : vector<17x64xf32> to vector<17xf32>
    %795 = vector.shape_cast %794 : vector<17xf32> to vector<17x1xf32>
    %cst_525 = arith.constant 6.400000e+01 : f32
    %796 = vector.broadcast %cst_525 : f32 to vector<17x1xf32>
    %797 = arith.divf %795, %796 : vector<17x1xf32>
    %798 = vector.broadcast %790 : vector<17x1xf32> to vector<17x64xf32>
    %799 = arith.subf %782, %798 : vector<17x64xf32>
    %cst_526 = arith.constant 9.99999974E-6 : f32
    %800 = vector.broadcast %cst_526 : f32 to vector<17x1xf32>
    %801 = arith.addf %797, %800 : vector<17x1xf32>
    %802 = math.rsqrt %801 : vector<17x1xf32>
    %803 = vector.broadcast %802 : vector<17x1xf32> to vector<17x64xf32>
    %804 = arith.mulf %799, %803 : vector<17x64xf32>
    %805 = vector.broadcast %784 : vector<1x64xf32> to vector<17x64xf32>
    %806 = arith.mulf %804, %805 : vector<17x64xf32>
    %807 = vector.broadcast %786 : vector<1x64xf32> to vector<17x64xf32>
    %808 = arith.addf %806, %807 : vector<17x64xf32>
    %c4_527 = arith.constant 4 : index
    %c0_528 = arith.constant 0 : index
    %c0_529 = arith.constant 0 : index
    %809 = vector.load %arg31[%c4_527, %c0_528, %c0_529] : memref<8x64x16xf32, #tpu.memory_space<vmem>>, vector<1x64x16xf32>
    %810 = vector.shape_cast %809 : vector<1x64x16xf32> to vector<64x16xf32>
    %cst_530 = arith.constant dense<0.000000e+00> : vector<17x16xf32>
    %811 = tpu.matmul %808, %810, %cst_530 {dimension_numbers = #tpu.dot_dimension_numbers<[1], [0], [0], [1], [0, 0, 1, 1], [], []>} : vector<17x64xf32>, vector<64x16xf32>, vector<17x16xf32> -> vector<17x16xf32>
    %c4_531 = arith.constant 4 : index
    %c0_532 = arith.constant 0 : index
    %c0_533 = arith.constant 0 : index
    %812 = vector.load %arg32[%c4_531, %c0_532, %c0_533] : memref<8x1x16xf32, #tpu.memory_space<vmem>>, vector<1x1x16xf32>
    %813 = vector.shape_cast %812 : vector<1x1x16xf32> to vector<1x16xf32>
    %814 = vector.broadcast %813 : vector<1x16xf32> to vector<17x16xf32>
    %815 = arith.addf %811, %814 : vector<17x16xf32>
    %c4_534 = arith.constant 4 : index
    %c0_535 = arith.constant 0 : index
    %c0_536 = arith.constant 0 : index
    %816 = vector.load %arg33[%c4_534, %c0_535, %c0_536] : memref<8x64x16xf32, #tpu.memory_space<vmem>>, vector<1x64x16xf32>
    %817 = vector.shape_cast %816 : vector<1x64x16xf32> to vector<64x16xf32>
    %cst_537 = arith.constant dense<0.000000e+00> : vector<17x16xf32>
    %818 = tpu.matmul %808, %817, %cst_537 {dimension_numbers = #tpu.dot_dimension_numbers<[1], [0], [0], [1], [0, 0, 1, 1], [], []>} : vector<17x64xf32>, vector<64x16xf32>, vector<17x16xf32> -> vector<17x16xf32>
    %c4_538 = arith.constant 4 : index
    %c0_539 = arith.constant 0 : index
    %c0_540 = arith.constant 0 : index
    %819 = vector.load %arg34[%c4_538, %c0_539, %c0_540] : memref<8x1x16xf32, #tpu.memory_space<vmem>>, vector<1x1x16xf32>
    %820 = vector.shape_cast %819 : vector<1x1x16xf32> to vector<1x16xf32>
    %821 = vector.broadcast %820 : vector<1x16xf32> to vector<17x16xf32>
    %822 = arith.addf %818, %821 : vector<17x16xf32>
    %c4_541 = arith.constant 4 : index
    %c0_542 = arith.constant 0 : index
    %c0_543 = arith.constant 0 : index
    %823 = vector.load %arg35[%c4_541, %c0_542, %c0_543] : memref<8x64x16xf32, #tpu.memory_space<vmem>>, vector<1x64x16xf32>
    %824 = vector.shape_cast %823 : vector<1x64x16xf32> to vector<64x16xf32>
    %cst_544 = arith.constant dense<0.000000e+00> : vector<17x16xf32>
    %825 = tpu.matmul %808, %824, %cst_544 {dimension_numbers = #tpu.dot_dimension_numbers<[1], [0], [0], [1], [0, 0, 1, 1], [], []>} : vector<17x64xf32>, vector<64x16xf32>, vector<17x16xf32> -> vector<17x16xf32>
    %c4_545 = arith.constant 4 : index
    %c0_546 = arith.constant 0 : index
    %c0_547 = arith.constant 0 : index
    %826 = vector.load %arg36[%c4_545, %c0_546, %c0_547] : memref<8x1x16xf32, #tpu.memory_space<vmem>>, vector<1x1x16xf32>
    %827 = vector.shape_cast %826 : vector<1x1x16xf32> to vector<1x16xf32>
    %828 = vector.broadcast %827 : vector<1x16xf32> to vector<17x16xf32>
    %829 = arith.addf %825, %828 : vector<17x16xf32>
    %cst_548 = arith.constant dense<0.000000e+00> : vector<17x17xf32>
    %830 = tpu.matmul %815, %822, %cst_548 {dimension_numbers = #tpu.dot_dimension_numbers<[1], [1], [0], [0], [0, 0, 1, 0], [], []>} : vector<17x16xf32>, vector<17x16xf32>, vector<17x17xf32> -> vector<17x17xf32>
    %cst_549 = arith.constant 2.500000e-01 : f32
    %831 = vector.broadcast %cst_549 : f32 to vector<17x17xf32>
    %832 = arith.mulf %830, %831 : vector<17x17xf32>
    %cst_550 = arith.constant dense<0xFF800000> : vector<17xf32>
    %833 = vector.multi_reduction <maximumf>, %832, %cst_550 [1] : vector<17x17xf32> to vector<17xf32>
    %834 = vector.shape_cast %833 : vector<17xf32> to vector<17x1xf32>
    %835 = vector.broadcast %834 : vector<17x1xf32> to vector<17x17xf32>
    %836 = arith.subf %832, %835 : vector<17x17xf32>
    %837 = math.exp %836 : vector<17x17xf32>
    %cst_551 = arith.constant dense<0.000000e+00> : vector<17xf32>
    %838 = vector.multi_reduction <add>, %837, %cst_551 [1] : vector<17x17xf32> to vector<17xf32>
    %839 = vector.shape_cast %838 : vector<17xf32> to vector<17x1xf32>
    %840 = tpu.reciprocal %839 {approx = true} : vector<17x1xf32> -> vector<17x1xf32>
    %841 = vector.broadcast %840 : vector<17x1xf32> to vector<17x17xf32>
    %842 = arith.mulf %837, %841 : vector<17x17xf32>
    %cst_552 = arith.constant dense<0.000000e+00> : vector<17x16xf32>
    %843 = tpu.matmul %842, %829, %cst_552 {dimension_numbers = #tpu.dot_dimension_numbers<[1], [0], [0], [1], [0, 0, 1, 1], [], []>} : vector<17x17xf32>, vector<17x16xf32>, vector<17x16xf32> -> vector<17x16xf32>
    %c4_553 = arith.constant 4 : index
    %c0_554 = arith.constant 0 : index
    %c0_555 = arith.constant 0 : index
    %844 = vector.load %arg37[%c4_553, %c0_554, %c0_555] : memref<8x16x64xf32, #tpu.memory_space<vmem>>, vector<1x16x64xf32>
    %845 = vector.shape_cast %844 : vector<1x16x64xf32> to vector<16x64xf32>
    %cst_556 = arith.constant dense<0.000000e+00> : vector<17x64xf32>
    %846 = tpu.matmul %843, %845, %cst_556 {dimension_numbers = #tpu.dot_dimension_numbers<[1], [0], [0], [1], [0, 0, 1, 1], [], []>} : vector<17x16xf32>, vector<16x64xf32>, vector<17x64xf32> -> vector<17x64xf32>
    %c5_557 = arith.constant 5 : index
    %c0_558 = arith.constant 0 : index
    %c0_559 = arith.constant 0 : index
    %847 = vector.load %arg31[%c5_557, %c0_558, %c0_559] : memref<8x64x16xf32, #tpu.memory_space<vmem>>, vector<1x64x16xf32>
    %848 = vector.shape_cast %847 : vector<1x64x16xf32> to vector<64x16xf32>
    %cst_560 = arith.constant dense<0.000000e+00> : vector<17x16xf32>
    %849 = tpu.matmul %808, %848, %cst_560 {dimension_numbers = #tpu.dot_dimension_numbers<[1], [0], [0], [1], [0, 0, 1, 1], [], []>} : vector<17x64xf32>, vector<64x16xf32>, vector<17x16xf32> -> vector<17x16xf32>
    %c5_561 = arith.constant 5 : index
    %c0_562 = arith.constant 0 : index
    %c0_563 = arith.constant 0 : index
    %850 = vector.load %arg32[%c5_561, %c0_562, %c0_563] : memref<8x1x16xf32, #tpu.memory_space<vmem>>, vector<1x1x16xf32>
    %851 = vector.shape_cast %850 : vector<1x1x16xf32> to vector<1x16xf32>
    %852 = vector.broadcast %851 : vector<1x16xf32> to vector<17x16xf32>
    %853 = arith.addf %849, %852 : vector<17x16xf32>
    %c5_564 = arith.constant 5 : index
    %c0_565 = arith.constant 0 : index
    %c0_566 = arith.constant 0 : index
    %854 = vector.load %arg33[%c5_564, %c0_565, %c0_566] : memref<8x64x16xf32, #tpu.memory_space<vmem>>, vector<1x64x16xf32>
    %855 = vector.shape_cast %854 : vector<1x64x16xf32> to vector<64x16xf32>
    %cst_567 = arith.constant dense<0.000000e+00> : vector<17x16xf32>
    %856 = tpu.matmul %808, %855, %cst_567 {dimension_numbers = #tpu.dot_dimension_numbers<[1], [0], [0], [1], [0, 0, 1, 1], [], []>} : vector<17x64xf32>, vector<64x16xf32>, vector<17x16xf32> -> vector<17x16xf32>
    %c5_568 = arith.constant 5 : index
    %c0_569 = arith.constant 0 : index
    %c0_570 = arith.constant 0 : index
    %857 = vector.load %arg34[%c5_568, %c0_569, %c0_570] : memref<8x1x16xf32, #tpu.memory_space<vmem>>, vector<1x1x16xf32>
    %858 = vector.shape_cast %857 : vector<1x1x16xf32> to vector<1x16xf32>
    %859 = vector.broadcast %858 : vector<1x16xf32> to vector<17x16xf32>
    %860 = arith.addf %856, %859 : vector<17x16xf32>
    %c5_571 = arith.constant 5 : index
    %c0_572 = arith.constant 0 : index
    %c0_573 = arith.constant 0 : index
    %861 = vector.load %arg35[%c5_571, %c0_572, %c0_573] : memref<8x64x16xf32, #tpu.memory_space<vmem>>, vector<1x64x16xf32>
    %862 = vector.shape_cast %861 : vector<1x64x16xf32> to vector<64x16xf32>
    %cst_574 = arith.constant dense<0.000000e+00> : vector<17x16xf32>
    %863 = tpu.matmul %808, %862, %cst_574 {dimension_numbers = #tpu.dot_dimension_numbers<[1], [0], [0], [1], [0, 0, 1, 1], [], []>} : vector<17x64xf32>, vector<64x16xf32>, vector<17x16xf32> -> vector<17x16xf32>
    %c5_575 = arith.constant 5 : index
    %c0_576 = arith.constant 0 : index
    %c0_577 = arith.constant 0 : index
    %864 = vector.load %arg36[%c5_575, %c0_576, %c0_577] : memref<8x1x16xf32, #tpu.memory_space<vmem>>, vector<1x1x16xf32>
    %865 = vector.shape_cast %864 : vector<1x1x16xf32> to vector<1x16xf32>
    %866 = vector.broadcast %865 : vector<1x16xf32> to vector<17x16xf32>
    %867 = arith.addf %863, %866 : vector<17x16xf32>
    %cst_578 = arith.constant dense<0.000000e+00> : vector<17x17xf32>
    %868 = tpu.matmul %853, %860, %cst_578 {dimension_numbers = #tpu.dot_dimension_numbers<[1], [1], [0], [0], [0, 0, 1, 0], [], []>} : vector<17x16xf32>, vector<17x16xf32>, vector<17x17xf32> -> vector<17x17xf32>
    %cst_579 = arith.constant 2.500000e-01 : f32
    %869 = vector.broadcast %cst_579 : f32 to vector<17x17xf32>
    %870 = arith.mulf %868, %869 : vector<17x17xf32>
    %cst_580 = arith.constant dense<0xFF800000> : vector<17xf32>
    %871 = vector.multi_reduction <maximumf>, %870, %cst_580 [1] : vector<17x17xf32> to vector<17xf32>
    %872 = vector.shape_cast %871 : vector<17xf32> to vector<17x1xf32>
    %873 = vector.broadcast %872 : vector<17x1xf32> to vector<17x17xf32>
    %874 = arith.subf %870, %873 : vector<17x17xf32>
    %875 = math.exp %874 : vector<17x17xf32>
    %cst_581 = arith.constant dense<0.000000e+00> : vector<17xf32>
    %876 = vector.multi_reduction <add>, %875, %cst_581 [1] : vector<17x17xf32> to vector<17xf32>
    %877 = vector.shape_cast %876 : vector<17xf32> to vector<17x1xf32>
    %878 = tpu.reciprocal %877 {approx = true} : vector<17x1xf32> -> vector<17x1xf32>
    %879 = vector.broadcast %878 : vector<17x1xf32> to vector<17x17xf32>
    %880 = arith.mulf %875, %879 : vector<17x17xf32>
    %cst_582 = arith.constant dense<0.000000e+00> : vector<17x16xf32>
    %881 = tpu.matmul %880, %867, %cst_582 {dimension_numbers = #tpu.dot_dimension_numbers<[1], [0], [0], [1], [0, 0, 1, 1], [], []>} : vector<17x17xf32>, vector<17x16xf32>, vector<17x16xf32> -> vector<17x16xf32>
    %c5_583 = arith.constant 5 : index
    %c0_584 = arith.constant 0 : index
    %c0_585 = arith.constant 0 : index
    %882 = vector.load %arg37[%c5_583, %c0_584, %c0_585] : memref<8x16x64xf32, #tpu.memory_space<vmem>>, vector<1x16x64xf32>
    %883 = vector.shape_cast %882 : vector<1x16x64xf32> to vector<16x64xf32>
    %cst_586 = arith.constant dense<0.000000e+00> : vector<17x64xf32>
    %884 = tpu.matmul %881, %883, %cst_586 {dimension_numbers = #tpu.dot_dimension_numbers<[1], [0], [0], [1], [0, 0, 1, 1], [], []>} : vector<17x16xf32>, vector<16x64xf32>, vector<17x64xf32> -> vector<17x64xf32>
    %885 = arith.addf %846, %884 : vector<17x64xf32>
    %c6_587 = arith.constant 6 : index
    %c0_588 = arith.constant 0 : index
    %c0_589 = arith.constant 0 : index
    %886 = vector.load %arg31[%c6_587, %c0_588, %c0_589] : memref<8x64x16xf32, #tpu.memory_space<vmem>>, vector<1x64x16xf32>
    %887 = vector.shape_cast %886 : vector<1x64x16xf32> to vector<64x16xf32>
    %cst_590 = arith.constant dense<0.000000e+00> : vector<17x16xf32>
    %888 = tpu.matmul %808, %887, %cst_590 {dimension_numbers = #tpu.dot_dimension_numbers<[1], [0], [0], [1], [0, 0, 1, 1], [], []>} : vector<17x64xf32>, vector<64x16xf32>, vector<17x16xf32> -> vector<17x16xf32>
    %c6_591 = arith.constant 6 : index
    %c0_592 = arith.constant 0 : index
    %c0_593 = arith.constant 0 : index
    %889 = vector.load %arg32[%c6_591, %c0_592, %c0_593] : memref<8x1x16xf32, #tpu.memory_space<vmem>>, vector<1x1x16xf32>
    %890 = vector.shape_cast %889 : vector<1x1x16xf32> to vector<1x16xf32>
    %891 = vector.broadcast %890 : vector<1x16xf32> to vector<17x16xf32>
    %892 = arith.addf %888, %891 : vector<17x16xf32>
    %c6_594 = arith.constant 6 : index
    %c0_595 = arith.constant 0 : index
    %c0_596 = arith.constant 0 : index
    %893 = vector.load %arg33[%c6_594, %c0_595, %c0_596] : memref<8x64x16xf32, #tpu.memory_space<vmem>>, vector<1x64x16xf32>
    %894 = vector.shape_cast %893 : vector<1x64x16xf32> to vector<64x16xf32>
    %cst_597 = arith.constant dense<0.000000e+00> : vector<17x16xf32>
    %895 = tpu.matmul %808, %894, %cst_597 {dimension_numbers = #tpu.dot_dimension_numbers<[1], [0], [0], [1], [0, 0, 1, 1], [], []>} : vector<17x64xf32>, vector<64x16xf32>, vector<17x16xf32> -> vector<17x16xf32>
    %c6_598 = arith.constant 6 : index
    %c0_599 = arith.constant 0 : index
    %c0_600 = arith.constant 0 : index
    %896 = vector.load %arg34[%c6_598, %c0_599, %c0_600] : memref<8x1x16xf32, #tpu.memory_space<vmem>>, vector<1x1x16xf32>
    %897 = vector.shape_cast %896 : vector<1x1x16xf32> to vector<1x16xf32>
    %898 = vector.broadcast %897 : vector<1x16xf32> to vector<17x16xf32>
    %899 = arith.addf %895, %898 : vector<17x16xf32>
    %c6_601 = arith.constant 6 : index
    %c0_602 = arith.constant 0 : index
    %c0_603 = arith.constant 0 : index
    %900 = vector.load %arg35[%c6_601, %c0_602, %c0_603] : memref<8x64x16xf32, #tpu.memory_space<vmem>>, vector<1x64x16xf32>
    %901 = vector.shape_cast %900 : vector<1x64x16xf32> to vector<64x16xf32>
    %cst_604 = arith.constant dense<0.000000e+00> : vector<17x16xf32>
    %902 = tpu.matmul %808, %901, %cst_604 {dimension_numbers = #tpu.dot_dimension_numbers<[1], [0], [0], [1], [0, 0, 1, 1], [], []>} : vector<17x64xf32>, vector<64x16xf32>, vector<17x16xf32> -> vector<17x16xf32>
    %c6_605 = arith.constant 6 : index
    %c0_606 = arith.constant 0 : index
    %c0_607 = arith.constant 0 : index
    %903 = vector.load %arg36[%c6_605, %c0_606, %c0_607] : memref<8x1x16xf32, #tpu.memory_space<vmem>>, vector<1x1x16xf32>
    %904 = vector.shape_cast %903 : vector<1x1x16xf32> to vector<1x16xf32>
    %905 = vector.broadcast %904 : vector<1x16xf32> to vector<17x16xf32>
    %906 = arith.addf %902, %905 : vector<17x16xf32>
    %cst_608 = arith.constant dense<0.000000e+00> : vector<17x17xf32>
    %907 = tpu.matmul %892, %899, %cst_608 {dimension_numbers = #tpu.dot_dimension_numbers<[1], [1], [0], [0], [0, 0, 1, 0], [], []>} : vector<17x16xf32>, vector<17x16xf32>, vector<17x17xf32> -> vector<17x17xf32>
    %cst_609 = arith.constant 2.500000e-01 : f32
    %908 = vector.broadcast %cst_609 : f32 to vector<17x17xf32>
    %909 = arith.mulf %907, %908 : vector<17x17xf32>
    %cst_610 = arith.constant dense<0xFF800000> : vector<17xf32>
    %910 = vector.multi_reduction <maximumf>, %909, %cst_610 [1] : vector<17x17xf32> to vector<17xf32>
    %911 = vector.shape_cast %910 : vector<17xf32> to vector<17x1xf32>
    %912 = vector.broadcast %911 : vector<17x1xf32> to vector<17x17xf32>
    %913 = arith.subf %909, %912 : vector<17x17xf32>
    %914 = math.exp %913 : vector<17x17xf32>
    %cst_611 = arith.constant dense<0.000000e+00> : vector<17xf32>
    %915 = vector.multi_reduction <add>, %914, %cst_611 [1] : vector<17x17xf32> to vector<17xf32>
    %916 = vector.shape_cast %915 : vector<17xf32> to vector<17x1xf32>
    %917 = tpu.reciprocal %916 {approx = true} : vector<17x1xf32> -> vector<17x1xf32>
    %918 = vector.broadcast %917 : vector<17x1xf32> to vector<17x17xf32>
    %919 = arith.mulf %914, %918 : vector<17x17xf32>
    %cst_612 = arith.constant dense<0.000000e+00> : vector<17x16xf32>
    %920 = tpu.matmul %919, %906, %cst_612 {dimension_numbers = #tpu.dot_dimension_numbers<[1], [0], [0], [1], [0, 0, 1, 1], [], []>} : vector<17x17xf32>, vector<17x16xf32>, vector<17x16xf32> -> vector<17x16xf32>
    %c6_613 = arith.constant 6 : index
    %c0_614 = arith.constant 0 : index
    %c0_615 = arith.constant 0 : index
    %921 = vector.load %arg37[%c6_613, %c0_614, %c0_615] : memref<8x16x64xf32, #tpu.memory_space<vmem>>, vector<1x16x64xf32>
    %922 = vector.shape_cast %921 : vector<1x16x64xf32> to vector<16x64xf32>
    %cst_616 = arith.constant dense<0.000000e+00> : vector<17x64xf32>
    %923 = tpu.matmul %920, %922, %cst_616 {dimension_numbers = #tpu.dot_dimension_numbers<[1], [0], [0], [1], [0, 0, 1, 1], [], []>} : vector<17x16xf32>, vector<16x64xf32>, vector<17x64xf32> -> vector<17x64xf32>
    %924 = arith.addf %885, %923 : vector<17x64xf32>
    %c7_617 = arith.constant 7 : index
    %c0_618 = arith.constant 0 : index
    %c0_619 = arith.constant 0 : index
    %925 = vector.load %arg31[%c7_617, %c0_618, %c0_619] : memref<8x64x16xf32, #tpu.memory_space<vmem>>, vector<1x64x16xf32>
    %926 = vector.shape_cast %925 : vector<1x64x16xf32> to vector<64x16xf32>
    %cst_620 = arith.constant dense<0.000000e+00> : vector<17x16xf32>
    %927 = tpu.matmul %808, %926, %cst_620 {dimension_numbers = #tpu.dot_dimension_numbers<[1], [0], [0], [1], [0, 0, 1, 1], [], []>} : vector<17x64xf32>, vector<64x16xf32>, vector<17x16xf32> -> vector<17x16xf32>
    %c7_621 = arith.constant 7 : index
    %c0_622 = arith.constant 0 : index
    %c0_623 = arith.constant 0 : index
    %928 = vector.load %arg32[%c7_621, %c0_622, %c0_623] : memref<8x1x16xf32, #tpu.memory_space<vmem>>, vector<1x1x16xf32>
    %929 = vector.shape_cast %928 : vector<1x1x16xf32> to vector<1x16xf32>
    %930 = vector.broadcast %929 : vector<1x16xf32> to vector<17x16xf32>
    %931 = arith.addf %927, %930 : vector<17x16xf32>
    %c7_624 = arith.constant 7 : index
    %c0_625 = arith.constant 0 : index
    %c0_626 = arith.constant 0 : index
    %932 = vector.load %arg33[%c7_624, %c0_625, %c0_626] : memref<8x64x16xf32, #tpu.memory_space<vmem>>, vector<1x64x16xf32>
    %933 = vector.shape_cast %932 : vector<1x64x16xf32> to vector<64x16xf32>
    %cst_627 = arith.constant dense<0.000000e+00> : vector<17x16xf32>
    %934 = tpu.matmul %808, %933, %cst_627 {dimension_numbers = #tpu.dot_dimension_numbers<[1], [0], [0], [1], [0, 0, 1, 1], [], []>} : vector<17x64xf32>, vector<64x16xf32>, vector<17x16xf32> -> vector<17x16xf32>
    %c7_628 = arith.constant 7 : index
    %c0_629 = arith.constant 0 : index
    %c0_630 = arith.constant 0 : index
    %935 = vector.load %arg34[%c7_628, %c0_629, %c0_630] : memref<8x1x16xf32, #tpu.memory_space<vmem>>, vector<1x1x16xf32>
    %936 = vector.shape_cast %935 : vector<1x1x16xf32> to vector<1x16xf32>
    %937 = vector.broadcast %936 : vector<1x16xf32> to vector<17x16xf32>
    %938 = arith.addf %934, %937 : vector<17x16xf32>
    %c7_631 = arith.constant 7 : index
    %c0_632 = arith.constant 0 : index
    %c0_633 = arith.constant 0 : index
    %939 = vector.load %arg35[%c7_631, %c0_632, %c0_633] : memref<8x64x16xf32, #tpu.memory_space<vmem>>, vector<1x64x16xf32>
    %940 = vector.shape_cast %939 : vector<1x64x16xf32> to vector<64x16xf32>
    %cst_634 = arith.constant dense<0.000000e+00> : vector<17x16xf32>
    %941 = tpu.matmul %808, %940, %cst_634 {dimension_numbers = #tpu.dot_dimension_numbers<[1], [0], [0], [1], [0, 0, 1, 1], [], []>} : vector<17x64xf32>, vector<64x16xf32>, vector<17x16xf32> -> vector<17x16xf32>
    %c7_635 = arith.constant 7 : index
    %c0_636 = arith.constant 0 : index
    %c0_637 = arith.constant 0 : index
    %942 = vector.load %arg36[%c7_635, %c0_636, %c0_637] : memref<8x1x16xf32, #tpu.memory_space<vmem>>, vector<1x1x16xf32>
    %943 = vector.shape_cast %942 : vector<1x1x16xf32> to vector<1x16xf32>
    %944 = vector.broadcast %943 : vector<1x16xf32> to vector<17x16xf32>
    %945 = arith.addf %941, %944 : vector<17x16xf32>
    %cst_638 = arith.constant dense<0.000000e+00> : vector<17x17xf32>
    %946 = tpu.matmul %931, %938, %cst_638 {dimension_numbers = #tpu.dot_dimension_numbers<[1], [1], [0], [0], [0, 0, 1, 0], [], []>} : vector<17x16xf32>, vector<17x16xf32>, vector<17x17xf32> -> vector<17x17xf32>
    %cst_639 = arith.constant 2.500000e-01 : f32
    %947 = vector.broadcast %cst_639 : f32 to vector<17x17xf32>
    %948 = arith.mulf %946, %947 : vector<17x17xf32>
    %cst_640 = arith.constant dense<0xFF800000> : vector<17xf32>
    %949 = vector.multi_reduction <maximumf>, %948, %cst_640 [1] : vector<17x17xf32> to vector<17xf32>
    %950 = vector.shape_cast %949 : vector<17xf32> to vector<17x1xf32>
    %951 = vector.broadcast %950 : vector<17x1xf32> to vector<17x17xf32>
    %952 = arith.subf %948, %951 : vector<17x17xf32>
    %953 = math.exp %952 : vector<17x17xf32>
    %cst_641 = arith.constant dense<0.000000e+00> : vector<17xf32>
    %954 = vector.multi_reduction <add>, %953, %cst_641 [1] : vector<17x17xf32> to vector<17xf32>
    %955 = vector.shape_cast %954 : vector<17xf32> to vector<17x1xf32>
    %956 = tpu.reciprocal %955 {approx = true} : vector<17x1xf32> -> vector<17x1xf32>
    %957 = vector.broadcast %956 : vector<17x1xf32> to vector<17x17xf32>
    %958 = arith.mulf %953, %957 : vector<17x17xf32>
    %cst_642 = arith.constant dense<0.000000e+00> : vector<17x16xf32>
    %959 = tpu.matmul %958, %945, %cst_642 {dimension_numbers = #tpu.dot_dimension_numbers<[1], [0], [0], [1], [0, 0, 1, 1], [], []>} : vector<17x17xf32>, vector<17x16xf32>, vector<17x16xf32> -> vector<17x16xf32>
    %c7_643 = arith.constant 7 : index
    %c0_644 = arith.constant 0 : index
    %c0_645 = arith.constant 0 : index
    %960 = vector.load %arg37[%c7_643, %c0_644, %c0_645] : memref<8x16x64xf32, #tpu.memory_space<vmem>>, vector<1x16x64xf32>
    %961 = vector.shape_cast %960 : vector<1x16x64xf32> to vector<16x64xf32>
    %cst_646 = arith.constant dense<0.000000e+00> : vector<17x64xf32>
    %962 = tpu.matmul %959, %961, %cst_646 {dimension_numbers = #tpu.dot_dimension_numbers<[1], [0], [0], [1], [0, 0, 1, 1], [], []>} : vector<17x16xf32>, vector<16x64xf32>, vector<17x64xf32> -> vector<17x64xf32>
    %963 = arith.addf %924, %962 : vector<17x64xf32>
    %964 = arith.addf %782, %963 : vector<17x64xf32>
    %c1_647 = arith.constant 1 : index
    %c0_648 = arith.constant 0 : index
    %c0_649 = arith.constant 0 : index
    %965 = vector.load %arg38[%c1_647, %c0_648, %c0_649] : memref<2x1x64xf32, #tpu.memory_space<vmem>>, vector<1x1x64xf32>
    %966 = vector.shape_cast %965 : vector<1x1x64xf32> to vector<1x64xf32>
    %967 = vector.broadcast %966 : vector<1x64xf32> to vector<17x64xf32>
    %968 = arith.addf %964, %967 : vector<17x64xf32>
    %c1_650 = arith.constant 1 : index
    %c0_651 = arith.constant 0 : index
    %c0_652 = arith.constant 0 : index
    %969 = vector.load %arg39[%c1_650, %c0_651, %c0_652] : memref<2x1x64xf32, #tpu.memory_space<vmem>>, vector<1x1x64xf32>
    %970 = vector.shape_cast %969 : vector<1x1x64xf32> to vector<1x64xf32>
    %c1_653 = arith.constant 1 : index
    %c0_654 = arith.constant 0 : index
    %c0_655 = arith.constant 0 : index
    %971 = vector.load %arg40[%c1_653, %c0_654, %c0_655] : memref<2x1x64xf32, #tpu.memory_space<vmem>>, vector<1x1x64xf32>
    %972 = vector.shape_cast %971 : vector<1x1x64xf32> to vector<1x64xf32>
    %cst_656 = arith.constant dense<0.000000e+00> : vector<17xf32>
    %973 = vector.multi_reduction <add>, %968, %cst_656 [1] : vector<17x64xf32> to vector<17xf32>
    %974 = vector.shape_cast %973 : vector<17xf32> to vector<17x1xf32>
    %cst_657 = arith.constant 6.400000e+01 : f32
    %975 = vector.broadcast %cst_657 : f32 to vector<17x1xf32>
    %976 = arith.divf %974, %975 : vector<17x1xf32>
    %977 = vector.broadcast %976 : vector<17x1xf32> to vector<17x64xf32>
    %978 = arith.subf %968, %977 : vector<17x64xf32>
    %979 = arith.mulf %978, %978 : vector<17x64xf32>
    %cst_658 = arith.constant dense<0.000000e+00> : vector<17xf32>
    %980 = vector.multi_reduction <add>, %979, %cst_658 [1] : vector<17x64xf32> to vector<17xf32>
    %981 = vector.shape_cast %980 : vector<17xf32> to vector<17x1xf32>
    %cst_659 = arith.constant 6.400000e+01 : f32
    %982 = vector.broadcast %cst_659 : f32 to vector<17x1xf32>
    %983 = arith.divf %981, %982 : vector<17x1xf32>
    %984 = vector.broadcast %976 : vector<17x1xf32> to vector<17x64xf32>
    %985 = arith.subf %968, %984 : vector<17x64xf32>
    %cst_660 = arith.constant 9.99999974E-6 : f32
    %986 = vector.broadcast %cst_660 : f32 to vector<17x1xf32>
    %987 = arith.addf %983, %986 : vector<17x1xf32>
    %988 = math.rsqrt %987 : vector<17x1xf32>
    %989 = vector.broadcast %988 : vector<17x1xf32> to vector<17x64xf32>
    %990 = arith.mulf %985, %989 : vector<17x64xf32>
    %991 = vector.broadcast %970 : vector<1x64xf32> to vector<17x64xf32>
    %992 = arith.mulf %990, %991 : vector<17x64xf32>
    %993 = vector.broadcast %972 : vector<1x64xf32> to vector<17x64xf32>
    %994 = arith.addf %992, %993 : vector<17x64xf32>
    %c1_661 = arith.constant 1 : index
    %c0_662 = arith.constant 0 : index
    %c0_663 = arith.constant 0 : index
    %995 = vector.load %arg41[%c1_661, %c0_662, %c0_663] : memref<2x64x256xf32, #tpu.memory_space<vmem>>, vector<1x64x256xf32>
    %996 = vector.shape_cast %995 : vector<1x64x256xf32> to vector<64x256xf32>
    %cst_664 = arith.constant dense<0.000000e+00> : vector<17x256xf32>
    %997 = tpu.matmul %994, %996, %cst_664 {dimension_numbers = #tpu.dot_dimension_numbers<[1], [0], [0], [1], [0, 0, 1, 1], [], []>} : vector<17x64xf32>, vector<64x256xf32>, vector<17x256xf32> -> vector<17x256xf32>
    %c1_665 = arith.constant 1 : index
    %c0_666 = arith.constant 0 : index
    %c0_667 = arith.constant 0 : index
    %998 = vector.load %arg42[%c1_665, %c0_666, %c0_667] : memref<2x1x256xf32, #tpu.memory_space<vmem>>, vector<1x1x256xf32>
    %999 = vector.shape_cast %998 : vector<1x1x256xf32> to vector<1x256xf32>
    %1000 = vector.broadcast %999 : vector<1x256xf32> to vector<17x256xf32>
    %1001 = arith.addf %997, %1000 : vector<17x256xf32>
    %cst_668 = arith.constant 5.000000e-01 : f32
    %1002 = vector.broadcast %cst_668 : f32 to vector<17x256xf32>
    %1003 = arith.mulf %1002, %1001 : vector<17x256xf32>
    %1004 = arith.mulf %1001, %1001 : vector<17x256xf32>
    %1005 = arith.mulf %1001, %1004 : vector<17x256xf32>
    %cst_669 = arith.constant 4.471500e-02 : f32
    %1006 = vector.broadcast %cst_669 : f32 to vector<17x256xf32>
    %1007 = arith.mulf %1006, %1005 : vector<17x256xf32>
    %1008 = arith.addf %1001, %1007 : vector<17x256xf32>
    %cst_670 = arith.constant 0.797884583 : f32
    %1009 = vector.broadcast %cst_670 : f32 to vector<17x256xf32>
    %1010 = arith.mulf %1009, %1008 : vector<17x256xf32>
    %1011 = math.tanh %1010 : vector<17x256xf32>
    %cst_671 = arith.constant 1.000000e+00 : f32
    %1012 = vector.broadcast %cst_671 : f32 to vector<17x256xf32>
    %1013 = arith.addf %1012, %1011 : vector<17x256xf32>
    %1014 = arith.mulf %1003, %1013 : vector<17x256xf32>
    %c1_672 = arith.constant 1 : index
    %c0_673 = arith.constant 0 : index
    %c0_674 = arith.constant 0 : index
    %1015 = vector.load %arg43[%c1_672, %c0_673, %c0_674] : memref<2x256x64xf32, #tpu.memory_space<vmem>>, vector<1x256x64xf32>
    %1016 = vector.shape_cast %1015 : vector<1x256x64xf32> to vector<256x64xf32>
    %cst_675 = arith.constant dense<0.000000e+00> : vector<17x64xf32>
    %1017 = tpu.matmul %1014, %1016, %cst_675 {dimension_numbers = #tpu.dot_dimension_numbers<[1], [0], [0], [1], [0, 0, 1, 1], [], []>} : vector<17x256xf32>, vector<256x64xf32>, vector<17x64xf32> -> vector<17x64xf32>
    %c1_676 = arith.constant 1 : index
    %c0_677 = arith.constant 0 : index
    %c0_678 = arith.constant 0 : index
    %1018 = vector.load %arg44[%c1_676, %c0_677, %c0_678] : memref<2x1x64xf32, #tpu.memory_space<vmem>>, vector<1x1x64xf32>
    %1019 = vector.shape_cast %1018 : vector<1x1x64xf32> to vector<1x64xf32>
    %1020 = vector.broadcast %1019 : vector<1x64xf32> to vector<17x64xf32>
    %1021 = arith.addf %1017, %1020 : vector<17x64xf32>
    %1022 = arith.addf %968, %1021 : vector<17x64xf32>
    %c0_679 = arith.constant 0 : index
    %c0_680 = arith.constant 0 : index
    %1023 = vector.load %arg45[%c0_679, %c0_680] : memref<1x64xf32, #tpu.memory_space<vmem>>, vector<1x64xf32>
    %c0_681 = arith.constant 0 : index
    %c0_682 = arith.constant 0 : index
    %1024 = vector.load %arg46[%c0_681, %c0_682] : memref<1x64xf32, #tpu.memory_space<vmem>>, vector<1x64xf32>
    %cst_683 = arith.constant dense<0.000000e+00> : vector<17xf32>
    %1025 = vector.multi_reduction <add>, %1022, %cst_683 [1] : vector<17x64xf32> to vector<17xf32>
    %1026 = vector.shape_cast %1025 : vector<17xf32> to vector<17x1xf32>
    %cst_684 = arith.constant 6.400000e+01 : f32
    %1027 = vector.broadcast %cst_684 : f32 to vector<17x1xf32>
    %1028 = arith.divf %1026, %1027 : vector<17x1xf32>
    %1029 = vector.broadcast %1028 : vector<17x1xf32> to vector<17x64xf32>
    %1030 = arith.subf %1022, %1029 : vector<17x64xf32>
    %1031 = arith.mulf %1030, %1030 : vector<17x64xf32>
    %cst_685 = arith.constant dense<0.000000e+00> : vector<17xf32>
    %1032 = vector.multi_reduction <add>, %1031, %cst_685 [1] : vector<17x64xf32> to vector<17xf32>
    %1033 = vector.shape_cast %1032 : vector<17xf32> to vector<17x1xf32>
    %cst_686 = arith.constant 6.400000e+01 : f32
    %1034 = vector.broadcast %cst_686 : f32 to vector<17x1xf32>
    %1035 = arith.divf %1033, %1034 : vector<17x1xf32>
    %1036 = vector.broadcast %1028 : vector<17x1xf32> to vector<17x64xf32>
    %1037 = arith.subf %1022, %1036 : vector<17x64xf32>
    %cst_687 = arith.constant 9.99999974E-6 : f32
    %1038 = vector.broadcast %cst_687 : f32 to vector<17x1xf32>
    %1039 = arith.addf %1035, %1038 : vector<17x1xf32>
    %1040 = math.rsqrt %1039 : vector<17x1xf32>
    %1041 = vector.broadcast %1040 : vector<17x1xf32> to vector<17x64xf32>
    %1042 = arith.mulf %1037, %1041 : vector<17x64xf32>
    %1043 = vector.broadcast %1023 : vector<1x64xf32> to vector<17x64xf32>
    %1044 = arith.mulf %1042, %1043 : vector<17x64xf32>
    %1045 = vector.broadcast %1024 : vector<1x64xf32> to vector<17x64xf32>
    %1046 = arith.addf %1044, %1045 : vector<17x64xf32>
    %c0_688 = arith.constant 0 : index
    %c0_689 = arith.constant 0 : index
    %1047 = vector.load %arg47[%c0_688, %c0_689] : memref<64x32xf32, #tpu.memory_space<vmem>>, vector<64x32xf32>
    %cst_690 = arith.constant dense<0.000000e+00> : vector<17x32xf32>
    %1048 = tpu.matmul %1046, %1047, %cst_690 {dimension_numbers = #tpu.dot_dimension_numbers<[1], [0], [0], [1], [0, 0, 1, 1], [], []>} : vector<17x64xf32>, vector<64x32xf32>, vector<17x32xf32> -> vector<17x32xf32>
    %c0_691 = arith.constant 0 : index
    %c0_692 = arith.constant 0 : index
    %1049 = vector.load %arg48[%c0_691, %c0_692] : memref<1x32xf32, #tpu.memory_space<vmem>>, vector<1x32xf32>
    %1050 = vector.broadcast %1049 : vector<1x32xf32> to vector<17x32xf32>
    %1051 = arith.addf %1048, %1050 : vector<17x32xf32>
    %1052 = vector.extract_strided_slice %1051 {offsets = [1, 0], sizes = [16, 32], strides = [1, 1]} : vector<17x32xf32> to vector<16x32xf32>
    %c0_693 = arith.constant 0 : index
    %c0_694 = arith.constant 0 : index
    %c0_695 = arith.constant 0 : index
    %1053 = vector.load %arg49[%c0_693, %c0_694, %c0_695] : memref<1x16x32xf32, #tpu.memory_space<vmem>>, vector<1x16x32xf32>
    %1054 = vector.shape_cast %1053 : vector<1x16x32xf32> to vector<16x32xf32>
    %1055 = vector.shape_cast %1052 : vector<16x32xf32> to vector<1x16x32xf32>
    tpu.vector_store %arg49[%c0_693, %c0_694, %c0_695], %1055 {strides = array<i32>} : memref<1x16x32xf32, #tpu.memory_space<vmem>>, vector<1x16x32xf32>,
    %c4_i32 = arith.constant 4 : i32
    %1056 = vector.broadcast %c4_i32 : i32 to vector<16x1xi32>
    %1057 = arith.cmpi sge, %532, %1056 : vector<16x1xi32>
    %1058 = arith.extui %1057 : vector<16x1xi1> to vector<16x1xi32>
    %1059 = arith.sitofp %1058 : vector<16x1xi32> to vector<16x1xf32>
    %1060 = arith.subf %1052, %1 : vector<16x32xf32>
    %1061 = arith.mulf %1060, %1060 : vector<16x32xf32>
    %cst_696 = arith.constant dense<0.000000e+00> : vector<16xf32>
    %1062 = vector.multi_reduction <add>, %1061, %cst_696 [1] : vector<16x32xf32> to vector<16xf32>
    %1063 = vector.shape_cast %1062 : vector<16xf32> to vector<16x1xf32>
    %cst_697 = arith.constant 3.125000e-02 : f32
    %1064 = vector.broadcast %cst_697 : f32 to vector<16x1xf32>
    %1065 = arith.mulf %1063, %1064 : vector<16x1xf32>
    %1066 = arith.mulf %1065, %1059 : vector<16x1xf32>
    %c0_698 = arith.constant 0 : index
    %c0_699 = arith.constant 0 : index
    %c0_700 = arith.constant 0 : index
    %1067 = vector.load %arg50[%c0_698, %c0_699, %c0_700] : memref<1x16x1xf32, #tpu.memory_space<vmem>>, vector<1x16x1xf32>
    %1068 = vector.shape_cast %1067 : vector<1x16x1xf32> to vector<16x1xf32>
    %1069 = vector.shape_cast %1066 : vector<16x1xf32> to vector<1x16x1xf32>
    tpu.vector_store %arg50[%c0_698, %c0_699, %c0_700], %1069 {strides = array<i32>} : memref<1x16x1xf32, #tpu.memory_space<vmem>>, vector<1x16x1xf32>,
    return
  }
  func.func @transform_0(%arg0: i32) -> (i32, i32, i32) {
    %c0_i32 = arith.constant 0 : i32
    %c0_i32_0 = arith.constant 0 : i32
    %c0_i32_1 = arith.constant 0 : i32
    return %arg0, %c0_i32, %c0_i32_0 : i32, i32, i32
  }
  func.func @transform_1(%arg0: i32) -> (i32, i32, i32) {
    %c0_i32 = arith.constant 0 : i32
    %c0_i32_0 = arith.constant 0 : i32
    %c0_i32_1 = arith.constant 0 : i32
    return %arg0, %c0_i32, %c0_i32_0 : i32, i32, i32
  }
  func.func @transform_2(%arg0: i32) -> (i32, i32, i32) {
    %c0_i32 = arith.constant 0 : i32
    %c0_i32_0 = arith.constant 0 : i32
    %c0_i32_1 = arith.constant 0 : i32
    return %arg0, %c0_i32, %c0_i32_0 : i32, i32, i32
  }
  func.func @transform_3(%arg0: i32) -> (i32, i32) {
    %c0_i32 = arith.constant 0 : i32
    %c0_i32_0 = arith.constant 0 : i32
    %c0_i32_1 = arith.constant 0 : i32
    return %c0_i32, %c0_i32_0 : i32, i32
  }
  func.func @transform_4(%arg0: i32) -> (i32, i32) {
    %c0_i32 = arith.constant 0 : i32
    %c0_i32_0 = arith.constant 0 : i32
    %c0_i32_1 = arith.constant 0 : i32
    return %c0_i32, %c0_i32_0 : i32, i32
  }
  func.func @transform_5(%arg0: i32) -> (i32, i32) {
    %c0_i32 = arith.constant 0 : i32
    %c0_i32_0 = arith.constant 0 : i32
    %c0_i32_1 = arith.constant 0 : i32
    return %c0_i32, %c0_i32_0 : i32, i32
  }
  func.func @transform_6(%arg0: i32) -> (i32, i32, i32) {
    %c0_i32 = arith.constant 0 : i32
    %c0_i32_0 = arith.constant 0 : i32
    %c0_i32_1 = arith.constant 0 : i32
    %c0_i32_2 = arith.constant 0 : i32
    return %c0_i32, %c0_i32_0, %c0_i32_1 : i32, i32, i32
  }
  func.func @transform_7(%arg0: i32) -> (i32, i32, i32) {
    %c0_i32 = arith.constant 0 : i32
    %c0_i32_0 = arith.constant 0 : i32
    %c0_i32_1 = arith.constant 0 : i32
    %c0_i32_2 = arith.constant 0 : i32
    return %c0_i32, %c0_i32_0, %c0_i32_1 : i32, i32, i32
  }
  func.func @transform_8(%arg0: i32) -> (i32, i32, i32) {
    %c0_i32 = arith.constant 0 : i32
    %c0_i32_0 = arith.constant 0 : i32
    %c0_i32_1 = arith.constant 0 : i32
    %c0_i32_2 = arith.constant 0 : i32
    return %c0_i32, %c0_i32_0, %c0_i32_1 : i32, i32, i32
  }
  func.func @transform_9(%arg0: i32) -> (i32, i32, i32) {
    %c0_i32 = arith.constant 0 : i32
    %c0_i32_0 = arith.constant 0 : i32
    %c0_i32_1 = arith.constant 0 : i32
    %c0_i32_2 = arith.constant 0 : i32
    return %c0_i32, %c0_i32_0, %c0_i32_1 : i32, i32, i32
  }
  func.func @transform_10(%arg0: i32) -> (i32, i32, i32) {
    %c0_i32 = arith.constant 0 : i32
    %c0_i32_0 = arith.constant 0 : i32
    %c0_i32_1 = arith.constant 0 : i32
    %c0_i32_2 = arith.constant 0 : i32
    return %c0_i32, %c0_i32_0, %c0_i32_1 : i32, i32, i32
  }
  func.func @transform_11(%arg0: i32) -> (i32, i32, i32) {
    %c0_i32 = arith.constant 0 : i32
    %c0_i32_0 = arith.constant 0 : i32
    %c0_i32_1 = arith.constant 0 : i32
    %c0_i32_2 = arith.constant 0 : i32
    return %c0_i32, %c0_i32_0, %c0_i32_1 : i32, i32, i32
  }
  func.func @transform_12(%arg0: i32) -> (i32, i32, i32) {
    %c0_i32 = arith.constant 0 : i32
    %c0_i32_0 = arith.constant 0 : i32
    %c0_i32_1 = arith.constant 0 : i32
    %c0_i32_2 = arith.constant 0 : i32
    return %c0_i32, %c0_i32_0, %c0_i32_1 : i32, i32, i32
  }
  func.func @transform_13(%arg0: i32) -> (i32, i32, i32) {
    %c0_i32 = arith.constant 0 : i32
    %c0_i32_0 = arith.constant 0 : i32
    %c0_i32_1 = arith.constant 0 : i32
    %c0_i32_2 = arith.constant 0 : i32
    return %c0_i32, %c0_i32_0, %c0_i32_1 : i32, i32, i32
  }
  func.func @transform_14(%arg0: i32) -> (i32, i32, i32) {
    %c0_i32 = arith.constant 0 : i32
    %c0_i32_0 = arith.constant 0 : i32
    %c0_i32_1 = arith.constant 0 : i32
    %c0_i32_2 = arith.constant 0 : i32
    return %c0_i32, %c0_i32_0, %c0_i32_1 : i32, i32, i32
  }
  func.func @transform_15(%arg0: i32) -> (i32, i32, i32) {
    %c0_i32 = arith.constant 0 : i32
    %c0_i32_0 = arith.constant 0 : i32
    %c0_i32_1 = arith.constant 0 : i32
    %c0_i32_2 = arith.constant 0 : i32
    return %c0_i32, %c0_i32_0, %c0_i32_1 : i32, i32, i32
  }
  func.func @transform_16(%arg0: i32) -> (i32, i32, i32) {
    %c0_i32 = arith.constant 0 : i32
    %c0_i32_0 = arith.constant 0 : i32
    %c0_i32_1 = arith.constant 0 : i32
    %c0_i32_2 = arith.constant 0 : i32
    return %c0_i32, %c0_i32_0, %c0_i32_1 : i32, i32, i32
  }
  func.func @transform_17(%arg0: i32) -> (i32, i32, i32) {
    %c0_i32 = arith.constant 0 : i32
    %c0_i32_0 = arith.constant 0 : i32
    %c0_i32_1 = arith.constant 0 : i32
    %c0_i32_2 = arith.constant 0 : i32
    return %c0_i32, %c0_i32_0, %c0_i32_1 : i32, i32, i32
  }
  func.func @transform_18(%arg0: i32) -> (i32, i32, i32) {
    %c0_i32 = arith.constant 0 : i32
    %c0_i32_0 = arith.constant 0 : i32
    %c0_i32_1 = arith.constant 0 : i32
    %c0_i32_2 = arith.constant 0 : i32
    return %c0_i32, %c0_i32_0, %c0_i32_1 : i32, i32, i32
  }
  func.func @transform_19(%arg0: i32) -> (i32, i32, i32) {
    %c0_i32 = arith.constant 0 : i32
    %c0_i32_0 = arith.constant 0 : i32
    %c0_i32_1 = arith.constant 0 : i32
    %c0_i32_2 = arith.constant 0 : i32
    return %c0_i32, %c0_i32_0, %c0_i32_1 : i32, i32, i32
  }
  func.func @transform_20(%arg0: i32) -> (i32, i32, i32) {
    %c0_i32 = arith.constant 0 : i32
    %c0_i32_0 = arith.constant 0 : i32
    %c0_i32_1 = arith.constant 0 : i32
    %c0_i32_2 = arith.constant 0 : i32
    return %c0_i32, %c0_i32_0, %c0_i32_1 : i32, i32, i32
  }
  func.func @transform_21(%arg0: i32) -> (i32, i32, i32) {
    %c0_i32 = arith.constant 0 : i32
    %c0_i32_0 = arith.constant 0 : i32
    %c0_i32_1 = arith.constant 0 : i32
    %c0_i32_2 = arith.constant 0 : i32
    return %c0_i32, %c0_i32_0, %c0_i32_1 : i32, i32, i32
  }
  func.func @transform_22(%arg0: i32) -> (i32, i32) {
    %c0_i32 = arith.constant 0 : i32
    %c0_i32_0 = arith.constant 0 : i32
    %c0_i32_1 = arith.constant 0 : i32
    return %c0_i32, %c0_i32_0 : i32, i32
  }
  func.func @transform_23(%arg0: i32) -> (i32, i32) {
    %c0_i32 = arith.constant 0 : i32
    %c0_i32_0 = arith.constant 0 : i32
    %c0_i32_1 = arith.constant 0 : i32
    return %c0_i32, %c0_i32_0 : i32, i32
  }
  func.func @transform_24(%arg0: i32) -> (i32, i32) {
    %c0_i32 = arith.constant 0 : i32
    %c0_i32_0 = arith.constant 0 : i32
    %c0_i32_1 = arith.constant 0 : i32
    return %c0_i32, %c0_i32_0 : i32, i32
  }
  func.func @transform_25(%arg0: i32) -> (i32, i32) {
    %c0_i32 = arith.constant 0 : i32
    %c0_i32_0 = arith.constant 0 : i32
    %c0_i32_1 = arith.constant 0 : i32
    return %c0_i32, %c0_i32_0 : i32, i32
  }
  func.func @transform_26(%arg0: i32) -> (i32, i32) {
    %c0_i32 = arith.constant 0 : i32
    %c0_i32_0 = arith.constant 0 : i32
    %c0_i32_1 = arith.constant 0 : i32
    return %c0_i32, %c0_i32_0 : i32, i32
  }
  func.func @transform_27(%arg0: i32) -> (i32, i32) {
    %c0_i32 = arith.constant 0 : i32
    %c0_i32_0 = arith.constant 0 : i32
    %c0_i32_1 = arith.constant 0 : i32
    return %c0_i32, %c0_i32_0 : i32, i32
  }
  func.func @transform_28(%arg0: i32) -> (i32, i32, i32) {
    %c0_i32 = arith.constant 0 : i32
    %c0_i32_0 = arith.constant 0 : i32
    %c0_i32_1 = arith.constant 0 : i32
    %c0_i32_2 = arith.constant 0 : i32
    return %c0_i32, %c0_i32_0, %c0_i32_1 : i32, i32, i32
  }
  func.func @transform_29(%arg0: i32) -> (i32, i32, i32) {
    %c0_i32 = arith.constant 0 : i32
    %c0_i32_0 = arith.constant 0 : i32
    %c0_i32_1 = arith.constant 0 : i32
    %c0_i32_2 = arith.constant 0 : i32
    return %c0_i32, %c0_i32_0, %c0_i32_1 : i32, i32, i32
  }
  func.func @transform_30(%arg0: i32) -> (i32, i32, i32) {
    %c0_i32 = arith.constant 0 : i32
    %c0_i32_0 = arith.constant 0 : i32
    %c0_i32_1 = arith.constant 0 : i32
    %c0_i32_2 = arith.constant 0 : i32
    return %c0_i32, %c0_i32_0, %c0_i32_1 : i32, i32, i32
  }
  func.func @transform_31(%arg0: i32) -> (i32, i32, i32) {
    %c0_i32 = arith.constant 0 : i32
    %c0_i32_0 = arith.constant 0 : i32
    %c0_i32_1 = arith.constant 0 : i32
    %c0_i32_2 = arith.constant 0 : i32
    return %c0_i32, %c0_i32_0, %c0_i32_1 : i32, i32, i32
  }
  func.func @transform_32(%arg0: i32) -> (i32, i32, i32) {
    %c0_i32 = arith.constant 0 : i32
    %c0_i32_0 = arith.constant 0 : i32
    %c0_i32_1 = arith.constant 0 : i32
    %c0_i32_2 = arith.constant 0 : i32
    return %c0_i32, %c0_i32_0, %c0_i32_1 : i32, i32, i32
  }
  func.func @transform_33(%arg0: i32) -> (i32, i32, i32) {
    %c0_i32 = arith.constant 0 : i32
    %c0_i32_0 = arith.constant 0 : i32
    %c0_i32_1 = arith.constant 0 : i32
    %c0_i32_2 = arith.constant 0 : i32
    return %c0_i32, %c0_i32_0, %c0_i32_1 : i32, i32, i32
  }
  func.func @transform_34(%arg0: i32) -> (i32, i32, i32) {
    %c0_i32 = arith.constant 0 : i32
    %c0_i32_0 = arith.constant 0 : i32
    %c0_i32_1 = arith.constant 0 : i32
    %c0_i32_2 = arith.constant 0 : i32
    return %c0_i32, %c0_i32_0, %c0_i32_1 : i32, i32, i32
  }
  func.func @transform_35(%arg0: i32) -> (i32, i32, i32) {
    %c0_i32 = arith.constant 0 : i32
    %c0_i32_0 = arith.constant 0 : i32
    %c0_i32_1 = arith.constant 0 : i32
    %c0_i32_2 = arith.constant 0 : i32
    return %c0_i32, %c0_i32_0, %c0_i32_1 : i32, i32, i32
  }
  func.func @transform_36(%arg0: i32) -> (i32, i32, i32) {
    %c0_i32 = arith.constant 0 : i32
    %c0_i32_0 = arith.constant 0 : i32
    %c0_i32_1 = arith.constant 0 : i32
    %c0_i32_2 = arith.constant 0 : i32
    return %c0_i32, %c0_i32_0, %c0_i32_1 : i32, i32, i32
  }
  func.func @transform_37(%arg0: i32) -> (i32, i32, i32) {
    %c0_i32 = arith.constant 0 : i32
    %c0_i32_0 = arith.constant 0 : i32
    %c0_i32_1 = arith.constant 0 : i32
    %c0_i32_2 = arith.constant 0 : i32
    return %c0_i32, %c0_i32_0, %c0_i32_1 : i32, i32, i32
  }
  func.func @transform_38(%arg0: i32) -> (i32, i32, i32) {
    %c0_i32 = arith.constant 0 : i32
    %c0_i32_0 = arith.constant 0 : i32
    %c0_i32_1 = arith.constant 0 : i32
    %c0_i32_2 = arith.constant 0 : i32
    return %c0_i32, %c0_i32_0, %c0_i32_1 : i32, i32, i32
  }
  func.func @transform_39(%arg0: i32) -> (i32, i32, i32) {
    %c0_i32 = arith.constant 0 : i32
    %c0_i32_0 = arith.constant 0 : i32
    %c0_i32_1 = arith.constant 0 : i32
    %c0_i32_2 = arith.constant 0 : i32
    return %c0_i32, %c0_i32_0, %c0_i32_1 : i32, i32, i32
  }
  func.func @transform_40(%arg0: i32) -> (i32, i32, i32) {
    %c0_i32 = arith.constant 0 : i32
    %c0_i32_0 = arith.constant 0 : i32
    %c0_i32_1 = arith.constant 0 : i32
    %c0_i32_2 = arith.constant 0 : i32
    return %c0_i32, %c0_i32_0, %c0_i32_1 : i32, i32, i32
  }
  func.func @transform_41(%arg0: i32) -> (i32, i32, i32) {
    %c0_i32 = arith.constant 0 : i32
    %c0_i32_0 = arith.constant 0 : i32
    %c0_i32_1 = arith.constant 0 : i32
    %c0_i32_2 = arith.constant 0 : i32
    return %c0_i32, %c0_i32_0, %c0_i32_1 : i32, i32, i32
  }
  func.func @transform_42(%arg0: i32) -> (i32, i32, i32) {
    %c0_i32 = arith.constant 0 : i32
    %c0_i32_0 = arith.constant 0 : i32
    %c0_i32_1 = arith.constant 0 : i32
    %c0_i32_2 = arith.constant 0 : i32
    return %c0_i32, %c0_i32_0, %c0_i32_1 : i32, i32, i32
  }
  func.func @transform_43(%arg0: i32) -> (i32, i32, i32) {
    %c0_i32 = arith.constant 0 : i32
    %c0_i32_0 = arith.constant 0 : i32
    %c0_i32_1 = arith.constant 0 : i32
    %c0_i32_2 = arith.constant 0 : i32
    return %c0_i32, %c0_i32_0, %c0_i32_1 : i32, i32, i32
  }
  func.func @transform_44(%arg0: i32) -> (i32, i32) {
    %c0_i32 = arith.constant 0 : i32
    %c0_i32_0 = arith.constant 0 : i32
    %c0_i32_1 = arith.constant 0 : i32
    return %c0_i32, %c0_i32_0 : i32, i32
  }
  func.func @transform_45(%arg0: i32) -> (i32, i32) {
    %c0_i32 = arith.constant 0 : i32
    %c0_i32_0 = arith.constant 0 : i32
    %c0_i32_1 = arith.constant 0 : i32
    return %c0_i32, %c0_i32_0 : i32, i32
  }
  func.func @transform_46(%arg0: i32) -> (i32, i32) {
    %c0_i32 = arith.constant 0 : i32
    %c0_i32_0 = arith.constant 0 : i32
    %c0_i32_1 = arith.constant 0 : i32
    return %c0_i32, %c0_i32_0 : i32, i32
  }
  func.func @transform_47(%arg0: i32) -> (i32, i32) {
    %c0_i32 = arith.constant 0 : i32
    %c0_i32_0 = arith.constant 0 : i32
    %c0_i32_1 = arith.constant 0 : i32
    return %c0_i32, %c0_i32_0 : i32, i32
  }
  func.func @transform_48(%arg0: i32) -> (i32, i32, i32) {
    %c0_i32 = arith.constant 0 : i32
    %c0_i32_0 = arith.constant 0 : i32
    %c0_i32_1 = arith.constant 0 : i32
    return %arg0, %c0_i32, %c0_i32_0 : i32, i32, i32
  }
  func.func @transform_49(%arg0: i32) -> (i32, i32, i32) {
    %c0_i32 = arith.constant 0 : i32
    %c0_i32_0 = arith.constant 0 : i32
    %c0_i32_1 = arith.constant 0 : i32
    return %arg0, %c0_i32, %c0_i32_0 : i32, i32, i32
  }
}

</mosaic_0001>

<bundles_post_ra>
// kernel: mae_forward.1
= control target key start
LH: loop header
LB: loop body
LE: loop exit
PB: predicated region body
PF: predicated region fallthrough
CT: control target
= control target key end

     0   :  { %s16546_s6 = smov 1   ;;  %s16547_s10 = smov 2   ;;  %s18933_s0 = inlined_call_operand.smem [shape: u32[50], index: -1, kind: input, shape index: {}] }
   0x1   :  { %s16610_s5 = sld [smem:[%s18933_s0]]   ;;  %s16548_s14 = smov 3  }
   0x2   :  { %s16615_s9 = sld [smem:[%s18933_s0 + %s16546_s6]]   ;;  %s16549_s18 = smov 4  }
   0x3   :  { %s16620_s13 = sld [smem:[%s18933_s0 + %s16547_s10]]   ;;  %s16550_s22 = smov 5  }
   0x4   :  { %s16625_s17 = sld [smem:[%s18933_s0 + %s16548_s14]]   ;;  %s16551_s26 = smov 6  }
   0x5   :  { %s16630_s21 = sld [smem:[%s18933_s0 + %s16549_s18]]   ;;  %s16552_s30 = smov 7  }
   0x6   :  { %s16635_s25 = sld [smem:[%s18933_s0 + %s16550_s22]]   ;;  %s16553_s4 = smov 8  }
   0x7   :  { %18988 = sst [smem:[#allocation5_spill]] %s16610_s5  ;;  %s16554_s10 = smov 9  }
   0x8   :  { %18989 = sst [smem:[#allocation6_spill]] %s16615_s9  ;;  %s16555_s15 = smov 10  }
   0x9   :  { %18990 = sst [smem:[#allocation7_spill]] %s16620_s13  ;;  %s16556_s20 = smov 11  }
   0xa   :  { %18991 = sst [smem:[#allocation8_spill]] %s16625_s17  ;;  %s16558_s1 = smov 13  }
   0xb   :  { %18992 = sst [smem:[#allocation9_spill]] %s16630_s21  ;;  %s16559_s7 = smov 14  }
   0xc   :  { %18993 = sst [smem:[#allocation10_spill]] %s16635_s25  ;;  %s16561_s22 = smov 16  }
   0xd   :  { %s16640_s29 = sld [smem:[%s18933_s0 + %s16551_s26]]   ;;  %s16557_s26 = smov 12  }
   0xe   :  { %s16645_s3 = sld [smem:[%s18933_s0 + %s16552_s30]]   ;;  %s16562_s28 = smov 17  }
   0xf   :  { %s16650_s8 = sld [smem:[%s18933_s0 + %s16553_s4]]  }
  0x10   :  { %s16655_s14 = sld [smem:[%s18933_s0 + %s16554_s10]]  }
  0x11   :  { %s16660_s19 = sld [smem:[%s18933_s0 + %s16555_s15]]   ;;  %s16560_s15 = smov 15  }
  0x12   :  { %s16665_s24 = sld [smem:[%s18933_s0 + %s16556_s20]]  }
  0x13   :  { %18994 = sst [smem:[#allocation11_spill]] %s16640_s29 }
  0x14   :  { %18995 = sst [smem:[#allocation12_spill]] %s16645_s3 }
  0x15   :  { %18996 = sst [smem:[#allocation13_spill]] %s16650_s8 }
  0x16   :  { %18997 = sst [smem:[#allocation14_spill]] %s16655_s14 }
  0x17   :  { %18998 = sst [smem:[#allocation15_spill]] %s16660_s19 }
  0x18   :  { %18999 = sst [smem:[#allocation16_spill]] %s16665_s24 }
  0x19   :  { %s16670_s30 = sld [smem:[%s18933_s0 + %s16557_s26]]  }
  0x1a   :  { %s16675_s6 = sld [smem:[%s18933_s0 + %s16558_s1]]  }
  0x1b   :  { %s16680_s12 = sld [smem:[%s18933_s0 + %s16559_s7]]   ;;  %s16563_s7 = smov 18  }
  0x1c   :  { %s16685_s20 = sld [smem:[%s18933_s0 + %s16560_s15]]   ;;  %s16564_s15 = smov 19  }
  0x1d   :  { %s16690_s27 = sld [smem:[%s18933_s0 + %s16561_s22]]   ;;  %s16565_s22 = smov 20  }
  0x1e   :  { %s16695_s4 = sld [smem:[%s18933_s0 + %s16562_s28]]   ;;  %s16566_s28 = smov 21  }
  0x1f   :  { %19000 = sst [smem:[#allocation17_spill]] %s16670_s30 }
  0x20   :  { %19001 = sst [smem:[#allocation18_spill]] %s16675_s6 }
  0x21   :  { %19002 = sst [smem:[#allocation19_spill]] %s16680_s12 }
  0x22   :  { %19003 = sst [smem:[#allocation20_spill]] %s16685_s20 }
  0x23   :  { %19004 = sst [smem:[#allocation21_spill]] %s16690_s27 }
  0x24   :  { %19005 = sst [smem:[#allocation22_spill]] %s16695_s4 }
  0x25   :  { %s16700_s13 = sld [smem:[%s18933_s0 + %s16563_s7]]   ;;  %s16567_s7 = smov 22  }
  0x26   :  { %s16705_s20 = sld [smem:[%s18933_s0 + %s16564_s15]]   ;;  %s16568_s15 = smov 23  }
  0x27   :  { %s16710_s27 = sld [smem:[%s18933_s0 + %s16565_s22]]   ;;  %s16569_s22 = smov 24  }
  0x28   :  { %s16715_s4 = sld [smem:[%s18933_s0 + %s16566_s28]]   ;;  %s16570_s28 = smov 25  }
  0x2b   :  { %19006 = sst [smem:[#allocation23_spill]] %s16700_s13 }
  0x2c   :  { %19007 = sst [smem:[#allocation24_spill]] %s16705_s20 }
  0x2d   :  { %19008 = sst [smem:[#allocation25_spill]] %s16710_s27 }
  0x2e   :  { %19009 = sst [smem:[#allocation26_spill]] %s16715_s4 }
  0x2f   :  { %s16720_s13 = sld [smem:[%s18933_s0 + %s16567_s7]]   ;;  %s16571_s7 = smov 26  }
  0x30   :  { %s16725_s20 = sld [smem:[%s18933_s0 + %s16568_s15]]   ;;  %s16572_s15 = smov 27  }
  0x31   :  { %s16730_s27 = sld [smem:[%s18933_s0 + %s16569_s22]]   ;;  %s16573_s22 = smov 28  }
  0x32   :  { %s16735_s4 = sld [smem:[%s18933_s0 + %s16570_s28]]   ;;  %s16574_s28 = smov 29  }
  0x35   :  { %19010 = sst [smem:[#allocation27_spill]] %s16720_s13 }
  0x36   :  { %19011 = sst [smem:[#allocation28_spill]] %s16725_s20 }
  0x37   :  { %19012 = sst [smem:[#allocation29_spill]] %s16730_s27 }
  0x38   :  { %19013 = sst [smem:[#allocation30_spill]] %s16735_s4 }
  0x39   :  { %s16740_s13 = sld [smem:[%s18933_s0 + %s16571_s7]]   ;;  %s16575_s7 = smov 30  }
  0x3a   :  { %s16745_s20 = sld [smem:[%s18933_s0 + %s16572_s15]]   ;;  %s16576_s15 = smov 31  }
  0x3b   :  { %s16750_s27 = sld [smem:[%s18933_s0 + %s16573_s22]]   ;;  %s16577_s22 = smov 32  }
  0x3c   :  { %s16755_s4 = sld [smem:[%s18933_s0 + %s16574_s28]]   ;;  %s16578_s28 = smov 33  }
  0x3f   :  { %19014 = sst [smem:[#allocation31_spill]] %s16740_s13 }
  0x40   :  { %19015 = sst [smem:[#allocation32_spill]] %s16745_s20 }
  0x41   :  { %19016 = sst [smem:[#allocation33_spill]] %s16750_s27 }
  0x42   :  { %19017 = sst [smem:[#allocation34_spill]] %s16755_s4 }
  0x43   :  { %s16760_s13 = sld [smem:[%s18933_s0 + %s16575_s7]]   ;;  %s16579_s7 = smov 34  }
  0x44   :  { %s16765_s20 = sld [smem:[%s18933_s0 + %s16576_s15]]   ;;  %s16580_s15 = smov 35  }
  0x45   :  { %s16770_s27 = sld [smem:[%s18933_s0 + %s16577_s22]]   ;;  %s16581_s22 = smov 36  }
  0x46   :  { %s16775_s4 = sld [smem:[%s18933_s0 + %s16578_s28]]   ;;  %s16582_s28 = smov 37  }
  0x49   :  { %19018 = sst [smem:[#allocation35_spill]] %s16760_s13 }
  0x4a   :  { %19019 = sst [smem:[#allocation36_spill]] %s16765_s20 }
  0x4b   :  { %19020 = sst [smem:[#allocation37_spill]] %s16770_s27 }
  0x4c   :  { %19021 = sst [smem:[#allocation38_spill]] %s16775_s4 }
  0x4d   :  { %s16780_s13 = sld [smem:[%s18933_s0 + %s16579_s7]]   ;;  %s16583_s7 = smov 38  }
  0x4e   :  { %s16785_s20 = sld [smem:[%s18933_s0 + %s16580_s15]]   ;;  %s16584_s15 = smov 39  }
  0x4f   :  { %s16790_s27 = sld [smem:[%s18933_s0 + %s16581_s22]]   ;;  %s16585_s22 = smov 40  }
  0x50   :  { %s16795_s4 = sld [smem:[%s18933_s0 + %s16582_s28]]   ;;  %s16586_s28 = smov 41  }
  0x53   :  { %19022 = sst [smem:[#allocation39_spill]] %s16780_s13 }
  0x54   :  { %19023 = sst [smem:[#allocation40_spill]] %s16785_s20 }
  0x55   :  { %19024 = sst [smem:[#allocation41_spill]] %s16790_s27 }
  0x56   :  { %19025 = sst [smem:[#allocation42_spill]] %s16795_s4 }
  0x57   :  { %s16800_s13 = sld [smem:[%s18933_s0 + %s16583_s7]]   ;;  %s16587_s7 = smov 42  }
  0x58   :  { %s16805_s20 = sld [smem:[%s18933_s0 + %s16584_s15]]   ;;  %s16588_s15 = smov 43  }
  0x59   :  { %s16810_s27 = sld [smem:[%s18933_s0 + %s16585_s22]]   ;;  %s16589_s22 = smov 44  }
  0x5a   :  { %s16815_s4 = sld [smem:[%s18933_s0 + %s16586_s28]]   ;;  %s16590_s28 = smov 45  }
  0x5d   :  { %19026 = sst [smem:[#allocation43_spill]] %s16800_s13 }
  0x5e   :  { %19027 = sst [smem:[#allocation44_spill]] %s16805_s20 }
  0x5f   :  { %19028 = sst [smem:[#allocation45_spill]] %s16810_s27 }
  0x60   :  { %19029 = sst [smem:[#allocation46_spill]] %s16815_s4 }
  0x61   :  { %s16820_s13 = sld [smem:[%s18933_s0 + %s16587_s7]]   ;;  %s16591_s7 = smov 46  }
  0x62   :  { %s16825_s20 = sld [smem:[%s18933_s0 + %s16588_s15]]   ;;  %s16592_s15 = smov 47  }
  0x63   :  { %s16830_s27 = sld [smem:[%s18933_s0 + %s16589_s22]]   ;;  %s16593_s22 = smov 48  }
  0x64   :  { %s16835_s4 = sld [smem:[%s18933_s0 + %s16590_s28]]   ;;  %s16594_s28 = smov 49  }
  0x67   :  { %19030 = sst [smem:[#allocation47_spill]] %s16820_s13 }
  0x68   :  { %19031 = sst [smem:[#allocation48_spill]] %s16825_s20 }
  0x69   :  { %19032 = sst [smem:[#allocation49_spill]] %s16830_s27 }
  0x6a   :  { %19033 = sst [smem:[#allocation50_spill]] %s16835_s4 }
  0x6b   :  { %s16840_s13 = sld [smem:[%s18933_s0 + %s16591_s7]]  }
  0x6c   :  { %s16845_s20 = sld [smem:[%s18933_s0 + %s16592_s15]]  }
  0x6d   :  { %s16850_s27 = sld [smem:[%s18933_s0 + %s16593_s22]]  }
  0x6e   :  { %s16855_s4 = sld [smem:[%s18933_s0 + %s16594_s28]]  }
  0x71   :  { %19034 = sst [smem:[#allocation51_spill]] %s16840_s13 }
  0x72   :  { %105 = vsyncpa [#allocation3], 0 }
  0x73   :  { %107 = vsyncpa [#allocation3 + $0x1], 0  ;;  %s16857_s7 = smov 0   ;;  %s16859_s10 = smov 0  }
  0x74   :  { %s16861_s11 = smov 0   ;;  %s16863_s15 = smov 0  }
  0x75 LB: > { %s19035_s13 = sld [smem:[#allocation51_spill]]  ;;  %s19036_s30 = sld [smem:[#allocation17_spill]]  ;;  %s16544_s15 = sphi %s16863_s15, %s19092_s15   ;;  %s16540_s11 = sphi %s16861_s11, %s19091_s11   ;;  %s16536_s10 = sphi %s16859_s10, %s19090_s10   ;;  %s16532_s7 = sphi %s16857_s7, %s19089_s7  }
  0x76   : > { %s19037_s29 = sld [smem:[#allocation11_spill]]  ;;  %s19038_s24 = sld [smem:[#allocation16_spill]] }
  0x77   : > { %s19039_s19 = sld [smem:[#allocation15_spill]]  ;;  %s19040_s14 = sld [smem:[#allocation14_spill]] }
  0x78   : > { %s19041_s12 = sld [smem:[#allocation19_spill]]  ;;  %s19042_s8 = sld [smem:[#allocation13_spill]] }
  0x79   : > { %s19043_s6 = sld [smem:[#allocation18_spill]]  ;;  %s19044_s3 = sld [smem:[#allocation12_spill]] }
  0x7a   : > { %s19045_s17 = sld [smem:[#allocation8_spill]]  ;;  %s19046_s21 = sld [smem:[#allocation9_spill]] }
  0x7b   : > { %s16878_s0 = sadd.s32 4294967295, %s16544_s15   ;;  %s12519_s16 = sadd.s32 4294967294, %s16544_s15  }
  0x7c   : > { %s16882_s18 = sadd.s32 1, %s16544_s15   ;;  %s1143_s22 = sadd.s32 1, %s16540_s11 }
  0x7d   : > { %s1140_s23 = ssub.s32 %s16544_s15, %s16882_s18  ;;  %p1153_p0 = scmp.ne.s32.totalorder %s16540_s11, %s16536_s10 }
  0x7e   : > { %p1141_p1 = scmp.eq.s32.totalorder %s1140_s23, 0  ;;  %p1154_p2 = scmp.eq.s32.totalorder %s16878_s0, 1 }
  0x7f   : > { %p1159_p3 = scmp.ne.s32.totalorder %s16536_s10, %s16532_s7  ;;  %p1160_p4 = scmp.eq.s32.totalorder %s12519_s16, 1 }
  0x80   : > { %s16893_s26 = scalar_select %p1141_p1, %s16540_s11, %s1143_s22  }
  0x81   : > { %p16895_p5 = por %p1154_p2, %p1153_p0  ;;  %p16899_p6 = por %p1160_p4, %p1159_p3 }
  0x82   : > { %19047 = sst [smem:[#allocation52_spill]] %s16893_s26  ;;  %p12522_p7 = scmp.ge.s32.totalorder %s16544_s15, 1 }
  0x83   : > { %p1362_p8 = scmp.lt.s32.totalorder %s16544_s15, 3 }
  0x85   : > { %p1363_p9 = pnand %p12522_p7, %p1362_p8 }
  0x86   : > { %v1513_v0 = vld [vmem:[%s19046_s21] sm:$0xff] (!%p1363_p9)  ;;  %v1514_v1 = vld [vmem:[%s19046_s21 + $0x8] sm:$0xff] (!%p1363_p9)  ;;  %s19050_s5 = sld [smem:[#allocation5_spill]] (!%p1363_p9)  ;;  %v1515_v2 = vld [vmem:[%s19046_s21 + $0x10] sm:$0xff] (!%p1363_p9)  ;;  %p1492_p10 = scmp.lt.s32.totalorder (!%p1363_p9), %s16878_s0, 1  ;;  %v16595_v5 = vmov (!%p1363_p9), 0   ;;  %v1611_v12 = vlaneseq (!%p1363_p9) }
  0x87   : > { %1366 = sbr.rel (%p1363_p9) target bundleno = 21933 (0x55ad), region = 212  ;;  %s19051_s9 = sld [smem:[#allocation6_spill]] (!%p1363_p9)  ;;  %v15485_v3 = vpack.c.bf16 (!%p1363_p9), %v1514_v1, %v1513_v0  ;;  %v1516_v4 = vld [vmem:[%s19046_s21 + $0x18] sm:$0xff] (!%p1363_p9)  ;;  %16280 = vset.pattern.permute.xlu0 (!%p1363_p9), %v16595_v5  ;;  %16281 = vset.pattern.permute.xlu1 (!%p1363_p9), %v16595_v5  ;;  %vm1524_vm0 = vcmask (!%p1363_p9), 261120   ;;  %v16596_v10 = vmov (!%p1363_p9), 0.0|0.0   ;;  %vm16597_vm1 = vmmov (!%p1363_p9), 0  }
  0x88   : > { %v15489_v6 = vpack.c.bf16 (!%p1363_p9), %v1516_v4, %v1515_v2  ;;  %s19052_s25 = sld [smem:[#allocation10_spill]] (!%p1363_p9)  ;;  %15493 = vmatprep.subr.bf16.mxu1 (!%p1363_p9), %v16596_v10  ;;  %v16598_v11 = vmov (!%p1363_p9), 0.0   ;;  %v1607_v15 = vld [vmem:[%s19045_s17 + $0x8] sm:$0xff] (!%p1363_p9)  ;;  %v1606_v18 = vld [vmem:[%s19045_s17] sm:$0xff] (!%p1363_p9)  ;;  %v16932_v19 = vand.u32 (!%p1363_p9), 127, %v1611_v12  ;;  %vm1619_vm3 = vcmask (!%p1363_p9), 130048  }
  0x89   : > { %15486 = vmatprep.subr.bf16.mxu0 (!%p1363_p9), %v15485_v3  ;;  %14019 = vmatprep.mubr.msk.f32.mxu1 (!%p1363_p9), %vm16597_vm1, %v16598_v11  ;;  %vm1695_vm4 = vcmask (!%p1363_p9), 257024   ;;  %v1724_v34 = vld [vmem:[%s19042_s8] sm:$0xff] (!%p1363_p9)  ;;  %v1725_v35 = vld [vmem:[%s19042_s8 + $0x8] sm:$0xff] (!%p1363_p9)  ;;  %v1726_v40 = vld [vmem:[%s19042_s8 + $0x10] sm:$0xff] (!%p1363_p9)  ;;  %vm1970_vm5 = vcmask (!%p1363_p9), 64512   ;;  %vm2064_vm6 = vcmask (!%p1363_p9), 1043456  }
  0x8a   : > { %15488 = vmatpush3.bf16.msra.mxu0 (!%p1363_p9), %v15485_v3  ;;  %v15497_v36 = vpack.c.bf16 (!%p1363_p9), %v1725_v35, %v1724_v34  ;;  %v1808_v37 = vld [vmem:[%s19039_s19] sm:$0xff] (!%p1363_p9)  ;;  %v1809_v38 = vld [vmem:[%s19039_s19 + $0x8] sm:$0xff] (!%p1363_p9)  ;;  %v1727_v41 = vld [vmem:[%s19042_s8 + $0x18] sm:$0xff] (!%p1363_p9)  ;;  %vm2048_vm7 = vcmask (!%p1363_p9), 27648   ;;  %vm2060_vm8 = vcmask (!%p1363_p9), 31744   ;;  %s19058_s17 = sld [smem:[#allocation24_spill]] (!%p1363_p9) }
  0x8b   : > { %15490 = vmatprep.subr.bf16.mxu0 (!%p1363_p9), %v15489_v6  ;;  %v15503_v39 = vpack.c.bf16 (!%p1363_p9), %v1809_v38, %v1808_v37  ;;  %v15500_v42 = vpack.c.bf16 (!%p1363_p9), %v1727_v41, %v1726_v40  ;;  %v1810_v43 = vld [vmem:[%s19039_s19 + $0x10] sm:$0xff] (!%p1363_p9)  ;;  %v1811_v44 = vld [vmem:[%s19039_s19 + $0x18] sm:$0xff] (!%p1363_p9)  ;;  %v12536_v50 = vld [vmem:[%s19037_s29] ss:$0 sm:$0xff] (!%p1363_p9)  ;;  %vm6246_vm10 = vcmask (!%p1363_p9), 1042432   ;;  %vm6345_vm12 = vcmask (!%p1363_p9), 1040384  }
  0x8c   : > { %v15506_v45 = vpack.c.bf16 (!%p1363_p9), %v1811_v44, %v1810_v43  ;;  %v1889_v52 = vld [vmem:[%s19036_s30] sm:$0xff] (!%p1363_p9)  ;;  %v1890_v53 = vld [vmem:[%s19036_s30 + $0x8] sm:$0xff] (!%p1363_p9)  ;;  %v1891_v58 = vld [vmem:[%s19036_s30 + $0x10] sm:$0xff] (!%p1363_p9)  ;;  %vm6361_vm13 = vcmask (!%p1363_p9), 523264   ;;  %vm6368_vm14 = vcmask (!%p1363_p9), 516096   ;;  %s19084_s26 = sld [smem:[#allocation48_spill]] (!%p1363_p9) }
  0x8d   : > { %v12537_v54 = vld [vmem:[%s19044_s3] ss:$0 sm:$0xff] (!%p1363_p9)  ;;  %v15509_v56 = vpack.c.bf16 (!%p1363_p9), %v1890_v53, %v1889_v52  ;;  %v1892_v59 = vld [vmem:[%s19036_s30 + $0x18] sm:$0xff] (!%p1363_p9)  ;;  %v12549_v62 = vld [vmem:[%s19042_s8 + $0x28] sm:$0xff] (!%p1363_p9) }
  0x8e   : > { %s1493_s2 = scalar_select %p1492_p10, %s16878_s0, 1  ;;  %15492 = vmatpush3.bf16.msra.mxu0 %v15489_v6  ;;  %v12531_v13 = vld [vmem:[%s19052_s25] ss:$0 sm:$0xff]  ;;  %v15512_v60 = vpack.c.bf16 %v1892_v59, %v1891_v58  ;;  %v12550_v0 = vld [vmem:[%s19042_s8 + $0x30] sm:$0xff]  ;;  %v12551_v1 = vld [vmem:[%s19042_s8 + $0x38] sm:$0xff] }
  0x8f   : > { %15502 = vmatprep.subr.bf16.mxu0 %v16596_v10  ;;  %v12548_v61 = vld [vmem:[%s19042_s8 + $0x20] sm:$0xff]  ;;  %v15518_v2 = vpack.c.bf16 %v12551_v1, %v12550_v0  ;;  %v12563_v4 = vld [vmem:[%s19036_s30 + $0x28] sm:$0xff]  ;;  %v12564_v6 = vld [vmem:[%s19036_s30 + $0x30] sm:$0xff]  ;;  %s19059_s25 = sld [smem:[#allocation26_spill]] }
  0x90   : > { %s16911_s16 = sshll.u32 %s1493_s2, 4  ;;  %s12526_s22 = sshll.u32 %s1493_s2, 2  ;;  %v15515_v63 = vpack.c.bf16 %v12549_v62, %v12548_v61  ;;  %v12562_v3 = vld [vmem:[%s19036_s30 + $0x20] sm:$0xff]  ;;  %v12556_v41 = vld [vmem:[%s19039_s19 + $0x28] sm:$0xff]  ;;  %vm17610_vm15 = vmpackc.low %vm1619_vm3, %vm1619_vm3 }
  0x91   : > { %s16915_s23 = scalar_lea.vmem %s19050_s5, %s16911_s16  ;;  %s1500_s21 = scalar_lea.vmem %s19051_s9, %s12526_s22  ;;  %v15527_v5 = vpack.c.bf16 %v12563_v4, %v12562_v3  ;;  %v12555_v40 = vld [vmem:[%s19039_s19 + $0x20] sm:$0xff]  ;;  %v12573_v4 = vld [vmem:[%s19041_s12 + $0x8] sm:$0xff] }
  0x92   : > { %v1511_v7 = vld [vmem:[%s16915_s23] sm:$0xff]  ;;  %v1512_v9 = vld [vmem:[%s16915_s23 + $0x8] sm:$0xff]  ;;  %v15521_v43 = vpack.c.bf16 %v12556_v41, %v12555_v40  ;;  %s19054_s2 = sld [smem:[#allocation23_spill]]  ;;  %s19055_s22 = sld [smem:[#allocation25_spill]] }
  0x93   : > { %14012 = vmatprep.mubr.msk.f32.mxu0 %vm1524_vm0, %v1511_v7  ;;  %v1610_v8 = vld [vmem:[%s1500_s21] sm:$0xf]  ;;  %v12565_v7 = vld [vmem:[%s19036_s30 + $0x38] sm:$0xff]  ;;  %s19053_s21 = sld [smem:[#allocation20_spill]]  ;;  %s19056_s5 = sld [smem:[#allocation21_spill]] }
  0x94   : > { %1614 = vperm.xlu0 %16280, %v1610_v8   ;;  %14013 = vmatmul.mubr.msk.f32.vlgmr.msra.gmra.mrb[0].mxu0 %vm1524_vm0, %v1512_v9  ;;  %v15530_v8 = vpack.c.bf16 %v12565_v7, %v12564_v6  ;;  %v12540_v9 = vld [vmem:[%s19038_s24] ss:$0 sm:$0xff]  ;;  %v12553_v52 = vld [vmem:[%s19040_s14 + $0x1] ss:$0 sm:$0xff]  ;;  %s19057_s9 = sld [smem:[#allocation22_spill]] }
  0x95   : > { %14041 = vmatprep.mubr.msk.f32.mxu0 %vm16597_vm1, %v16598_v11  ;;  %15504 = vmatpush3.bf16.msra.mxu0 %v15503_v39 }
  0x96   : > { %15505 = vmatprep.subr.bf16.mxu0 %v16596_v10 }
  0x99   : > { %15507 = vmatpush3.bf16.msra.mxu0 %v15506_v45  ;;  %v12557_v45 = vld [vmem:[%s19039_s19 + $0x30] sm:$0xff] }
  0x9a   : > { %14055 = vmatprep.subr.mxu0 %v16598_v11 }
 0x113   : > { %v1615_v21 = vpop.permute.xlu0 %1614 }
 0x114   : > { %vm1616_vm2 = vcmp.eq.s32.totalorder %v1615_v21, %v16932_v19  ;;  %v12542_v21 = vld [vmem:[%s19043_s6] ss:$0 sm:$0xff] }
 0x115   : > { %v12534_v25 = vsel %vm1616_vm2, 1.0, %v16598_v11  ;;  %vm6816_vm2 = vcmask 138240  }
 0x167   : > { %v14014_v14 = vpop.f32.mrb[0].mxu0 }
 0x168   : > { %v1603_v16 = vadd.f32 %v14014_v14, %v12531_v13  ;;  %v1597_v17 = vpop.f32.mrb[1].mxu0 }
 0x169   : > { %v1598_v20 = vadd.f32 %v12531_v13, %v1597_v17 }
 0x16a   : > { %v1609_v22 = vadd.f32 %v1607_v15, %v1603_v16  ;;  %v12538_v15 = vld [vmem:[%s19040_s14] ss:$0 sm:$0xff] }
 0x16b   : > { %v1608_v23 = vadd.f32 %v1606_v18, %v1598_v20 }
 0x16d   : > { %v15494_v24 = vpack.c.bf16 %v1609_v22, %v1608_v23 }
 0x16f   : > { %15495 = vmatpush3.bf16.msra.mxu1 %v15494_v24 }
 0x170   : > { %15496 = vmatprep.subr.bf16.mxu1 %v16596_v10 }
 0x172   : > { %14020 = vmatmul.mubr.msk.f32.vlgmr.msra.gmra.mrb[0].mxu1 %vm1619_vm3, %v12534_v25 }
 0x173   : > { %14030 = vmatprep.mubr.msk.f32.mxu1 %vm16597_vm1, %v16598_v11  ;;  %15498 = vmatpush3.bf16.msra.mxu1 %v15497_v36 }
 0x174   : > { %15499 = vmatprep.subr.bf16.mxu1 %v16596_v10 }
 0x177   : > { %15501 = vmatpush3.bf16.msra.mxu1 %v15500_v42 }
 0x178   : > { %15508 = vmatprep.subr.bf16.mxu1 %v16596_v10 }
 0x245   : > { %v16940_v26 = vpop.f32.mrb[0].mxu1 }
 0x246   : > { %v14021_v27 = vpop.f32.mrb[1].mxu1  ;;  %v1696_v28 = vsel %vm1695_vm4, %v16940_v26, 0.0 }
 0x247   : > { %1697 = vadd.xlane.f32.xlu0 %v1696_v28 }
 0x2d4   : > { %v1698_v29 = vpop.xlane.xlu0 %1697 }
 0x2d5   : > { %v1700_v30 = vmul.f32 0.03125, %v1698_v29 }
 0x2d7   : > { %v1701_v31 = vsub.f32 %v16940_v26, %v1700_v30 }
 0x2d9   : > { %v1702_v32 = vmul.f32 %v1701_v31, %v1701_v31 }
 0x2db   : > { %v1703_v33 = vsel %vm1695_vm4, %v1702_v32, 0.0 }
 0x2dc   : > { %1704 = vadd.xlane.f32.xlu1 %v1703_v33 }
 0x369   : > { %v1705_v46 = vpop.xlane.xlu1 %1704 }
 0x36a   : > { %v1706_v47 = vmul.f32 0.03125, %v1705_v46  ;;  %v12558_v46 = vld [vmem:[%s19039_s19 + $0x38] sm:$0xff] }
 0x36c   : > { %v1707_v48 = vadd.f32 1e-05, %v1706_v47  ;;  %v15524_v47 = vpack.c.bf16 %v12558_v46, %v12557_v45 }
 0x36e   : > { %16282 = vrsqrt.f32 %v1707_v48 }
 0x378   : > { %v16283_v49 = vpop.eup %16282 }
 0x379   : > { %v1709_v51 = vmul.f32 %v16283_v49, %v1701_v31 }
 0x37b   : > { %v1716_v55 = vmul.f32 %v12536_v50, %v1709_v51  ;;  %v12560_v50 = vld [vmem:[%s19038_s24 + $0x1] ss:$0 sm:$0xff] }
 0x37d   : > { %v16962_v57 = vadd.f32 %v12537_v54, %v1716_v55  ;;  %v12567_v55 = vld [vmem:[%s19043_s6 + $0x1] ss:$0 sm:$0xff] }
 0x37f   : > { %14031 = vmatmul.mubr.msk.f32.vlgmr.msra.gmra.mrb[2].mxu1 %vm1524_vm0, %v16962_v57  ;;  %14042 = vmatmul.mubr.msk.f32.vlgmr.msra.gmra.mrb[2].mxu0 %vm1524_vm0, %v16962_v57 }
 0x380   : > { %15510 = vmatpush3.bf16.msra.mxu1 %v15509_v56  ;;  %14052 = vmatprep.mubr.msk.f32.mxu1 %vm16597_vm1, %v16598_v11 }
 0x381   : > { %15511 = vmatprep.subr.bf16.mxu1 %v16596_v10  ;;  %14057 = vmatprep.mubr.msk.f32.mxu0 %vm16597_vm1, %v16598_v11 }
 0x384   : > { %15513 = vmatpush3.bf16.msra.mxu1 %v15512_v60 }
 0x385   : > { %15514 = vmatprep.subr.bf16.mxu1 %v16596_v10 }
 0x387   : > { %14053 = vmatmul.mubr.msk.f32.vlgmr.msra.gmra.mrb[4].mxu1 %vm1524_vm0, %v16962_v57 }
 0x388   : > { %15516 = vmatpush3.bf16.msra.mxu1 %v15515_v63  ;;  %14073 = vmatprep.mubr.msk.f32.mxu1 %vm16597_vm1, %v16598_v11 }
 0x389   : > { %15517 = vmatprep.subr.bf16.mxu1 %v16596_v10 }
 0x38c   : > { %15519 = vmatpush3.bf16.msra.mxu1 %v15518_v2 }
 0x38d   : > { %15526 = vmatprep.subr.bf16.mxu1 %v16596_v10 }
 0x38f   : > { %14074 = vmatmul.mubr.msk.f32.vlgmr.msra.gmra.mrb[6].mxu1 %vm1524_vm0, %v16962_v57 }
 0x390   : > { %15528 = vmatpush3.bf16.msra.mxu1 %v15527_v5  ;;  %14095 = vmatprep.mubr.msk.f32.mxu1 %vm16597_vm1, %v16598_v11 }
 0x391   : > { %15529 = vmatprep.subr.bf16.mxu1 %v16596_v10 }
 0x394   : > { %15531 = vmatpush3.bf16.msra.mxu1 %v15530_v8  ;;  %v2138_v8 = vld [vmem:[%s19041_s12] sm:$0xff] }
 0x395   : > { %14108 = vmatprep.subr.mxu1 %v16598_v11 }
 0x397   : > { %14096 = vmatmul.mubr.msk.f32.vlgmr.msra.gmra.mrb[8].mxu1 %vm1524_vm0, %v16962_v57 }
 0x398   : > { %14110 = vmatprep.mubr.msk.f32.mxu1 %vm16597_vm1, %v16598_v11  ;;  %14109 = vmatpush3.msra.mxu1 %v12573_v4  ;;  %v12605_v4 = vld [vmem:[%s19042_s8 + $0x70] sm:$0xff] }
 0x399   : > { %15532 = vmatprep.subr.bf16.mxu1 %v16596_v10 }
 0x452   : > { %v1804_v13 = vpop.f32.mrb[2].mxu1  ;;  %v1885_v14 = vpop.f32.mrb[2].mxu0 }
 0x453   : > { %v1886_v16 = vadd.f32 %v12540_v9, %v1885_v14  ;;  %v14032_v17 = vpop.f32.mrb[3].mxu1  ;;  %v14043_v18 = vpop.f32.mrb[3].mxu0  ;;  %v1805_v20 = vadd.f32 %v12538_v15, %v1804_v13  ;;  %v12583_v9 = vld [vmem:[%s19039_s19 + $0x40] sm:$0xff]  ;;  %v12584_v13 = vld [vmem:[%s19039_s19 + $0x48] sm:$0xff]  ;;  %v12585_v15 = vld [vmem:[%s19039_s19 + $0x50] sm:$0xff] }
 0x454   : > { %v15539_v14 = vpack.c.bf16 %v12584_v13, %v12583_v9  ;;  %v12576_v18 = vld [vmem:[%s19042_s8 + $0x40] sm:$0xff]  ;;  %v12619_v13 = vld [vmem:[%s19036_s30 + $0x70] sm:$0xff] }
 0x455   : > { %14056 = vmatpush3.xpose.msk.msra.mxu0 %vm1970_vm5, %v1886_v16  ;;  %v12586_v16 = vld [vmem:[%s19039_s19 + $0x58] sm:$0xff] }
 0x456   : > { %14060 = vmatprep.subr.mxu0 %v16598_v11  ;;  %v15542_v17 = vpack.c.bf16 %v12586_v16, %v12585_v15  ;;  %v12610_v16 = vld [vmem:[%s19039_s19 + $0x60] sm:$0xff] }
 0x458   : > { %14058 = vmatmul.mubr.msk.f32.vlgmr.msra.gmra.mrb[4].mxu0 %vm1970_vm5, %v1805_v20  ;;  %v12577_v20 = vld [vmem:[%s19042_s8 + $0x48] sm:$0xff] }
 0x459   : > { %14062 = vmatprep.mubr.msk.f32.mxu0 %vm16597_vm1, %v16598_v11 }
 0x45a   : > { %v1966_v22 = vpop.f32.mrb[4].mxu1 }
 0x45b   : > { %v1967_v23 = vadd.f32 %v12542_v21, %v1966_v22  ;;  %v14054_v24 = vpop.f32.mrb[5].mxu1  ;;  %v15533_v21 = vpack.c.bf16 %v12577_v20, %v12576_v18  ;;  %v12578_v22 = vld [vmem:[%s19042_s8 + $0x50] sm:$0xff] }
 0x45c   : > { %v12612_v20 = vld [vmem:[%s19039_s19 + $0x70] sm:$0xff] }
 0x45d   : > { %14061 = vmatpush3.msk.msra.mxu0 %vm2064_vm6, %v1967_v23  ;;  %v12579_v23 = vld [vmem:[%s19042_s8 + $0x58] sm:$0xff] }
 0x45e   : > { %15520 = vmatprep.subr.bf16.mxu0 %v16596_v10 }
 0x462   : > { %v2218_v25 = vpop.f32.mrb[6].mxu1 }
 0x463   : > { %v14075_v27 = vpop.f32.mrb[7].mxu1  ;;  %v2219_v56 = vadd.f32 %v12553_v52, %v2218_v25 }
 0x464   : > { %v15536_v27 = vpack.c.bf16 %v12579_v23, %v12578_v22 }
 0x46a   : > { %v2384_v28 = vpop.f32.mrb[8].mxu1 }
 0x46b   : > { %v14097_v29 = vpop.f32.mrb[9].mxu1  ;;  %v2385_v58 = vadd.f32 %v12567_v55, %v2384_v28  ;;  %v12590_v28 = vld [vmem:[%s19036_s30 + $0x40] sm:$0xff] }
 0x46c   : > { %v12591_v29 = vld [vmem:[%s19036_s30 + $0x48] sm:$0xff] }
 0x52b   : > { %v2043_v30 = vpop.f32.mrb[4].mxu0 }
 0x52c   : > { %v2047_v31 = vmul.f32 0.35355338, %v2043_v30  ;;  %v14059_v32 = vpop.f32.mrb[5].mxu0 }
 0x52d   : > { %v15545_v32 = vpack.c.bf16 %v12591_v29, %v12590_v28 }
 0x52e   : > { %v2049_v33 = vsel %vm2048_vm7, %v2047_v31, -inf }
 0x52f   : > { %2050 = vmax.xlane.f32.xlu1 %v2049_v33  ;;  %v12592_v33 = vld [vmem:[%s19036_s30 + $0x50] sm:$0xff] }
 0x5bc   : > { %v2051_v34 = vpop.xlane.xlu1 %2050 }
 0x5bd   : > { %v2052_v35 = vsub.f32 %v2047_v31, %v2051_v34  ;;  %v12593_v34 = vld [vmem:[%s19036_s30 + $0x58] sm:$0xff] }
 0x5bf   : > { %v2053_v36 = vmul.f32 1.442695, %v2052_v35  ;;  %v12588_v35 = vld [vmem:[%s19038_s24 + $0x2] ss:$0 sm:$0xff] }
 0x5c1   : > { %16284 = vpow2.f32 %v2053_v36  ;;  %v15548_v36 = vpack.c.bf16 %v12593_v34, %v12592_v33  ;;  %v12615_v33 = vld [vmem:[%s19038_s24 + $0x3] ss:$0 sm:$0xff] }
 0x5cb   : > { %v16285_v37 = vpop.eup %16284 }
 0x5cc   : > { %v2055_v38 = vsel %vm2048_vm7, %v16285_v37, 0.0 }
 0x5cd   : > { %2056 = vadd.xlane.f32.xlu1 %v2055_v38 }
 0x65a   : > { %v2057_v39 = vpop.xlane.xlu1 %2056 }
 0x65b   : > { %16286 = vrcp.f32 %v2057_v39 }
 0x665   : > { %v16287_v42 = vpop.eup %16286 }
 0x666   : > { %v2059_v44 = vmul.f32 %v16287_v42, %v16285_v37 }
 0x668   : > { %14063 = vmatmul.mubr.msk.f32.vlgmr.msra.gmra.mrb[6].mxu0 %vm2060_vm8, %v2059_v44 }
 0x669   : > { %15522 = vmatpush3.bf16.msra.mxu0 %v15521_v43  ;;  %14084 = vmatprep.mubr.msk.f32.mxu0 %vm16597_vm1, %v16598_v11  ;;  %v12581_v43 = vld [vmem:[%s19040_s14 + $0x2] ss:$0 sm:$0xff] }
 0x66a   : > { %15523 = vmatprep.subr.bf16.mxu0 %v16596_v10 }
 0x66d   : > { %15525 = vmatpush3.bf16.msra.mxu0 %v15524_v47  ;;  %v12595_v47 = vld [vmem:[%s19043_s6 + $0x2] ss:$0 sm:$0xff] }
 0x66e   : > { %14098 = vmatprep.subr.mxu0 %v16598_v11 }
 0x670   : > { %14085 = vmatmul.mubr.msk.f32.vlgmr.msra.gmra.mrb[8].mxu0 %vm1524_vm0, %v16962_v57 }
 0x671   : > { %14100 = vmatprep.mubr.msk.f32.mxu0 %vm16597_vm1, %v16598_v11 }
 0x73b   : > { %v2134_v48 = vpop.f32.mrb[6].mxu0 }
 0x73c   : > { %v14064_v49 = vpop.f32.mrb[7].mxu0 }
 0x743   : > { %v2301_v51 = vpop.f32.mrb[8].mxu0 }
 0x744   : > { %v2302_v53 = vadd.f32 %v12560_v50, %v2301_v51  ;;  %v14086_v54 = vpop.f32.mrb[9].mxu0 }
 0x746   : > { %14099 = vmatpush3.xpose.msk.msra.mxu0 %vm1970_vm5, %v2302_v53 }
 0x747   : > { %14103 = vmatprep.subr.mxu0 %v16598_v11 }
 0x749   : > { %14101 = vmatmul.mubr.msk.f32.vlgmr.msra.gmra.mrb[10].mxu0 %vm1970_vm5, %v2219_v56 }
 0x74a   : > { %14104 = vmatpush3.msk.msra.mxu0 %vm2064_vm6, %v2385_v58  ;;  %14105 = vmatprep.mubr.msk.f32.mxu0 %vm16597_vm1, %v16598_v11 }
 0x74b   : > { %14113 = vmatprep.subr.mxu0 %v16598_v11 }
 0x81c   : > { %v2460_v59 = vpop.f32.mrb[10].mxu0 }
 0x81d   : > { %v2464_v60 = vmul.f32 0.35355338, %v2460_v59  ;;  %v14102_v61 = vpop.f32.mrb[11].mxu0 }
 0x81e   : > { %v12601_v61 = vld [vmem:[%s19041_s12 + $0x10] sm:$0xff] }
 0x81f   : > { %v2465_v62 = vsel %vm2048_vm7, %v2464_v60, -inf }
 0x820   : > { %2466 = vmax.xlane.f32.xlu1 %v2465_v62 }
 0x8ad   : > { %v2467_v63 = vpop.xlane.xlu1 %2466 }
 0x8ae   : > { %v2468_v0 = vsub.f32 %v2464_v60, %v2467_v63  ;;  %v12603_v63 = vld [vmem:[%s19042_s8 + $0x60] sm:$0xff] }
 0x8b0   : > { %v2469_v1 = vmul.f32 1.442695, %v2468_v0  ;;  %v12604_v0 = vld [vmem:[%s19042_s8 + $0x68] sm:$0xff] }
 0x8b2   : > { %16288 = vpow2.f32 %v2469_v1 }
 0x8bc   : > { %v16289_v2 = vpop.eup %16288 }
 0x8bd   : > { %v2471_v3 = vsel %vm2048_vm7, %v16289_v2, 0.0 }
 0x8be   : > { %2472 = vadd.xlane.f32.xlu1 %v2471_v3 }
 0x94b   : > { %v2473_v5 = vpop.xlane.xlu1 %2472 }
 0x94c   : > { %16290 = vrcp.f32 %v2473_v5  ;;  %v12606_v5 = vld [vmem:[%s19042_s8 + $0x78] sm:$0xff] }
 0x956   : > { %v16291_v6 = vpop.eup %16290 }
 0x957   : > { %v2475_v7 = vmul.f32 %v16291_v6, %v16289_v2  ;;  %v15551_v2 = vpack.c.bf16 %v12604_v0, %v12603_v63  ;;  %v15554_v6 = vpack.c.bf16 %v12606_v5, %v12605_v4  ;;  %v3716_v4 = vld [vmem:[%s19054_s2] sm:$0xff]  ;;  %v3717_v5 = vld [vmem:[%s19054_s2 + $0x8] sm:$0xff] }
 0x959   : > { %14106 = vmatmul.mubr.msk.f32.vlgmr.msra.gmra.mrb[12].mxu0 %vm2060_vm8, %v2475_v7  ;;  %v12617_v7 = vld [vmem:[%s19036_s30 + $0x60] sm:$0xff] }
 0x95a   : > { %14114 = vmatpush3.msra.mxu0 %v2138_v8  ;;  %14115 = vmatprep.mubr.msk.f32.mxu0 %vm16597_vm1, %v16598_v11  ;;  %v12618_v8 = vld [vmem:[%s19036_s30 + $0x68] sm:$0xff] }
 0x95b   : > { %15538 = vmatprep.subr.bf16.mxu0 %v16596_v10  ;;  %v15563_v9 = vpack.c.bf16 %v12618_v8, %v12617_v7  ;;  %v3719_v7 = vld [vmem:[%s19054_s2 + $0x18] sm:$0xff] }
 0x95d   : > { %14116 = vmatmul.mubr.msk.f32.vlgmr.msra.gmra.mrb[14].mxu0 %vm1970_vm5, %v2134_v48 }
 0x95e   : > { %15540 = vmatpush3.bf16.msra.mxu0 %v15539_v14  ;;  %14137 = vmatprep.mubr.msk.f32.mxu0 %vm16597_vm1, %v16598_v11  ;;  %v12620_v14 = vld [vmem:[%s19036_s30 + $0x78] sm:$0xff] }
 0x95f   : > { %15541 = vmatprep.subr.bf16.mxu0 %v16596_v10  ;;  %v15566_v15 = vpack.c.bf16 %v12620_v14, %v12619_v13  ;;  %v3810_v13 = vld [vmem:[%s19055_s22 + $0x8] sm:$0xff] }
 0x962   : > { %15543 = vmatpush3.bf16.msra.mxu0 %v15542_v17  ;;  %v12611_v17 = vld [vmem:[%s19039_s19 + $0x68] sm:$0xff] }
 0x963   : > { %14151 = vmatprep.subr.mxu0 %v16598_v11  ;;  %v15557_v18 = vpack.c.bf16 %v12611_v17, %v12610_v16 }
 0x965   : > { %14138 = vmatmul.mubr.msk.f32.vlgmr.msra.gmra.mrb[16].mxu0 %vm1524_vm0, %v16962_v57 }
 0x966   : > { %14153 = vmatprep.mubr.msk.f32.mxu0 %vm16597_vm1, %v16598_v11 }
 0xa2c   : > { %v2548_v24 = vpop.f32.mrb[12].mxu0 }
 0xa2d   : > { %v14107_v25 = vpop.f32.mrb[13].mxu0  ;;  %14111 = vmatmul.mubr.msk.f32.vlgmr.msra.gmra.mrb[10].mxu1 %vm1970_vm5, %v2548_v24 }
 0xa2e   : > { %15534 = vmatpush3.bf16.msra.mxu1 %v15533_v21  ;;  %14126 = vmatprep.mubr.msk.f32.mxu1 %vm16597_vm1, %v16598_v11  ;;  %v12613_v21 = vld [vmem:[%s19039_s19 + $0x78] sm:$0xff] }
 0xa2f   : > { %15535 = vmatprep.subr.bf16.mxu1 %v16596_v10  ;;  %v15560_v24 = vpack.c.bf16 %v12613_v21, %v12612_v20  ;;  %v12631_v20 = vld [vmem:[%s19056_s5] ss:$0 sm:$0xff] }
 0xa30   : > { %v2696_v30 = vpop.f32.mrb[14].mxu0 }
 0xa31   : > { %v14117_v31 = vpop.f32.mrb[15].mxu0 }
 0xa32   : > { %15537 = vmatpush3.bf16.msra.mxu1 %v15536_v27 }
 0xa33   : > { %15544 = vmatprep.subr.bf16.mxu1 %v16596_v10 }
 0xa35   : > { %14127 = vmatmul.mubr.msk.f32.vlgmr.msra.gmra.mrb[12].mxu1 %vm1524_vm0, %v16962_v57 }
 0xa36   : > { %15546 = vmatpush3.bf16.msra.mxu1 %v15545_v32  ;;  %14148 = vmatprep.mubr.msk.f32.mxu1 %vm16597_vm1, %v16598_v11 }
 0xa37   : > { %15547 = vmatprep.subr.bf16.mxu1 %v16596_v10 }
 0xa38   : > { %v2862_v37 = vpop.f32.mrb[16].mxu0 }
 0xa39   : > { %v2863_v38 = vadd.f32 %v12588_v35, %v2862_v37  ;;  %v14139_v39 = vpop.f32.mrb[17].mxu0  ;;  %v12608_v35 = vld [vmem:[%s19040_s14 + $0x3] ss:$0 sm:$0xff] }
 0xa3a   : > { %15549 = vmatpush3.bf16.msra.mxu1 %v15548_v36 }
 0xa3b   : > { %14152 = vmatpush3.xpose.msk.msra.mxu0 %vm1970_vm5, %v2863_v38  ;;  %14161 = vmatprep.subr.mxu1 %v16598_v11  ;;  %v12622_v38 = vld [vmem:[%s19043_s6 + $0x3] ss:$0 sm:$0xff] }
 0xa3c   : > { %14156 = vmatprep.subr.mxu0 %v16598_v11 }
 0xa3d   : > { %14149 = vmatmul.mubr.msk.f32.vlgmr.msra.gmra.mrb[14].mxu1 %vm1524_vm0, %v16962_v57 }
 0xa3e   : > { %14163 = vmatprep.mubr.msk.f32.mxu1 %vm16597_vm1, %v16598_v11  ;;  %14162 = vmatpush3.msra.mxu1 %v12601_v61 }
 0xa3f   : > { %15556 = vmatprep.subr.bf16.mxu1 %v16596_v10 }
 0xb00   : > { %v2623_v40 = vpop.f32.mrb[10].mxu1 }
 0xb01   : > { %v17083_v41 = vadd.f32 %v2696_v30, %v2623_v40  ;;  %v14112_v42 = vpop.f32.mrb[11].mxu1 }
 0xb08   : > { %v2779_v44 = vpop.f32.mrb[12].mxu1 }
 0xb09   : > { %v2780_v45 = vadd.f32 %v12581_v43, %v2779_v44  ;;  %v14128_v46 = vpop.f32.mrb[13].mxu1 }
 0xb0b   : > { %14154 = vmatmul.mubr.msk.f32.vlgmr.msra.gmra.mrb[18].mxu0 %vm1970_vm5, %v2780_v45 }
 0xb0c   : > { %14158 = vmatprep.mubr.msk.f32.mxu0 %vm16597_vm1, %v16598_v11 }
 0xb10   : > { %v2945_v48 = vpop.f32.mrb[14].mxu1 }
 0xb11   : > { %v2946_v49 = vadd.f32 %v12595_v47, %v2945_v48  ;;  %v14150_v50 = vpop.f32.mrb[15].mxu1 }
 0xb13   : > { %14157 = vmatpush3.msk.msra.mxu0 %vm2064_vm6, %v2946_v49 }
 0xb14   : > { %15550 = vmatprep.subr.bf16.mxu0 %v16596_v10 }
 0xbde   : > { %v3021_v51 = vpop.f32.mrb[18].mxu0 }
 0xbdf   : > { %v3025_v52 = vmul.f32 0.35355338, %v3021_v51  ;;  %v14155_v53 = vpop.f32.mrb[19].mxu0 }
 0xbe1   : > { %v3026_v54 = vsel %vm2048_vm7, %v3025_v52, -inf }
 0xbe2   : > { %3027 = vmax.xlane.f32.xlu1 %v3026_v54 }
 0xc6f   : > { %v3028_v55 = vpop.xlane.xlu1 %3027 }
 0xc70   : > { %v3029_v56 = vsub.f32 %v3025_v52, %v3028_v55  ;;  %v12628_v52 = vld [vmem:[%s19041_s12 + $0x18] sm:$0xff] }
 0xc72   : > { %v3030_v58 = vmul.f32 1.442695, %v3029_v56 }
 0xc74   : > { %16292 = vpow2.f32 %v3030_v58 }
 0xc7e   : > { %v16293_v59 = vpop.eup %16292 }
 0xc7f   : > { %v3032_v60 = vsel %vm2048_vm7, %v16293_v59, 0.0 }
 0xc80   : > { %3033 = vadd.xlane.f32.xlu1 %v3032_v60 }
 0xd0d   : > { %v3034_v62 = vpop.xlane.xlu1 %3033 }
 0xd0e   : > { %16294 = vrcp.f32 %v3034_v62 }
 0xd18   : > { %v16295_v1 = vpop.eup %16294 }
 0xd19   : > { %v3036_v3 = vmul.f32 %v16295_v1, %v16293_v59  ;;  %v12630_v59 = vld [vmem:[%s19053_s21] ss:$0 sm:$0xff] }
 0xd1b   : > { %14159 = vmatmul.mubr.msk.f32.vlgmr.msra.gmra.mrb[20].mxu0 %vm2060_vm8, %v3036_v3 }
 0xd1c   : > { %15552 = vmatpush3.bf16.msra.mxu0 %v15551_v2  ;;  %14174 = vmatprep.mubr.msk.f32.mxu0 %vm16597_vm1, %v16598_v11 }
 0xd1d   : > { %15553 = vmatprep.subr.bf16.mxu0 %v16596_v10 }
 0xd20   : > { %15555 = vmatpush3.bf16.msra.mxu0 %v15554_v6  ;;  %v3718_v6 = vld [vmem:[%s19054_s2 + $0x10] sm:$0xff] }
 0xd21   : > { %15562 = vmatprep.subr.bf16.mxu0 %v16596_v10  ;;  %v15572_v8 = vpack.c.bf16 %v3719_v7, %v3718_v6  ;;  %v12640_v7 = vld [vmem:[%s19042_s8 + $0x80] sm:$0xff] }
 0xd23   : > { %14175 = vmatmul.mubr.msk.f32.vlgmr.msra.gmra.mrb[22].mxu0 %vm1524_vm0, %v16962_v57 }
 0xd24   : > { %15564 = vmatpush3.bf16.msra.mxu0 %v15563_v9  ;;  %14196 = vmatprep.mubr.msk.f32.mxu0 %vm16597_vm1, %v16598_v11  ;;  %v3809_v9 = vld [vmem:[%s19055_s22] sm:$0xff] }
 0xd25   : > { %15565 = vmatprep.subr.bf16.mxu0 %v16596_v10  ;;  %v15575_v14 = vpack.c.bf16 %v3810_v13, %v3809_v9  ;;  %v12643_v13 = vld [vmem:[%s19042_s8 + $0x98] sm:$0xff] }
 0xd28   : > { %15567 = vmatpush3.bf16.msra.mxu0 %v15566_v15 }
 0xd29   : > { %14209 = vmatprep.subr.mxu0 %v16598_v11 }
 0xd2b   : > { %14197 = vmatmul.mubr.msk.f32.vlgmr.msra.gmra.mrb[24].mxu0 %vm1524_vm0, %v16962_v57 }
 0xd2c   : > { %14211 = vmatprep.mubr.msk.f32.mxu0 %vm16597_vm1, %v16598_v11  ;;  %14210 = vmatpush3.msra.mxu0 %v12628_v52 }
 0xd2d   : > { %15574 = vmatprep.subr.bf16.mxu0 %v16596_v10 }
 0xdee   : > { %v3109_v22 = vpop.f32.mrb[20].mxu0 }
 0xdef   : > { %v14160_v23 = vpop.f32.mrb[21].mxu0  ;;  %14164 = vmatmul.mubr.msk.f32.vlgmr.msra.gmra.mrb[16].mxu1 %vm1970_vm5, %v3109_v22  ;;  %v12632_v22 = vld [vmem:[%s19057_s9] ss:$0 sm:$0xff] }
 0xdf0   : > { %15558 = vmatpush3.bf16.msra.mxu1 %v15557_v18  ;;  %14185 = vmatprep.mubr.msk.f32.mxu1 %vm16597_vm1, %v16598_v11 }
 0xdf1   : > { %15559 = vmatprep.subr.bf16.mxu1 %v16596_v10 }
 0xdf4   : > { %15561 = vmatpush3.bf16.msra.mxu1 %v15560_v24 }
 0xdf5   : > { %14199 = vmatprep.subr.mxu1 %v16598_v11 }
 0xdf6   : > { %v3268_v25 = vpop.f32.mrb[22].mxu0 }
 0xdf7   : > { %v14176_v27 = vpop.f32.mrb[23].mxu0  ;;  %14186 = vmatmul.mubr.msk.f32.vlgmr.msra.gmra.mrb[18].mxu1 %vm1524_vm0, %v16962_v57  ;;  %v3269_v39 = vadd.f32 %v12608_v35, %v3268_v25  ;;  %v3811_v25 = vld [vmem:[%s19055_s22 + $0x10] sm:$0xff]  ;;  %v3817_v35 = vld [vmem:[%s19055_s22 + $0x40] sm:$0xff] }
 0xdf8   : > { %14201 = vmatprep.mubr.msk.f32.mxu1 %vm16597_vm1, %v16598_v11  ;;  %v3812_v27 = vld [vmem:[%s19055_s22 + $0x18] sm:$0xff] }
 0xdfe   : > { %v3434_v28 = vpop.f32.mrb[24].mxu0 }
 0xdff   : > { %v14198_v29 = vpop.f32.mrb[25].mxu0  ;;  %v3435_v57 = vadd.f32 %v12622_v38, %v3434_v28  ;;  %v15578_v28 = vpack.c.bf16 %v3812_v27, %v3811_v25  ;;  %v3819_v38 = vld [vmem:[%s19055_s22 + $0x50] sm:$0xff] }
 0xe00   : > { %v3813_v29 = vld [vmem:[%s19055_s22 + $0x20] sm:$0xff] }
 0xec2   : > { %v3184_v30 = vpop.f32.mrb[16].mxu1 }
 0xec3   : > { %v3188_v31 = vadd.f32 %v3184_v30, %v17083_v41  ;;  %v14165_v32 = vpop.f32.mrb[17].mxu1  ;;  %v3814_v30 = vld [vmem:[%s19055_s22 + $0x28] sm:$0xff] }
 0xec4   : > { %v3815_v32 = vld [vmem:[%s19055_s22 + $0x30] sm:$0xff] }
 0xeca   : > { %v3351_v34 = vpop.f32.mrb[18].mxu1 }
 0xecb   : > { %v3352_v36 = vadd.f32 %v12615_v33, %v3351_v34  ;;  %v14187_v37 = vpop.f32.mrb[19].mxu1  ;;  %v3816_v33 = vld [vmem:[%s19055_s22 + $0x38] sm:$0xff] }
 0xecc   : > { %v15584_v34 = vpack.c.bf16 %v3816_v33, %v3815_v32  ;;  %v12654_v32 = vld [vmem:[%s19036_s30 + $0x80] sm:$0xff]  ;;  %v12655_v33 = vld [vmem:[%s19036_s30 + $0x88] sm:$0xff] }
 0xecd   : > { %14200 = vmatpush3.xpose.msk.msra.mxu1 %vm1970_vm5, %v3352_v36  ;;  %v3818_v36 = vld [vmem:[%s19055_s22 + $0x48] sm:$0xff] }
 0xece   : > { %14204 = vmatprep.subr.mxu1 %v16598_v11  ;;  %v15587_v37 = vpack.c.bf16 %v3818_v36, %v3817_v35  ;;  %v12656_v35 = vld [vmem:[%s19036_s30 + $0x90] sm:$0xff]  ;;  %v12657_v36 = vld [vmem:[%s19036_s30 + $0x98] sm:$0xff] }
 0xed0   : > { %14202 = vmatmul.mubr.msk.f32.vlgmr.msra.gmra.mrb[20].mxu1 %vm1970_vm5, %v3269_v39  ;;  %v3820_v39 = vld [vmem:[%s19055_s22 + $0x58] sm:$0xff] }
 0xed1   : > { %14205 = vmatpush3.msk.msra.mxu1 %vm2064_vm6, %v3435_v57  ;;  %14206 = vmatprep.mubr.msk.f32.mxu1 %vm16597_vm1, %v16598_v11  ;;  %v15590_v57 = vpack.c.bf16 %v3820_v39, %v3819_v38 }
 0xed2   : > { %15568 = vmatprep.subr.bf16.mxu1 %v16596_v10 }
 0xfa3   : > { %v3510_v40 = vpop.f32.mrb[20].mxu1 }
 0xfa4   : > { %v3514_v41 = vmul.f32 0.35355338, %v3510_v40  ;;  %v14203_v42 = vpop.f32.mrb[21].mxu1  ;;  %v3821_v40 = vld [vmem:[%s19055_s22 + $0x60] sm:$0xff] }
 0xfa6   : > { %v3515_v43 = vsel %vm2048_vm7, %v3514_v41, -inf }
 0xfa7   : > { %3516 = vmax.xlane.f32.xlu1 %v3515_v43  ;;  %v3823_v43 = vld [vmem:[%s19055_s22 + $0x70] sm:$0xff] }
0x1034   : > { %v3517_v44 = vpop.xlane.xlu1 %3516 }
0x1035   : > { %v3518_v45 = vsub.f32 %v3514_v41, %v3517_v44  ;;  %v3822_v41 = vld [vmem:[%s19055_s22 + $0x68] sm:$0xff]  ;;  %v3824_v44 = vld [vmem:[%s19055_s22 + $0x78] sm:$0xff] }
0x1036   : > { %v15593_v42 = vpack.c.bf16 %v3822_v41, %v3821_v40  ;;  %v12666_v41 = vld [vmem:[%s19042_s8 + $0xa0] sm:$0xff] }
0x1037   : > { %v3519_v46 = vmul.f32 1.442695, %v3518_v45  ;;  %v15596_v45 = vpack.c.bf16 %v3824_v44, %v3823_v43  ;;  %v12645_v43 = vld [vmem:[%s19040_s14 + $0x4] ss:$0 sm:$0xff] }
0x1039   : > { %16296 = vpow2.f32 %v3519_v46  ;;  %v12633_v46 = vld [vmem:[%s19058_s17] ss:$0 sm:$0xff] }
0x1043   : > { %v16297_v47 = vpop.eup %16296 }
0x1044   : > { %v3521_v48 = vsel %vm2048_vm7, %v16297_v47, 0.0 }
0x1045   : > { %3522 = vadd.xlane.f32.xlu1 %v3521_v48 }
0x10d2   : > { %v3523_v49 = vpop.xlane.xlu1 %3522 }
0x10d3   : > { %16298 = vrcp.f32 %v3523_v49 }
0x10dd   : > { %v16299_v50 = vpop.eup %16298 }
0x10de   : > { %v3525_v51 = vmul.f32 %v16299_v50, %v16297_v47 }
0x10e0   : > { %14207 = vmatmul.mubr.msk.f32.vlgmr.msra.gmra.mrb[22].mxu1 %vm2060_vm8, %v3525_v51 }
0x10e1   : > { %14222 = vmatprep.mubr.msk.f32.mxu1 %vm16597_vm1, %v16598_v11 }
0x11b3   : > { %v3598_v53 = vpop.f32.mrb[22].mxu1 }
0x11b4   : > { %v14208_v54 = vpop.f32.mrb[23].mxu1  ;;  %14212 = vmatmul.mubr.msk.f32.vlgmr.msra.gmra.mrb[26].mxu0 %vm1970_vm5, %v3598_v53 }
0x11b5   : > { %14257 = vmatprep.mubr.msk.f32.mxu0 %vm16597_vm1, %v16598_v11  ;;  %15576 = vmatpush3.bf16.msra.mxu0 %v15575_v14 }
0x11b6   : > { %15577 = vmatprep.subr.bf16.mxu0 %v16596_v10 }
0x11b9   : > { %15579 = vmatpush3.bf16.msra.mxu0 %v15578_v28 }
0x11ba   : > { %15580 = vmatprep.subr.bf16.mxu0 %v16596_v10 }
0x1287   : > { %v3673_v55 = vpop.f32.mrb[26].mxu0 }
0x1288   : > { %v3677_v56 = vadd.f32 %v3673_v55, %v3188_v31  ;;  %v14213_v58 = vpop.f32.mrb[27].mxu0  ;;  %v15581_v31 = vpack.c.bf16 %v3814_v30, %v3813_v29  ;;  %v12649_v29 = vld [vmem:[%s19039_s19 + $0x90] sm:$0xff]  ;;  %v12650_v30 = vld [vmem:[%s19039_s19 + $0x98] sm:$0xff] }
0x128a   : > { %v3678_v60 = vadd.f32 %v3677_v56, %v16940_v26  ;;  %v15569_v26 = vpack.c.bf16 %v3717_v5, %v3716_v4  ;;  %15582 = vmatpush3.bf16.msra.mxu0 %v15581_v31  ;;  %v15608_v31 = vpack.c.bf16 %v12650_v30, %v12649_v29  ;;  %v12671_v30 = vld [vmem:[%s19040_s14 + $0x5] ss:$0 sm:$0xff] }
0x128b   : > { %15583 = vmatprep.subr.bf16.mxu0 %v16596_v10 }
0x128c   : > { %v17155_v61 = vadd.f32 %v12630_v59, %v3678_v60  ;;  %15570 = vmatpush3.bf16.msra.mxu1 %v15569_v26  ;;  %v12635_v60 = vld [vmem:[%s19059_s25] ss:$0 sm:$0xff] }
0x128d   : > { %15571 = vmatprep.subr.bf16.mxu1 %v16596_v10 }
0x128e   : > { %v3689_v62 = vsel %vm1695_vm4, %v17155_v61, 0.0  ;;  %15585 = vmatpush3.bf16.msra.mxu0 %v15584_v34  ;;  %v15611_v34 = vpack.c.bf16 %v12655_v33, %v12654_v32  ;;  %v12685_v33 = vld [vmem:[%s19043_s6 + $0x5] ss:$0 sm:$0xff] }
0x128f   : > { %3690 = vadd.xlane.f32.xlu0 %v3689_v62  ;;  %15586 = vmatprep.subr.bf16.mxu0 %v16596_v10 }
0x1290   : > { %15573 = vmatpush3.bf16.msra.mxu1 %v15572_v8  ;;  %v12641_v8 = vld [vmem:[%s19042_s8 + $0x88] sm:$0xff] }
0x1291   : > { %15598 = vmatprep.subr.bf16.mxu1 %v16596_v10  ;;  %v15599_v9 = vpack.c.bf16 %v12641_v8, %v12640_v7 }
0x1292   : > { %15588 = vmatpush3.bf16.msra.mxu0 %v15587_v37  ;;  %v15614_v37 = vpack.c.bf16 %v12657_v36, %v12656_v35 }
0x1293   : > { %15589 = vmatprep.subr.bf16.mxu0 %v16596_v10 }
0x1296   : > { %15591 = vmatpush3.bf16.msra.mxu0 %v15590_v57  ;;  %v12652_v57 = vld [vmem:[%s19038_s24 + $0x4] ss:$0 sm:$0xff] }
0x1297   : > { %15592 = vmatprep.subr.bf16.mxu0 %v16596_v10 }
0x129a   : > { %15594 = vmatpush3.bf16.msra.mxu0 %v15593_v42  ;;  %v12667_v42 = vld [vmem:[%s19042_s8 + $0xa8] sm:$0xff] }
0x129b   : > { %15595 = vmatprep.subr.bf16.mxu0 %v16596_v10 }
0x129e   : > { %15597 = vmatpush3.bf16.msra.mxu0 %v15596_v45 }
0x129f   : > { %14298 = vmatprep.subr.mxu0 %v16598_v11 }
0x131c   : > { %v3691_v63 = vpop.xlane.xlu0 %3690 }
0x131d   : > { %v3692_v0 = vmul.f32 0.03125, %v3691_v63 }
0x131f   : > { %v3693_v1 = vsub.f32 %v17155_v61, %v3692_v0 }
0x1321   : > { %v3694_v2 = vmul.f32 %v3693_v1, %v3693_v1 }
0x1323   : > { %v3695_v3 = vsel %vm1695_vm4, %v3694_v2, 0.0 }
0x1324   : > { %3696 = vadd.xlane.f32.xlu1 %v3695_v3 }
0x13b1   : > { %v3697_v15 = vpop.xlane.xlu1 %3696 }
0x13b2   : > { %v3698_v16 = vmul.f32 0.03125, %v3697_v15 }
0x13b4   : > { %v3699_v17 = vadd.f32 1e-05, %v3698_v16 }
0x13b6   : > { %16300 = vrsqrt.f32 %v3699_v17 }
0x13c0   : > { %v16301_v18 = vpop.eup %16300 }
0x13c1   : > { %v3701_v21 = vmul.f32 %v16301_v18, %v3693_v1 }
0x13c3   : > { %v3708_v23 = vmul.f32 %v12631_v20, %v3701_v21  ;;  %v12638_v20 = vld [vmem:[%s19037_s29 + $0x1] ss:$0 sm:$0xff]  ;;  %s19082_s29 = sld [smem:[#allocation44_spill]] }
0x13c5   : > { %v3715_v24 = vadd.f32 %v12632_v22, %v3708_v23  ;;  %v12647_v22 = vld [vmem:[%s19039_s19 + $0x80] sm:$0xff]  ;;  %v12648_v23 = vld [vmem:[%s19039_s19 + $0x88] sm:$0xff] }
0x13c6   : > { %v15605_v27 = vpack.c.bf16 %v12648_v23, %v12647_v22  ;;  %v12676_v22 = vld [vmem:[%s19039_s19 + $0xb8] sm:$0xff] }
0x13c7   : > { %14223 = vmatmul.mubr.msk.f32.vlgmr.msra.gmra.mrb[24].mxu1 %vm1524_vm0, %v3715_v24  ;;  %v12639_v24 = vld [vmem:[%s19044_s3 + $0x1] ss:$0 sm:$0xff]  ;;  %s19061_s3 = sld [smem:[#allocation29_spill]] }
0x13c8   : > { %14268 = vmatprep.mubr.msk.f32.mxu1 %vm16597_vm1, %v16598_v11  ;;  %15600 = vmatpush3.bf16.msra.mxu1 %v15599_v9 }
0x13c9   : > { %15601 = vmatprep.subr.bf16.mxu1 %v16596_v10 }
0x149a   : > { %v3796_v47 = vpop.f32.mrb[24].mxu1 }
0x149b   : > { %v3797_v48 = vadd.f32 %v12633_v46, %v3796_v47  ;;  %v14224_v49 = vpop.f32.mrb[25].mxu1  ;;  %v15617_v46 = vpack.c.bf16 %v12667_v42, %v12666_v41 }
0x149c   : > { %v12669_v49 = vld [vmem:[%s19042_s8 + $0xb8] sm:$0xff] }
0x149d   : > { %v3801_v50 = vmul.f32 %v3797_v48, %v3797_v48  ;;  %v3800_v56 = vmul.f32 0.5, %v3797_v48 }
0x149f   : > { %v3802_v51 = vmul.f32 %v3801_v50, %v3797_v48  ;;  %v12659_v50 = vld [vmem:[%s19043_s6 + $0x4] ss:$0 sm:$0xff] }
0x14a1   : > { %v3803_v52 = vmul.f32 0.044715, %v3802_v51 }
0x14a3   : > { %v3804_v53 = vadd.f32 %v3803_v52, %v3797_v48  ;;  %v12668_v48 = vld [vmem:[%s19042_s8 + $0xb0] sm:$0xff] }
0x14a4   : > { %v15620_v51 = vpack.c.bf16 %v12669_v49, %v12668_v48  ;;  %v12665_v48 = vld [vmem:[%s19041_s12 + $0x20] sm:$0xff] }
0x14a5   : > { %v3805_v54 = vmul.f32 0.7978846, %v3804_v53  ;;  %v12680_v53 = vld [vmem:[%s19036_s30 + $0xa0] sm:$0xff] }
0x14a6   : > { %v12701_v49 = vld [vmem:[%s19039_s19 + $0xc0] sm:$0xff] }
0x14a7   : > { %16302 = vtanh.f32 %v3805_v54  ;;  %v12681_v54 = vld [vmem:[%s19036_s30 + $0xa8] sm:$0xff] }
0x14b1   : > { %v16303_v55 = vpop.eup %16302 }
0x14b2   : > { %v3807_v58 = vadd.f32 1.0, %v16303_v55 }
0x14b4   : > { %v3808_v59 = vmul.f32 %v3807_v58, %v3800_v56  ;;  %v15629_v58 = vpack.c.bf16 %v12681_v54, %v12680_v53  ;;  %v12704_v53 = vld [vmem:[%s19039_s19 + $0xd8] sm:$0xff] }
0x14b6   : > { %14258 = vmatmul.mubr.f32.vlgmr.msra.gmra.mrb[28].mxu0 %v3808_v59  ;;  %v12682_v59 = vld [vmem:[%s19036_s30 + $0xb0] sm:$0xff] }
0x14b7   : > { %14300 = vmatprep.mubr.msk.f32.mxu0 %vm16597_vm1, %v16598_v11 }
0x1589   : > { %v3898_v62 = vpop.f32.mrb[28].mxu0 }
0x158a   : > { %v3899_v63 = vadd.f32 %v12635_v60, %v3898_v62  ;;  %v14259_v0 = vpop.f32.mrb[29].mxu0  ;;  %v12683_v60 = vld [vmem:[%s19036_s30 + $0xb8] sm:$0xff] }
0x158b   : > { %v15632_v62 = vpack.c.bf16 %v12683_v60, %v12682_v59  ;;  %v12696_v59 = vld [vmem:[%s19042_s8 + $0xd0] sm:$0xff]  ;;  %v12697_v60 = vld [vmem:[%s19042_s8 + $0xd8] sm:$0xff] }
0x158c   : > { %v17201_v1 = vadd.f32 %v3899_v63, %v17155_v61  ;;  %v12642_v61 = vld [vmem:[%s19042_s8 + $0x90] sm:$0xff] }
0x158d   : > { %v15602_v14 = vpack.c.bf16 %v12643_v13, %v12642_v61 }
0x158e   : > { %v3907_v2 = vsel %vm1695_vm4, %v17201_v1, 0.0 }
0x158f   : > { %3908 = vadd.xlane.f32.xlu0 %v3907_v2  ;;  %15603 = vmatpush3.bf16.msra.mxu1 %v15602_v14 }
0x1590   : > { %15604 = vmatprep.subr.bf16.mxu1 %v16596_v10 }
0x161c   : > { %v3909_v3 = vpop.xlane.xlu0 %3908 }
0x161d   : > { %v3910_v4 = vmul.f32 0.03125, %v3909_v3 }
0x161f   : > { %v3911_v5 = vsub.f32 %v17201_v1, %v3910_v4 }
0x1621   : > { %v3912_v26 = vmul.f32 %v3911_v5, %v3911_v5 }
0x1623   : > { %v3913_v6 = vsel %vm1695_vm4, %v3912_v26, 0.0 }
0x1624   : > { %3914 = vadd.xlane.f32.xlu1 %v3913_v6 }
0x16b1   : > { %v3915_v15 = vpop.xlane.xlu1 %3914 }
0x16b2   : > { %v3916_v16 = vmul.f32 0.03125, %v3915_v15  ;;  %v12673_v15 = vld [vmem:[%s19039_s19 + $0xa0] sm:$0xff] }
0x16b4   : > { %v3917_v17 = vadd.f32 1e-05, %v3916_v16  ;;  %v12674_v16 = vld [vmem:[%s19039_s19 + $0xa8] sm:$0xff] }
0x16b6   : > { %16304 = vrsqrt.f32 %v3917_v17 }
0x16c0   : > { %v16305_v18 = vpop.eup %16304 }
0x16c1   : > { %v3919_v21 = vmul.f32 %v16305_v18, %v3911_v5  ;;  %v15623_v18 = vpack.c.bf16 %v12674_v16, %v12673_v15 }
0x16c3   : > { %v3926_v25 = vmul.f32 %v12638_v20, %v3919_v21  ;;  %v12675_v21 = vld [vmem:[%s19039_s19 + $0xb0] sm:$0xff] }
0x16c4   : > { %v15626_v23 = vpack.c.bf16 %v12676_v22, %v12675_v21 }
0x16c5   : > { %v17217_v28 = vadd.f32 %v12639_v24, %v3926_v25 }
0x16c7   : > { %14269 = vmatmul.mubr.msk.f32.vlgmr.msra.gmra.mrb[26].mxu1 %vm1524_vm0, %v17217_v28 }
0x16c8   : > { %15606 = vmatpush3.bf16.msra.mxu1 %v15605_v27  ;;  %14279 = vmatprep.mubr.msk.f32.mxu1 %vm16597_vm1, %v16598_v11  ;;  %v12678_v27 = vld [vmem:[%s19038_s24 + $0x5] ss:$0 sm:$0xff] }
0x16c9   : > { %15607 = vmatprep.subr.bf16.mxu1 %v16596_v10 }
0x16cc   : > { %15609 = vmatpush3.bf16.msra.mxu1 %v15608_v31 }
0x16cd   : > { %15610 = vmatprep.subr.bf16.mxu1 %v16596_v10 }
0x16cf   : > { %14280 = vmatmul.mubr.msk.f32.vlgmr.msra.gmra.mrb[28].mxu1 %vm1524_vm0, %v17217_v28 }
0x16d0   : > { %15612 = vmatpush3.bf16.msra.mxu1 %v15611_v34  ;;  %14290 = vmatprep.mubr.msk.f32.mxu1 %vm16597_vm1, %v16598_v11 }
0x16d1   : > { %15613 = vmatprep.subr.bf16.mxu1 %v16596_v10 }
0x16d4   : > { %15615 = vmatpush3.bf16.msra.mxu1 %v15614_v37 }
0x16d5   : > { %14293 = vmatprep.subr.mxu1 %v16598_v11 }
0x16d7   : > { %14291 = vmatmul.mubr.msk.f32.vlgmr.msra.gmra.mrb[30].mxu1 %vm1524_vm0, %v17217_v28 }
0x16d8   : > { %14295 = vmatprep.mubr.msk.f32.mxu1 %vm16597_vm1, %v16598_v11 }
0x179a   : > { %v4016_v38 = vpop.f32.mrb[26].mxu1 }
0x179b   : > { %v14270_v39 = vpop.f32.mrb[27].mxu1  ;;  %v4017_v47 = vadd.f32 %v12645_v43, %v4016_v38 }
0x17a2   : > { %v4099_v40 = vpop.f32.mrb[28].mxu1 }
0x17a3   : > { %v4100_v44 = vadd.f32 %v12652_v57, %v4099_v40  ;;  %v14281_v45 = vpop.f32.mrb[29].mxu1 }
0x17a5   : > { %14294 = vmatpush3.xpose.msk.msra.mxu1 %vm1970_vm5, %v4100_v44  ;;  %v12691_v44 = vld [vmem:[%s19041_s12 + $0x28] sm:$0xff] }
0x17a6   : > { %15616 = vmatprep.subr.bf16.mxu1 %v16596_v10 }
0x17a8   : > { %14296 = vmatmul.mubr.msk.f32.vlgmr.msra.gmra.mrb[32].mxu1 %vm1970_vm5, %v4017_v47 }
0x17a9   : > { %15618 = vmatpush3.bf16.msra.mxu1 %v15617_v46  ;;  %14311 = vmatprep.mubr.msk.f32.mxu1 %vm16597_vm1, %v16598_v11 }
0x17aa   : > { %v4182_v52 = vpop.f32.mrb[30].mxu1  ;;  %15619 = vmatprep.subr.bf16.mxu1 %v16596_v10 }
0x17ab   : > { %v4183_v55 = vadd.f32 %v12659_v50, %v4182_v52  ;;  %v14292_v56 = vpop.f32.mrb[31].mxu1  ;;  %v12702_v50 = vld [vmem:[%s19039_s19 + $0xc8] sm:$0xff]  ;;  %v12703_v52 = vld [vmem:[%s19039_s19 + $0xd0] sm:$0xff] }
0x17ac   : > { %v15644_v54 = vpack.c.bf16 %v12704_v53, %v12703_v52  ;;  %v12695_v56 = vld [vmem:[%s19042_s8 + $0xc8] sm:$0xff]  ;;  %v12728_v53 = vld [vmem:[%s19039_s19 + $0xe0] sm:$0xff] }
0x17ad   : > { %14299 = vmatpush3.msk.msra.mxu0 %vm2064_vm6, %v4183_v55  ;;  %15621 = vmatpush3.bf16.msra.mxu1 %v15620_v51  ;;  %v15641_v51 = vpack.c.bf16 %v12702_v50, %v12701_v49  ;;  %v12694_v55 = vld [vmem:[%s19042_s8 + $0xc0] sm:$0xff]  ;;  %v12737_v50 = vld [vmem:[%s19036_s30 + $0xf0] sm:$0xff] }
0x17ae   : > { %15628 = vmatprep.subr.bf16.mxu1 %v16596_v10  ;;  %15622 = vmatprep.subr.bf16.mxu0 %v16596_v10 }
0x17b0   : > { %14312 = vmatmul.mubr.msk.f32.vlgmr.msra.gmra.mrb[34].mxu1 %vm1524_vm0, %v17217_v28 }
0x17b1   : > { %15630 = vmatpush3.bf16.msra.mxu1 %v15629_v58  ;;  %14333 = vmatprep.mubr.msk.f32.mxu1 %vm16597_vm1, %v16598_v11  ;;  %v15635_v58 = vpack.c.bf16 %v12695_v56, %v12694_v55  ;;  %v12730_v56 = vld [vmem:[%s19039_s19 + $0xf0] sm:$0xff] }
0x17b2   : > { %15631 = vmatprep.subr.bf16.mxu1 %v16596_v10 }
0x17b5   : > { %15633 = vmatpush3.bf16.msra.mxu1 %v15632_v62 }
0x17b6   : > { %14346 = vmatprep.subr.mxu1 %v16598_v11 }
0x17b8   : > { %14334 = vmatmul.mubr.msk.f32.vlgmr.msra.gmra.mrb[36].mxu1 %vm1524_vm0, %v17217_v28 }
0x17b9   : > { %14348 = vmatprep.mubr.msk.f32.mxu1 %vm16597_vm1, %v16598_v11  ;;  %14347 = vmatpush3.msra.mxu1 %v12691_v44  ;;  %v12723_v44 = vld [vmem:[%s19042_s8 + $0xf0] sm:$0xff] }
0x17ba   : > { %15634 = vmatprep.subr.bf16.mxu1 %v16596_v10 }
0x187b   : > { %v4258_v63 = vpop.f32.mrb[32].mxu1 }
0x187c   : > { %v4262_v0 = vmul.f32 0.35355338, %v4258_v63  ;;  %v14297_v2 = vpop.f32.mrb[33].mxu1 }
0x187d   : > { %v12708_v2 = vld [vmem:[%s19036_s30 + $0xc0] sm:$0xff] }
0x187e   : > { %v4263_v3 = vsel %vm2048_vm7, %v4262_v0, -inf }
0x187f   : > { %4264 = vmax.xlane.f32.xlu0 %v4263_v3  ;;  %v12709_v3 = vld [vmem:[%s19036_s30 + $0xc8] sm:$0xff] }
0x1883   : > { %v4431_v4 = vpop.f32.mrb[34].mxu1 }
0x1884   : > { %v14313_v5 = vpop.f32.mrb[35].mxu1  ;;  %v4432_v34 = vadd.f32 %v12671_v30, %v4431_v4 }
0x188b   : > { %v4597_v26 = vpop.f32.mrb[36].mxu1 }
0x188c   : > { %v14335_v6 = vpop.f32.mrb[37].mxu1  ;;  %v4598_v35 = vadd.f32 %v12685_v33, %v4597_v26  ;;  %v15647_v26 = vpack.c.bf16 %v12709_v3, %v12708_v2 }
0x188d   : > { %v12710_v6 = vld [vmem:[%s19036_s30 + $0xd0] sm:$0xff] }
0x190c   : > { %v4265_v7 = vpop.xlane.xlu0 %4264 }
0x190d   : > { %v4266_v8 = vsub.f32 %v4262_v0, %v4265_v7  ;;  %v15638_v0 = vpack.c.bf16 %v12697_v60, %v12696_v59  ;;  %v12711_v7 = vld [vmem:[%s19036_s30 + $0xd8] sm:$0xff] }
0x190f   : > { %v4267_v9 = vmul.f32 1.442695, %v4266_v8  ;;  %v12706_v8 = vld [vmem:[%s19038_s24 + $0x6] ss:$0 sm:$0xff] }
0x1911   : > { %16306 = vpow2.f32 %v4267_v9  ;;  %v15650_v9 = vpack.c.bf16 %v12711_v7, %v12710_v6  ;;  %v12733_v6 = vld [vmem:[%s19038_s24 + $0x7] ss:$0 sm:$0xff]  ;;  %s19080_s24 = sld [smem:[#allocation47_spill]] }
0x191b   : > { %v16307_v61 = vpop.eup %16306 }
0x191c   : > { %v4269_v13 = vsel %vm2048_vm7, %v16307_v61, 0.0 }
0x191d   : > { %4270 = vadd.xlane.f32.xlu1 %v4269_v13 }
0x19aa   : > { %v4271_v14 = vpop.xlane.xlu1 %4270 }
0x19ab   : > { %16308 = vrcp.f32 %v4271_v14 }
0x19b5   : > { %v16309_v17 = vpop.eup %16308 }
0x19b6   : > { %v4273_v20 = vmul.f32 %v16309_v17, %v16307_v61 }
0x19b8   : > { %14301 = vmatmul.mubr.msk.f32.vlgmr.msra.gmra.mrb[30].mxu0 %vm2060_vm8, %v4273_v20 }
0x19b9   : > { %15624 = vmatpush3.bf16.msra.mxu0 %v15623_v18  ;;  %14322 = vmatprep.mubr.msk.f32.mxu0 %vm16597_vm1, %v16598_v11  ;;  %v12699_v18 = vld [vmem:[%s19040_s14 + $0x6] ss:$0 sm:$0xff] }
0x19ba   : > { %15625 = vmatprep.subr.bf16.mxu0 %v16596_v10 }
0x19bd   : > { %15627 = vmatpush3.bf16.msra.mxu0 %v15626_v23  ;;  %v12713_v23 = vld [vmem:[%s19043_s6 + $0x6] ss:$0 sm:$0xff] }
0x19be   : > { %14336 = vmatprep.subr.mxu0 %v16598_v11 }
0x19c0   : > { %14323 = vmatmul.mubr.msk.f32.vlgmr.msra.gmra.mrb[32].mxu0 %vm1524_vm0, %v17217_v28 }
0x19c1   : > { %14338 = vmatprep.mubr.msk.f32.mxu0 %vm16597_vm1, %v16598_v11 }
0x1a8b   : > { %v4346_v24 = vpop.f32.mrb[30].mxu0 }
0x1a8c   : > { %v14302_v25 = vpop.f32.mrb[31].mxu0 }
0x1a93   : > { %v4514_v29 = vpop.f32.mrb[32].mxu0 }
0x1a94   : > { %v4515_v31 = vadd.f32 %v12678_v27, %v4514_v29  ;;  %v14324_v32 = vpop.f32.mrb[33].mxu0 }
0x1a96   : > { %14337 = vmatpush3.xpose.msk.msra.mxu0 %vm1970_vm5, %v4515_v31 }
0x1a97   : > { %14341 = vmatprep.subr.mxu0 %v16598_v11 }
0x1a99   : > { %14339 = vmatmul.mubr.msk.f32.vlgmr.msra.gmra.mrb[34].mxu0 %vm1970_vm5, %v4432_v34 }
0x1a9a   : > { %14342 = vmatpush3.msk.msra.mxu0 %vm2064_vm6, %v4598_v35  ;;  %14343 = vmatprep.mubr.msk.f32.mxu0 %vm16597_vm1, %v16598_v11 }
0x1a9b   : > { %14351 = vmatprep.subr.mxu0 %v16598_v11 }
0x1b6c   : > { %v4673_v36 = vpop.f32.mrb[34].mxu0 }
0x1b6d   : > { %v4677_v37 = vmul.f32 0.35355338, %v4673_v36  ;;  %v14340_v38 = vpop.f32.mrb[35].mxu0 }
0x1b6e   : > { %v12719_v38 = vld [vmem:[%s19041_s12 + $0x30] sm:$0xff] }
0x1b6f   : > { %v4678_v39 = vsel %vm2048_vm7, %v4677_v37, -inf }
0x1b70   : > { %4679 = vmax.xlane.f32.xlu0 %v4678_v39 }
0x1bfd   : > { %v4680_v57 = vpop.xlane.xlu0 %4679 }
0x1bfe   : > { %v4681_v40 = vsub.f32 %v4677_v37, %v4680_v57  ;;  %v12721_v57 = vld [vmem:[%s19042_s8 + $0xe0] sm:$0xff] }
0x1c00   : > { %v4682_v41 = vmul.f32 1.442695, %v4681_v40  ;;  %v12722_v40 = vld [vmem:[%s19042_s8 + $0xe8] sm:$0xff] }
0x1c02   : > { %16310 = vpow2.f32 %v4682_v41 }
0x1c0c   : > { %v16311_v42 = vpop.eup %16310 }
0x1c0d   : > { %v4684_v43 = vsel %vm2048_vm7, %v16311_v42, 0.0 }
0x1c0e   : > { %4685 = vadd.xlane.f32.xlu1 %v4684_v43 }
0x1c9b   : > { %v4686_v45 = vpop.xlane.xlu1 %4685 }
0x1c9c   : > { %16312 = vrcp.f32 %v4686_v45  ;;  %v12724_v45 = vld [vmem:[%s19042_s8 + $0xf8] sm:$0xff]  ;;  %s19063_s8 = sld [smem:[#allocation28_spill]] }
0x1ca6   : > { %v16313_v46 = vpop.eup %16312 }
0x1ca7   : > { %v4688_v47 = vmul.f32 %v16313_v46, %v16311_v42  ;;  %v15653_v42 = vpack.c.bf16 %v12722_v40, %v12721_v57  ;;  %v15656_v46 = vpack.c.bf16 %v12724_v45, %v12723_v44  ;;  %v12754_v44 = vld [vmem:[%s19054_s2 + $0x20] sm:$0xff]  ;;  %v12755_v45 = vld [vmem:[%s19054_s2 + $0x28] sm:$0xff] }
0x1ca9   : > { %14344 = vmatmul.mubr.msk.f32.vlgmr.msra.gmra.mrb[36].mxu0 %vm2060_vm8, %v4688_v47  ;;  %v12735_v47 = vld [vmem:[%s19036_s30 + $0xe0] sm:$0xff] }
0x1caa   : > { %14352 = vmatpush3.msra.mxu0 %v12665_v48  ;;  %14353 = vmatprep.mubr.msk.f32.mxu0 %vm16597_vm1, %v16598_v11  ;;  %v12736_v48 = vld [vmem:[%s19036_s30 + $0xe8] sm:$0xff] }
0x1cab   : > { %15640 = vmatprep.subr.bf16.mxu0 %v16596_v10  ;;  %v15665_v49 = vpack.c.bf16 %v12736_v48, %v12735_v47  ;;  %v12757_v47 = vld [vmem:[%s19054_s2 + $0x38] sm:$0xff] }
0x1cad   : > { %14354 = vmatmul.mubr.msk.f32.vlgmr.msra.gmra.mrb[38].mxu0 %vm1970_vm5, %v4346_v24 }
0x1cae   : > { %15642 = vmatpush3.bf16.msra.mxu0 %v15641_v51  ;;  %14375 = vmatprep.mubr.msk.f32.mxu0 %vm16597_vm1, %v16598_v11  ;;  %v12738_v51 = vld [vmem:[%s19036_s30 + $0xf8] sm:$0xff]  ;;  %s19083_s30 = sld [smem:[#allocation46_spill]] }
0x1caf   : > { %15643 = vmatprep.subr.bf16.mxu0 %v16596_v10  ;;  %v15668_v52 = vpack.c.bf16 %v12738_v51, %v12737_v50  ;;  %v12762_v50 = vld [vmem:[%s19055_s22 + $0x88] sm:$0xff] }
0x1cb2   : > { %15645 = vmatpush3.bf16.msra.mxu0 %v15644_v54  ;;  %v12729_v54 = vld [vmem:[%s19039_s19 + $0xe8] sm:$0xff] }
0x1cb3   : > { %14389 = vmatprep.subr.mxu0 %v16598_v11  ;;  %v15659_v55 = vpack.c.bf16 %v12729_v54, %v12728_v53 }
0x1cb5   : > { %14376 = vmatmul.mubr.msk.f32.vlgmr.msra.gmra.mrb[40].mxu0 %vm1524_vm0, %v17217_v28 }
0x1cb6   : > { %14391 = vmatprep.mubr.msk.f32.mxu0 %vm16597_vm1, %v16598_v11 }
0x1d7c   : > { %v4761_v62 = vpop.f32.mrb[36].mxu0 }
0x1d7d   : > { %v14345_v63 = vpop.f32.mrb[37].mxu0  ;;  %14349 = vmatmul.mubr.msk.f32.vlgmr.msra.gmra.mrb[38].mxu1 %vm1970_vm5, %v4761_v62 }
0x1d7e   : > { %15636 = vmatpush3.bf16.msra.mxu1 %v15635_v58  ;;  %14364 = vmatprep.mubr.msk.f32.mxu1 %vm16597_vm1, %v16598_v11  ;;  %v12731_v58 = vld [vmem:[%s19039_s19 + $0xf8] sm:$0xff]  ;;  %s19077_s19 = sld [smem:[#allocation41_spill]] }
0x1d7f   : > { %15637 = vmatprep.subr.bf16.mxu1 %v16596_v10  ;;  %v15662_v62 = vpack.c.bf16 %v12731_v58, %v12730_v56  ;;  %v12752_v56 = vld [vmem:[%s19056_s5 + $0x1] ss:$0 sm:$0xff] }
0x1d80   : > { %v4909_v4 = vpop.f32.mrb[38].mxu0 }
0x1d81   : > { %v14355_v5 = vpop.f32.mrb[39].mxu0 }
0x1d82   : > { %15639 = vmatpush3.bf16.msra.mxu1 %v15638_v0 }
0x1d83   : > { %15646 = vmatprep.subr.bf16.mxu1 %v16596_v10 }
0x1d85   : > { %14365 = vmatmul.mubr.msk.f32.vlgmr.msra.gmra.mrb[40].mxu1 %vm1524_vm0, %v17217_v28 }
0x1d86   : > { %15648 = vmatpush3.bf16.msra.mxu1 %v15647_v26  ;;  %14386 = vmatprep.mubr.msk.f32.mxu1 %vm16597_vm1, %v16598_v11 }
0x1d87   : > { %15649 = vmatprep.subr.bf16.mxu1 %v16596_v10 }
0x1d88   : > { %v5075_v61 = vpop.f32.mrb[40].mxu0 }
0x1d89   : > { %v5076_v13 = vadd.f32 %v12706_v8, %v5075_v61  ;;  %v14377_v14 = vpop.f32.mrb[41].mxu0  ;;  %v12726_v8 = vld [vmem:[%s19040_s14 + $0x7] ss:$0 sm:$0xff]  ;;  %s19073_s14 = sld [smem:[#allocation36_spill]] }
0x1d8a   : > { %15651 = vmatpush3.bf16.msra.mxu1 %v15650_v9 }
0x1d8b   : > { %14390 = vmatpush3.xpose.msk.msra.mxu0 %vm1970_vm5, %v5076_v13  ;;  %14399 = vmatprep.subr.mxu1 %v16598_v11  ;;  %v12740_v13 = vld [vmem:[%s19043_s6 + $0x7] ss:$0 sm:$0xff]  ;;  %s19062_s6 = sld [smem:[#allocation27_spill]] }
0x1d8c   : > { %14394 = vmatprep.subr.mxu0 %v16598_v11 }
0x1d8d   : > { %14387 = vmatmul.mubr.msk.f32.vlgmr.msra.gmra.mrb[42].mxu1 %vm1524_vm0, %v17217_v28 }
0x1d8e   : > { %14401 = vmatprep.mubr.msk.f32.mxu1 %vm16597_vm1, %v16598_v11  ;;  %14400 = vmatpush3.msra.mxu1 %v12719_v38 }
0x1d8f   : > { %15658 = vmatprep.subr.bf16.mxu1 %v16596_v10 }
0x1e50   : > { %v4836_v15 = vpop.f32.mrb[38].mxu1 }
0x1e51   : > { %v17344_v16 = vadd.f32 %v4909_v4, %v4836_v15  ;;  %v14350_v17 = vpop.f32.mrb[39].mxu1 }
0x1e58   : > { %v4992_v20 = vpop.f32.mrb[40].mxu1 }
0x1e59   : > { %v4993_v21 = vadd.f32 %v12699_v18, %v4992_v20  ;;  %v14366_v22 = vpop.f32.mrb[41].mxu1 }
0x1e5b   : > { %14392 = vmatmul.mubr.msk.f32.vlgmr.msra.gmra.mrb[42].mxu0 %vm1970_vm5, %v4993_v21 }
0x1e5c   : > { %14396 = vmatprep.mubr.msk.f32.mxu0 %vm16597_vm1, %v16598_v11 }
0x1e60   : > { %v5158_v24 = vpop.f32.mrb[42].mxu1 }
0x1e61   : > { %v5159_v25 = vadd.f32 %v12713_v23, %v5158_v24  ;;  %v14388_v27 = vpop.f32.mrb[43].mxu1 }
0x1e63   : > { %14395 = vmatpush3.msk.msra.mxu0 %vm2064_vm6, %v5159_v25 }
0x1e64   : > { %15652 = vmatprep.subr.bf16.mxu0 %v16596_v10 }
0x1f2e   : > { %v5234_v29 = vpop.f32.mrb[42].mxu0 }
0x1f2f   : > { %v5238_v30 = vmul.f32 0.35355338, %v5234_v29  ;;  %v14393_v31 = vpop.f32.mrb[43].mxu0 }
0x1f31   : > { %v5239_v32 = vsel %vm2048_vm7, %v5238_v30, -inf }
0x1f32   : > { %5240 = vmax.xlane.f32.xlu0 %v5239_v32 }
0x1fbf   : > { %v5241_v33 = vpop.xlane.xlu0 %5240 }
0x1fc0   : > { %v5242_v34 = vsub.f32 %v5238_v30, %v5241_v33  ;;  %v12746_v30 = vld [vmem:[%s19041_s12 + $0x38] sm:$0xff]  ;;  %s19072_s12 = sld [smem:[#allocation38_spill]] }
0x1fc2   : > { %v5243_v35 = vmul.f32 1.442695, %v5242_v34 }
0x1fc4   : > { %16314 = vpow2.f32 %v5243_v35 }
0x1fce   : > { %v16315_v36 = vpop.eup %16314 }
0x1fcf   : > { %v5245_v37 = vsel %vm2048_vm7, %v16315_v36, 0.0 }
0x1fd0   : > { %5246 = vadd.xlane.f32.xlu1 %v5245_v37 }
0x205d   : > { %v5247_v39 = vpop.xlane.xlu1 %5246 }
0x205e   : > { %16316 = vrcp.f32 %v5247_v39 }
0x2068   : > { %v16317_v41 = vpop.eup %16316 }
0x2069   : > { %v5249_v43 = vmul.f32 %v16317_v41, %v16315_v36  ;;  %v12749_v36 = vld [vmem:[%s19053_s21 + $0x1] ss:$0 sm:$0xff]  ;;  %s19078_s21 = sld [smem:[#allocation42_spill]] }
0x206b   : > { %14397 = vmatmul.mubr.msk.f32.vlgmr.msra.gmra.mrb[44].mxu0 %vm2060_vm8, %v5249_v43 }
0x206c   : > { %15654 = vmatpush3.bf16.msra.mxu0 %v15653_v42  ;;  %14412 = vmatprep.mubr.msk.f32.mxu0 %vm16597_vm1, %v16598_v11 }
0x206d   : > { %15655 = vmatprep.subr.bf16.mxu0 %v16596_v10 }
0x2070   : > { %15657 = vmatpush3.bf16.msra.mxu0 %v15656_v46  ;;  %v12756_v46 = vld [vmem:[%s19054_s2 + $0x30] sm:$0xff]  ;;  %s19060_s2 = sld [smem:[#allocation7_spill]] }
0x2071   : > { %15664 = vmatprep.subr.bf16.mxu0 %v16596_v10  ;;  %v15674_v48 = vpack.c.bf16 %v12757_v47, %v12756_v46 }
0x2073   : > { %14413 = vmatmul.mubr.msk.f32.vlgmr.msra.gmra.mrb[46].mxu0 %vm1524_vm0, %v17217_v28 }
0x2074   : > { %15666 = vmatpush3.bf16.msra.mxu0 %v15665_v49  ;;  %14434 = vmatprep.mubr.msk.f32.mxu0 %vm16597_vm1, %v16598_v11  ;;  %v12761_v49 = vld [vmem:[%s19055_s22 + $0x80] sm:$0xff] }
0x2075   : > { %15667 = vmatprep.subr.bf16.mxu0 %v16596_v10  ;;  %v15677_v51 = vpack.c.bf16 %v12762_v50, %v12761_v49  ;;  %v6154_v50 = vld [vmem:[%s19061_s3 + $0x10] sm:$0xff] }
0x2076   : > { %s17465_s5 = scalar_lea.vmem %s19060_s2, %s16911_s16  ;;  %s19064_s2 = sld [smem:[#allocation30_spill]] }
0x2078   : > { %15669 = vmatpush3.bf16.msra.mxu0 %v15668_v52 }
0x2079   : > { %14447 = vmatprep.subr.mxu0 %v16598_v11 }
0x207b   : > { %14435 = vmatmul.mubr.msk.f32.vlgmr.msra.gmra.mrb[48].mxu0 %vm1524_vm0, %v17217_v28 }
0x207c   : > { %14449 = vmatprep.mubr.msk.f32.mxu0 %vm16597_vm1, %v16598_v11  ;;  %14448 = vmatpush3.msra.mxu0 %v12746_v30 }
0x207d   : > { %15676 = vmatprep.subr.bf16.mxu0 %v16596_v10 }
0x213e   : > { %v5322_v59 = vpop.f32.mrb[44].mxu0 }
0x213f   : > { %v14398_v60 = vpop.f32.mrb[45].mxu0  ;;  %14402 = vmatmul.mubr.msk.f32.vlgmr.msra.gmra.mrb[44].mxu1 %vm1970_vm5, %v5322_v59  ;;  %v12753_v59 = vld [vmem:[%s19057_s9 + $0x1] ss:$0 sm:$0xff]  ;;  %s19065_s9 = sld [smem:[#allocation31_spill]] }
0x2140   : > { %15660 = vmatpush3.bf16.msra.mxu1 %v15659_v55  ;;  %14423 = vmatprep.mubr.msk.f32.mxu1 %vm16597_vm1, %v16598_v11 }
0x2141   : > { %15661 = vmatprep.subr.bf16.mxu1 %v16596_v10 }
0x2144   : > { %15663 = vmatpush3.bf16.msra.mxu1 %v15662_v62 }
0x2145   : > { %14437 = vmatprep.subr.mxu1 %v16598_v11 }
0x2146   : > { %v5481_v63 = vpop.f32.mrb[46].mxu0 }
0x2147   : > { %v14414_v0 = vpop.f32.mrb[47].mxu0  ;;  %14424 = vmatmul.mubr.msk.f32.vlgmr.msra.gmra.mrb[46].mxu1 %vm1524_vm0, %v17217_v28  ;;  %v5482_v14 = vadd.f32 %v12726_v8, %v5481_v63  ;;  %v12763_v63 = vld [vmem:[%s19055_s22 + $0x90] sm:$0xff]  ;;  %v12769_v8 = vld [vmem:[%s19055_s22 + $0xc0] sm:$0xff] }
0x2148   : > { %14439 = vmatprep.mubr.msk.f32.mxu1 %vm16597_vm1, %v16598_v11  ;;  %v12764_v0 = vld [vmem:[%s19055_s22 + $0x98] sm:$0xff] }
0x214e   : > { %v5647_v2 = vpop.f32.mrb[48].mxu0 }
0x214f   : > { %v14436_v3 = vpop.f32.mrb[49].mxu0  ;;  %v5648_v28 = vadd.f32 %v12740_v13, %v5647_v2  ;;  %v15680_v2 = vpack.c.bf16 %v12764_v0, %v12763_v63  ;;  %v12771_v13 = vld [vmem:[%s19055_s22 + $0xd0] sm:$0xff]  ;;  %v12780_v63 = vld [vmem:[%s19063_s8] ss:$0 sm:$0xff]  ;;  %s19068_s8 = sld [smem:[#allocation37_spill]] }
0x2150   : > { %v12765_v3 = vld [vmem:[%s19055_s22 + $0xa0] sm:$0xff] }
0x2212   : > { %v5397_v4 = vpop.f32.mrb[44].mxu1 }
0x2213   : > { %v5401_v5 = vadd.f32 %v5397_v4, %v17344_v16  ;;  %v14403_v26 = vpop.f32.mrb[45].mxu1  ;;  %v12766_v4 = vld [vmem:[%s19055_s22 + $0xa8] sm:$0xff] }
0x2214   : > { %v12767_v26 = vld [vmem:[%s19055_s22 + $0xb0] sm:$0xff] }
0x221a   : > { %v5564_v7 = vpop.f32.mrb[46].mxu1 }
0x221b   : > { %v5565_v9 = vadd.f32 %v12733_v6, %v5564_v7  ;;  %v14425_v61 = vpop.f32.mrb[47].mxu1  ;;  %v12768_v6 = vld [vmem:[%s19055_s22 + $0xb8] sm:$0xff] }
0x221c   : > { %v15686_v7 = vpack.c.bf16 %v12768_v6, %v12767_v26 }
0x221d   : > { %14438 = vmatpush3.xpose.msk.msra.mxu1 %vm1970_vm5, %v5565_v9  ;;  %v12770_v9 = vld [vmem:[%s19055_s22 + $0xc8] sm:$0xff] }
0x221e   : > { %14442 = vmatprep.subr.mxu1 %v16598_v11  ;;  %v15689_v61 = vpack.c.bf16 %v12770_v9, %v12769_v8 }
0x2220   : > { %14440 = vmatmul.mubr.msk.f32.vlgmr.msra.gmra.mrb[48].mxu1 %vm1970_vm5, %v5482_v14  ;;  %v12772_v14 = vld [vmem:[%s19055_s22 + $0xd8] sm:$0xff] }
0x2221   : > { %14443 = vmatpush3.msk.msra.mxu1 %vm2064_vm6, %v5648_v28  ;;  %14444 = vmatprep.mubr.msk.f32.mxu1 %vm16597_vm1, %v16598_v11  ;;  %v15692_v28 = vpack.c.bf16 %v12772_v14, %v12771_v13 }
0x2222   : > { %15670 = vmatprep.subr.bf16.mxu1 %v16596_v10 }
0x22f3   : > { %v5723_v15 = vpop.f32.mrb[48].mxu1 }
0x22f4   : > { %v5727_v16 = vmul.f32 0.35355338, %v5723_v15  ;;  %v14441_v17 = vpop.f32.mrb[49].mxu1  ;;  %v12773_v15 = vld [vmem:[%s19055_s22 + $0xe0] sm:$0xff] }
0x22f6   : > { %v5728_v18 = vsel %vm2048_vm7, %v5727_v16, -inf }
0x22f7   : > { %5729 = vmax.xlane.f32.xlu0 %v5728_v18  ;;  %v12775_v18 = vld [vmem:[%s19055_s22 + $0xf0] sm:$0xff] }
0x2384   : > { %v5730_v20 = vpop.xlane.xlu0 %5729 }
0x2385   : > { %v5731_v21 = vsub.f32 %v5727_v16, %v5730_v20  ;;  %v12774_v16 = vld [vmem:[%s19055_s22 + $0xe8] sm:$0xff]  ;;  %v12776_v20 = vld [vmem:[%s19055_s22 + $0xf8] sm:$0xff]  ;;  %s19079_s22 = sld [smem:[#allocation45_spill]] }
0x2386   : > { %v15695_v17 = vpack.c.bf16 %v12774_v16, %v12773_v15 }
0x2387   : > { %v5732_v22 = vmul.f32 1.442695, %v5731_v21  ;;  %v15698_v21 = vpack.c.bf16 %v12776_v20, %v12775_v18 }
0x2389   : > { %16318 = vpow2.f32 %v5732_v22  ;;  %v12759_v22 = vld [vmem:[%s19058_s17 + $0x1] ss:$0 sm:$0xff]  ;;  %s19076_s17 = sld [smem:[#allocation40_spill]] }
0x2393   : > { %v16319_v23 = vpop.eup %16318 }
0x2394   : > { %v5734_v24 = vsel %vm2048_vm7, %v16319_v23, 0.0 }
0x2395   : > { %5735 = vadd.xlane.f32.xlu1 %v5734_v24 }
0x2422   : > { %v5736_v25 = vpop.xlane.xlu1 %5735 }
0x2423   : > { %16320 = vrcp.f32 %v5736_v25 }
0x242d   : > { %v16321_v27 = vpop.eup %16320 }
0x242e   : > { %v5738_v29 = vmul.f32 %v16321_v27, %v16319_v23 }
0x2430   : > { %14445 = vmatmul.mubr.msk.f32.vlgmr.msra.gmra.mrb[50].mxu1 %vm2060_vm8, %v5738_v29 }
0x2431   : > { %14460 = vmatprep.mubr.msk.f32.mxu1 %vm16597_vm1, %v16598_v11 }
0x2503   : > { %v5811_v31 = vpop.f32.mrb[50].mxu1 }
0x2504   : > { %v14446_v32 = vpop.f32.mrb[51].mxu1  ;;  %14450 = vmatmul.mubr.msk.f32.vlgmr.msra.gmra.mrb[50].mxu0 %vm1970_vm5, %v5811_v31 }
0x2505   : > { %14495 = vmatprep.mubr.msk.f32.mxu0 %vm16597_vm1, %v16598_v11  ;;  %15678 = vmatpush3.bf16.msra.mxu0 %v15677_v51  ;;  %v6155_v51 = vld [vmem:[%s19061_s3 + $0x18] sm:$0xff] }
0x2506   : > { %15679 = vmatprep.subr.bf16.mxu0 %v16596_v10 }
0x2509   : > { %15681 = vmatpush3.bf16.msra.mxu0 %v15680_v2 }
0x250a   : > { %15682 = vmatprep.subr.bf16.mxu0 %v16596_v10 }
0x25d7   : > { %v5886_v33 = vpop.f32.mrb[50].mxu0 }
0x25d8   : > { %v5890_v34 = vadd.f32 %v5886_v33, %v5401_v5  ;;  %v14451_v35 = vpop.f32.mrb[51].mxu0  ;;  %v15683_v5 = vpack.c.bf16 %v12766_v4, %v12765_v3  ;;  %v12781_v4 = vld [vmem:[%s19064_s2] ss:$0 sm:$0xff]  ;;  %s19069_s2 = sld [smem:[#allocation33_spill]] }
0x25da   : > { %v5891_v37 = vadd.f32 %v5890_v34, %v17201_v1  ;;  %v15671_v1 = vpack.c.bf16 %v12755_v45, %v12754_v44  ;;  %15684 = vmatpush3.bf16.msra.mxu0 %v15683_v5 }
0x25db   : > { %15685 = vmatprep.subr.bf16.mxu0 %v16596_v10 }
0x25dc   : > { %v17416_v38 = vadd.f32 %v12749_v36, %v5891_v37  ;;  %15672 = vmatpush3.bf16.msra.mxu1 %v15671_v1  ;;  %v12778_v37 = vld [vmem:[%s19059_s25 + $0x1] ss:$0 sm:$0xff]  ;;  %s19081_s25 = sld [smem:[#allocation43_spill]] }
0x25dd   : > { %15673 = vmatprep.subr.bf16.mxu1 %v16596_v10 }
0x25de   : > { %v5905_v39 = vsel %vm1695_vm4, %v17416_v38, 0.0  ;;  %15687 = vmatpush3.bf16.msra.mxu0 %v15686_v7  ;;  %v12783_v7 = vld [vmem:[%s19065_s9] ss:$0 sm:$0xff]  ;;  %s19067_s9 = sld [smem:[#allocation35_spill]] }
0x25df   : > { %5906 = vadd.xlane.f32.xlu0 %v5905_v39  ;;  %15688 = vmatprep.subr.bf16.mxu0 %v16596_v10 }
0x25e0   : > { %15675 = vmatpush3.bf16.msra.mxu1 %v15674_v48  ;;  %v6152_v48 = vld [vmem:[%s19061_s3] sm:$0xff] }
0x25e1   : > { %15700 = vmatprep.subr.bf16.mxu1 %v16596_v10 }
0x25e2   : > { %15690 = vmatpush3.bf16.msra.mxu0 %v15689_v61 }
0x25e3   : > { %15691 = vmatprep.subr.bf16.mxu0 %v16596_v10 }
0x25e6   : > { %15693 = vmatpush3.bf16.msra.mxu0 %v15692_v28 }
0x25e7   : > { %15694 = vmatprep.subr.bf16.mxu0 %v16596_v10 }
0x25ea   : > { %15696 = vmatpush3.bf16.msra.mxu0 %v15695_v17 }
0x25eb   : > { %15697 = vmatprep.subr.bf16.mxu0 %v16596_v10 }
0x25ee   : > { %15699 = vmatpush3.bf16.msra.mxu0 %v15698_v21 }
0x25ef   : > { %15722 = vmatprep.subr.bf16.mxu0 %v16596_v10 }
0x266c   : > { %v5907_v57 = vpop.xlane.xlu0 %5906 }
0x266d   : > { %v5908_v40 = vmul.f32 0.03125, %v5907_v57 }
0x266f   : > { %v5909_v41 = vsub.f32 %v17416_v38, %v5908_v40 }
0x2671   : > { %v5910_v42 = vmul.f32 %v5909_v41, %v5909_v41 }
0x2673   : > { %v5911_v43 = vsel %vm1695_vm4, %v5910_v42, 0.0 }
0x2674   : > { %5912 = vadd.xlane.f32.xlu1 %v5911_v43  ;;  %v6248_v43 = vld [vmem:[%s17465_s5] sm:$0xff] }
0x2701   : > { %v5913_v52 = vpop.xlane.xlu1 %5912 }
0x2702   : > { %v5914_v53 = vmul.f32 0.03125, %v5913_v52  ;;  %v15704_v52 = vpack.c.bf16 %v6155_v51, %v6154_v50  ;;  %v6423_v50 = vld [vmem:[%s19067_s9 + $0x10] sm:$0xff]  ;;  %v6424_v51 = vld [vmem:[%s19067_s9 + $0x18] sm:$0xff] }
0x2704   : > { %v5915_v54 = vadd.f32 1e-05, %v5914_v53  ;;  %v6249_v53 = vld [vmem:[%s17465_s5 + $0x8] sm:$0xff] }
0x2706   : > { %16322 = vrsqrt.f32 %v5915_v54 }
0x2710   : > { %v16323_v55 = vpop.eup %16322 }
0x2711   : > { %v5917_v58 = vmul.f32 %v16323_v55, %v5909_v41 }
0x2713   : > { %v5924_v60 = vmul.f32 %v12752_v56, %v5917_v58 }
0x2715   : > { %v5931_v62 = vadd.f32 %v12753_v59, %v5924_v60  ;;  %v12779_v59 = vld [vmem:[%s19062_s6] ss:$0 sm:$0xff]  ;;  %s19066_s6 = sld [smem:[#allocation32_spill]] }
0x2717   : > { %14461 = vmatmul.mubr.msk.f32.vlgmr.msra.gmra.mrb[52].mxu1 %vm1524_vm0, %v5931_v62 }
0x2718   : > { %14506 = vmatprep.mubr.msk.f32.mxu1 %vm16597_vm1, %v16598_v11 }
0x271b   : > { %v6353_v18 = vld [vmem:[%s19066_s6] sm:$0xff]  ;;  %v6354_v20 = vld [vmem:[%s19066_s6 + $0x8] sm:$0xff]  ;;  %v6355_v21 = vld [vmem:[%s19066_s6 + $0x10] sm:$0x1]  ;;  %s19071_s6 = sld [smem:[#allocation34_spill]] }
0x27ea   : > { %v6014_v23 = vpop.f32.mrb[52].mxu1 }
0x27eb   : > { %v6015_v24 = vadd.f32 %v12759_v22, %v6014_v23  ;;  %v14462_v25 = vpop.f32.mrb[53].mxu1 }
0x27ed   : > { %v6019_v27 = vmul.f32 %v6015_v24, %v6015_v24  ;;  %v6018_v34 = vmul.f32 0.5, %v6015_v24 }
0x27ef   : > { %v6020_v29 = vmul.f32 %v6019_v27, %v6015_v24 }
0x27f1   : > { %v6021_v30 = vmul.f32 0.044715, %v6020_v29 }
0x27f3   : > { %v6022_v31 = vadd.f32 %v6021_v30, %v6015_v24 }
0x27f5   : > { %v6023_v32 = vmul.f32 0.7978846, %v6022_v31 }
0x27f7   : > { %16324 = vtanh.f32 %v6023_v32 }
0x2801   : > { %v16325_v33 = vpop.eup %16324 }
0x2802   : > { %v6025_v35 = vadd.f32 1.0, %v16325_v33 }
0x2804   : > { %v6026_v36 = vmul.f32 %v6025_v35, %v6018_v34 }
0x2806   : > { %14496 = vmatmul.mubr.f32.vlgmr.msra.gmra.mrb[52].mxu0 %v6026_v36 }
0x2807   : > { %14557 = vmatprep.mubr.msk.f32.mxu0 %vm16597_vm1, %v16598_v11 }
0x28d9   : > { %v6118_v39 = vpop.f32.mrb[52].mxu0 }
0x28da   : > { %v6119_v57 = vadd.f32 %v12778_v37, %v6118_v39  ;;  %v14497_v40 = vpop.f32.mrb[53].mxu0 }
0x28dc   : > { %v6122_v41 = vadd.f32 %v6119_v57, %v17416_v38  ;;  %v6153_v38 = vld [vmem:[%s19061_s3 + $0x8] sm:$0xff]  ;;  %s19070_s3 = sld [smem:[#allocation39_spill]] }
0x28dd   : > { %v15701_v49 = vpack.c.bf16 %v6153_v38, %v6152_v48  ;;  %v6525_v48 = vld [vmem:[%s19068_s8] sm:$0xff]  ;;  %v6526_v38 = vld [vmem:[%s19068_s8 + $0x8] sm:$0xff] }
0x28de   : > { %v6125_v42 = vsel %vm1695_vm4, %v6122_v41, 0.0 }
0x28df   : > { %6126 = vadd.xlane.f32.xlu0 %v6125_v42  ;;  %15702 = vmatpush3.bf16.msra.mxu1 %v15701_v49  ;;  %v15723_v49 = vpack.c.bf16 %v6526_v38, %v6525_v48 }
0x28e0   : > { %15703 = vmatprep.subr.bf16.mxu1 %v16596_v10 }
0x28e1   : > { %15724 = vmatpush3.bf16.msra.mxu0 %v15723_v49  ;;  %v12794_v49 = vld [vmem:[%s19072_s12] ss:$0 sm:$0xff] }
0x28e2   : > { %15725 = vmatprep.subr.bf16.mxu0 %v16596_v10 }
0x28e3   : > { %15705 = vmatpush3.bf16.msra.mxu1 %v15704_v52  ;;  %v15714_v52 = vpack.c.bf16 %v6424_v51, %v6423_v50 }
0x28f5   : > { %6251 = vperm.xlu0 %16280, %v6248_v43  }
0x296c   : > { %v6127_v44 = vpop.xlane.xlu0 %6126 }
0x296d   : > { %v6128_v45 = vmul.f32 0.03125, %v6127_v44 }
0x296f   : > { %v6129_v1 = vsub.f32 %v6122_v41, %v6128_v45 }
0x2971   : > { %v6130_v46 = vmul.f32 %v6129_v1, %v6129_v1 }
0x2973   : > { %v6131_v47 = vsel %vm1695_vm4, %v6130_v46, 0.0  ;;  %v6422_v46 = vld [vmem:[%s19067_s9 + $0x8] sm:$0xff]  ;;  %vm6823_vm4 = vcmask 131072  }
0x2974   : > { %6132 = vadd.xlane.f32.xlu1 %v6131_v47  ;;  %v6252_v60 = vpop.permute.xlu0 %6251 }
0x2975   : > { %vm6256_vm9 = vcmp.eq.s32.totalorder %v6252_v60, %v16932_v19  ;;  %v6529_v60 = vld [vmem:[%s19068_s8 + $0x20] sm:$0xff] }
0x2976   : > { %v12784_v3 = vsel %vm6256_vm9, 1.0, %v16598_v11 }
0x2985   : > { %6254 = vperm.xlu1 %16281, %v6249_v53   ;;  %v6527_v53 = vld [vmem:[%s19068_s8 + $0x10] sm:$0xff] }
0x2a01   : > { %v6133_v54 = vpop.xlane.xlu1 %6132 }
0x2a02   : > { %v6134_v55 = vmul.f32 0.03125, %v6133_v54  ;;  %v6528_v54 = vld [vmem:[%s19068_s8 + $0x18] sm:$0xff] }
0x2a04   : > { %v6135_v56 = vadd.f32 1e-05, %v6134_v55  ;;  %v15726_v55 = vpack.c.bf16 %v6528_v54, %v6527_v53 }
0x2a05   : > { %v6255_v9 = vpop.permute.xlu1 %6254 }
0x2a06   : > { %16326 = vrsqrt.f32 %v6135_v56  ;;  %vm6257_vm11 = vcmp.eq.s32.totalorder %v6255_v9, %v16932_v19  ;;  %15727 = vmatpush3.bf16.msra.mxu0 %v15726_v55  ;;  %v6425_v56 = vld [vmem:[%s19067_s9 + $0x20] sm:$0xff] }
0x2a07   : > { %v12785_v14 = vsel %vm6257_vm11, 1.0, %v16598_v11  ;;  %15728 = vmatprep.subr.bf16.mxu0 %v16596_v10 }
0x2a10   : > { %v16327_v58 = vpop.eup %16326 }
0x2a11   : > { %v6137_v62 = vmul.f32 %v16327_v58, %v6129_v1  ;;  %v6421_v1 = vld [vmem:[%s19067_s9] sm:$0xff]  ;;  %v6426_v58 = vld [vmem:[%s19067_s9 + $0x28] sm:$0xff] }
0x2a12   : > { %v15711_v47 = vpack.c.bf16 %v6422_v46, %v6421_v1 }
0x2a13   : > { %v6144_v0 = vmul.f32 %v12779_v59, %v6137_v62  ;;  %v15717_v59 = vpack.c.bf16 %v6426_v58, %v6425_v56  ;;  %v6530_v62 = vld [vmem:[%s19068_s8 + $0x28] sm:$0xff] }
0x2a15   : > { %v6151_v2 = vadd.f32 %v12780_v63, %v6144_v0  ;;  %v15729_v63 = vpack.c.bf16 %v6530_v62, %v6529_v60  ;;  %v6427_v0 = vld [vmem:[%s19067_s9 + $0x30] sm:$0xff] }
0x2a17   : > { %14507 = vmatmul.mubr.msk.f32.vlgmr.msra.gmra.mrb[54].mxu1 %vm1524_vm0, %v6151_v2  ;;  %15730 = vmatpush3.bf16.msra.mxu0 %v15729_v63  ;;  %v6428_v2 = vld [vmem:[%s19067_s9 + $0x38] sm:$0xff] }
0x2a18   : > { %14513 = vmatprep.mubr.msk.f32.mxu1 %vm1619_vm3, %v12784_v3  ;;  %v15720_v3 = vpack.c.bf16 %v6428_v2, %v6427_v0  ;;  %15731 = vmatprep.subr.bf16.mxu0 %v16596_v10  ;;  %v12812_v0 = vld [vmem:[%s19067_s9 + $0x40] sm:$0xff]  ;;  %v12813_v2 = vld [vmem:[%s19067_s9 + $0x48] sm:$0xff] }
0x2aea   : > { %v6232_v5 = vpop.f32.mrb[54].mxu1 }
0x2aeb   : > { %v6233_v26 = vadd.f32 %v12781_v4, %v6232_v5  ;;  %v14508_v6 = vpop.f32.mrb[55].mxu1  ;;  %v6531_v4 = vld [vmem:[%s19068_s8 + $0x30] sm:$0xff]  ;;  %v6532_v5 = vld [vmem:[%s19068_s8 + $0x38] sm:$0xff] }
0x2aed   : > { %v6244_v8 = vrot.slane %v6233_v26, 1 }
0x2aef   : > { %v6247_v61 = vsel %vm6246_vm10, %v6244_v8, %v12783_v7 }
0x2af0   : > { %v15706_v13 = vpack.c.bf16 %v12783_v7, %v6247_v61 }
0x2af2   : > { %15707 = vmatprep.subr.bf16.mxu1 %v15706_v13 }
0x2af3   : > { %15709 = vmatpush3.bf16.msra.mxu1 %v15706_v13 }
0x2af4   : > { %15710 = vmatprep.subr.bf16.mxu1 %v16596_v10 }
0x2af6   : > { %14514 = vmatmul.mubr.msk.f32.vlgmr.msra.gmra.mrb[56].mxu1 %vm1619_vm3, %v12785_v14 }
0x2af7   : > { %14532 = vmatprep.mubr.msk.f32.mxu1 %vm16597_vm1, %v16598_v11  ;;  %15712 = vmatpush3.bf16.msra.mxu1 %v15711_v47 }
0x2af8   : > { %15713 = vmatprep.subr.bf16.mxu1 %v16596_v10 }
0x2afb   : > { %15715 = vmatpush3.bf16.msra.mxu1 %v15714_v52 }
0x2afc   : > { %15716 = vmatprep.subr.bf16.mxu1 %v16596_v10 }
0x2aff   : > { %15718 = vmatpush3.bf16.msra.mxu1 %v15717_v59 }
0x2b00   : > { %15719 = vmatprep.subr.bf16.mxu1 %v16596_v10 }
0x2b03   : > { %15721 = vmatpush3.bf16.msra.mxu1 %v15720_v3  ;;  %v12790_v3 = vld [vmem:[%s19073_s14] ss:$0 sm:$0xff] }
0x2b04   : > { %15734 = vmatprep.subr.bf16.mxu1 %v16596_v10 }
0x2bc9   : > { %v14515_v28 = vpop.f32.mrb[56].mxu1 }
0x2bca   : > { %v6347_v15 = vrot.slane %v14515_v28, 7  ;;  %v6334_v16 = vpop.f32.mrb[57].mxu1 }
0x2bcb   : > { %v6346_v17 = vrot.slane %v6334_v16, 7 }
0x2bcc   : > { %v17498_v25 = vadd.f32 %v6355_v21, %v6347_v15  ;;  %v6620_v21 = vld [vmem:[%s19070_s3] sm:$0xff] }
0x2bcd   : > { %v6348_v19 = vsel %vm6345_vm12, %v6346_v17, %v6347_v15  ;;  %v6352_v22 = vsel %vm6345_vm12, %v6233_v26, %v6346_v17  ;;  %v15732_v26 = vpack.c.bf16 %v6532_v5, %v6531_v4  ;;  %v12788_v17 = vld [vmem:[%s19069_s2] ss:$0 sm:$0xff] }
0x2bce   : > { %v17494_v23 = vadd.f32 %v6353_v18, %v6352_v22  ;;  %v17496_v24 = vadd.f32 %v6354_v20, %v6348_v19  ;;  %v6369_v30 = vsel %vm6368_vm14, %v17498_v25, 0.0  ;;  %v6621_v19 = vld [vmem:[%s19070_s3 + $0x8] sm:$0xff]  ;;  %v12789_v22 = vld [vmem:[%s19071_s6] ss:$0 sm:$0xff] }
0x2bcf   : > { %15733 = vmatpush3.bf16.msra.mxu0 %v15732_v26 }
0x2bd0   : > { %v6362_v27 = vsel %vm6361_vm13, %v17494_v23, 0.0  ;;  %v6365_v29 = vsel %vm6361_vm13, %v17496_v24, 0.0  ;;  %15746 = vmatprep.subr.bf16.mxu0 %v16596_v10 }
0x2bd1   : > { %6363 = vadd.xlane.f32.xlu1 %v6362_v27  ;;  %6366 = vadd.xlane.f32.xlu0 %v6365_v29 }
0x2bd5   : > { %6370 = vadd.xlane.f32.xlu0 %v6369_v30 }
0x2c5e   : > { %v6364_v31 = vpop.xlane.xlu1 %6363  ;;  %v6367_v32 = vpop.xlane.xlu0 %6366 }
0x2c5f   : > { %v6373_v33 = vmul.f32 0.015625, %v6364_v31  ;;  %v6374_v34 = vmul.f32 0.015625, %v6367_v32  ;;  %v15735_v31 = vpack.c.bf16 %v6621_v19, %v6620_v21 }
0x2c61   : > { %v17507_v35 = vsub.f32 %v17494_v23, %v6373_v33  ;;  %v17510_v36 = vsub.f32 %v17496_v24, %v6374_v34 }
0x2c62   : > { %v6371_v37 = vpop.xlane.xlu0 %6370 }
0x2c63   : > { %v6375_v39 = vmul.f32 0.015625, %v6371_v37  ;;  %v6379_v57 = vmul.f32 %v17507_v35, %v17507_v35  ;;  %v6380_v40 = vmul.f32 %v17510_v36, %v17510_v36  ;;  %v6622_v37 = vld [vmem:[%s19070_s3 + $0x10] sm:$0xff] }
0x2c65   : > { %v17517_v41 = vsub.f32 %v17498_v25, %v6375_v39  ;;  %v6382_v42 = vsel %vm6361_vm13, %v6379_v57, 0.0  ;;  %v6385_v43 = vsel %vm6361_vm13, %v6380_v40, 0.0  ;;  %v6623_v39 = vld [vmem:[%s19070_s3 + $0x18] sm:$0xff]  ;;  %v6624_v40 = vld [vmem:[%s19070_s3 + $0x20] sm:$0xff] }
0x2c66   : > { %6383 = vadd.xlane.f32.xlu1 %v6382_v42  ;;  %6386 = vadd.xlane.f32.xlu0 %v6385_v43 }
0x2c67   : > { %v6381_v44 = vmul.f32 %v17517_v41, %v17517_v41 }
0x2c69   : > { %v6388_v45 = vsel %vm6368_vm14, %v6381_v44, 0.0  ;;  %v6626_v44 = vld [vmem:[%s19070_s3 + $0x30] sm:$0xff] }
0x2c6a   : > { %6389 = vadd.xlane.f32.xlu1 %v6388_v45  ;;  %v6627_v45 = vld [vmem:[%s19070_s3 + $0x38] sm:$0xff] }
0x2c6b   : > { %v15744_v1 = vpack.c.bf16 %v6627_v45, %v6626_v44  ;;  %v12843_v44 = vld [vmem:[%s19070_s3 + $0x68] sm:$0xff] }
0x2cf3   : > { %v6384_v6 = vpop.xlane.xlu1 %6383  ;;  %v6387_v7 = vpop.xlane.xlu0 %6386 }
0x2cf4   : > { %v6391_v8 = vmul.f32 0.015625, %v6384_v6  ;;  %v6392_v9 = vmul.f32 0.015625, %v6387_v7  ;;  %v15754_v6 = vpack.c.bf16 %v12813_v2, %v12812_v0 }
0x2cf6   : > { %v6394_v61 = vadd.f32 1e-05, %v6391_v8  ;;  %v6395_v13 = vadd.f32 1e-05, %v6392_v9  ;;  %v12798_v8 = vld [vmem:[%s19076_s17] ss:$0 sm:$0xff] }
0x2cf7   : > { %v6390_v14 = vpop.xlane.xlu1 %6389  ;;  %v12814_v9 = vld [vmem:[%s19067_s9 + $0x50] sm:$0xff] }
0x2cf8   : > { %16328 = vrsqrt.f32 %v6394_v61  ;;  %v6393_v28 = vmul.f32 0.015625, %v6390_v14  ;;  %v12815_v61 = vld [vmem:[%s19067_s9 + $0x58] sm:$0xff] }
0x2cf9   : > { %16330 = vrsqrt.f32 %v6395_v13 }
0x2cfa   : > { %v6396_v15 = vadd.f32 1e-05, %v6393_v28 }
0x2cfc   : > { %16332 = vrsqrt.f32 %v6396_v15 }
0x2d02   : > { %v16329_v16 = vpop.eup %16328 }
0x2d03   : > { %v16331_v18 = vpop.eup %16330  ;;  %v6400_v20 = vmul.f32 %v16329_v16, %v17507_v35  ;;  %v15738_v35 = vpack.c.bf16 %v6623_v39, %v6622_v37  ;;  %v15757_v16 = vpack.c.bf16 %v12815_v61, %v12814_v9  ;;  %v12838_v37 = vld [vmem:[%s19070_s3 + $0x40] sm:$0xff]  ;;  %v12839_v39 = vld [vmem:[%s19070_s3 + $0x48] sm:$0xff] }
0x2d04   : > { %v6401_v27 = vmul.f32 %v16331_v18, %v17510_v36  ;;  %v12816_v18 = vld [vmem:[%s19067_s9 + $0x60] sm:$0xff] }
0x2d05   : > { %v6409_v29 = vmul.f32 %v12788_v17, %v6400_v20  ;;  %v12817_v20 = vld [vmem:[%s19067_s9 + $0x68] sm:$0xff] }
0x2d06   : > { %v16333_v30 = vpop.eup %16332  ;;  %v6410_v33 = vmul.f32 %v12788_v17, %v6401_v27  ;;  %v15760_v27 = vpack.c.bf16 %v12817_v20, %v12816_v18 }
0x2d07   : > { %v17554_v32 = vadd.f32 %v12789_v22, %v6409_v29  ;;  %v6402_v34 = vmul.f32 %v16333_v30, %v17517_v41  ;;  %v6625_v41 = vld [vmem:[%s19070_s3 + $0x28] sm:$0xff]  ;;  %v12818_v30 = vld [vmem:[%s19067_s9 + $0x70] sm:$0xff] }
0x2d08   : > { %v17565_v36 = vadd.f32 %v12789_v22, %v6410_v33  ;;  %v15741_v42 = vpack.c.bf16 %v6625_v41, %v6624_v40  ;;  %v12841_v40 = vld [vmem:[%s19070_s3 + $0x58] sm:$0xff] }
0x2d09   : > { %14533 = vmatmul.mubr.msk.f32.vlgmr.msra.gmra.mrb[58].mxu1 %vm6361_vm13, %v17554_v32  ;;  %14558 = vmatmul.mubr.msk.f32.vlgmr.msra.gmra.mrb[54].mxu0 %vm6361_vm13, %v17554_v32  ;;  %v6411_v57 = vmul.f32 %v12788_v17, %v6402_v34 }
0x2d0a   : > { %15736 = vmatpush3.bf16.msra.mxu1 %v15735_v31  ;;  %14535 = vmatprep.mubr.msk.f32.mxu1 %vm16597_vm1, %v16598_v11  ;;  %v12819_v31 = vld [vmem:[%s19067_s9 + $0x78] sm:$0xff] }
0x2d0b   : > { %14560 = vmatprep.mubr.msk.f32.mxu0 %vm16597_vm1, %v16598_v11  ;;  %15737 = vmatprep.subr.bf16.mxu1 %v16596_v10  ;;  %v17578_v43 = vadd.f32 %v12789_v22, %v6411_v57  ;;  %v15763_v34 = vpack.c.bf16 %v12819_v31, %v12818_v30  ;;  %v12840_v57 = vld [vmem:[%s19070_s3 + $0x50] sm:$0xff] }
0x2d0c   : > { %v15781_v41 = vpack.c.bf16 %v12841_v40, %v12840_v57  ;;  %v12825_v40 = vld [vmem:[%s19068_s8 + $0x40] sm:$0xff] }
0x2d0d   : > { %14536 = vmatmul.mubr.msk.f32.gmra.mrb[60].mxu1 %vm6361_vm13, %v17565_v36  ;;  %14561 = vmatmul.mubr.msk.f32.gmra.mrb[56].mxu0 %vm6361_vm13, %v17565_v36 }
0x2d0e   : > { %15739 = vmatpush3.bf16.msra.mxu1 %v15738_v35  ;;  %14538 = vmatprep.mubr.msk.f32.mxu1 %vm16597_vm1, %v16598_v11  ;;  %v15778_v35 = vpack.c.bf16 %v12839_v39, %v12838_v37 }
0x2d0f   : > { %14563 = vmatprep.mubr.msk.f32.mxu0 %vm16597_vm1, %v16598_v11  ;;  %15740 = vmatprep.subr.bf16.mxu1 %v16596_v10 }
0x2d11   : > { %14539 = vmatmul.mubr.msk.f32.gmra.mrb[62].mxu1 %vm6361_vm13, %v17578_v43  ;;  %14564 = vmatmul.mubr.msk.f32.gmra.mrb[58].mxu0 %vm6361_vm13, %v17578_v43 }
0x2d12   : > { %15742 = vmatpush3.bf16.msra.mxu1 %v15741_v42  ;;  %14582 = vmatprep.mubr.msk.f32.mxu1 %vm16597_vm1, %v16598_v11  ;;  %v12842_v42 = vld [vmem:[%s19070_s3 + $0x60] sm:$0xff] }
0x2d13   : > { %15743 = vmatprep.subr.bf16.mxu1 %v16596_v10  ;;  %14597 = vmatprep.mubr.msk.f32.mxu0 %vm16597_vm1, %v16598_v11  ;;  %v15784_v45 = vpack.c.bf16 %v12843_v44, %v12842_v42 }
0x2d16   : > { %15745 = vmatpush3.bf16.msra.mxu1 %v15744_v1  ;;  %v12844_v1 = vld [vmem:[%s19070_s3 + $0x70] sm:$0xff] }
0x2d17   : > { %15750 = vmatprep.subr.bf16.mxu1 %v16596_v10 }
0x2d19   : > { %14583 = vmatmul.mubr.msk.f32.vlgmr.msra.gmra.mrb[64].mxu1 %vm6361_vm13, %v17554_v32 }
0x2d1a   : > { %14585 = vmatprep.mubr.msk.f32.mxu1 %vm16597_vm1, %v16598_v11 }
0x2d1d   : > { %14586 = vmatmul.mubr.msk.f32.gmra.mrb[66].mxu1 %vm6361_vm13, %v17565_v36 }
0x2d1e   : > { %14588 = vmatprep.mubr.msk.f32.mxu1 %vm16597_vm1, %v16598_v11 }
0x2d21   : > { %14589 = vmatmul.mubr.msk.f32.gmra.mrb[68].mxu1 %vm6361_vm13, %v17578_v43 }
0x2d22   : > { %14612 = vmatprep.mubr.msk.f32.mxu1 %vm16597_vm1, %v16598_v11 }
0x2ddc   : > { %v6511_v46 = vpop.f32.mrb[58].mxu1  ;;  %v6606_v47 = vpop.f32.mrb[54].mxu0 }
0x2ddd   : > { %v14534_v48 = vpop.f32.mrb[59].mxu1  ;;  %v14559_v38 = vpop.f32.mrb[55].mxu0  ;;  %v6607_v52 = vadd.f32 %v12794_v49, %v6606_v47  ;;  %v6512_v7 = vadd.f32 %v12790_v3, %v6511_v46  ;;  %v12845_v46 = vld [vmem:[%s19070_s3 + $0x78] sm:$0xff] }
0x2dde   : > { %v15787_v47 = vpack.c.bf16 %v12845_v46, %v12844_v1  ;;  %v12827_v1 = vld [vmem:[%s19068_s8 + $0x50] sm:$0xff]  ;;  %v12828_v46 = vld [vmem:[%s19068_s8 + $0x58] sm:$0xff] }
0x2de0   : > { %v6516_v50 = vpop.f32.mrb[60].mxu1  ;;  %v6611_v51 = vpop.f32.mrb[56].mxu0 }
0x2de1   : > { %v6612_v53 = vadd.f32 %v12794_v49, %v6611_v51  ;;  %v14537_v54 = vpop.f32.mrb[61].mxu1  ;;  %v14562_v55 = vpop.f32.mrb[57].mxu0  ;;  %v6517_v17 = vadd.f32 %v12790_v3, %v6516_v50 }
0x2de3   : > { %v15747_v58 = vpack.c.bf16 %v6612_v53, %v6607_v52 }
0x2de4   : > { %v6521_v59 = vpop.f32.mrb[62].mxu1  ;;  %v6616_v60 = vpop.f32.mrb[58].mxu0 }
0x2de5   : > { %v14540_v62 = vpop.f32.mrb[63].mxu1  ;;  %v14565_v63 = vpop.f32.mrb[59].mxu0  ;;  %15749 = vmatpush3.bf16.xpose.msk.msra.mxu0 %vm17610_vm15, %v15747_v58  ;;  %v6617_v4 = vadd.f32 %v12794_v49, %v6616_v60  ;;  %v6522_v29 = vadd.f32 %v12790_v3, %v6521_v59 }
0x2de6   : > { %14595 = vmatprep.subr.mxu0 %v16598_v11 }
0x2dec   : > { %v6701_v5 = vpop.f32.mrb[64].mxu1 }
0x2ded   : > { %v14584_v26 = vpop.f32.mrb[65].mxu1  ;;  %14596 = vmatpush3.xpose.msk.msra.mxu0 %vm1619_vm3, %v6617_v4  ;;  %v6702_v14 = vadd.f32 %v12798_v8, %v6701_v5 }
0x2dee   : > { %15753 = vmatprep.subr.bf16.mxu0 %v16596_v10 }
0x2df0   : > { %v6706_v13 = vpop.f32.mrb[66].mxu1  ;;  %14598 = vmatmul.mubr.msk.f32.vlgmr.msra.gmra.mrb[60].mxu0 %vm1619_vm3, %v6512_v7 }
0x2df1   : > { %v6707_v28 = vadd.f32 %v12798_v8, %v6706_v13  ;;  %v14587_v15 = vpop.f32.mrb[67].mxu1  ;;  %15755 = vmatpush3.bf16.msra.mxu0 %v15754_v6  ;;  %14600 = vmatprep.mubr.msk.f32.mxu0 %vm16597_vm1, %v16598_v11  ;;  %v17691_v6 = vld [vmem:[%s19076_s17 + $0x1] ss:$0 sm:$0xff] }
0x2df2   : > { %15756 = vmatprep.subr.bf16.mxu0 %v16596_v10 }
0x2df3   : > { %v15751_v21 = vpack.c.bf16 %v6707_v28, %v6702_v14 }
0x2df4   : > { %v6711_v19 = vpop.f32.mrb[68].mxu1  ;;  %14601 = vmatmul.mubr.msk.f32.gmra.mrb[62].mxu0 %vm1619_vm3, %v6517_v17 }
0x2df5   : > { %v14590_v22 = vpop.f32.mrb[69].mxu1  ;;  %15752 = vmatpush3.bf16.msra.mxu1 %v15751_v21  ;;  %15758 = vmatpush3.bf16.msra.mxu0 %v15757_v16  ;;  %v6712_v33 = vadd.f32 %v12798_v8, %v6711_v19 }
0x2df6   : > { %14603 = vmatprep.mubr.msk.f32.mxu0 %vm16597_vm1, %v16598_v11  ;;  %14610 = vmatprep.subr.mxu1 %v16598_v11 }
0x2df7   : > { %15759 = vmatprep.subr.bf16.mxu0 %v16596_v10 }
0x2df8   : > { %14604 = vmatmul.mubr.msk.f32.gmra.mrb[64].mxu0 %vm1619_vm3, %v6522_v29 }
0x2df9   : > { %14611 = vmatpush3.msk.msra.mxu1 %vm6345_vm12, %v6712_v33  ;;  %15761 = vmatpush3.bf16.msra.mxu0 %v15760_v27 }
0x2dfa   : > { %15762 = vmatprep.subr.bf16.mxu0 %v16596_v10  ;;  %14637 = vmatprep.mubr.msk.f32.mxu0 %vm16597_vm1, %v16598_v11 }
0x2dfb   : > { %15765 = vmatprep.subr.bf16.mxu1 %v16596_v10 }
0x2dfd   : > { %15764 = vmatpush3.bf16.msra.mxu0 %v15763_v34 }
0x2dfe   : > { %15777 = vmatprep.subr.bf16.mxu0 %v16596_v10 }
0x2e00   : > { %14638 = vmatmul.mubr.msk.f32.vlgmr.msra.gmra.mrb[66].mxu0 %vm6361_vm13, %v17554_v32 }
0x2e01   : > { %15779 = vmatpush3.bf16.msra.mxu0 %v15778_v35  ;;  %14640 = vmatprep.mubr.msk.f32.mxu0 %vm16597_vm1, %v16598_v11 }
0x2e02   : > { %15780 = vmatprep.subr.bf16.mxu0 %v16596_v10 }
0x2e04   : > { %14641 = vmatmul.mubr.msk.f32.gmra.mrb[68].mxu0 %vm6361_vm13, %v17565_v36 }
0x2e05   : > { %15782 = vmatpush3.bf16.msra.mxu0 %v15781_v41  ;;  %14643 = vmatprep.mubr.msk.f32.mxu0 %vm16597_vm1, %v16598_v11  ;;  %v12826_v41 = vld [vmem:[%s19068_s8 + $0x48] sm:$0xff] }
0x2e06   : > { %15783 = vmatprep.subr.bf16.mxu0 %v16596_v10  ;;  %v15766_v44 = vpack.c.bf16 %v12826_v41, %v12825_v40 }
0x2e08   : > { %14644 = vmatmul.mubr.msk.f32.gmra.mrb[70].mxu0 %vm6361_vm13, %v17578_v43 }
0x2e09   : > { %15785 = vmatpush3.bf16.msra.mxu0 %v15784_v45  ;;  %14687 = vmatprep.mubr.msk.f32.mxu0 %vm16597_vm1, %v16598_v11 }
0x2e0a   : > { %15786 = vmatprep.subr.bf16.mxu0 %v16596_v10 }
0x2e0d   : > { %15788 = vmatpush3.bf16.msra.mxu0 %v15787_v47 }
0x2e0e   : > { %15796 = vmatprep.subr.bf16.mxu0 %v16596_v10 }
0x2e10   : > { %14688 = vmatmul.mubr.msk.f32.vlgmr.msra.gmra.mrb[72].mxu0 %vm6361_vm13, %v17554_v32 }
0x2e11   : > { %14690 = vmatprep.mubr.msk.f32.mxu0 %vm16597_vm1, %v16598_v11 }
0x2e14   : > { %14691 = vmatmul.mubr.msk.f32.gmra.mrb[74].mxu0 %vm6361_vm13, %v17565_v36 }
0x2e15   : > { %14693 = vmatprep.mubr.msk.f32.mxu0 %vm16597_vm1, %v16598_v11 }
0x2e18   : > { %14694 = vmatmul.mubr.msk.f32.gmra.mrb[76].mxu0 %vm6361_vm13, %v17578_v43 }
0x2e19   : > { %14730 = vmatprep.mubr.msk.f32.mxu0 %vm16597_vm1, %v16598_v11 }
0x2ec3   : > { %v6799_v48 = vpop.f32.mrb[60].mxu0 }
0x2ec4   : > { %v6813_v38 = vmul.f32 0.25, %v6799_v48  ;;  %v14599_v49 = vpop.f32.mrb[61].mxu0  ;;  %v15769_v48 = vpack.c.bf16 %v12828_v46, %v12827_v1 }
0x2ec5   : > { %v12829_v49 = vld [vmem:[%s19068_s8 + $0x60] sm:$0xff] }
0x2ec6   : > { %v6817_v50 = vsel %vm6816_vm2, %v6813_v38, -inf }
0x2ec7   : > { %6818 = vmax.xlane.f32.xlu0 %v6817_v50  ;;  %v6804_v51 = vpop.f32.mrb[62].mxu0  ;;  %v12830_v50 = vld [vmem:[%s19068_s8 + $0x68] sm:$0xff] }
0x2ec8   : > { %v6814_v52 = vmul.f32 0.25, %v6804_v51  ;;  %v14602_v53 = vpop.f32.mrb[63].mxu0 }
0x2eca   : > { %v6820_v54 = vsel %vm6816_vm2, %v6814_v52, -inf }
0x2ecb   : > { %6821 = vmax.xlane.f32.xlu1 %v6820_v54  ;;  %v6809_v55 = vpop.f32.mrb[64].mxu0  ;;  %v12831_v54 = vld [vmem:[%s19068_s8 + $0x70] sm:$0xff] }
0x2ecc   : > { %v6815_v58 = vmul.f32 0.25, %v6809_v55  ;;  %v14605_v59 = vpop.f32.mrb[65].mxu0  ;;  %v12832_v55 = vld [vmem:[%s19068_s8 + $0x78] sm:$0xff] }
0x2ece   : > { %v6824_v60 = vsel %vm6823_vm4, %v6815_v58, -inf }
0x2ecf   : > { %6825 = vmax.xlane.f32.xlu0 %v6824_v60 }
0x2ed3   : > { %v17684_v62 = vpop.f32.mrb[66].mxu0 }
0x2ed4   : > { %v14639_v63 = vpop.f32.mrb[67].mxu0 }
0x2ed7   : > { %v17686_v0 = vpop.f32.mrb[68].mxu0 }
0x2ed8   : > { %v14642_v2 = vpop.f32.mrb[69].mxu0 }
0x2edb   : > { %v17688_v3 = vpop.f32.mrb[70].mxu0 }
0x2edc   : > { %v14645_v4 = vpop.f32.mrb[71].mxu0 }
0x2ee3   : > { %v7222_v5 = vpop.f32.mrb[72].mxu0 }
0x2ee4   : > { %v14689_v26 = vpop.f32.mrb[73].mxu0  ;;  %v17694_v8 = vadd.f32 %v17691_v6, %v7222_v5 }
0x2ee7   : > { %v7227_v7 = vpop.f32.mrb[74].mxu0 }
0x2ee8   : > { %v17697_v9 = vadd.f32 %v17691_v6, %v7227_v7  ;;  %v14692_v61 = vpop.f32.mrb[75].mxu0 }
0x2ee9   : > { %v12834_v61 = vld [vmem:[%s19072_s12 + $0x1] ss:$0 sm:$0xff] }
0x2eea   : > { %v15794_v13 = vpack.c.bf16 %v17697_v9, %v17694_v8 }
0x2eeb   : > { %v17701_v14 = vpop.f32.mrb[76].mxu0 }
0x2eec   : > { %v14695_v28 = vpop.f32.mrb[77].mxu0 }
0x2f54   : > { %v6819_v15 = vpop.xlane.xlu0 %6818 }
0x2f55   : > { %v6827_v16 = vsub.f32 %v6813_v38, %v6819_v15 }
0x2f57   : > { %v6830_v17 = vmul.f32 1.442695, %v6827_v16 }
0x2f58   : > { %v6822_v18 = vpop.xlane.xlu1 %6821 }
0x2f59   : > { %16334 = vpow2.f32 %v6830_v17  ;;  %v6828_v20 = vsub.f32 %v6814_v52, %v6822_v18  ;;  %v15772_v52 = vpack.c.bf16 %v12830_v50, %v12829_v49 }
0x2f5b   : > { %v6832_v21 = vmul.f32 1.442695, %v6828_v20 }
0x2f5c   : > { %v6826_v19 = vpop.xlane.xlu0 %6825 }
0x2f5d   : > { %16336 = vpow2.f32 %v6832_v21  ;;  %v6829_v22 = vsub.f32 %v6815_v58, %v6826_v19  ;;  %v15775_v58 = vpack.c.bf16 %v12832_v55, %v12831_v54  ;;  %v12821_v19 = vld [vmem:[%s19073_s14 + $0x1] ss:$0 sm:$0xff] }
0x2f5f   : > { %v6834_v27 = vmul.f32 1.442695, %v6829_v22 }
0x2f61   : > { %16338 = vpow2.f32 %v6834_v27  ;;  %v7029_v27 = vadd.f32 %v12821_v19, %v17684_v62  ;;  %v7039_v62 = vadd.f32 %v12821_v19, %v17688_v3 }
0x2f63   : > { %v16335_v29 = vpop.eup %16334 }
0x2f64   : > { %v6836_v30 = vsel %vm6816_vm2, %v16335_v29, 0.0 }
0x2f65   : > { %6837 = vadd.xlane.f32.xlu1 %v6836_v30  ;;  %v7233_v30 = vadd.f32 %v17691_v6, %v17701_v14 }
0x2f67   : > { %v16337_v31 = vpop.eup %16336 }
0x2f68   : > { %v6839_v33 = vsel %vm6816_vm2, %v16337_v31, 0.0 }
0x2f69   : > { %6840 = vadd.xlane.f32.xlu0 %v6839_v33 }
0x2f6b   : > { %v16339_v34 = vpop.eup %16338 }
0x2f6c   : > { %v6842_v37 = vsel %vm6823_vm4, %v16339_v34, 0.0 }
0x2f6d   : > { %6843 = vadd.xlane.f32.xlu1 %v6842_v37 }
0x2ff2   : > { %v6838_v39 = vpop.xlane.xlu1 %6837 }
0x2ff3   : > { %16340 = vrcp.f32 %v6838_v39 }
0x2ff6   : > { %v6841_v35 = vpop.xlane.xlu0 %6840 }
0x2ff7   : > { %16342 = vrcp.f32 %v6841_v35 }
0x2ffa   : > { %v6844_v57 = vpop.xlane.xlu1 %6843 }
0x2ffb   : > { %16344 = vrcp.f32 %v6844_v57 }
0x2ffd   : > { %v16341_v42 = vpop.eup %16340 }
0x2ffe   : > { %v6848_v45 = vmul.f32 %v16341_v42, %v16335_v29  ;;  %v7034_v29 = vadd.f32 %v12821_v19, %v17686_v0  ;;  %v12884_v19 = vld [vmem:[%s19068_s8 + $0x90] sm:$0xff] }
0x3000   : > { %14613 = vmatmul.mubr.msk.f32.vlgmr.msra.gmra.mrb[70].mxu1 %vm6816_vm2, %v6848_v45 }
0x3001   : > { %v16343_v47 = vpop.eup %16342  ;;  %15767 = vmatpush3.bf16.msra.mxu1 %v15766_v44  ;;  %14615 = vmatprep.mubr.msk.f32.mxu1 %vm16597_vm1, %v16598_v11 }
0x3002   : > { %15768 = vmatprep.subr.bf16.mxu1 %v16596_v10  ;;  %v6849_v38 = vmul.f32 %v16343_v47, %v16337_v31 }
0x3004   : > { %14616 = vmatmul.mubr.msk.f32.gmra.mrb[72].mxu1 %vm6816_vm2, %v6849_v38 }
0x3005   : > { %v16345_v51 = vpop.eup %16344  ;;  %15770 = vmatpush3.bf16.msra.mxu1 %v15769_v48  ;;  %14618 = vmatprep.mubr.msk.f32.mxu1 %vm16597_vm1, %v16598_v11 }
0x3006   : > { %15771 = vmatprep.subr.bf16.mxu1 %v16596_v10  ;;  %v6850_v53 = vmul.f32 %v16345_v51, %v16339_v34 }
0x3008   : > { %14619 = vmatmul.mubr.msk.f32.gmra.mrb[74].mxu1 %vm6816_vm2, %v6850_v53  ;;  %v12862_v53 = vld [vmem:[%s19077_s19 + $0x18] sm:$0xff] }
0x3009   : > { %15773 = vmatpush3.bf16.msra.mxu1 %v15772_v52  ;;  %14662 = vmatprep.mubr.msk.f32.mxu1 %vm16597_vm1, %v16598_v11  ;;  %v12861_v52 = vld [vmem:[%s19077_s19 + $0x10] sm:$0xff] }
0x300a   : > { %15774 = vmatprep.subr.bf16.mxu1 %v16596_v10  ;;  %v15797_v54 = vpack.c.bf16 %v12862_v53, %v12861_v52  ;;  %v12899_v53 = vld [vmem:[%s19070_s3 + $0xa0] sm:$0xff] }
0x300c   : > { %15798 = vmatpush3.bf16.msra.mxu0 %v15797_v54  ;;  %v12900_v54 = vld [vmem:[%s19070_s3 + $0xa8] sm:$0xff] }
0x300d   : > { %15776 = vmatpush3.bf16.msra.mxu1 %v15775_v58  ;;  %15802 = vmatprep.subr.bf16.mxu0 %v16596_v10 }
0x300e   : > { %15789 = vmatprep.subr.bf16.mxu1 %v16596_v10 }
0x3010   : > { %14663 = vmatmul.mubr.msk.f32.vlgmr.msra.gmra.mrb[76].mxu1 %vm6361_vm13, %v17554_v32 }
0x3011   : > { %14665 = vmatprep.mubr.msk.f32.mxu1 %vm16597_vm1, %v16598_v11 }
0x3014   : > { %14666 = vmatmul.mubr.msk.f32.gmra.mrb[78].mxu1 %vm6361_vm13, %v17565_v36 }
0x3015   : > { %14668 = vmatprep.mubr.msk.f32.mxu1 %vm16597_vm1, %v16598_v11 }
0x3018   : > { %14669 = vmatmul.mubr.msk.f32.gmra.mrb[80].mxu1 %vm6361_vm13, %v17578_v43 }
0x3019   : > { %14702 = vmatprep.mubr.msk.f32.mxu1 %vm16597_vm1, %v16598_v11 }
0x30d3   : > { %v17739_v59 = vpop.f32.mrb[70].mxu1 }
0x30d4   : > { %v14614_v60 = vpop.f32.mrb[71].mxu1 }
0x30d7   : > { %v17741_v63 = vpop.f32.mrb[72].mxu1 }
0x30d8   : > { %v14617_v2 = vpop.f32.mrb[73].mxu1 }
0x30d9   : > { %v6943_v2 = vld [vmem:[%s19077_s19] sm:$0xff] }
0x30db   : > { %v17743_v4 = vpop.f32.mrb[74].mxu1 }
0x30dc   : > { %v14620_v5 = vpop.f32.mrb[75].mxu1 }
0x30dd   : > { %v6944_v5 = vld [vmem:[%s19077_s19 + $0x8] sm:$0xff] }
0x30e3   : > { %v7125_v26 = vpop.f32.mrb[76].mxu1 }
0x30e4   : > { %v14664_v7 = vpop.f32.mrb[77].mxu1  ;;  %v7126_v15 = vadd.f32 %v12834_v61, %v7125_v26 }
0x30e5   : > { %v15800_v7 = vpack.c.bf16 %v6944_v5, %v6943_v2  ;;  %v12901_v2 = vld [vmem:[%s19070_s3 + $0xb0] sm:$0xff]  ;;  %v12902_v5 = vld [vmem:[%s19070_s3 + $0xb8] sm:$0xff] }
0x30e7   : > { %v7130_v28 = vpop.f32.mrb[78].mxu1 }
0x30e8   : > { %v7131_v16 = vadd.f32 %v12834_v61, %v7130_v28  ;;  %v14667_v17 = vpop.f32.mrb[79].mxu1 }
0x30ea   : > { %v15790_v18 = vpack.c.bf16 %v7131_v16, %v7126_v15 }
0x30eb   : > { %v7135_v20 = vpop.f32.mrb[80].mxu1 }
0x30ec   : > { %v14670_v21 = vpop.f32.mrb[81].mxu1  ;;  %15792 = vmatpush3.bf16.xpose.msk.msra.mxu1 %vm17610_vm15, %v15790_v18  ;;  %v7136_v22 = vadd.f32 %v12834_v61, %v7135_v20  ;;  %v12882_v18 = vld [vmem:[%s19068_s8 + $0x80] sm:$0xff]  ;;  %v12883_v20 = vld [vmem:[%s19068_s8 + $0x88] sm:$0xff] }
0x30ed   : > { %14700 = vmatprep.subr.mxu1 %v16598_v11  ;;  %v15815_v21 = vpack.c.bf16 %v12883_v20, %v12882_v18 }
0x30f4   : > { %14701 = vmatpush3.xpose.msk.msra.mxu1 %vm1619_vm3, %v7136_v22  ;;  %v12885_v22 = vld [vmem:[%s19068_s8 + $0x98] sm:$0xff] }
0x30f5   : > { %15793 = vmatprep.subr.bf16.mxu1 %v16596_v10 }
0x30f7   : > { %14703 = vmatmul.mubr.msk.f32.vlgmr.msra.gmra.mrb[82].mxu1 %vm1619_vm3, %v7029_v27  ;;  %v15818_v27 = vpack.c.bf16 %v12885_v22, %v12884_v19 }
0x30f8   : > { %15795 = vmatpush3.bf16.msra.mxu1 %v15794_v13  ;;  %14705 = vmatprep.mubr.msk.f32.mxu1 %vm16597_vm1, %v16598_v11 }
0x30f9   : > { %14715 = vmatprep.subr.mxu1 %v16598_v11 }
0x30fb   : > { %14706 = vmatmul.mubr.msk.f32.gmra.mrb[84].mxu1 %vm1619_vm3, %v7034_v29  ;;  %v12886_v29 = vld [vmem:[%s19068_s8 + $0xa0] sm:$0xff] }
0x30fc   : > { %14716 = vmatpush3.msk.msra.mxu1 %vm6345_vm12, %v7233_v30  ;;  %14708 = vmatprep.mubr.msk.f32.mxu1 %vm16597_vm1, %v16598_v11  ;;  %v12887_v30 = vld [vmem:[%s19068_s8 + $0xa8] sm:$0xff] }
0x30fd   : > { %15799 = vmatprep.subr.bf16.mxu1 %v16596_v10 }
0x30ff   : > { %14709 = vmatmul.mubr.msk.f32.gmra.mrb[86].mxu1 %vm1619_vm3, %v7039_v62  ;;  %v15821_v62 = vpack.c.bf16 %v12887_v30, %v12886_v29 }
0x3100   : > { %14717 = vmatprep.mubr.msk.f32.mxu1 %vm16597_vm1, %v16598_v11 }
0x31ca   : > { %v7320_v0 = vpop.f32.mrb[82].mxu1 }
0x31cb   : > { %v7334_v8 = vmul.f32 0.25, %v7320_v0  ;;  %v14704_v9 = vpop.f32.mrb[83].mxu1  ;;  %v12889_v0 = vld [vmem:[%s19068_s8 + $0xb8] sm:$0xff] }
0x31cd   : > { %v7337_v6 = vsel %vm6816_vm2, %v7334_v8, -inf }
0x31ce   : > { %7338 = vmax.xlane.f32.xlu0 %v7337_v6  ;;  %v7325_v13 = vpop.f32.mrb[84].mxu1  ;;  %v12871_v6 = vld [vmem:[%s19067_s9 + $0x90] sm:$0xff] }
0x31cf   : > { %v7335_v14 = vmul.f32 0.25, %v7325_v13  ;;  %v14707_v31 = vpop.f32.mrb[85].mxu1  ;;  %v12872_v13 = vld [vmem:[%s19067_s9 + $0x98] sm:$0xff] }
0x31d1   : > { %v7340_v33 = vsel %vm6816_vm2, %v7335_v14, -inf }
0x31d2   : > { %7341 = vmax.xlane.f32.xlu1 %v7340_v33  ;;  %v7330_v3 = vpop.f32.mrb[86].mxu1  ;;  %v15806_v33 = vpack.c.bf16 %v12872_v13, %v12871_v6 }
0x31d3   : > { %v7336_v34 = vmul.f32 0.25, %v7330_v3  ;;  %v14710_v37 = vpop.f32.mrb[87].mxu1  ;;  %v12873_v3 = vld [vmem:[%s19067_s9 + $0xa0] sm:$0xff] }
0x31d5   : > { %v7343_v39 = vsel %vm6823_vm4, %v7336_v34, -inf }
0x31d6   : > { %7344 = vmax.xlane.f32.xlu0 %v7343_v39 }
0x325b   : > { %v7339_v35 = vpop.xlane.xlu0 %7338 }
0x325c   : > { %v7346_v57 = vsub.f32 %v7334_v8, %v7339_v35 }
0x325e   : > { %v7349_v40 = vmul.f32 1.442695, %v7346_v57  ;;  %v12875_v57 = vld [vmem:[%s19067_s9 + $0xb0] sm:$0xff] }
0x325f   : > { %v7342_v41 = vpop.xlane.xlu1 %7341 }
0x3260   : > { %16346 = vpow2.f32 %v7349_v40  ;;  %v7347_v42 = vsub.f32 %v7335_v14, %v7342_v41  ;;  %v12876_v40 = vld [vmem:[%s19067_s9 + $0xb8] sm:$0xff] }
0x3262   : > { %v7351_v44 = vmul.f32 1.442695, %v7347_v42 }
0x3263   : > { %v7345_v45 = vpop.xlane.xlu0 %7344 }
0x3264   : > { %16348 = vpow2.f32 %v7351_v44  ;;  %v7348_v1 = vsub.f32 %v7336_v34, %v7345_v45  ;;  %v12874_v34 = vld [vmem:[%s19067_s9 + $0xa8] sm:$0xff]  ;;  %v15812_v44 = vpack.c.bf16 %v12876_v40, %v12875_v57  ;;  %v12895_v45 = vld [vmem:[%s19070_s3 + $0x80] sm:$0xff] }
0x3265   : > { %v15809_v35 = vpack.c.bf16 %v12874_v34, %v12873_v3  ;;  %v12904_v40 = vld [vmem:[%s19076_s17 + $0x2] ss:$0 sm:$0xff] }
0x3266   : > { %v7353_v46 = vmul.f32 1.442695, %v7348_v1  ;;  %v12896_v1 = vld [vmem:[%s19070_s3 + $0x88] sm:$0xff] }
0x3268   : > { %16350 = vpow2.f32 %v7353_v46 }
0x326a   : > { %v16347_v47 = vpop.eup %16346 }
0x326b   : > { %v7355_v48 = vsel %vm6816_vm2, %v16347_v47, 0.0 }
0x326c   : > { %7356 = vadd.xlane.f32.xlu1 %v7355_v48  ;;  %v15827_v48 = vpack.c.bf16 %v12896_v1, %v12895_v45 }
0x326e   : > { %v16349_v38 = vpop.eup %16348 }
0x326f   : > { %v7358_v49 = vsel %vm6816_vm2, %v16349_v38, 0.0 }
0x3270   : > { %7359 = vadd.xlane.f32.xlu0 %v7358_v49  ;;  %v12898_v49 = vld [vmem:[%s19070_s3 + $0x98] sm:$0xff] }
0x3272   : > { %v16351_v50 = vpop.eup %16350 }
0x3273   : > { %v7361_v51 = vsel %vm6823_vm4, %v16351_v50, 0.0 }
0x3274   : > { %7362 = vadd.xlane.f32.xlu1 %v7361_v51 }
0x32f9   : > { %v7357_v55 = vpop.xlane.xlu1 %7356 }
0x32fa   : > { %16352 = vrcp.f32 %v7357_v55 }
0x32fd   : > { %v7360_v58 = vpop.xlane.xlu0 %7359 }
0x32fe   : > { %16354 = vrcp.f32 %v7360_v58 }
0x3301   : > { %v7363_v60 = vpop.xlane.xlu1 %7362 }
0x3302   : > { %16356 = vrcp.f32 %v7363_v60  ;;  %v15833_v60 = vpack.c.bf16 %v12900_v54, %v12899_v53 }
0x3304   : > { %v16353_v26 = vpop.eup %16352 }
0x3305   : > { %v7367_v61 = vmul.f32 %v16353_v26, %v16347_v47  ;;  %v15836_v26 = vpack.c.bf16 %v12902_v5, %v12901_v2 }
0x3307   : > { %14718 = vmatmul.mubr.msk.f32.vlgmr.msra.gmra.mrb[88].mxu1 %vm6816_vm2, %v7367_v61 }
0x3308   : > { %v16355_v28 = vpop.eup %16354  ;;  %14720 = vmatprep.mubr.msk.f32.mxu1 %vm16597_vm1, %v16598_v11  ;;  %15801 = vmatpush3.bf16.msra.mxu1 %v15800_v7 }
0x3309   : > { %v7368_v15 = vmul.f32 %v16355_v28, %v16349_v38  ;;  %15814 = vmatprep.subr.bf16.mxu1 %v16596_v10  ;;  %v12897_v38 = vld [vmem:[%s19070_s3 + $0x90] sm:$0xff]  ;;  %v12891_v28 = vld [vmem:[%s19072_s12 + $0x2] ss:$0 sm:$0xff] }
0x330a   : > { %v15830_v52 = vpack.c.bf16 %v12898_v49, %v12897_v38 }
0x330b   : > { %14721 = vmatmul.mubr.msk.f32.gmra.mrb[90].mxu1 %vm6816_vm2, %v7368_v15 }
0x330c   : > { %v16357_v16 = vpop.eup %16356  ;;  %14723 = vmatprep.mubr.msk.f32.mxu1 %vm16597_vm1, %v16598_v11 }
0x330d   : > { %v7369_v17 = vmul.f32 %v16357_v16, %v16351_v50 }
0x330f   : > { %14724 = vmatmul.mubr.msk.f32.gmra.mrb[92].mxu1 %vm6816_vm2, %v7369_v17 }
0x3310   : > { %14743 = vmatprep.mubr.msk.f32.mxu1 %vm16597_vm1, %v16598_v11 }
0x3313   : > { %14744 = vmatmul.mubr.msk.f32.vlgmr.msra.gmra.mrb[94].mxu1 %vm1619_vm3, %v17739_v59  ;;  %v12888_v59 = vld [vmem:[%s19068_s8 + $0xb0] sm:$0xff] }
0x3314   : > { %15816 = vmatpush3.bf16.msra.mxu1 %v15815_v21  ;;  %14746 = vmatprep.mubr.msk.f32.mxu1 %vm16597_vm1, %v16598_v11  ;;  %v15824_v8 = vpack.c.bf16 %v12889_v0, %v12888_v59 }
0x3315   : > { %15817 = vmatprep.subr.bf16.mxu1 %v16596_v10 }
0x3317   : > { %14747 = vmatmul.mubr.msk.f32.gmra.mrb[96].mxu1 %vm1619_vm3, %v17741_v63  ;;  %v12869_v63 = vld [vmem:[%s19067_s9 + $0x80] sm:$0xff] }
0x3318   : > { %15819 = vmatpush3.bf16.msra.mxu1 %v15818_v27  ;;  %14749 = vmatprep.mubr.msk.f32.mxu1 %vm16597_vm1, %v16598_v11 }
0x3319   : > { %15820 = vmatprep.subr.bf16.mxu1 %v16596_v10 }
0x331b   : > { %14750 = vmatmul.mubr.msk.f32.gmra.mrb[98].mxu1 %vm1619_vm3, %v17743_v4  ;;  %v12870_v4 = vld [vmem:[%s19067_s9 + $0x88] sm:$0xff] }
0x331c   : > { %15822 = vmatpush3.bf16.msra.mxu1 %v15821_v62  ;;  %14793 = vmatprep.mubr.msk.f32.mxu1 %vm16597_vm1, %v16598_v11  ;;  %v15803_v9 = vpack.c.bf16 %v12870_v4, %v12869_v63 }
0x331d   : > { %15823 = vmatprep.subr.bf16.mxu1 %v16596_v10 }
0x3320   : > { %15825 = vmatpush3.bf16.msra.mxu1 %v15824_v8 }
0x3321   : > { %15838 = vmatprep.subr.bf16.mxu1 %v16596_v10 }
0x3323   : > { %14794 = vmatmul.mubr.msk.f32.vlgmr.msra.gmra.mrb[100].mxu1 %vm6361_vm13, %v17554_v32 }
0x3324   : > { %14796 = vmatprep.mubr.msk.f32.mxu1 %vm16597_vm1, %v16598_v11 }
0x3327   : > { %14797 = vmatmul.mubr.msk.f32.gmra.mrb[102].mxu1 %vm6361_vm13, %v17565_v36 }
0x3328   : > { %14799 = vmatprep.mubr.msk.f32.mxu1 %vm16597_vm1, %v16598_v11 }
0x332b   : > { %14800 = vmatmul.mubr.msk.f32.gmra.mrb[104].mxu1 %vm6361_vm13, %v17578_v43 }
0x332c   : > { %14833 = vmatprep.mubr.msk.f32.mxu1 %vm16597_vm1, %v16598_v11 }
0x33da   : > { %v7448_v14 = vpop.f32.mrb[88].mxu1 }
0x33db   : > { %v14719_v31 = vpop.f32.mrb[89].mxu1  ;;  %14731 = vmatmul.mubr.msk.f32.vlgmr.msra.gmra.mrb[78].mxu0 %vm1619_vm3, %v7448_v14 }
0x33dc   : > { %15804 = vmatpush3.bf16.msra.mxu0 %v15803_v9  ;;  %14733 = vmatprep.mubr.msk.f32.mxu0 %vm16597_vm1, %v16598_v11  ;;  %v12878_v9 = vld [vmem:[%s19073_s14 + $0x2] ss:$0 sm:$0xff] }
0x33dd   : > { %15805 = vmatprep.subr.bf16.mxu0 %v16596_v10 }
0x33de   : > { %v7453_v37 = vpop.f32.mrb[90].mxu1 }
0x33df   : > { %v14722_v39 = vpop.f32.mrb[91].mxu1  ;;  %14734 = vmatmul.mubr.msk.f32.gmra.mrb[80].mxu0 %vm1619_vm3, %v7453_v37 }
0x33e0   : > { %15807 = vmatpush3.bf16.msra.mxu0 %v15806_v33  ;;  %14736 = vmatprep.mubr.msk.f32.mxu0 %vm16597_vm1, %v16598_v11 }
0x33e1   : > { %15808 = vmatprep.subr.bf16.mxu0 %v16596_v10 }
0x33e2   : > { %v7458_v41 = vpop.f32.mrb[92].mxu1 }
0x33e3   : > { %v14725_v42 = vpop.f32.mrb[93].mxu1  ;;  %14737 = vmatmul.mubr.msk.f32.gmra.mrb[82].mxu0 %vm1619_vm3, %v7458_v41 }
0x33e4   : > { %15810 = vmatpush3.bf16.msra.mxu0 %v15809_v35  ;;  %14768 = vmatprep.mubr.msk.f32.mxu0 %vm16597_vm1, %v16598_v11 }
0x33e5   : > { %15811 = vmatprep.subr.bf16.mxu0 %v16596_v10 }
0x33e6   : > { %v7629_v46 = vpop.f32.mrb[94].mxu1 }
0x33e7   : > { %v14745_v47 = vpop.f32.mrb[95].mxu1 }
0x33e8   : > { %15813 = vmatpush3.bf16.msra.mxu0 %v15812_v44 }
0x33e9   : > { %15826 = vmatprep.subr.bf16.mxu0 %v16596_v10 }
0x33ea   : > { %v7634_v50 = vpop.f32.mrb[96].mxu1 }
0x33eb   : > { %14769 = vmatmul.mubr.msk.f32.vlgmr.msra.gmra.mrb[84].mxu0 %vm6361_vm13, %v17554_v32  ;;  %v14748_v51 = vpop.f32.mrb[97].mxu1 }
0x33ec   : > { %15828 = vmatpush3.bf16.msra.mxu0 %v15827_v48  ;;  %14771 = vmatprep.mubr.msk.f32.mxu0 %vm16597_vm1, %v16598_v11 }
0x33ed   : > { %15829 = vmatprep.subr.bf16.mxu0 %v16596_v10 }
0x33ee   : > { %v7639_v55 = vpop.f32.mrb[98].mxu1 }
0x33ef   : > { %14772 = vmatmul.mubr.msk.f32.gmra.mrb[86].mxu0 %vm6361_vm13, %v17565_v36  ;;  %v14751_v58 = vpop.f32.mrb[99].mxu1 }
0x33f0   : > { %15831 = vmatpush3.bf16.msra.mxu0 %v15830_v52  ;;  %14774 = vmatprep.mubr.msk.f32.mxu0 %vm16597_vm1, %v16598_v11 }
0x33f1   : > { %15832 = vmatprep.subr.bf16.mxu0 %v16596_v10 }
0x33f3   : > { %14775 = vmatmul.mubr.msk.f32.gmra.mrb[88].mxu0 %vm6361_vm13, %v17578_v43 }
0x33f4   : > { %15834 = vmatpush3.bf16.msra.mxu0 %v15833_v60  ;;  %14818 = vmatprep.mubr.msk.f32.mxu0 %vm16597_vm1, %v16598_v11 }
0x33f5   : > { %15835 = vmatprep.subr.bf16.mxu0 %v16596_v10 }
0x33f6   : > { %v7823_v7 = vpop.f32.mrb[100].mxu1 }
0x33f7   : > { %v14795_v61 = vpop.f32.mrb[101].mxu1  ;;  %v7824_v16 = vadd.f32 %v12891_v28, %v7823_v7 }
0x33f8   : > { %15837 = vmatpush3.bf16.msra.mxu0 %v15836_v26 }
0x33f9   : > { %15842 = vmatprep.subr.bf16.mxu0 %v16596_v10 }
0x33fa   : > { %v7828_v15 = vpop.f32.mrb[102].mxu1 }
0x33fb   : > { %v7829_v17 = vadd.f32 %v12891_v28, %v7828_v15  ;;  %v14798_v18 = vpop.f32.mrb[103].mxu1  ;;  %14819 = vmatmul.mubr.msk.f32.vlgmr.msra.gmra.mrb[90].mxu0 %vm6361_vm13, %v17554_v32 }
0x33fc   : > { %14821 = vmatprep.mubr.msk.f32.mxu0 %vm16597_vm1, %v16598_v11 }
0x33fd   : > { %v15839_v20 = vpack.c.bf16 %v7829_v17, %v7824_v16 }
0x33fe   : > { %v7833_v21 = vpop.f32.mrb[104].mxu1 }
0x33ff   : > { %v14801_v19 = vpop.f32.mrb[105].mxu1  ;;  %14822 = vmatmul.mubr.msk.f32.gmra.mrb[92].mxu0 %vm6361_vm13, %v17565_v36  ;;  %15841 = vmatpush3.bf16.xpose.msk.msra.mxu1 %vm17610_vm15, %v15839_v20  ;;  %v7834_v22 = vadd.f32 %v12891_v28, %v7833_v21 }
0x3400   : > { %14824 = vmatprep.mubr.msk.f32.mxu0 %vm16597_vm1, %v16598_v11  ;;  %14831 = vmatprep.subr.mxu1 %v16598_v11 }
0x3403   : > { %14825 = vmatmul.mubr.msk.f32.gmra.mrb[94].mxu0 %vm6361_vm13, %v17578_v43 }
0x3404   : > { %14848 = vmatprep.mubr.msk.f32.mxu0 %vm16597_vm1, %v16598_v11 }
0x3407   : > { %14832 = vmatpush3.xpose.msk.msra.mxu1 %vm1619_vm3, %v7834_v22 }
0x3408   : > { %15845 = vmatprep.subr.bf16.mxu1 %v16596_v10 }
0x34ae   : > { %v7540_v27 = vpop.f32.mrb[78].mxu0 }
0x34af   : > { %v17892_v29 = vadd.f32 %v7629_v46, %v7540_v27  ;;  %v14732_v30 = vpop.f32.mrb[79].mxu0 }
0x34b2   : > { %v7545_v62 = vpop.f32.mrb[80].mxu0 }
0x34b3   : > { %v17894_v59 = vadd.f32 %v7634_v50, %v7545_v62  ;;  %v14735_v0 = vpop.f32.mrb[81].mxu0 }
0x34b4   : > { %v12918_v0 = vld [vmem:[%s19077_s19 + $0x20] sm:$0xff] }
0x34b6   : > { %v7550_v8 = vpop.f32.mrb[82].mxu0 }
0x34b7   : > { %v17896_v63 = vadd.f32 %v7639_v55, %v7550_v8  ;;  %v14738_v4 = vpop.f32.mrb[83].mxu0  ;;  %v12919_v8 = vld [vmem:[%s19077_s19 + $0x28] sm:$0xff] }
0x34b8   : > { %v15846_v4 = vpack.c.bf16 %v12919_v8, %v12918_v0 }
0x34be   : > { %v7726_v6 = vpop.f32.mrb[84].mxu0 }
0x34bf   : > { %v7727_v13 = vadd.f32 %v12878_v9, %v7726_v6  ;;  %v14770_v14 = vpop.f32.mrb[85].mxu0 }
0x34c0   : > { %v12923_v14 = vld [vmem:[%s19067_s9 + $0xc0] sm:$0xff] }
0x34c1   : > { %14834 = vmatmul.mubr.msk.f32.vlgmr.msra.gmra.mrb[106].mxu1 %vm1619_vm3, %v7727_v13 }
0x34c2   : > { %v7731_v31 = vpop.f32.mrb[86].mxu0  ;;  %14836 = vmatprep.mubr.msk.f32.mxu1 %vm16597_vm1, %v16598_v11  ;;  %15847 = vmatpush3.bf16.msra.mxu1 %v15846_v4 }
0x34c3   : > { %v7732_v33 = vadd.f32 %v12878_v9, %v7731_v31  ;;  %v14773_v3 = vpop.f32.mrb[87].mxu0  ;;  %15860 = vmatprep.subr.bf16.mxu1 %v16596_v10  ;;  %v12924_v31 = vld [vmem:[%s19067_s9 + $0xc8] sm:$0xff] }
0x34c4   : > { %v15849_v3 = vpack.c.bf16 %v12924_v31, %v12923_v14 }
0x34c5   : > { %14837 = vmatmul.mubr.msk.f32.gmra.mrb[108].mxu1 %vm1619_vm3, %v7732_v33 }
0x34c6   : > { %v7736_v34 = vpop.f32.mrb[88].mxu0  ;;  %14839 = vmatprep.mubr.msk.f32.mxu1 %vm16597_vm1, %v16598_v11 }
0x34c7   : > { %v7737_v37 = vadd.f32 %v12878_v9, %v7736_v34  ;;  %v14776_v39 = vpop.f32.mrb[89].mxu0 }
0x34c8   : > { %v12926_v39 = vld [vmem:[%s19067_s9 + $0xd8] sm:$0xff] }
0x34c9   : > { %14840 = vmatmul.mubr.msk.f32.gmra.mrb[110].mxu1 %vm1619_vm3, %v7737_v37  ;;  %v12925_v37 = vld [vmem:[%s19067_s9 + $0xd0] sm:$0xff] }
0x34ca   : > { %14861 = vmatprep.mubr.msk.f32.mxu1 %vm16597_vm1, %v16598_v11 }
0x34ce   : > { %v7920_v35 = vpop.f32.mrb[90].mxu0 }
0x34cf   : > { %v14820_v57 = vpop.f32.mrb[91].mxu0  ;;  %v7921_v42 = vadd.f32 %v12904_v40, %v7920_v35 }
0x34d0   : > { %v15852_v57 = vpack.c.bf16 %v12926_v39, %v12925_v37 }
0x34d2   : > { %v7925_v41 = vpop.f32.mrb[92].mxu0 }
0x34d3   : > { %v7926_v44 = vadd.f32 %v12904_v40, %v7925_v41  ;;  %v14823_v45 = vpop.f32.mrb[93].mxu0  ;;  %v12927_v41 = vld [vmem:[%s19067_s9 + $0xe0] sm:$0xff] }
0x34d5   : > { %v15843_v1 = vpack.c.bf16 %v7926_v44, %v7921_v42  ;;  %v12928_v42 = vld [vmem:[%s19067_s9 + $0xe8] sm:$0xff] }
0x34d6   : > { %v7930_v46 = vpop.f32.mrb[94].mxu0  ;;  %v15855_v45 = vpack.c.bf16 %v12928_v42, %v12927_v41 }
0x34d7   : > { %v14826_v47 = vpop.f32.mrb[95].mxu0  ;;  %15844 = vmatpush3.bf16.msra.mxu0 %v15843_v1  ;;  %v7931_v48 = vadd.f32 %v12904_v40, %v7930_v46  ;;  %v12929_v46 = vld [vmem:[%s19067_s9 + $0xf0] sm:$0xff] }
0x34d8   : > { %14846 = vmatprep.subr.mxu0 %v16598_v11  ;;  %v12930_v47 = vld [vmem:[%s19067_s9 + $0xf8] sm:$0xff] }
0x34db   : > { %14847 = vmatpush3.msk.msra.mxu0 %vm6345_vm12, %v7931_v48  ;;  %v15858_v48 = vpack.c.bf16 %v12930_v47, %v12929_v46 }
0x34dc   : > { %15848 = vmatprep.subr.bf16.mxu0 %v16596_v10 }
0x3594   : > { %v8018_v38 = vpop.f32.mrb[106].mxu1 }
0x3595   : > { %v8032_v49 = vmul.f32 0.25, %v8018_v38  ;;  %v14835_v50 = vpop.f32.mrb[107].mxu1  ;;  %v12949_v38 = vld [vmem:[%s19070_s3 + $0xc0] sm:$0xff] }
0x3597   : > { %v8035_v51 = vsel %vm6816_vm2, %v8032_v49, -inf }
0x3598   : > { %8036 = vmax.xlane.f32.xlu0 %v8035_v51  ;;  %v8023_v52 = vpop.f32.mrb[108].mxu1  ;;  %v12951_v51 = vld [vmem:[%s19070_s3 + $0xd0] sm:$0xff] }
0x3599   : > { %v8033_v53 = vmul.f32 0.25, %v8023_v52  ;;  %v14838_v54 = vpop.f32.mrb[109].mxu1  ;;  %v12952_v52 = vld [vmem:[%s19070_s3 + $0xd8] sm:$0xff] }
0x359a   : > { %v12953_v54 = vld [vmem:[%s19070_s3 + $0xe0] sm:$0xff] }
0x359b   : > { %v8038_v55 = vsel %vm6816_vm2, %v8033_v53, -inf }
0x359c   : > { %8039 = vmax.xlane.f32.xlu1 %v8038_v55  ;;  %v8028_v58 = vpop.f32.mrb[110].mxu1  ;;  %v12954_v55 = vld [vmem:[%s19070_s3 + $0xe8] sm:$0xff] }
0x359d   : > { %v8034_v60 = vmul.f32 0.25, %v8028_v58  ;;  %v14841_v2 = vpop.f32.mrb[111].mxu1  ;;  %v15879_v58 = vpack.c.bf16 %v12954_v55, %v12953_v54 }
0x359e   : > { %v12956_v2 = vld [vmem:[%s19070_s3 + $0xf8] sm:$0xff] }
0x359f   : > { %v8041_v5 = vsel %vm6823_vm4, %v8034_v60, -inf }
0x35a0   : > { %8042 = vmax.xlane.f32.xlu0 %v8041_v5 }
0x3625   : > { %v8037_v26 = vpop.xlane.xlu0 %8036 }
0x3626   : > { %v8044_v7 = vsub.f32 %v8032_v49, %v8037_v26  ;;  %v12950_v49 = vld [vmem:[%s19070_s3 + $0xc8] sm:$0xff]  ;;  %v12936_v26 = vld [vmem:[%s19068_s8 + $0xc0] sm:$0xff] }
0x3627   : > { %v15873_v50 = vpack.c.bf16 %v12950_v49, %v12949_v38 }
0x3628   : > { %v8047_v61 = vmul.f32 1.442695, %v8044_v7  ;;  %v12937_v7 = vld [vmem:[%s19068_s8 + $0xc8] sm:$0xff] }
0x3629   : > { %v8040_v28 = vpop.xlane.xlu1 %8039 }
0x362a   : > { %16358 = vpow2.f32 %v8047_v61  ;;  %v8045_v15 = vsub.f32 %v8033_v53, %v8040_v28  ;;  %v15876_v53 = vpack.c.bf16 %v12952_v52, %v12951_v51  ;;  %v15861_v61 = vpack.c.bf16 %v12937_v7, %v12936_v26  ;;  %v12938_v28 = vld [vmem:[%s19068_s8 + $0xd0] sm:$0xff]  ;;  %v12945_v52 = vld [vmem:[%s19072_s12 + $0x3] ss:$0 sm:$0xff] }
0x362c   : > { %v8049_v16 = vmul.f32 1.442695, %v8045_v15  ;;  %v12939_v15 = vld [vmem:[%s19068_s8 + $0xd8] sm:$0xff] }
0x362d   : > { %v8043_v17 = vpop.xlane.xlu0 %8042 }
0x362e   : > { %16360 = vpow2.f32 %v8049_v16  ;;  %v8046_v18 = vsub.f32 %v8034_v60, %v8043_v17  ;;  %v12955_v60 = vld [vmem:[%s19070_s3 + $0xf0] sm:$0xff] }
0x362f   : > { %v15882_v5 = vpack.c.bf16 %v12956_v2, %v12955_v60 }
0x3630   : > { %v8051_v20 = vmul.f32 1.442695, %v8046_v18  ;;  %v15864_v18 = vpack.c.bf16 %v12939_v15, %v12938_v28 }
0x3632   : > { %16362 = vpow2.f32 %v8051_v20  ;;  %v12940_v20 = vld [vmem:[%s19068_s8 + $0xe0] sm:$0xff] }
0x3634   : > { %v16359_v21 = vpop.eup %16358 }
0x3635   : > { %v8053_v19 = vsel %vm6816_vm2, %v16359_v21, 0.0 }
0x3636   : > { %8054 = vadd.xlane.f32.xlu1 %v8053_v19 }
0x3638   : > { %v16361_v22 = vpop.eup %16360 }
0x3639   : > { %v8056_v27 = vsel %vm6816_vm2, %v16361_v22, 0.0 }
0x363a   : > { %8057 = vadd.xlane.f32.xlu0 %v8056_v27 }
0x363c   : > { %v16363_v30 = vpop.eup %16362 }
0x363d   : > { %v8059_v62 = vsel %vm6823_vm4, %v16363_v30, 0.0 }
0x363e   : > { %8060 = vadd.xlane.f32.xlu1 %v8059_v62  ;;  %v12943_v62 = vld [vmem:[%s19068_s8 + $0xf8] sm:$0xff] }
0x36c3   : > { %v8055_v9 = vpop.xlane.xlu1 %8054 }
0x36c4   : > { %16364 = vrcp.f32 %v8055_v9 }
0x36c7   : > { %v8058_v6 = vpop.xlane.xlu0 %8057 }
0x36c8   : > { %16366 = vrcp.f32 %v8058_v6 }
0x36cb   : > { %v8061_v13 = vpop.xlane.xlu1 %8060 }
0x36cc   : > { %16368 = vrcp.f32 %v8061_v13 }
0x36ce   : > { %v16365_v33 = vpop.eup %16364 }
0x36cf   : > { %v8065_v34 = vmul.f32 %v16365_v33, %v16359_v21  ;;  %v12941_v21 = vld [vmem:[%s19068_s8 + $0xe8] sm:$0xff] }
0x36d0   : > { %v15867_v27 = vpack.c.bf16 %v12941_v21, %v12940_v20 }
0x36d1   : > { %14849 = vmatmul.mubr.msk.f32.vlgmr.msra.gmra.mrb[96].mxu0 %vm6816_vm2, %v8065_v34  ;;  %v12958_v34 = vld [vmem:[%s19076_s17 + $0x3] ss:$0 sm:$0xff] }
0x36d2   : > { %v16367_v35 = vpop.eup %16366  ;;  %15850 = vmatpush3.bf16.msra.mxu0 %v15849_v3  ;;  %14851 = vmatprep.mubr.msk.f32.mxu0 %vm16597_vm1, %v16598_v11 }
0x36d3   : > { %15851 = vmatprep.subr.bf16.mxu0 %v16596_v10  ;;  %v8066_v40 = vmul.f32 %v16367_v35, %v16361_v22 }
0x36d5   : > { %14852 = vmatmul.mubr.msk.f32.gmra.mrb[98].mxu0 %vm6816_vm2, %v8066_v40 }
0x36d6   : > { %v16369_v44 = vpop.eup %16368  ;;  %15853 = vmatpush3.bf16.msra.mxu0 %v15852_v57  ;;  %14854 = vmatprep.mubr.msk.f32.mxu0 %vm16597_vm1, %v16598_v11 }
0x36d7   : > { %15854 = vmatprep.subr.bf16.mxu0 %v16596_v10  ;;  %v8067_v1 = vmul.f32 %v16369_v44, %v16363_v30  ;;  %v12942_v30 = vld [vmem:[%s19068_s8 + $0xf0] sm:$0xff] }
0x36d8   : > { %v15870_v4 = vpack.c.bf16 %v12943_v62, %v12942_v30 }
0x36d9   : > { %14855 = vmatmul.mubr.msk.f32.gmra.mrb[100].mxu0 %vm6816_vm2, %v8067_v1 }
0x36da   : > { %15856 = vmatpush3.bf16.msra.mxu0 %v15855_v45  ;;  %14886 = vmatprep.mubr.msk.f32.mxu0 %vm16597_vm1, %v16598_v11 }
0x36db   : > { %15857 = vmatprep.subr.bf16.mxu0 %v16596_v10 }
0x36de   : > { %15859 = vmatpush3.bf16.msra.mxu0 %v15858_v48 }
0x36df   : > { %15872 = vmatprep.subr.bf16.mxu0 %v16596_v10 }
0x36e1   : > { %14887 = vmatmul.mubr.msk.f32.vlgmr.msra.gmra.mrb[102].mxu0 %vm6361_vm13, %v17554_v32 }
0x36e2   : > { %15874 = vmatpush3.bf16.msra.mxu0 %v15873_v50  ;;  %14889 = vmatprep.mubr.msk.f32.mxu0 %vm16597_vm1, %v16598_v11 }
0x36e3   : > { %15875 = vmatprep.subr.bf16.mxu0 %v16596_v10 }
0x36e5   : > { %14890 = vmatmul.mubr.msk.f32.gmra.mrb[104].mxu0 %vm6361_vm13, %v17565_v36 }
0x36e6   : > { %15877 = vmatpush3.bf16.msra.mxu0 %v15876_v53  ;;  %14892 = vmatprep.mubr.msk.f32.mxu0 %vm16597_vm1, %v16598_v11 }
0x36e7   : > { %15878 = vmatprep.subr.bf16.mxu0 %v16596_v10 }
0x36e9   : > { %14893 = vmatmul.mubr.msk.f32.gmra.mrb[106].mxu0 %vm6361_vm13, %v17578_v43 }
0x36ea   : > { %15880 = vmatpush3.bf16.msra.mxu0 %v15879_v58  ;;  %14936 = vmatprep.mubr.msk.f32.mxu0 %vm16597_vm1, %v16598_v11 }
0x36eb   : > { %15881 = vmatprep.subr.bf16.mxu0 %v16596_v10 }
0x36ee   : > { %15883 = vmatpush3.bf16.msra.mxu0 %v15882_v5 }
0x36ef   : > { %15888 = vmatprep.subr.bf16.mxu0 %v16596_v10 }
0x36f1   : > { %14937 = vmatmul.mubr.msk.f32.vlgmr.msra.gmra.mrb[108].mxu0 %vm6361_vm13, %v17554_v32 }
0x36f2   : > { %14939 = vmatprep.mubr.msk.f32.mxu0 %vm16597_vm1, %v16598_v11 }
0x36f5   : > { %14940 = vmatmul.mubr.msk.f32.gmra.mrb[110].mxu0 %vm6361_vm13, %v17565_v36 }
0x36f6   : > { %14942 = vmatprep.mubr.msk.f32.mxu0 %vm16597_vm1, %v16598_v11 }
0x36f9   : > { %14943 = vmatmul.mubr.msk.f32.gmra.mrb[112].mxu0 %vm6361_vm13, %v17578_v43 }
0x36fa   : > { %14966 = vmatprep.mubr.msk.f32.mxu0 %vm16597_vm1, %v16598_v11 }
0x37a4   : > { %v8146_v16 = vpop.f32.mrb[96].mxu0 }
0x37a5   : > { %v14850_v17 = vpop.f32.mrb[97].mxu0  ;;  %14862 = vmatmul.mubr.msk.f32.vlgmr.msra.gmra.mrb[112].mxu1 %vm1619_vm3, %v8146_v16 }
0x37a6   : > { %15862 = vmatpush3.bf16.msra.mxu1 %v15861_v61  ;;  %14864 = vmatprep.mubr.msk.f32.mxu1 %vm16597_vm1, %v16598_v11 }
0x37a7   : > { %15863 = vmatprep.subr.bf16.mxu1 %v16596_v10 }
0x37a8   : > { %v8151_v19 = vpop.f32.mrb[98].mxu0 }
0x37a9   : > { %v14853_v22 = vpop.f32.mrb[99].mxu0  ;;  %14865 = vmatmul.mubr.msk.f32.gmra.mrb[114].mxu1 %vm1619_vm3, %v8151_v19 }
0x37aa   : > { %15865 = vmatpush3.bf16.msra.mxu1 %v15864_v18  ;;  %14867 = vmatprep.mubr.msk.f32.mxu1 %vm16597_vm1, %v16598_v11 }
0x37ab   : > { %15866 = vmatprep.subr.bf16.mxu1 %v16596_v10 }
0x37ac   : > { %v8156_v0 = vpop.f32.mrb[100].mxu0 }
0x37ad   : > { %v14856_v8 = vpop.f32.mrb[101].mxu0  ;;  %14868 = vmatmul.mubr.msk.f32.gmra.mrb[116].mxu1 %vm1619_vm3, %v8156_v0 }
0x37ae   : > { %15868 = vmatpush3.bf16.msra.mxu1 %v15867_v27  ;;  %14911 = vmatprep.mubr.msk.f32.mxu1 %vm16597_vm1, %v16598_v11 }
0x37af   : > { %15869 = vmatprep.subr.bf16.mxu1 %v16596_v10 }
0x37b2   : > { %15871 = vmatpush3.bf16.msra.mxu1 %v15870_v4 }
0x37b3   : > { %15884 = vmatprep.subr.bf16.mxu1 %v16596_v10 }
0x37b4   : > { %v8338_v9 = vpop.f32.mrb[102].mxu0 }
0x37b5   : > { %v14888_v6 = vpop.f32.mrb[103].mxu0  ;;  %14912 = vmatmul.mubr.msk.f32.vlgmr.msra.gmra.mrb[118].mxu1 %vm6361_vm13, %v17554_v32 }
0x37b6   : > { %14914 = vmatprep.mubr.msk.f32.mxu1 %vm16597_vm1, %v16598_v11 }
0x37b8   : > { %v8343_v13 = vpop.f32.mrb[104].mxu0 }
0x37b9   : > { %v14891_v14 = vpop.f32.mrb[105].mxu0  ;;  %14915 = vmatmul.mubr.msk.f32.gmra.mrb[120].mxu1 %vm6361_vm13, %v17565_v36 }
0x37ba   : > { %14917 = vmatprep.mubr.msk.f32.mxu1 %vm16597_vm1, %v16598_v11 }
0x37bc   : > { %v8348_v31 = vpop.f32.mrb[106].mxu0 }
0x37bd   : > { %v14894_v33 = vpop.f32.mrb[107].mxu0  ;;  %14918 = vmatmul.mubr.msk.f32.gmra.mrb[122].mxu1 %vm6361_vm13, %v17578_v43 }
0x37be   : > { %14951 = vmatprep.mubr.msk.f32.mxu1 %vm16597_vm1, %v16598_v11 }
0x37c4   : > { %v8532_v32 = vpop.f32.mrb[108].mxu0 }
0x37c5   : > { %v14938_v3 = vpop.f32.mrb[109].mxu0  ;;  %v8533_v39 = vadd.f32 %v12958_v34, %v8532_v32 }
0x37c8   : > { %v8537_v37 = vpop.f32.mrb[110].mxu0 }
0x37c9   : > { %v8538_v35 = vadd.f32 %v12958_v34, %v8537_v37  ;;  %v14941_v57 = vpop.f32.mrb[111].mxu0 }
0x37ca   : > { %v12973_v57 = vld [vmem:[%s19077_s19 + $0x38] sm:$0xff] }
0x37cb   : > { %v15889_v40 = vpack.c.bf16 %v8538_v35, %v8533_v39  ;;  %v12972_v35 = vld [vmem:[%s19077_s19 + $0x30] sm:$0xff] }
0x37cc   : > { %v8542_v36 = vpop.f32.mrb[112].mxu0 }
0x37cd   : > { %v14944_v41 = vpop.f32.mrb[113].mxu0  ;;  %15890 = vmatpush3.bf16.msra.mxu0 %v15889_v40  ;;  %v8543_v42 = vadd.f32 %v12958_v34, %v8542_v36  ;;  %v15892_v40 = vpack.c.bf16 %v12973_v57, %v12972_v35  ;;  %v8943_v57 = vld [vmem:[%s19079_s22 + $0x20] sm:$0xff] }
0x37ce   : > { %14964 = vmatprep.subr.mxu0 %v16598_v11 }
0x37d1   : > { %14965 = vmatpush3.msk.msra.mxu0 %vm6345_vm12, %v8543_v42 }
0x3878   : > { %v8238_v43 = vpop.f32.mrb[112].mxu1 }
0x3879   : > { %v18015_v44 = vadd.f32 %v8238_v43, %v17892_v29  ;;  %v14863_v45 = vpop.f32.mrb[113].mxu1 }
0x387c   : > { %v8243_v1 = vpop.f32.mrb[114].mxu1 }
0x387d   : > { %v18018_v46 = vadd.f32 %v8243_v1, %v17894_v59  ;;  %v14866_v47 = vpop.f32.mrb[115].mxu1  ;;  %v12932_v59 = vld [vmem:[%s19073_s14 + $0x3] ss:$0 sm:$0xff] }
0x387e   : > { %v8344_v26 = vadd.f32 %v12932_v59, %v8343_v13  ;;  %v8349_v7 = vadd.f32 %v12932_v59, %v8348_v31 }
0x3880   : > { %v8248_v48 = vpop.f32.mrb[116].mxu1 }
0x3881   : > { %v18021_v38 = vadd.f32 %v8248_v48, %v17896_v63  ;;  %v14869_v49 = vpop.f32.mrb[117].mxu1  ;;  %v8339_v63 = vadd.f32 %v12932_v59, %v8338_v9 }
0x3888   : > { %v8435_v50 = vpop.f32.mrb[118].mxu1 }
0x3889   : > { %v14913_v51 = vpop.f32.mrb[119].mxu1  ;;  %v8436_v54 = vadd.f32 %v12945_v52, %v8435_v50 }
0x388c   : > { %v8440_v53 = vpop.f32.mrb[120].mxu1 }
0x388d   : > { %v8441_v55 = vadd.f32 %v12945_v52, %v8440_v53  ;;  %v14916_v29 = vpop.f32.mrb[121].mxu1 }
0x388f   : > { %v15885_v58 = vpack.c.bf16 %v8441_v55, %v8436_v54 }
0x3890   : > { %v8445_v60 = vpop.f32.mrb[122].mxu1 }
0x3891   : > { %v14919_v2 = vpop.f32.mrb[123].mxu1  ;;  %15887 = vmatpush3.bf16.xpose.msk.msra.mxu1 %vm17610_vm15, %v15885_v58  ;;  %v8446_v5 = vadd.f32 %v12945_v52, %v8445_v60 }
0x3892   : > { %14949 = vmatprep.subr.mxu1 %v16598_v11  ;;  %v12977_v2 = vld [vmem:[%s19078_s21] ss:$0 sm:$0xff] }
0x3899   : > { %14950 = vmatpush3.xpose.msk.msra.mxu1 %vm1619_vm3, %v8446_v5 }
0x389a   : > { %15891 = vmatprep.subr.bf16.mxu1 %v16596_v10 }
0x389c   : > { %14952 = vmatmul.mubr.msk.f32.vlgmr.msra.gmra.mrb[124].mxu1 %vm1619_vm3, %v8339_v63 }
0x389d   : > { %14954 = vmatprep.mubr.msk.f32.mxu1 %vm16597_vm1, %v16598_v11  ;;  %15893 = vmatpush3.bf16.msra.mxu1 %v15892_v40  ;;  %v8945_v40 = vld [vmem:[%s19079_s22 + $0x30] sm:$0xff] }
0x38a0   : > { %14955 = vmatmul.mubr.msk.f32.gmra.mrb[126].mxu1 %vm1619_vm3, %v8344_v26 }
0x38a1   : > { %14957 = vmatprep.mubr.msk.f32.mxu1 %vm16597_vm1, %v16598_v11 }
0x38a4   : > { %14958 = vmatmul.mubr.msk.f32.gmra.mrb[128].mxu1 %vm1619_vm3, %v8349_v7 }
0x38a5   : > { %14979 = vmatprep.mubr.msk.f32.mxu1 %vm16597_vm1, %v16598_v11 }
0x396f   : > { %v8630_v61 = vpop.f32.mrb[124].mxu1 }
0x3970   : > { %v8644_v28 = vmul.f32 0.25, %v8630_v61  ;;  %v14953_v15 = vpop.f32.mrb[125].mxu1 }
0x3972   : > { %v8647_v16 = vsel %vm6816_vm2, %v8644_v28, -inf }
0x3973   : > { %8648 = vmax.xlane.f32.xlu0 %v8647_v16  ;;  %v8635_v17 = vpop.f32.mrb[126].mxu1 }
0x3974   : > { %v8645_v18 = vmul.f32 0.25, %v8635_v17  ;;  %v14956_v20 = vpop.f32.mrb[127].mxu1 }
0x3976   : > { %v8650_v21 = vsel %vm6816_vm2, %v8645_v18, -inf }
0x3977   : > { %8651 = vmax.xlane.f32.xlu1 %v8650_v21  ;;  %v8640_v19 = vpop.f32.mrb[128].mxu1 }
0x3978   : > { %v8646_v22 = vmul.f32 0.25, %v8640_v19  ;;  %v14959_v27 = vpop.f32.mrb[129].mxu1 }
0x397a   : > { %v8653_v30 = vsel %vm6823_vm4, %v8646_v22, -inf }
0x397b   : > { %8654 = vmax.xlane.f32.xlu0 %v8653_v30 }
0x3a00   : > { %v8649_v62 = vpop.xlane.xlu0 %8648 }
0x3a01   : > { %v8656_v0 = vsub.f32 %v8644_v28, %v8649_v62 }
0x3a03   : > { %v8659_v8 = vmul.f32 1.442695, %v8656_v0 }
0x3a04   : > { %v8652_v4 = vpop.xlane.xlu1 %8651 }
0x3a05   : > { %16370 = vpow2.f32 %v8659_v8  ;;  %v8657_v9 = vsub.f32 %v8645_v18, %v8652_v4 }
0x3a07   : > { %v8661_v6 = vmul.f32 1.442695, %v8657_v9 }
0x3a08   : > { %v8655_v13 = vpop.xlane.xlu0 %8654 }
0x3a09   : > { %16372 = vpow2.f32 %v8661_v6  ;;  %v8658_v14 = vsub.f32 %v8646_v22, %v8655_v13 }
0x3a0b   : > { %v8663_v31 = vmul.f32 1.442695, %v8658_v14  ;;  %v8940_v14 = vld [vmem:[%s19079_s22 + $0x8] sm:$0xff] }
0x3a0d   : > { %16374 = vpow2.f32 %v8663_v31  ;;  %v8942_v31 = vld [vmem:[%s19079_s22 + $0x18] sm:$0xff] }
0x3a0f   : > { %v16371_v33 = vpop.eup %16370 }
0x3a10   : > { %v8665_v32 = vsel %vm6816_vm2, %v16371_v33, 0.0 }
0x3a11   : > { %8666 = vadd.xlane.f32.xlu1 %v8665_v32  ;;  %v8939_v32 = vld [vmem:[%s19079_s22] sm:$0xff] }
0x3a13   : > { %v16373_v3 = vpop.eup %16372 }
0x3a14   : > { %v8668_v34 = vsel %vm6816_vm2, %v16373_v3, 0.0 }
0x3a15   : > { %8669 = vadd.xlane.f32.xlu0 %v8668_v34 }
0x3a17   : > { %v16375_v37 = vpop.eup %16374 }
0x3a18   : > { %v8671_v39 = vsel %vm6823_vm4, %v16375_v37, 0.0 }
0x3a19   : > { %8672 = vadd.xlane.f32.xlu1 %v8671_v39  ;;  %v8946_v39 = vld [vmem:[%s19079_s22 + $0x38] sm:$0xff] }
0x3a9e   : > { %v8667_v36 = vpop.xlane.xlu1 %8666 }
0x3a9f   : > { %16376 = vrcp.f32 %v8667_v36  ;;  %v15900_v36 = vpack.c.bf16 %v8945_v40, %v8943_v57  ;;  %v9136_v57 = vld [vmem:[%s19080_s24 + $0xb8] sm:$0xff] }
0x3aa2   : > { %v8670_v41 = vpop.xlane.xlu0 %8669 }
0x3aa3   : > { %16378 = vrcp.f32 %v8670_v41  ;;  %v8948_v41 = vld [vmem:[%s19079_s22 + $0x48] sm:$0xff] }
0x3aa6   : > { %v8673_v42 = vpop.xlane.xlu1 %8672 }
0x3aa7   : > { %16380 = vrcp.f32 %v8673_v42  ;;  %v8950_v42 = vld [vmem:[%s19079_s22 + $0x58] sm:$0xff] }
0x3aa9   : > { %v16377_v43 = vpop.eup %16376 }
0x3aaa   : > { %v8677_v45 = vmul.f32 %v16377_v43, %v16371_v33  ;;  %v15894_v33 = vpack.c.bf16 %v8942_v31, %v8940_v14  ;;  %v15902_v43 = vpack.c.bf16 %v8950_v42, %v8948_v41  ;;  %v9116_v14 = vld [vmem:[%s19080_s24 + $0x18] sm:$0xff] }
0x3aab   : > { %v9120_v41 = vld [vmem:[%s19080_s24 + $0x38] sm:$0xff] }
0x3aac   : > { %14967 = vmatmul.mubr.msk.f32.vlgmr.msra.gmra.mrb[114].mxu0 %vm6816_vm2, %v8677_v45  ;;  %15895 = vmatprep.subr.bf16.mxu0 %v15894_v33  ;;  %v8947_v45 = vld [vmem:[%s19079_s22 + $0x40] sm:$0xff] }
0x3aad   : > { %v16379_v1 = vpop.eup %16378  ;;  %14969 = vmatprep.mubr.msk.f32.mxu0 %vm16597_vm1, %v16598_v11  ;;  %v9133_v33 = vld [vmem:[%s19080_s24 + $0xa0] sm:$0xff] }
0x3aae   : > { %v8678_v47 = vmul.f32 %v16379_v1, %v16373_v3  ;;  %v8941_v3 = vld [vmem:[%s19079_s22 + $0x10] sm:$0xff] }
0x3aaf   : > { %v15896_v34 = vpack.c.bf16 %v8941_v3, %v8939_v32  ;;  %v8949_v1 = vld [vmem:[%s19079_s22 + $0x50] sm:$0xff]  ;;  %v9134_v32 = vld [vmem:[%s19080_s24 + $0xa8] sm:$0xff] }
0x3ab0   : > { %14970 = vmatmul.mubr.msk.f32.gmra.mrb[116].mxu0 %vm6816_vm2, %v8678_v47  ;;  %v15904_v47 = vpack.c.bf16 %v8949_v1, %v8947_v45  ;;  %v15918_v3 = vpack.c.bf16 %v9134_v32, %v9133_v33  ;;  %v9138_v45 = vld [vmem:[%s19080_s24 + $0xc8] sm:$0xff] }
0x3ab1   : > { %v16381_v48 = vpop.eup %16380  ;;  %14972 = vmatprep.mubr.msk.f32.mxu0 %vm16597_vm1, %v16598_v11  ;;  %15897 = vmatpush1.bf16.msra.mxu0 %v15896_v34  ;;  %v9117_v34 = vld [vmem:[%s19080_s24 + $0x20] sm:$0xff] }
0x3ab2   : > { %v8679_v49 = vmul.f32 %v16381_v48, %v16375_v37  ;;  %v8944_v37 = vld [vmem:[%s19079_s22 + $0x28] sm:$0xff] }
0x3ab3   : > { %v15898_v35 = vpack.c.bf16 %v8946_v39, %v8944_v37  ;;  %v8952_v48 = vld [vmem:[%s19079_s22 + $0x68] sm:$0xff] }
0x3ab4   : > { %14973 = vmatmul.mubr.msk.f32.gmra.mrb[118].mxu0 %vm6816_vm2, %v8679_v49  ;;  %v8954_v49 = vld [vmem:[%s19079_s22 + $0x78] sm:$0xff]  ;;  %v9118_v37 = vld [vmem:[%s19080_s24 + $0x28] sm:$0xff] }
0x3ab5   : > { %9040 = vmatprep.mubr.f32.mxu0 %v16598_v11  ;;  %15899 = vmatprep.subr.bf16.mxu0 %v15898_v35  ;;  %v15920_v39 = vpack.c.bf16 %v9118_v37, %v9117_v34  ;;  %v9135_v35 = vld [vmem:[%s19080_s24 + $0xb0] sm:$0xff] }
0x3ab6   : > { %15901 = vmatpush1.bf16.msra.mxu0 %v15900_v36  ;;  %v15922_v40 = vpack.c.bf16 %v9136_v57, %v9135_v35  ;;  %v9119_v36 = vld [vmem:[%s19080_s24 + $0x30] sm:$0xff] }
0x3ab7   : > { %15903 = vmatprep.subr.bf16.mxu0 %v15902_v43  ;;  %v15924_v42 = vpack.c.bf16 %v9120_v41, %v9119_v36  ;;  %v9137_v43 = vld [vmem:[%s19080_s24 + $0xc0] sm:$0xff] }
0x3ab8   : > { %v15926_v1 = vpack.c.bf16 %v9138_v45, %v9137_v43 }
0x3aba   : > { %15905 = vmatpush1.bf16.msra.mxu0 %v15904_v47  ;;  %v9121_v47 = vld [vmem:[%s19080_s24 + $0x40] sm:$0xff] }
0x3b7f   : > { %v8758_v50 = vpop.f32.mrb[114].mxu0 }
0x3b80   : > { %v14968_v51 = vpop.f32.mrb[115].mxu0  ;;  %14980 = vmatmul.mubr.msk.f32.vlgmr.msra.gmra.mrb[130].mxu1 %vm1619_vm3, %v8758_v50  ;;  %v15906_v50 = vpack.c.bf16 %v8954_v49, %v8952_v48  ;;  %v9122_v48 = vld [vmem:[%s19080_s24 + $0x48] sm:$0xff] }
0x3b81   : > { %14982 = vmatprep.mubr.msk.f32.mxu1 %vm16597_vm1, %v16598_v11  ;;  %v8951_v51 = vld [vmem:[%s19079_s22 + $0x60] sm:$0xff]  ;;  %v15928_v49 = vpack.c.bf16 %v9122_v48, %v9121_v47 }
0x3b82   : > { %15907 = vmatprep.subr.bf16.mxu0 %v15906_v50  ;;  %v9139_v50 = vld [vmem:[%s19080_s24 + $0xd0] sm:$0xff] }
0x3b83   : > { %v8763_v52 = vpop.f32.mrb[116].mxu0 }
0x3b84   : > { %v14971_v53 = vpop.f32.mrb[117].mxu0  ;;  %14983 = vmatmul.mubr.msk.f32.gmra.mrb[132].mxu1 %vm1619_vm3, %v8763_v52  ;;  %v8953_v52 = vld [vmem:[%s19079_s22 + $0x70] sm:$0xff] }
0x3b85   : > { %14985 = vmatprep.mubr.msk.f32.mxu1 %vm16597_vm1, %v16598_v11  ;;  %v15908_v53 = vpack.c.bf16 %v8953_v52, %v8951_v51  ;;  %v9140_v51 = vld [vmem:[%s19080_s24 + $0xd8] sm:$0xff] }
0x3b86   : > { %v15930_v52 = vpack.c.bf16 %v9140_v51, %v9139_v50 }
0x3b87   : > { %v8768_v54 = vpop.f32.mrb[118].mxu0  ;;  %15909 = vmatpush1.bf16.msra.mxu0 %v15908_v53  ;;  %v9123_v53 = vld [vmem:[%s19080_s24 + $0x50] sm:$0xff] }
0x3b88   : > { %v14974_v55 = vpop.f32.mrb[119].mxu0  ;;  %14986 = vmatmul.mubr.msk.f32.gmra.mrb[134].mxu1 %vm1619_vm3, %v8768_v54  ;;  %15942 = vmatprep.subr.bf16.mxu0 %v16596_v10  ;;  %v9129_v54 = vld [vmem:[%s19080_s24 + $0x80] sm:$0xff] }
0x3b89   : > { %v9130_v55 = vld [vmem:[%s19080_s24 + $0x88] sm:$0xff] }
0x3c53   : > { %v8850_v29 = vpop.f32.mrb[130].mxu1 }
0x3c54   : > { %v8864_v58 = vadd.f32 %v8850_v29, %v18015_v44  ;;  %v14981_v60 = vpop.f32.mrb[131].mxu1  ;;  %v9113_v29 = vld [vmem:[%s19080_s24] sm:$0xff] }
0x3c55   : > { %v9114_v60 = vld [vmem:[%s19080_s24 + $0x8] sm:$0xff] }
0x3c56   : > { %v8867_v59 = vadd.f32 %v8864_v58, %v17494_v23  ;;  %v15910_v58 = vpack.c.bf16 %v9130_v55, %v9129_v54  ;;  %v9124_v54 = vld [vmem:[%s19080_s24 + $0x58] sm:$0xff] }
0x3c57   : > { %v8855_v5 = vpop.f32.mrb[132].mxu1  ;;  %v15932_v55 = vpack.c.bf16 %v9124_v54, %v9123_v53 }
0x3c58   : > { %v18065_v63 = vadd.f32 %v12977_v2, %v8867_v59  ;;  %v8865_v26 = vadd.f32 %v8855_v5, %v18018_v46  ;;  %v14984_v7 = vpop.f32.mrb[133].mxu1  ;;  %15911 = vmatprep.subr.bf16.mxu1 %v15910_v58  ;;  %v9142_v58 = vld [vmem:[%s19080_s24 + $0xe8] sm:$0xff] }
0x3c5a   : > { %v8868_v61 = vadd.f32 %v8865_v26, %v17496_v24  ;;  %v8882_v28 = vsel %vm6361_vm13, %v18065_v63, 0.0 }
0x3c5b   : > { %8883 = vadd.xlane.f32.xlu0 %v8882_v28  ;;  %v8860_v15 = vpop.f32.mrb[134].mxu1 }
0x3c5c   : > { %v18071_v16 = vadd.f32 %v12977_v2, %v8868_v61  ;;  %v8866_v44 = vadd.f32 %v8860_v15, %v18021_v38  ;;  %v14987_v17 = vpop.f32.mrb[135].mxu1 }
0x3c5e   : > { %v8869_v23 = vadd.f32 %v8866_v44, %v17498_v25  ;;  %v8885_v18 = vsel %vm6361_vm13, %v18071_v16, 0.0 }
0x3c5f   : > { %8886 = vadd.xlane.f32.xlu1 %v8885_v18  ;;  %v12978_v18 = vld [vmem:[%s19081_s25] ss:$0 sm:$0xff] }
0x3c60   : > { %v18077_v46 = vadd.f32 %v12977_v2, %v8869_v23  ;;  %v15912_v2 = vpack.c.bf16 %v9114_v60, %v9113_v29  ;;  %v9141_v29 = vld [vmem:[%s19080_s24 + $0xe0] sm:$0xff] }
0x3c61   : > { %v15934_v60 = vpack.c.bf16 %v9142_v58, %v9141_v29 }
0x3c62   : > { %v8888_v24 = vsel %vm6368_vm14, %v18077_v46, 0.0  ;;  %15913 = vmatpush3.bf16.msra.mxu1 %v15912_v2  ;;  %v9125_v2 = vld [vmem:[%s19080_s24 + $0x60] sm:$0xff] }
0x3c63   : > { %8889 = vadd.xlane.f32.xlu0 %v8888_v24 }
0x3ce8   : > { %v8884_v20 = vpop.xlane.xlu0 %8883 }
0x3ce9   : > { %v8891_v21 = vmul.f32 0.015625, %v8884_v20  ;;  %v12979_v20 = vld [vmem:[%s19082_s29] ss:$0 sm:$0xff] }
0x3ceb   : > { %v18082_v19 = vsub.f32 %v18065_v63, %v8891_v21 }
0x3cec   : > { %v8887_v38 = vpop.xlane.xlu1 %8886 }
0x3ced   : > { %v8892_v22 = vmul.f32 0.015625, %v8887_v38  ;;  %v8897_v25 = vmul.f32 %v18082_v19, %v18082_v19 }
0x3cef   : > { %v18087_v27 = vsub.f32 %v18071_v16, %v8892_v22  ;;  %v8900_v30 = vsel %vm6361_vm13, %v8897_v25, 0.0 }
0x3cf0   : > { %8901 = vadd.xlane.f32.xlu1 %v8900_v30  ;;  %v8890_v62 = vpop.xlane.xlu0 %8889 }
0x3cf1   : > { %v8893_v0 = vmul.f32 0.015625, %v8890_v62  ;;  %v8898_v8 = vmul.f32 %v18087_v27, %v18087_v27 }
0x3cf3   : > { %v18093_v4 = vsub.f32 %v18077_v46, %v8893_v0  ;;  %v8903_v9 = vsel %vm6361_vm13, %v8898_v8, 0.0 }
0x3cf4   : > { %8904 = vadd.xlane.f32.xlu0 %v8903_v9  ;;  %v9131_v9 = vld [vmem:[%s19080_s24 + $0x90] sm:$0xff] }
0x3cf5   : > { %v8899_v6 = vmul.f32 %v18093_v4, %v18093_v4 }
0x3cf7   : > { %v8906_v13 = vsel %vm6368_vm14, %v8899_v6, 0.0  ;;  %v9132_v6 = vld [vmem:[%s19080_s24 + $0x98] sm:$0xff] }
0x3cf8   : > { %8907 = vadd.xlane.f32.xlu1 %v8906_v13  ;;  %v15914_v13 = vpack.c.bf16 %v9132_v6, %v9131_v9 }
0x3cfa   : > { %15915 = vmatprep.subr.bf16.mxu1 %v15914_v13 }
0x3d7d   : > { %v8902_v59 = vpop.xlane.xlu1 %8901 }
0x3d7e   : > { %v8909_v5 = vmul.f32 0.015625, %v8902_v59  ;;  %v9126_v59 = vld [vmem:[%s19080_s24 + $0x68] sm:$0xff] }
0x3d80   : > { %v8912_v26 = vadd.f32 1e-05, %v8909_v5  ;;  %v15936_v5 = vpack.c.bf16 %v9126_v59, %v9125_v2 }
0x3d81   : > { %v8905_v7 = vpop.xlane.xlu0 %8904 }
0x3d82   : > { %16382 = vrsqrt.f32 %v8912_v26  ;;  %v8910_v61 = vmul.f32 0.015625, %v8905_v7  ;;  %v9143_v26 = vld [vmem:[%s19080_s24 + $0xf0] sm:$0xff]  ;;  %v9144_v7 = vld [vmem:[%s19080_s24 + $0xf8] sm:$0xff] }
0x3d84   : > { %v8913_v28 = vadd.f32 1e-05, %v8910_v61  ;;  %v15938_v61 = vpack.c.bf16 %v9144_v7, %v9143_v26 }
0x3d85   : > { %v8908_v15 = vpop.xlane.xlu1 %8907 }
0x3d86   : > { %16384 = vrsqrt.f32 %v8913_v28  ;;  %v8911_v44 = vmul.f32 0.015625, %v8908_v15  ;;  %v9127_v28 = vld [vmem:[%s19080_s24 + $0x70] sm:$0xff]  ;;  %v9128_v15 = vld [vmem:[%s19080_s24 + $0x78] sm:$0xff] }
0x3d88   : > { %v8914_v17 = vadd.f32 1e-05, %v8911_v44  ;;  %v15940_v44 = vpack.c.bf16 %v9128_v15, %v9127_v28 }
0x3d8a   : > { %16386 = vrsqrt.f32 %v8914_v17  ;;  %v18162_v17 = vshrl.u32 %v1611_v12, 7 }
0x3d8c   : > { %v16383_v23 = vpop.eup %16382 }
0x3d8d   : > { %v8918_v24 = vmul.f32 %v16383_v23, %v18082_v19  ;;  %v8959_v23 = vsub.s32 0, %v18162_v17 }
0x3d8f   : > { %v8927_v21 = vmul.f32 %v12978_v18, %v8918_v24  ;;  %v8963_v24 = vsub.s32 1, %v18162_v17 }
0x3d90   : > { %v16385_v38 = vpop.eup %16384 }
0x3d91   : > { %v8936_v22 = vadd.f32 %v12979_v20, %v8927_v21  ;;  %v8919_v25 = vmul.f32 %v16385_v38, %v18087_v27 }
0x3d93   : > { %12980 = vmatmul.mubr.msk.f32.vlgmr.msra.gmra.mrb[120].mxu0 %vm6361_vm13, %v8936_v22  ;;  %v8928_v30 = vmul.f32 %v12978_v18, %v8919_v25 }
0x3d94   : > { %v16387_v62 = vpop.eup %16386  ;;  %9046 = vmatprep.mubr.f32.mxu0 %v16598_v11 }
0x3d95   : > { %v8937_v0 = vadd.f32 %v12979_v20, %v8928_v30  ;;  %v8920_v19 = vmul.f32 %v16387_v62, %v18093_v4  ;;  %v9115_v4 = vld [vmem:[%s19080_s24 + $0x10] sm:$0xff] }
0x3d96   : > { %v15916_v31 = vpack.c.bf16 %v9116_v14, %v9115_v4 }
0x3d97   : > { %12981 = vmatmul.mubr.msk.f32.gmra.mrb[122].mxu0 %vm6361_vm13, %v8937_v0  ;;  %v8929_v8 = vmul.f32 %v12978_v18, %v8920_v19  ;;  %v8955_v18 = vld [vmem:[%s19083_s30] sm:$0x3] }
0x3d98   : > { %9052 = vmatprep.mubr.f32.mxu0 %v16598_v11  ;;  %15917 = vmatpush3.bf16.msra.mxu1 %v15916_v31  ;;  %v8964_v21 = vrot.slane %v8955_v18, %v8963_v24 }
0x3d99   : > { %v8938_v27 = vadd.f32 %v12979_v20, %v8929_v8  ;;  %15919 = vmatprep.subr.bf16.mxu1 %v15918_v3  ;;  %v8960_v20 = vrot.slane %v8955_v18, %v8959_v23 }
0x3d9b   : > { %12982 = vmatmul.mubr.msk.f32.gmra.mrb[124].mxu0 %vm6361_vm13, %v8938_v27 }
0x3d9c   : > { %15004 = vmatprep.mubr.msk.f32.mxu0 %vm16597_vm1, %v16598_v11  ;;  %15921 = vmatpush3.bf16.msra.mxu1 %v15920_v39 }
0x3d9d   : > { %15923 = vmatprep.subr.bf16.mxu1 %v15922_v40 }
0x3da0   : > { %15925 = vmatpush3.bf16.msra.mxu1 %v15924_v42 }
0x3da1   : > { %15927 = vmatprep.subr.bf16.mxu1 %v15926_v1 }
0x3da4   : > { %15929 = vmatpush3.bf16.msra.mxu1 %v15928_v49 }
0x3da5   : > { %15931 = vmatprep.subr.bf16.mxu1 %v15930_v52 }
0x3da8   : > { %15933 = vmatpush3.bf16.msra.mxu1 %v15932_v55 }
0x3da9   : > { %15935 = vmatprep.subr.bf16.mxu1 %v15934_v60 }
0x3dac   : > { %15937 = vmatpush3.bf16.msra.mxu1 %v15936_v5 }
0x3dad   : > { %15939 = vmatprep.subr.bf16.mxu1 %v15938_v61 }
0x3db0   : > { %15941 = vmatpush3.bf16.msra.mxu1 %v15940_v44 }
0x3db1   : > { %15966 = vmatprep.subr.bf16.mxu1 %v16596_v10 }
0x3e66   : > { %v9042_v38 = vpop.f32.mrb[120].mxu0 }
0x3e67   : > { %v9043_v22 = vadd.f32 %v9042_v38, %v8960_v20  ;;  %v9044_v25 = vpop.f32.mrb[121].mxu0 }
0x3e68   : > { %v9045_v30 = vadd.f32 %v9044_v25, %v8964_v21 }
0x3e69   : > { %v9065_v62 = vmul.f32 %v9043_v22, %v9043_v22  ;;  %v9059_v7 = vmul.f32 0.5, %v9043_v22 }
0x3e6a   : > { %v9066_v0 = vmul.f32 %v9045_v30, %v9045_v30  ;;  %v9048_v19 = vpop.f32.mrb[122].mxu0  ;;  %v9060_v5 = vmul.f32 0.5, %v9045_v30 }
0x3e6b   : > { %v9071_v12 = vmul.f32 %v9065_v62, %v9043_v22  ;;  %v9049_v8 = vadd.f32 %v9048_v19, %v8960_v20  ;;  %v9050_v27 = vpop.f32.mrb[123].mxu0 }
0x3e6c   : > { %v9072_v9 = vmul.f32 %v9066_v0, %v9045_v30  ;;  %v9051_v6 = vadd.f32 %v9050_v27, %v8964_v21 }
0x3e6d   : > { %v9077_v13 = vmul.f32 0.044715, %v9071_v12  ;;  %v9067_v4 = vmul.f32 %v9049_v8, %v9049_v8  ;;  %v9061_v38 = vmul.f32 0.5, %v9049_v8 }
0x3e6e   : > { %v9078_v14 = vmul.f32 0.044715, %v9072_v9  ;;  %v9068_v31 = vmul.f32 %v9051_v6, %v9051_v6  ;;  %v9054_v33 = vpop.f32.mrb[124].mxu0 }
0x3e6f   : > { %v9083_v32 = vadd.f32 %v9077_v13, %v9043_v22  ;;  %v9073_v3 = vmul.f32 %v9067_v4, %v9049_v8  ;;  %v9055_v34 = vadd.f32 %v9054_v33, %v8960_v20  ;;  %v9056_v37 = vpop.f32.mrb[125].mxu0  ;;  %v9062_v20 = vmul.f32 0.5, %v9051_v6 }
0x3e70   : > { %v9084_v39 = vadd.f32 %v9078_v14, %v9045_v30  ;;  %v9074_v35 = vmul.f32 %v9068_v31, %v9051_v6  ;;  %v9057_v57 = vadd.f32 %v9056_v37, %v8964_v21 }
0x3e71   : > { %v9089_v40 = vmul.f32 0.7978846, %v9083_v32  ;;  %v9079_v36 = vmul.f32 0.044715, %v9073_v3  ;;  %v9069_v41 = vmul.f32 %v9055_v34, %v9055_v34  ;;  %v9063_v22 = vmul.f32 0.5, %v9055_v34 }
0x3e72   : > { %v9090_v42 = vmul.f32 0.7978846, %v9084_v39  ;;  %v9080_v43 = vmul.f32 0.044715, %v9074_v35  ;;  %v9070_v45 = vmul.f32 %v9057_v57, %v9057_v57  ;;  %v9064_v30 = vmul.f32 0.5, %v9057_v57 }
0x3e73   : > { %16388 = vtanh.f32 %v9089_v40  ;;  %v9085_v1 = vadd.f32 %v9079_v36, %v9049_v8  ;;  %v9075_v47 = vmul.f32 %v9069_v41, %v9055_v34  ;;  %v12983_v8 = vld [vmem:[%s19084_s26] ss:$0 sm:$0xff] }
0x3e74   : > { %v9086_v48 = vadd.f32 %v9080_v43, %v9051_v6  ;;  %v9076_v49 = vmul.f32 %v9070_v45, %v9057_v57  ;;  %16390 = vtanh.f32 %v9090_v42 }
0x3e75   : > { %v9091_v50 = vmul.f32 0.7978846, %v9085_v1  ;;  %v9081_v51 = vmul.f32 0.044715, %v9075_v47 }
0x3e76   : > { %v9092_v52 = vmul.f32 0.7978846, %v9086_v48  ;;  %v9082_v53 = vmul.f32 0.044715, %v9076_v49 }
0x3e77   : > { %v9087_v54 = vadd.f32 %v9081_v51, %v9055_v34  ;;  %16392 = vtanh.f32 %v9091_v50 }
0x3e78   : > { %v9088_v55 = vadd.f32 %v9082_v53, %v9057_v57  ;;  %16394 = vtanh.f32 %v9092_v52 }
0x3e79   : > { %v9093_v29 = vmul.f32 0.7978846, %v9087_v54 }
0x3e7a   : > { %v9094_v58 = vmul.f32 0.7978846, %v9088_v55 }
0x3e7b   : > { %16396 = vtanh.f32 %v9093_v29 }
0x3e7c   : > { %16398 = vtanh.f32 %v9094_v58 }
0x3e7d   : > { %v16389_v60 = vpop.eup %16388 }
0x3e7e   : > { %v16391_v2 = vpop.eup %16390  ;;  %v9101_v59 = vadd.f32 1.0, %v16389_v60  ;;  %v12988_v60 = vld [vmem:[%s19067_s9 + $0x100] sm:$0xff] }
0x3e7f   : > { %v9102_v26 = vadd.f32 1.0, %v16391_v2  ;;  %v12989_v2 = vld [vmem:[%s19067_s9 + $0x108] sm:$0xff] }
0x3e80   : > { %v9107_v44 = vmul.f32 %v9101_v59, %v9059_v7  ;;  %v15943_v59 = vpack.c.bf16 %v12989_v2, %v12988_v60  ;;  %v13007_v2 = vld [vmem:[%s19068_s8 + $0x130] sm:$0xff] }
0x3e81   : > { %v16393_v61 = vpop.eup %16392  ;;  %v9108_v28 = vmul.f32 %v9102_v26, %v9060_v5  ;;  %v13014_v5 = vld [vmem:[%s19070_s3 + $0x100] sm:$0xff]  ;;  %v13015_v26 = vld [vmem:[%s19070_s3 + $0x108] sm:$0xff] }
0x3e82   : > { %v16395_v15 = vpop.eup %16394  ;;  %v9103_v18 = vadd.f32 1.0, %v16393_v61  ;;  %v15967_v7 = vpack.c.bf16 %v13015_v26, %v13014_v5  ;;  %15944 = vmatpush3.bf16.msra.mxu0 %v15943_v59  ;;  %v12990_v61 = vld [vmem:[%s19067_s9 + $0x110] sm:$0xff]  ;;  %v13008_v59 = vld [vmem:[%s19068_s8 + $0x138] sm:$0xff] }
0x3e83   : > { %9216 = vmatprep.mubr.f32.mxu1 %v9108_v28  ;;  %v9104_v21 = vadd.f32 1.0, %v16395_v15  ;;  %15945 = vmatprep.subr.bf16.mxu0 %v16596_v10  ;;  %v12991_v28 = vld [vmem:[%s19067_s9 + $0x118] sm:$0xff]  ;;  %v15964_v5 = vpack.c.bf16 %v13008_v59, %v13007_v2  ;;  %v13069_v59 = vld [vmem:[%s19070_s3 + $0x160] sm:$0xff] }
0x3e84   : > { %9217 = vmatmul.mubr.f32.vlgmr.msra.gmra.mrb[136].mxu1 %v9107_v44  ;;  %v9109_v19 = vmul.f32 %v9103_v18, %v9061_v38  ;;  %v15946_v15 = vpack.c.bf16 %v12991_v28, %v12990_v61  ;;  %v13016_v44 = vld [vmem:[%s19070_s3 + $0x110] sm:$0xff]  ;;  %v13017_v18 = vld [vmem:[%s19070_s3 + $0x118] sm:$0xff]  ;;  %v12993_v38 = vld [vmem:[%s19067_s9 + $0x128] sm:$0xff] }
0x3e85   : > { %v16397_v25 = vpop.eup %16396  ;;  %v9110_v62 = vmul.f32 %v9104_v21, %v9062_v20  ;;  %15968 = vmatpush3.bf16.msra.mxu1 %v15967_v7  ;;  %v15970_v20 = vpack.c.bf16 %v13017_v18, %v13016_v44  ;;  %v12992_v21 = vld [vmem:[%s19067_s9 + $0x120] sm:$0xff] }
0x3e86   : > { %v16399_v0 = vpop.eup %16398  ;;  %v9105_v12 = vadd.f32 1.0, %v16397_v25  ;;  %15969 = vmatprep.subr.bf16.mxu1 %v16596_v10  ;;  %15947 = vmatpush3.bf16.msra.mxu0 %v15946_v15  ;;  %v15949_v25 = vpack.c.bf16 %v12993_v38, %v12992_v21  ;;  %v13023_v15 = vld [vmem:[%s19076_s17 + $0x4] ss:$0 sm:$0xff] }
0x3e87   : > { %9221 = vmatprep.mubr.f32.mxu1 %v9110_v62  ;;  %v9106_v27 = vadd.f32 1.0, %v16399_v0  ;;  %15948 = vmatprep.subr.bf16.mxu0 %v16596_v10  ;;  %v13018_v62 = vld [vmem:[%s19070_s3 + $0x120] sm:$0xff]  ;;  %v13019_v0 = vld [vmem:[%s19070_s3 + $0x128] sm:$0xff] }
0x3e88   : > { %9222 = vmatmul.mubr.f32.gmra.mrb[138].mxu1 %v9109_v19  ;;  %v9111_v13 = vmul.f32 %v9105_v12, %v9063_v22  ;;  %v15973_v19 = vpack.c.bf16 %v13019_v0, %v13018_v62  ;;  %v12994_v12 = vld [vmem:[%s19067_s9 + $0x130] sm:$0xff] }
0x3e89   : > { %v9112_v9 = vmul.f32 %v9106_v27, %v9064_v30  ;;  %15971 = vmatpush3.bf16.msra.mxu1 %v15970_v20  ;;  %v12995_v30 = vld [vmem:[%s19067_s9 + $0x138] sm:$0xff]  ;;  %v13020_v22 = vld [vmem:[%s19070_s3 + $0x130] sm:$0xff] }
0x3e8a   : > { %15972 = vmatprep.subr.bf16.mxu1 %v16596_v10  ;;  %15950 = vmatpush3.bf16.msra.mxu0 %v15949_v25  ;;  %v15952_v27 = vpack.c.bf16 %v12995_v30, %v12994_v12 }
0x3e8b   : > { %9226 = vmatprep.mubr.f32.mxu1 %v9112_v9  ;;  %15951 = vmatprep.subr.bf16.mxu0 %v16596_v10  ;;  %v13021_v9 = vld [vmem:[%s19070_s3 + $0x138] sm:$0xff] }
0x3e8c   : > { %9227 = vmatmul.mubr.f32.gmra.mrb[140].mxu1 %v9111_v13  ;;  %v15976_v13 = vpack.c.bf16 %v13021_v9, %v13020_v22 }
0x3e8d   : > { %15054 = vmatprep.mubr.msk.f32.mxu1 %vm16597_vm1, %v16598_v11  ;;  %15974 = vmatpush3.bf16.msra.mxu1 %v15973_v19 }
0x3e8e   : > { %15975 = vmatprep.subr.bf16.mxu1 %v16596_v10  ;;  %15953 = vmatpush3.bf16.msra.mxu0 %v15952_v27 }
0x3e8f   : > { %15954 = vmatprep.subr.bf16.mxu0 %v16596_v10 }
0x3e91   : > { %15977 = vmatpush3.bf16.msra.mxu1 %v15976_v13  ;;  %v13010_v13 = vld [vmem:[%s19072_s12 + $0x4] ss:$0 sm:$0xff] }
0x3e92   : > { %15982 = vmatprep.subr.bf16.mxu1 %v16596_v10 }
0x3f57   : > { %v13743_v6 = vpop.f32.mrb[136].mxu1 }
0x3f58   : > { %v13744_v4 = vpop.f32.mrb[137].mxu1 }
0x3f59   : > { %v13745_v14 = vadd.f32 %v13744_v4, %v13743_v6 }
0x3f5b   : > { %v9219_v31 = vadd.f32 %v13745_v14, %v12983_v8  ;;  %v13746_v33 = vpop.f32.mrb[138].mxu1 }
0x3f5c   : > { %v13747_v32 = vpop.f32.mrb[139].mxu1 }
0x3f5d   : > { %v18175_v3 = vadd.f32 %v9219_v31, %v18065_v63  ;;  %v13748_v37 = vadd.f32 %v13747_v32, %v13746_v33 }
0x3f5f   : > { %v9224_v39 = vadd.f32 %v13748_v37, %v12983_v8  ;;  %v13749_v34 = vpop.f32.mrb[140].mxu1  ;;  %v9239_v35 = vsel %vm6361_vm13, %v18175_v3, 0.0 }
0x3f60   : > { %v13750_v57 = vpop.f32.mrb[141].mxu1  ;;  %9240 = vadd.xlane.f32.xlu0 %v9239_v35  ;;  %v12986_v35 = vld [vmem:[%s19069_s2 + $0x1] ss:$0 sm:$0xff]  ;;  %s19085_s2 = sld [smem:[#allocation49_spill]] }
0x3f61   : > { %v18180_v40 = vadd.f32 %v9224_v39, %v18071_v16  ;;  %v13751_v36 = vadd.f32 %v13750_v57, %v13749_v34 }
0x3f63   : > { %v9229_v41 = vadd.f32 %v13751_v36, %v12983_v8  ;;  %v9242_v42 = vsel %vm6361_vm13, %v18180_v40, 0.0  ;;  %v13001_v36 = vld [vmem:[%s19068_s8 + $0x100] sm:$0xff] }
0x3f64   : > { %9243 = vadd.xlane.f32.xlu1 %v9242_v42  ;;  %v12987_v42 = vld [vmem:[%s19071_s6 + $0x1] ss:$0 sm:$0xff] }
0x3f65   : > { %v18185_v63 = vadd.f32 %v9229_v41, %v18077_v46  ;;  %v13002_v41 = vld [vmem:[%s19068_s8 + $0x108] sm:$0xff] }
0x3f67   : > { %v9245_v43 = vsel %vm6368_vm14, %v18185_v63, 0.0 }
0x3f68   : > { %9246 = vadd.xlane.f32.xlu0 %v9245_v43 }
0x3fed   : > { %v9241_v45 = vpop.xlane.xlu0 %9240 }
0x3fee   : > { %v9248_v1 = vmul.f32 0.015625, %v9241_v45 }
0x3ff0   : > { %v18190_v47 = vsub.f32 %v18175_v3, %v9248_v1  ;;  %v15955_v1 = vpack.c.bf16 %v13002_v41, %v13001_v36  ;;  %v13041_v41 = vld [vmem:[%s19067_s9 + $0x150] sm:$0xff] }
0x3ff1   : > { %v9244_v16 = vpop.xlane.xlu1 %9243 }
0x3ff2   : > { %v9249_v48 = vmul.f32 0.015625, %v9244_v16  ;;  %v9254_v49 = vmul.f32 %v18190_v47, %v18190_v47 }
0x3ff4   : > { %v18195_v46 = vsub.f32 %v18180_v40, %v9249_v48  ;;  %v9257_v50 = vsel %vm6361_vm13, %v9254_v49, 0.0  ;;  %v13003_v49 = vld [vmem:[%s19068_s8 + $0x110] sm:$0xff] }
0x3ff5   : > { %9258 = vadd.xlane.f32.xlu1 %v9257_v50  ;;  %v9247_v51 = vpop.xlane.xlu0 %9246  ;;  %v13004_v50 = vld [vmem:[%s19068_s8 + $0x118] sm:$0xff] }
0x3ff6   : > { %v9250_v52 = vmul.f32 0.015625, %v9247_v51  ;;  %v9255_v53 = vmul.f32 %v18195_v46, %v18195_v46 }
0x3ff8   : > { %v18201_v54 = vsub.f32 %v18185_v63, %v9250_v52  ;;  %v9260_v55 = vsel %vm6361_vm13, %v9255_v53, 0.0  ;;  %v15958_v52 = vpack.c.bf16 %v13004_v50, %v13003_v49 }
0x3ff9   : > { %9261 = vadd.xlane.f32.xlu0 %v9260_v55  ;;  %v13005_v55 = vld [vmem:[%s19068_s8 + $0x120] sm:$0xff] }
0x3ffa   : > { %v9256_v29 = vmul.f32 %v18201_v54, %v18201_v54 }
0x3ffc   : > { %v9263_v58 = vsel %vm6368_vm14, %v9256_v29, 0.0  ;;  %v13006_v29 = vld [vmem:[%s19068_s8 + $0x128] sm:$0xff] }
0x3ffd   : > { %9264 = vadd.xlane.f32.xlu1 %v9263_v58  ;;  %v15961_v60 = vpack.c.bf16 %v13006_v29, %v13005_v55  ;;  %v13066_v55 = vld [vmem:[%s19070_s3 + $0x148] sm:$0xff] }
0x4082   : > { %v9259_v6 = vpop.xlane.xlu1 %9258 }
0x4083   : > { %v9266_v8 = vmul.f32 0.015625, %v9259_v6 }
0x4085   : > { %v9269_v4 = vadd.f32 1e-05, %v9266_v8 }
0x4086   : > { %v9262_v14 = vpop.xlane.xlu0 %9261 }
0x4087   : > { %16400 = vrsqrt.f32 %v9269_v4  ;;  %v9267_v31 = vmul.f32 0.015625, %v9262_v14 }
0x4089   : > { %v9270_v33 = vadd.f32 1e-05, %v9267_v31 }
0x408a   : > { %v9265_v32 = vpop.xlane.xlu1 %9264 }
0x408b   : > { %16402 = vrsqrt.f32 %v9270_v33  ;;  %v9268_v37 = vmul.f32 0.015625, %v9265_v32 }
0x408d   : > { %v9271_v39 = vadd.f32 1e-05, %v9268_v37  ;;  %v13039_v37 = vld [vmem:[%s19067_s9 + $0x140] sm:$0xff] }
0x408f   : > { %16404 = vrsqrt.f32 %v9271_v39  ;;  %v13040_v39 = vld [vmem:[%s19067_s9 + $0x148] sm:$0xff] }
0x4091   : > { %v16401_v34 = vpop.eup %16400 }
0x4092   : > { %v9275_v57 = vmul.f32 %v16401_v34, %v18190_v47  ;;  %v12997_v34 = vld [vmem:[%s19073_s14 + $0x4] ss:$0 sm:$0xff] }
0x4094   : > { %v9284_v43 = vmul.f32 %v12986_v35, %v9275_v57  ;;  %v15986_v57 = vpack.c.bf16 %v13040_v39, %v13039_v37 }
0x4095   : > { %v16403_v45 = vpop.eup %16402 }
0x4096   : > { %v18236_v16 = vadd.f32 %v12987_v42, %v9284_v43  ;;  %v9276_v48 = vmul.f32 %v16403_v45, %v18195_v46 }
0x4098   : > { %v9285_v51 = vmul.f32 %v12986_v35, %v9276_v48  ;;  %15005 = vmatmul.mubr.msk.f32.vlgmr.msra.gmra.mrb[126].mxu0 %vm6361_vm13, %v18236_v16  ;;  %15055 = vmatmul.mubr.msk.f32.vlgmr.msra.gmra.mrb[142].mxu1 %vm6361_vm13, %v18236_v16  ;;  %v13044_v48 = vld [vmem:[%s19067_s9 + $0x168] sm:$0xff] }
0x4099   : > { %v16405_v47 = vpop.eup %16404  ;;  %15956 = vmatpush3.bf16.msra.mxu0 %v15955_v1  ;;  %15007 = vmatprep.mubr.msk.f32.mxu0 %vm16597_vm1, %v16598_v11  ;;  %v13043_v1 = vld [vmem:[%s19067_s9 + $0x160] sm:$0xff] }
0x409a   : > { %v18247_v53 = vadd.f32 %v12987_v42, %v9285_v51  ;;  %v9277_v46 = vmul.f32 %v16405_v47, %v18201_v54  ;;  %15957 = vmatprep.subr.bf16.mxu0 %v16596_v10  ;;  %15057 = vmatprep.mubr.msk.f32.mxu1 %vm16597_vm1, %v16598_v11  ;;  %v15992_v49 = vpack.c.bf16 %v13044_v48, %v13043_v1  ;;  %v13045_v51 = vld [vmem:[%s19067_s9 + $0x170] sm:$0xff]  ;;  %v13046_v47 = vld [vmem:[%s19067_s9 + $0x178] sm:$0xff] }
0x409c   : > { %v9286_v58 = vmul.f32 %v12986_v35, %v9277_v46  ;;  %15008 = vmatmul.mubr.msk.f32.gmra.mrb[128].mxu0 %vm6361_vm13, %v18247_v53  ;;  %15058 = vmatmul.mubr.msk.f32.gmra.mrb[144].mxu1 %vm6361_vm13, %v18247_v53  ;;  %v13065_v46 = vld [vmem:[%s19070_s3 + $0x140] sm:$0xff] }
0x409d   : > { %15959 = vmatpush3.bf16.msra.mxu0 %v15958_v52  ;;  %15010 = vmatprep.mubr.msk.f32.mxu0 %vm16597_vm1, %v16598_v11  ;;  %v15995_v52 = vpack.c.bf16 %v13046_v47, %v13045_v51  ;;  %v16010_v29 = vpack.c.bf16 %v13066_v55, %v13065_v46 }
0x409e   : > { %v18261_v54 = vadd.f32 %v12987_v42, %v9286_v58  ;;  %15960 = vmatprep.subr.bf16.mxu0 %v16596_v10  ;;  %15060 = vmatprep.mubr.msk.f32.mxu1 %vm16597_vm1, %v16598_v11  ;;  %v13042_v42 = vld [vmem:[%s19067_s9 + $0x158] sm:$0xff]  ;;  %v13067_v58 = vld [vmem:[%s19070_s3 + $0x150] sm:$0xff] }
0x409f   : > { %v15989_v43 = vpack.c.bf16 %v13042_v42, %v13041_v41 }
0x40a0   : > { %15011 = vmatmul.mubr.msk.f32.gmra.mrb[130].mxu0 %vm6361_vm13, %v18261_v54  ;;  %15061 = vmatmul.mubr.msk.f32.gmra.mrb[146].mxu1 %vm6361_vm13, %v18261_v54 }
0x40a1   : > { %15962 = vmatpush3.bf16.msra.mxu0 %v15961_v60  ;;  %15029 = vmatprep.mubr.msk.f32.mxu0 %vm16597_vm1, %v16598_v11  ;;  %v13068_v60 = vld [vmem:[%s19070_s3 + $0x158] sm:$0xff] }
0x40a2   : > { %15963 = vmatprep.subr.bf16.mxu0 %v16596_v10  ;;  %15084 = vmatprep.mubr.msk.f32.mxu1 %vm16597_vm1, %v16598_v11  ;;  %v16013_v2 = vpack.c.bf16 %v13068_v60, %v13067_v58 }
0x40a5   : > { %15965 = vmatpush3.bf16.msra.mxu0 %v15964_v5  ;;  %v13070_v5 = vld [vmem:[%s19070_s3 + $0x168] sm:$0xff] }
0x40a6   : > { %15978 = vmatprep.subr.bf16.mxu0 %v16596_v10 }
0x40a8   : > { %15030 = vmatmul.mubr.msk.f32.vlgmr.msra.gmra.mrb[132].mxu0 %vm6361_vm13, %v18236_v16 }
0x40a9   : > { %15032 = vmatprep.mubr.msk.f32.mxu0 %vm16597_vm1, %v16598_v11 }
0x40ac   : > { %15033 = vmatmul.mubr.msk.f32.gmra.mrb[134].mxu0 %vm6361_vm13, %v18247_v53 }
0x40ad   : > { %15035 = vmatprep.mubr.msk.f32.mxu0 %vm16597_vm1, %v16598_v11 }
0x40b0   : > { %15036 = vmatmul.mubr.msk.f32.gmra.mrb[136].mxu0 %vm6361_vm13, %v18261_v54 }
0x40b1   : > { %15069 = vmatprep.mubr.msk.f32.mxu0 %vm16597_vm1, %v16598_v11 }
0x416b   : > { %v9388_v26 = vpop.f32.mrb[126].mxu0  ;;  %v9582_v7 = vpop.f32.mrb[142].mxu1 }
0x416c   : > { %v15006_v61 = vpop.f32.mrb[127].mxu0  ;;  %v15056_v28 = vpop.f32.mrb[143].mxu1  ;;  %v9583_v20 = vadd.f32 %v13023_v15, %v9582_v7  ;;  %v9389_v36 = vadd.f32 %v12997_v34, %v9388_v26  ;;  %v16016_v26 = vpack.c.bf16 %v13070_v5, %v13069_v59  ;;  %v13071_v7 = vld [vmem:[%s19070_s3 + $0x170] sm:$0xff]  ;;  %v13052_v59 = vld [vmem:[%s19068_s8 + $0x140] sm:$0xff]  ;;  %v13053_v5 = vld [vmem:[%s19068_s8 + $0x148] sm:$0xff] }
0x416d   : > { %v13072_v61 = vld [vmem:[%s19070_s3 + $0x178] sm:$0xff] }
0x416e   : > { %v16019_v28 = vpack.c.bf16 %v13072_v61, %v13071_v7  ;;  %v15998_v7 = vpack.c.bf16 %v13053_v5, %v13052_v59 }
0x416f   : > { %v9393_v44 = vpop.f32.mrb[128].mxu0  ;;  %v9587_v18 = vpop.f32.mrb[144].mxu1 }
0x4170   : > { %v9588_v21 = vadd.f32 %v13023_v15, %v9587_v18  ;;  %v15009_v38 = vpop.f32.mrb[129].mxu0  ;;  %v15059_v25 = vpop.f32.mrb[145].mxu1  ;;  %v9394_v45 = vadd.f32 %v12997_v34, %v9393_v44 }
0x4172   : > { %v15983_v62 = vpack.c.bf16 %v9588_v21, %v9583_v20 }
0x4173   : > { %v9398_v0 = vpop.f32.mrb[130].mxu0  ;;  %v9592_v19 = vpop.f32.mrb[146].mxu1 }
0x4174   : > { %v15012_v12 = vpop.f32.mrb[131].mxu0  ;;  %v15062_v30 = vpop.f32.mrb[147].mxu1  ;;  %15984 = vmatpush3.bf16.msra.mxu1 %v15983_v62  ;;  %v9593_v27 = vadd.f32 %v13023_v15, %v9592_v19  ;;  %v9399_v50 = vadd.f32 %v12997_v34, %v9398_v0 }
0x4175   : > { %15082 = vmatprep.subr.mxu1 %v16598_v11 }
0x4178   : > { %15083 = vmatpush3.msk.msra.mxu1 %vm6345_vm12, %v9593_v27 }
0x4179   : > { %15997 = vmatprep.subr.bf16.mxu1 %v16596_v10 }
0x417b   : > { %v9485_v22 = vpop.f32.mrb[132].mxu0 }
0x417c   : > { %v15031_v9 = vpop.f32.mrb[133].mxu0  ;;  %v9486_v8 = vadd.f32 %v13010_v13, %v9485_v22 }
0x417f   : > { %v9490_v6 = vpop.f32.mrb[134].mxu0 }
0x4180   : > { %v9491_v4 = vadd.f32 %v13010_v13, %v9490_v6  ;;  %v15034_v14 = vpop.f32.mrb[135].mxu0 }
0x4182   : > { %v15979_v31 = vpack.c.bf16 %v9491_v4, %v9486_v8 }
0x4183   : > { %v9495_v33 = vpop.f32.mrb[136].mxu0 }
0x4184   : > { %v15037_v32 = vpop.f32.mrb[137].mxu0  ;;  %15981 = vmatpush3.bf16.xpose.msk.msra.mxu0 %vm17610_vm15, %v15979_v31  ;;  %v9496_v35 = vadd.f32 %v13010_v13, %v9495_v33  ;;  %v18368_v31 = vld [vmem:[%s19076_s17 + $0x5] ss:$0 sm:$0xff] }
0x4185   : > { %15067 = vmatprep.subr.mxu0 %v16598_v11 }
0x418c   : > { %15068 = vmatpush3.xpose.msk.msra.mxu0 %vm1619_vm3, %v9496_v35 }
0x418d   : > { %15985 = vmatprep.subr.bf16.mxu0 %v16596_v10 }
0x418f   : > { %15070 = vmatmul.mubr.msk.f32.vlgmr.msra.gmra.mrb[138].mxu0 %vm1619_vm3, %v9389_v36 }
0x4190   : > { %15987 = vmatpush3.bf16.msra.mxu0 %v15986_v57  ;;  %15072 = vmatprep.mubr.msk.f32.mxu0 %vm16597_vm1, %v16598_v11 }
0x4191   : > { %15988 = vmatprep.subr.bf16.mxu0 %v16596_v10 }
0x4193   : > { %15073 = vmatmul.mubr.msk.f32.gmra.mrb[140].mxu0 %vm1619_vm3, %v9394_v45 }
0x4194   : > { %15990 = vmatpush3.bf16.msra.mxu0 %v15989_v43  ;;  %15075 = vmatprep.mubr.msk.f32.mxu0 %vm16597_vm1, %v16598_v11 }
0x4195   : > { %15991 = vmatprep.subr.bf16.mxu0 %v16596_v10 }
0x4197   : > { %15076 = vmatmul.mubr.msk.f32.gmra.mrb[142].mxu0 %vm1619_vm3, %v9399_v50 }
0x4198   : > { %15993 = vmatpush3.bf16.msra.mxu0 %v15992_v49  ;;  %15109 = vmatprep.mubr.msk.f32.mxu0 %vm16597_vm1, %v16598_v11 }
0x4199   : > { %15994 = vmatprep.subr.bf16.mxu0 %v16596_v10 }
0x419c   : > { %15996 = vmatpush3.bf16.msra.mxu0 %v15995_v52 }
0x419d   : > { %16009 = vmatprep.subr.bf16.mxu0 %v16596_v10 }
0x419f   : > { %15110 = vmatmul.mubr.msk.f32.vlgmr.msra.gmra.mrb[144].mxu0 %vm6361_vm13, %v18236_v16 }
0x41a0   : > { %16011 = vmatpush3.bf16.msra.mxu0 %v16010_v29  ;;  %15112 = vmatprep.mubr.msk.f32.mxu0 %vm16597_vm1, %v16598_v11 }
0x41a1   : > { %16012 = vmatprep.subr.bf16.mxu0 %v16596_v10 }
0x41a3   : > { %15113 = vmatmul.mubr.msk.f32.gmra.mrb[146].mxu0 %vm6361_vm13, %v18247_v53 }
0x41a4   : > { %16014 = vmatpush3.bf16.msra.mxu0 %v16013_v2  ;;  %15115 = vmatprep.mubr.msk.f32.mxu0 %vm16597_vm1, %v16598_v11 }
0x41a5   : > { %16015 = vmatprep.subr.bf16.mxu0 %v16596_v10 }
0x41a7   : > { %15116 = vmatmul.mubr.msk.f32.gmra.mrb[148].mxu0 %vm6361_vm13, %v18261_v54 }
0x41a8   : > { %16017 = vmatpush3.bf16.msra.mxu0 %v16016_v26  ;;  %15159 = vmatprep.mubr.msk.f32.mxu0 %vm16597_vm1, %v16598_v11 }
0x41a9   : > { %16018 = vmatprep.subr.bf16.mxu0 %v16596_v10 }
0x41ac   : > { %16020 = vmatpush3.bf16.msra.mxu0 %v16019_v28  ;;  %v13054_v28 = vld [vmem:[%s19068_s8 + $0x150] sm:$0xff] }
0x41ad   : > { %16028 = vmatprep.subr.bf16.mxu0 %v16596_v10 }
0x41af   : > { %15160 = vmatmul.mubr.msk.f32.vlgmr.msra.gmra.mrb[150].mxu0 %vm6361_vm13, %v18236_v16 }
0x41b0   : > { %15162 = vmatprep.mubr.msk.f32.mxu0 %vm16597_vm1, %v16598_v11 }
0x41b3   : > { %15163 = vmatmul.mubr.msk.f32.gmra.mrb[152].mxu0 %vm6361_vm13, %v18247_v53 }
0x41b4   : > { %15165 = vmatprep.mubr.msk.f32.mxu0 %vm16597_vm1, %v16598_v11 }
0x41b7   : > { %15166 = vmatmul.mubr.msk.f32.gmra.mrb[154].mxu0 %vm6361_vm13, %v18261_v54 }
0x41b8   : > { %15202 = vmatprep.mubr.msk.f32.mxu0 %vm16597_vm1, %v16598_v11 }
0x4262   : > { %v9680_v15 = vpop.f32.mrb[138].mxu0 }
0x4263   : > { %v9694_v44 = vmul.f32 0.25, %v9680_v15  ;;  %v15071_v18 = vpop.f32.mrb[139].mxu0  ;;  %v13055_v15 = vld [vmem:[%s19068_s8 + $0x158] sm:$0xff] }
0x4264   : > { %v16001_v18 = vpack.c.bf16 %v13055_v15, %v13054_v28 }
0x4265   : > { %v9697_v20 = vsel %vm6816_vm2, %v9694_v44, -inf }
0x4266   : > { %9698 = vmax.xlane.f32.xlu0 %v9697_v20  ;;  %v9685_v21 = vpop.f32.mrb[140].mxu0 }
0x4267   : > { %v9695_v38 = vmul.f32 0.25, %v9685_v21  ;;  %v15074_v25 = vpop.f32.mrb[141].mxu0  ;;  %v13056_v21 = vld [vmem:[%s19068_s8 + $0x160] sm:$0xff] }
0x4269   : > { %v9700_v62 = vsel %vm6816_vm2, %v9695_v38, -inf }
0x426a   : > { %9701 = vmax.xlane.f32.xlu1 %v9700_v62  ;;  %v9690_v0 = vpop.f32.mrb[142].mxu0 }
0x426b   : > { %v9696_v19 = vmul.f32 0.25, %v9690_v0  ;;  %v15077_v12 = vpop.f32.mrb[143].mxu0 }
0x426c   : > { %v13059_v12 = vld [vmem:[%s19068_s8 + $0x178] sm:$0xff] }
0x426d   : > { %v9703_v30 = vsel %vm6823_vm4, %v9696_v19, -inf }
0x426e   : > { %9704 = vmax.xlane.f32.xlu0 %v9703_v30 }
0x4272   : > { %v18361_v27 = vpop.f32.mrb[144].mxu0 }
0x4273   : > { %v15111_v22 = vpop.f32.mrb[145].mxu0 }
0x4276   : > { %v18363_v9 = vpop.f32.mrb[146].mxu0 }
0x4277   : > { %v15114_v13 = vpop.f32.mrb[147].mxu0 }
0x427a   : > { %v18365_v6 = vpop.f32.mrb[148].mxu0 }
0x427b   : > { %v15117_v8 = vpop.f32.mrb[149].mxu0 }
0x4282   : > { %v10102_v4 = vpop.f32.mrb[150].mxu0 }
0x4283   : > { %v15161_v14 = vpop.f32.mrb[151].mxu0  ;;  %v18371_v32 = vadd.f32 %v18368_v31, %v10102_v4 }
0x4286   : > { %v10107_v33 = vpop.f32.mrb[152].mxu0 }
0x4287   : > { %v18374_v37 = vadd.f32 %v18368_v31, %v10107_v33  ;;  %v15164_v39 = vpop.f32.mrb[153].mxu0 }
0x4289   : > { %v16026_v34 = vpack.c.bf16 %v18374_v37, %v18371_v32 }
0x428a   : > { %v18378_v35 = vpop.f32.mrb[154].mxu0 }
0x428b   : > { %v15167_v57 = vpop.f32.mrb[155].mxu0 }
0x42f3   : > { %v9699_v36 = vpop.xlane.xlu0 %9698 }
0x42f4   : > { %v9706_v41 = vsub.f32 %v9694_v44, %v9699_v36  ;;  %v13061_v36 = vld [vmem:[%s19072_s12 + $0x5] ss:$0 sm:$0xff] }
0x42f6   : > { %v9709_v42 = vmul.f32 1.442695, %v9706_v41 }
0x42f7   : > { %v9702_v43 = vpop.xlane.xlu1 %9701 }
0x42f8   : > { %16406 = vpow2.f32 %v9709_v42  ;;  %v9707_v45 = vsub.f32 %v9695_v38, %v9702_v43  ;;  %v13057_v38 = vld [vmem:[%s19068_s8 + $0x168] sm:$0xff] }
0x42f9   : > { %v16004_v62 = vpack.c.bf16 %v13057_v38, %v13056_v21 }
0x42fa   : > { %v9711_v1 = vmul.f32 1.442695, %v9707_v45 }
0x42fb   : > { %v9705_v48 = vpop.xlane.xlu0 %9704 }
0x42fc   : > { %16408 = vpow2.f32 %v9711_v1  ;;  %v9708_v49 = vsub.f32 %v9696_v19, %v9705_v48  ;;  %v13058_v19 = vld [vmem:[%s19068_s8 + $0x170] sm:$0xff] }
0x42fd   : > { %v16007_v30 = vpack.c.bf16 %v13059_v12, %v13058_v19  ;;  %v13088_v19 = vld [vmem:[%s19077_s19 + $0x50] sm:$0xff]  ;;  %v13089_v12 = vld [vmem:[%s19077_s19 + $0x58] sm:$0xff] }
0x42fe   : > { %v9713_v50 = vmul.f32 1.442695, %v9708_v49 }
0x4300   : > { %16410 = vpow2.f32 %v9713_v50  ;;  %v13048_v50 = vld [vmem:[%s19073_s14 + $0x5] ss:$0 sm:$0xff] }
0x4302   : > { %v16407_v51 = vpop.eup %16406 }
0x4303   : > { %v9715_v47 = vsel %vm6816_vm2, %v16407_v51, 0.0 }
0x4304   : > { %9716 = vadd.xlane.f32.xlu1 %v9715_v47  ;;  %v9909_v47 = vadd.f32 %v13048_v50, %v18361_v27  ;;  %v9919_v27 = vadd.f32 %v13048_v50, %v18365_v6 }
0x4306   : > { %v16409_v52 = vpop.eup %16408 }
0x4307   : > { %v9718_v46 = vsel %vm6816_vm2, %v16409_v52, 0.0 }
0x4308   : > { %9719 = vadd.xlane.f32.xlu0 %v9718_v46  ;;  %v10113_v46 = vadd.f32 %v18368_v31, %v18378_v35 }
0x430a   : > { %v16411_v55 = vpop.eup %16410 }
0x430b   : > { %v9721_v29 = vsel %vm6823_vm4, %v16411_v55, 0.0 }
0x430c   : > { %9722 = vadd.xlane.f32.xlu1 %v9721_v29 }
0x4391   : > { %v9717_v58 = vpop.xlane.xlu1 %9716 }
0x4392   : > { %16412 = vrcp.f32 %v9717_v58 }
0x4395   : > { %v9720_v60 = vpop.xlane.xlu0 %9719 }
0x4396   : > { %16414 = vrcp.f32 %v9720_v60 }
0x4399   : > { %v9723_v2 = vpop.xlane.xlu1 %9722 }
0x439a   : > { %16416 = vrcp.f32 %v9723_v2 }
0x439c   : > { %v16413_v26 = vpop.eup %16412 }
0x439d   : > { %v9727_v61 = vmul.f32 %v16413_v26, %v16407_v51 }
0x439f   : > { %15085 = vmatmul.mubr.msk.f32.vlgmr.msra.gmra.mrb[148].mxu1 %vm6816_vm2, %v9727_v61 }
0x43a0   : > { %v16415_v44 = vpop.eup %16414  ;;  %15999 = vmatpush3.bf16.msra.mxu1 %v15998_v7  ;;  %15087 = vmatprep.mubr.msk.f32.mxu1 %vm16597_vm1, %v16598_v11 }
0x43a1   : > { %16000 = vmatprep.subr.bf16.mxu1 %v16596_v10  ;;  %v9728_v20 = vmul.f32 %v16415_v44, %v16409_v52  ;;  %v9914_v52 = vadd.f32 %v13048_v50, %v18363_v9  ;;  %v13110_v50 = vld [vmem:[%s19068_s8 + $0x188] sm:$0xff] }
0x43a3   : > { %15088 = vmatmul.mubr.msk.f32.gmra.mrb[150].mxu1 %vm6816_vm2, %v9728_v20 }
0x43a4   : > { %v16417_v25 = vpop.eup %16416  ;;  %16002 = vmatpush3.bf16.msra.mxu1 %v16001_v18  ;;  %15090 = vmatprep.mubr.msk.f32.mxu1 %vm16597_vm1, %v16598_v11 }
0x43a5   : > { %16003 = vmatprep.subr.bf16.mxu1 %v16596_v10  ;;  %v9729_v0 = vmul.f32 %v16417_v25, %v16411_v55 }
0x43a7   : > { %15091 = vmatmul.mubr.msk.f32.gmra.mrb[152].mxu1 %vm6816_vm2, %v9729_v0 }
0x43a8   : > { %16005 = vmatpush3.bf16.msra.mxu1 %v16004_v62  ;;  %15134 = vmatprep.mubr.msk.f32.mxu1 %vm16597_vm1, %v16598_v11 }
0x43a9   : > { %16006 = vmatprep.subr.bf16.mxu1 %v16596_v10 }
0x43ac   : > { %16008 = vmatpush3.bf16.msra.mxu1 %v16007_v30  ;;  %v16029_v30 = vpack.c.bf16 %v13089_v12, %v13088_v19 }
0x43ad   : > { %16021 = vmatprep.subr.bf16.mxu1 %v16596_v10 }
0x43ae   : > { %16030 = vmatpush3.bf16.msra.mxu0 %v16029_v30 }
0x43af   : > { %15135 = vmatmul.mubr.msk.f32.vlgmr.msra.gmra.mrb[154].mxu1 %vm6361_vm13, %v18236_v16  ;;  %16034 = vmatprep.subr.bf16.mxu0 %v16596_v10 }
0x43b0   : > { %15137 = vmatprep.mubr.msk.f32.mxu1 %vm16597_vm1, %v16598_v11 }
0x43b3   : > { %15138 = vmatmul.mubr.msk.f32.gmra.mrb[156].mxu1 %vm6361_vm13, %v18247_v53 }
0x43b4   : > { %15140 = vmatprep.mubr.msk.f32.mxu1 %vm16597_vm1, %v16598_v11 }
0x43b7   : > { %15141 = vmatmul.mubr.msk.f32.gmra.mrb[158].mxu1 %vm6361_vm13, %v18261_v54 }
0x43b8   : > { %15174 = vmatprep.mubr.msk.f32.mxu1 %vm16597_vm1, %v16598_v11 }
0x4472   : > { %v18416_v22 = vpop.f32.mrb[148].mxu1 }
0x4473   : > { %v15086_v13 = vpop.f32.mrb[149].mxu1 }
0x4476   : > { %v18418_v8 = vpop.f32.mrb[150].mxu1 }
0x4477   : > { %v15089_v4 = vpop.f32.mrb[151].mxu1 }
0x447a   : > { %v18420_v14 = vpop.f32.mrb[152].mxu1 }
0x447b   : > { %v15092_v33 = vpop.f32.mrb[153].mxu1 }
0x4482   : > { %v10005_v39 = vpop.f32.mrb[154].mxu1 }
0x4483   : > { %v15136_v57 = vpop.f32.mrb[155].mxu1  ;;  %v10006_v42 = vadd.f32 %v13061_v36, %v10005_v39  ;;  %v13037_v39 = vld [vmem:[%s19077_s19 + $0x40] sm:$0xff] }
0x4484   : > { %v13038_v57 = vld [vmem:[%s19077_s19 + $0x48] sm:$0xff] }
0x4486   : > { %v10010_v41 = vpop.f32.mrb[156].mxu1 }
0x4487   : > { %v10011_v43 = vadd.f32 %v13061_v36, %v10010_v41  ;;  %v15139_v45 = vpop.f32.mrb[157].mxu1  ;;  %v16032_v41 = vpack.c.bf16 %v13038_v57, %v13037_v39 }
0x4489   : > { %v16022_v1 = vpack.c.bf16 %v10011_v43, %v10006_v42 }
0x448a   : > { %v10015_v48 = vpop.f32.mrb[158].mxu1 }
0x448b   : > { %v15142_v49 = vpop.f32.mrb[159].mxu1  ;;  %16024 = vmatpush3.bf16.xpose.msk.msra.mxu1 %vm17610_vm15, %v16022_v1  ;;  %v10016_v51 = vadd.f32 %v13061_v36, %v10015_v48 }
0x448c   : > { %15172 = vmatprep.subr.mxu1 %v16598_v11  ;;  %v13109_v49 = vld [vmem:[%s19068_s8 + $0x180] sm:$0xff] }
0x4493   : > { %15173 = vmatpush3.xpose.msk.msra.mxu1 %vm1619_vm3, %v10016_v51  ;;  %v16047_v51 = vpack.c.bf16 %v13110_v50, %v13109_v49 }
0x4494   : > { %16025 = vmatprep.subr.bf16.mxu1 %v16596_v10 }
0x4496   : > { %15175 = vmatmul.mubr.msk.f32.vlgmr.msra.gmra.mrb[160].mxu1 %vm1619_vm3, %v9909_v47  ;;  %v13111_v47 = vld [vmem:[%s19068_s8 + $0x190] sm:$0xff] }
0x4497   : > { %16027 = vmatpush3.bf16.msra.mxu1 %v16026_v34  ;;  %15177 = vmatprep.mubr.msk.f32.mxu1 %vm16597_vm1, %v16598_v11 }
0x4498   : > { %15187 = vmatprep.subr.mxu1 %v16598_v11 }
0x449a   : > { %15178 = vmatmul.mubr.msk.f32.gmra.mrb[162].mxu1 %vm1619_vm3, %v9914_v52  ;;  %v13112_v52 = vld [vmem:[%s19068_s8 + $0x198] sm:$0xff] }
0x449b   : > { %15188 = vmatpush3.msk.msra.mxu1 %vm6345_vm12, %v10113_v46  ;;  %15180 = vmatprep.mubr.msk.f32.mxu1 %vm16597_vm1, %v16598_v11  ;;  %v16050_v46 = vpack.c.bf16 %v13112_v52, %v13111_v47 }
0x449c   : > { %16031 = vmatprep.subr.bf16.mxu1 %v16596_v10 }
0x449e   : > { %15181 = vmatmul.mubr.msk.f32.gmra.mrb[164].mxu1 %vm1619_vm3, %v9919_v27  ;;  %v13113_v27 = vld [vmem:[%s19068_s8 + $0x1a0] sm:$0xff] }
0x449f   : > { %15189 = vmatprep.mubr.msk.f32.mxu1 %vm16597_vm1, %v16598_v11 }
0x4569   : > { %v10200_v9 = vpop.f32.mrb[160].mxu1 }
0x456a   : > { %v10214_v32 = vmul.f32 0.25, %v10200_v9  ;;  %v15176_v37 = vpop.f32.mrb[161].mxu1  ;;  %v13114_v9 = vld [vmem:[%s19068_s8 + $0x1a8] sm:$0xff] }
0x456b   : > { %v13116_v37 = vld [vmem:[%s19068_s8 + $0x1b8] sm:$0xff] }
0x456c   : > { %v10217_v31 = vsel %vm6816_vm2, %v10214_v32, -inf }
0x456d   : > { %10218 = vmax.xlane.f32.xlu0 %v10217_v31  ;;  %v10205_v34 = vpop.f32.mrb[162].mxu1 }
0x456e   : > { %v10215_v35 = vmul.f32 0.25, %v10205_v34  ;;  %v15179_v55 = vpop.f32.mrb[163].mxu1 }
0x456f   : > { %v13099_v55 = vld [vmem:[%s19067_s9 + $0x198] sm:$0xff] }
0x4570   : > { %v10220_v29 = vsel %vm6816_vm2, %v10215_v35, -inf }
0x4571   : > { %10221 = vmax.xlane.f32.xlu1 %v10220_v29  ;;  %v10210_v6 = vpop.f32.mrb[164].mxu1 }
0x4572   : > { %v10216_v58 = vmul.f32 0.25, %v10210_v6  ;;  %v15182_v60 = vpop.f32.mrb[165].mxu1 }
0x4573   : > { %v13100_v60 = vld [vmem:[%s19067_s9 + $0x1a0] sm:$0xff] }
0x4574   : > { %v10223_v2 = vsel %vm6823_vm4, %v10216_v58, -inf }
0x4575   : > { %10224 = vmax.xlane.f32.xlu0 %v10223_v2  ;;  %v13101_v2 = vld [vmem:[%s19067_s9 + $0x1a8] sm:$0xff] }
0x45fa   : > { %v10219_v59 = vpop.xlane.xlu0 %10218 }
0x45fb   : > { %v10226_v5 = vsub.f32 %v10214_v32, %v10219_v59  ;;  %v16053_v32 = vpack.c.bf16 %v13114_v9, %v13113_v27 }
0x45fd   : > { %v10229_v26 = vmul.f32 1.442695, %v10226_v5 }
0x45fe   : > { %v10222_v7 = vpop.xlane.xlu1 %10221 }
0x45ff   : > { %16418 = vpow2.f32 %v10229_v26  ;;  %v10227_v61 = vsub.f32 %v10215_v35, %v10222_v7  ;;  %v13098_v35 = vld [vmem:[%s19067_s9 + $0x190] sm:$0xff]  ;;  %v16041_v26 = vpack.c.bf16 %v13101_v2, %v13100_v60 }
0x4600   : > { %v13102_v7 = vld [vmem:[%s19067_s9 + $0x1b0] sm:$0xff] }
0x4601   : > { %v10231_v28 = vmul.f32 1.442695, %v10227_v61  ;;  %v13103_v61 = vld [vmem:[%s19067_s9 + $0x1b8] sm:$0xff] }
0x4602   : > { %v10225_v15 = vpop.xlane.xlu0 %10224 }
0x4603   : > { %16420 = vpow2.f32 %v10231_v28  ;;  %v10228_v44 = vsub.f32 %v10216_v58, %v10225_v15  ;;  %v16038_v58 = vpack.c.bf16 %v13099_v55, %v13098_v35  ;;  %v13105_v55 = vld [vmem:[%s19073_s14 + $0x6] ss:$0 sm:$0xff] }
0x4605   : > { %v10233_v18 = vmul.f32 1.442695, %v10228_v44  ;;  %v16044_v44 = vpack.c.bf16 %v13103_v61, %v13102_v7 }
0x4607   : > { %16422 = vpow2.f32 %v10233_v18  ;;  %v13122_v18 = vld [vmem:[%s19070_s3 + $0x180] sm:$0xff] }
0x4609   : > { %v16419_v20 = vpop.eup %16418 }
0x460a   : > { %v10235_v21 = vsel %vm6816_vm2, %v16419_v20, 0.0 }
0x460b   : > { %10236 = vadd.xlane.f32.xlu1 %v10235_v21 }
0x460d   : > { %v16421_v38 = vpop.eup %16420 }
0x460e   : > { %v10238_v25 = vsel %vm6816_vm2, %v16421_v38, 0.0 }
0x460f   : > { %10239 = vadd.xlane.f32.xlu0 %v10238_v25 }
0x4611   : > { %v16423_v62 = vpop.eup %16422 }
0x4612   : > { %v10241_v0 = vsel %vm6823_vm4, %v16423_v62, 0.0 }
0x4613   : > { %10242 = vadd.xlane.f32.xlu1 %v10241_v0  ;;  %v13125_v0 = vld [vmem:[%s19070_s3 + $0x198] sm:$0xff] }
0x4698   : > { %v10237_v13 = vpop.xlane.xlu1 %10236 }
0x4699   : > { %16424 = vrcp.f32 %v10237_v13  ;;  %v13126_v13 = vld [vmem:[%s19070_s3 + $0x1a0] sm:$0xff] }
0x469c   : > { %v10240_v4 = vpop.xlane.xlu0 %10239 }
0x469d   : > { %16426 = vrcp.f32 %v10240_v4  ;;  %v13127_v4 = vld [vmem:[%s19070_s3 + $0x1a8] sm:$0xff] }
0x469e   : > { %v16065_v57 = vpack.c.bf16 %v13127_v4, %v13126_v13 }
0x46a0   : > { %v10243_v33 = vpop.xlane.xlu1 %10242 }
0x46a1   : > { %16428 = vrcp.f32 %v10243_v33 }
0x46a3   : > { %v16425_v36 = vpop.eup %16424 }
0x46a4   : > { %v10247_v42 = vmul.f32 %v16425_v36, %v16419_v20  ;;  %v13123_v20 = vld [vmem:[%s19070_s3 + $0x188] sm:$0xff]  ;;  %v13128_v36 = vld [vmem:[%s19070_s3 + $0x1b0] sm:$0xff] }
0x46a5   : > { %v16059_v25 = vpack.c.bf16 %v13123_v20, %v13122_v18 }
0x46a6   : > { %15190 = vmatmul.mubr.msk.f32.vlgmr.msra.gmra.mrb[166].mxu1 %vm6816_vm2, %v10247_v42 }
0x46a7   : > { %v16427_v43 = vpop.eup %16426  ;;  %15192 = vmatprep.mubr.msk.f32.mxu1 %vm16597_vm1, %v16598_v11  ;;  %16033 = vmatpush3.bf16.msra.mxu1 %v16032_v41  ;;  %v13129_v41 = vld [vmem:[%s19070_s3 + $0x1b8] sm:$0xff] }
0x46a8   : > { %v10248_v45 = vmul.f32 %v16427_v43, %v16421_v38  ;;  %16046 = vmatprep.subr.bf16.mxu1 %v16596_v10  ;;  %v16068_v42 = vpack.c.bf16 %v13129_v41, %v13128_v36 }
0x46aa   : > { %15193 = vmatmul.mubr.msk.f32.gmra.mrb[168].mxu1 %vm6816_vm2, %v10248_v45 }
0x46ab   : > { %v16429_v1 = vpop.eup %16428  ;;  %15195 = vmatprep.mubr.msk.f32.mxu1 %vm16597_vm1, %v16598_v11 }
0x46ac   : > { %v10249_v48 = vmul.f32 %v16429_v1, %v16423_v62  ;;  %v13124_v62 = vld [vmem:[%s19070_s3 + $0x190] sm:$0xff]  ;;  %v13118_v1 = vld [vmem:[%s19072_s12 + $0x6] ss:$0 sm:$0xff] }
0x46ad   : > { %v16062_v30 = vpack.c.bf16 %v13125_v0, %v13124_v62 }
0x46ae   : > { %15196 = vmatmul.mubr.msk.f32.gmra.mrb[170].mxu1 %vm6816_vm2, %v10249_v48 }
0x46af   : > { %15215 = vmatprep.mubr.msk.f32.mxu1 %vm16597_vm1, %v16598_v11 }
0x46b2   : > { %15216 = vmatmul.mubr.msk.f32.vlgmr.msra.gmra.mrb[172].mxu1 %vm1619_vm3, %v18416_v22  ;;  %v13115_v22 = vld [vmem:[%s19068_s8 + $0x1b0] sm:$0xff] }
0x46b3   : > { %16048 = vmatpush3.bf16.msra.mxu1 %v16047_v51  ;;  %15218 = vmatprep.mubr.msk.f32.mxu1 %vm16597_vm1, %v16598_v11  ;;  %v16056_v31 = vpack.c.bf16 %v13116_v37, %v13115_v22 }
0x46b4   : > { %16049 = vmatprep.subr.bf16.mxu1 %v16596_v10 }
0x46b6   : > { %15219 = vmatmul.mubr.msk.f32.gmra.mrb[174].mxu1 %vm1619_vm3, %v18418_v8  ;;  %v13096_v8 = vld [vmem:[%s19067_s9 + $0x180] sm:$0xff] }
0x46b7   : > { %16051 = vmatpush3.bf16.msra.mxu1 %v16050_v46  ;;  %15221 = vmatprep.mubr.msk.f32.mxu1 %vm16597_vm1, %v16598_v11 }
0x46b8   : > { %16052 = vmatprep.subr.bf16.mxu1 %v16596_v10 }
0x46ba   : > { %15222 = vmatmul.mubr.msk.f32.gmra.mrb[176].mxu1 %vm1619_vm3, %v18420_v14  ;;  %v13097_v14 = vld [vmem:[%s19067_s9 + $0x188] sm:$0xff] }
0x46bb   : > { %16054 = vmatpush3.bf16.msra.mxu1 %v16053_v32  ;;  %15265 = vmatprep.mubr.msk.f32.mxu1 %vm16597_vm1, %v16598_v11  ;;  %v16035_v34 = vpack.c.bf16 %v13097_v14, %v13096_v8 }
0x46bc   : > { %16055 = vmatprep.subr.bf16.mxu1 %v16596_v10 }
0x46bf   : > { %16057 = vmatpush3.bf16.msra.mxu1 %v16056_v31 }
0x46c0   : > { %16070 = vmatprep.subr.bf16.mxu1 %v16596_v10 }
0x46c2   : > { %15266 = vmatmul.mubr.msk.f32.vlgmr.msra.gmra.mrb[178].mxu1 %vm6361_vm13, %v18236_v16 }
0x46c3   : > { %15268 = vmatprep.mubr.msk.f32.mxu1 %vm16597_vm1, %v16598_v11 }
0x46c6   : > { %15269 = vmatmul.mubr.msk.f32.gmra.mrb[180].mxu1 %vm6361_vm13, %v18247_v53 }
0x46c7   : > { %15271 = vmatprep.mubr.msk.f32.mxu1 %vm16597_vm1, %v16598_v11 }
0x46ca   : > { %15272 = vmatmul.mubr.msk.f32.gmra.mrb[182].mxu1 %vm6361_vm13, %v18261_v54 }
0x46cb   : > { %15305 = vmatprep.mubr.msk.f32.mxu1 %vm16597_vm1, %v16598_v11 }
0x4779   : > { %v10328_v29 = vpop.f32.mrb[166].mxu1 }
0x477a   : > { %v15191_v6 = vpop.f32.mrb[167].mxu1  ;;  %15203 = vmatmul.mubr.msk.f32.vlgmr.msra.gmra.mrb[156].mxu0 %vm1619_vm3, %v10328_v29 }
0x477b   : > { %16036 = vmatpush3.bf16.msra.mxu0 %v16035_v34  ;;  %15205 = vmatprep.mubr.msk.f32.mxu0 %vm16597_vm1, %v16598_v11 }
0x477c   : > { %16037 = vmatprep.subr.bf16.mxu0 %v16596_v10 }
0x477d   : > { %v10333_v59 = vpop.f32.mrb[168].mxu1 }
0x477e   : > { %v15194_v5 = vpop.f32.mrb[169].mxu1  ;;  %15206 = vmatmul.mubr.msk.f32.gmra.mrb[158].mxu0 %vm1619_vm3, %v10333_v59 }
0x477f   : > { %16039 = vmatpush3.bf16.msra.mxu0 %v16038_v58  ;;  %15208 = vmatprep.mubr.msk.f32.mxu0 %vm16597_vm1, %v16598_v11 }
0x4780   : > { %16040 = vmatprep.subr.bf16.mxu0 %v16596_v10 }
0x4781   : > { %v10338_v28 = vpop.f32.mrb[170].mxu1 }
0x4782   : > { %v15197_v15 = vpop.f32.mrb[171].mxu1  ;;  %15209 = vmatmul.mubr.msk.f32.gmra.mrb[160].mxu0 %vm1619_vm3, %v10338_v28 }
0x4783   : > { %16042 = vmatpush3.bf16.msra.mxu0 %v16041_v26  ;;  %15240 = vmatprep.mubr.msk.f32.mxu0 %vm16597_vm1, %v16598_v11  ;;  %v13131_v15 = vld [vmem:[%s19076_s17 + $0x6] ss:$0 sm:$0xff] }
0x4784   : > { %16043 = vmatprep.subr.bf16.mxu0 %v16596_v10 }
0x4785   : > { %v10509_v21 = vpop.f32.mrb[172].mxu1 }
0x4786   : > { %v15217_v38 = vpop.f32.mrb[173].mxu1 }
0x4787   : > { %16045 = vmatpush3.bf16.msra.mxu0 %v16044_v44 }
0x4788   : > { %16058 = vmatprep.subr.bf16.mxu0 %v16596_v10 }
0x4789   : > { %v10514_v19 = vpop.f32.mrb[174].mxu1 }
0x478a   : > { %15241 = vmatmul.mubr.msk.f32.vlgmr.msra.gmra.mrb[162].mxu0 %vm6361_vm13, %v18236_v16  ;;  %v15220_v12 = vpop.f32.mrb[175].mxu1 }
0x478b   : > { %16060 = vmatpush3.bf16.msra.mxu0 %v16059_v25  ;;  %15243 = vmatprep.mubr.msk.f32.mxu0 %vm16597_vm1, %v16598_v11 }
0x478c   : > { %16061 = vmatprep.subr.bf16.mxu0 %v16596_v10 }
0x478d   : > { %v10519_v33 = vpop.f32.mrb[176].mxu1 }
0x478e   : > { %15244 = vmatmul.mubr.msk.f32.gmra.mrb[164].mxu0 %vm6361_vm13, %v18247_v53  ;;  %v15223_v39 = vpop.f32.mrb[177].mxu1 }
0x478f   : > { %16063 = vmatpush3.bf16.msra.mxu0 %v16062_v30  ;;  %15246 = vmatprep.mubr.msk.f32.mxu0 %vm16597_vm1, %v16598_v11 }
0x4790   : > { %16064 = vmatprep.subr.bf16.mxu0 %v16596_v10 }
0x4792   : > { %15247 = vmatmul.mubr.msk.f32.gmra.mrb[166].mxu0 %vm6361_vm13, %v18261_v54 }
0x4793   : > { %16066 = vmatpush3.bf16.msra.mxu0 %v16065_v57  ;;  %15290 = vmatprep.mubr.msk.f32.mxu0 %vm16597_vm1, %v16598_v11 }
0x4794   : > { %16067 = vmatprep.subr.bf16.mxu0 %v16596_v10 }
0x4795   : > { %v10703_v43 = vpop.f32.mrb[178].mxu1 }
0x4796   : > { %v15267_v45 = vpop.f32.mrb[179].mxu1  ;;  %v10704_v49 = vadd.f32 %v13118_v1, %v10703_v43 }
0x4797   : > { %16069 = vmatpush3.bf16.msra.mxu0 %v16068_v42 }
0x4798   : > { %16074 = vmatprep.subr.bf16.mxu0 %v16596_v10 }
0x4799   : > { %v10708_v48 = vpop.f32.mrb[180].mxu1 }
0x479a   : > { %v10709_v50 = vadd.f32 %v13118_v1, %v10708_v48  ;;  %v15270_v51 = vpop.f32.mrb[181].mxu1  ;;  %15291 = vmatmul.mubr.msk.f32.vlgmr.msra.gmra.mrb[168].mxu0 %vm6361_vm13, %v18236_v16 }
0x479b   : > { %15293 = vmatprep.mubr.msk.f32.mxu0 %vm16597_vm1, %v16598_v11 }
0x479c   : > { %v16071_v47 = vpack.c.bf16 %v10709_v50, %v10704_v49 }
0x479d   : > { %v10713_v52 = vpop.f32.mrb[182].mxu1 }
0x479e   : > { %v15273_v46 = vpop.f32.mrb[183].mxu1  ;;  %15294 = vmatmul.mubr.msk.f32.gmra.mrb[170].mxu0 %vm6361_vm13, %v18247_v53  ;;  %16073 = vmatpush3.bf16.xpose.msk.msra.mxu1 %vm17610_vm15, %v16071_v47  ;;  %v10714_v27 = vadd.f32 %v13118_v1, %v10713_v52 }
0x479f   : > { %15296 = vmatprep.mubr.msk.f32.mxu0 %vm16597_vm1, %v16598_v11  ;;  %15303 = vmatprep.subr.mxu1 %v16598_v11 }
0x47a2   : > { %15297 = vmatmul.mubr.msk.f32.gmra.mrb[172].mxu0 %vm6361_vm13, %v18261_v54 }
0x47a3   : > { %15320 = vmatprep.mubr.msk.f32.mxu0 %vm16597_vm1, %v16598_v11 }
0x47a6   : > { %15304 = vmatpush3.xpose.msk.msra.mxu1 %vm1619_vm3, %v10714_v27 }
0x47a7   : > { %16077 = vmatprep.subr.bf16.mxu1 %v16596_v10 }
0x484d   : > { %v10420_v9 = vpop.f32.mrb[156].mxu0 }
0x484e   : > { %v18569_v32 = vadd.f32 %v10509_v21, %v10420_v9  ;;  %v15204_v22 = vpop.f32.mrb[157].mxu0 }
0x4851   : > { %v10425_v37 = vpop.f32.mrb[158].mxu0 }
0x4852   : > { %v18571_v31 = vadd.f32 %v10514_v19, %v10425_v37  ;;  %v15207_v8 = vpop.f32.mrb[159].mxu0 }
0x4855   : > { %v10430_v14 = vpop.f32.mrb[160].mxu0 }
0x4856   : > { %v18573_v34 = vadd.f32 %v10519_v33, %v10430_v14  ;;  %v15210_v35 = vpop.f32.mrb[161].mxu0 }
0x4857   : > { %v13145_v35 = vld [vmem:[%s19077_s19 + $0x60] sm:$0xff] }
0x485d   : > { %v10606_v29 = vpop.f32.mrb[162].mxu0 }
0x485e   : > { %v10607_v6 = vadd.f32 %v13105_v55, %v10606_v29  ;;  %v15242_v58 = vpop.f32.mrb[163].mxu0 }
0x4860   : > { %15306 = vmatmul.mubr.msk.f32.vlgmr.msra.gmra.mrb[184].mxu1 %vm1619_vm3, %v10607_v6 }
0x4861   : > { %v10611_v60 = vpop.f32.mrb[164].mxu0  ;;  %15308 = vmatprep.mubr.msk.f32.mxu1 %vm16597_vm1, %v16598_v11 }
0x4862   : > { %v10612_v2 = vadd.f32 %v13105_v55, %v10611_v60  ;;  %v15245_v59 = vpop.f32.mrb[165].mxu0 }
0x4863   : > { %v13151_v59 = vld [vmem:[%s19067_s9 + $0x1c8] sm:$0xff] }
0x4864   : > { %15309 = vmatmul.mubr.msk.f32.gmra.mrb[186].mxu1 %vm1619_vm3, %v10612_v2  ;;  %v13150_v2 = vld [vmem:[%s19067_s9 + $0x1c0] sm:$0xff] }
0x4865   : > { %v10616_v5 = vpop.f32.mrb[166].mxu0  ;;  %15311 = vmatprep.mubr.msk.f32.mxu1 %vm16597_vm1, %v16598_v11 }
0x4866   : > { %v10617_v26 = vadd.f32 %v13105_v55, %v10616_v5  ;;  %v15248_v7 = vpop.f32.mrb[167].mxu0  ;;  %v13146_v55 = vld [vmem:[%s19077_s19 + $0x68] sm:$0xff] }
0x4867   : > { %v16078_v29 = vpack.c.bf16 %v13146_v55, %v13145_v35  ;;  %v13169_v35 = vld [vmem:[%s19068_s8 + $0x1f0] sm:$0xff]  ;;  %v13170_v55 = vld [vmem:[%s19068_s8 + $0x1f8] sm:$0xff] }
0x4868   : > { %15312 = vmatmul.mubr.msk.f32.gmra.mrb[188].mxu1 %vm1619_vm3, %v10617_v26  ;;  %v16081_v26 = vpack.c.bf16 %v13151_v59, %v13150_v2 }
0x4869   : > { %15333 = vmatprep.mubr.msk.f32.mxu1 %vm16597_vm1, %v16598_v11  ;;  %16079 = vmatpush3.bf16.msra.mxu1 %v16078_v29 }
0x486a   : > { %16092 = vmatprep.subr.bf16.mxu1 %v16596_v10 }
0x486d   : > { %v10800_v61 = vpop.f32.mrb[168].mxu0 }
0x486e   : > { %v15292_v28 = vpop.f32.mrb[169].mxu0  ;;  %v10801_v18 = vadd.f32 %v13131_v15, %v10800_v61  ;;  %v13152_v61 = vld [vmem:[%s19067_s9 + $0x1d0] sm:$0xff] }
0x486f   : > { %v13153_v28 = vld [vmem:[%s19067_s9 + $0x1d8] sm:$0xff] }
0x4871   : > { %v10805_v44 = vpop.f32.mrb[170].mxu0 }
0x4872   : > { %v10806_v20 = vadd.f32 %v13131_v15, %v10805_v44  ;;  %v15295_v21 = vpop.f32.mrb[171].mxu0  ;;  %v16084_v44 = vpack.c.bf16 %v13153_v28, %v13152_v61  ;;  %v13185_v28 = vld [vmem:[%s19076_s17 + $0x7] ss:$0 sm:$0xff] }
0x4873   : > { %v13155_v21 = vld [vmem:[%s19067_s9 + $0x1e8] sm:$0xff] }
0x4874   : > { %v16075_v38 = vpack.c.bf16 %v10806_v20, %v10801_v18  ;;  %v13154_v20 = vld [vmem:[%s19067_s9 + $0x1e0] sm:$0xff] }
0x4875   : > { %v10810_v25 = vpop.f32.mrb[172].mxu0 }
0x4876   : > { %v15298_v62 = vpop.f32.mrb[173].mxu0  ;;  %16076 = vmatpush3.bf16.msra.mxu0 %v16075_v38  ;;  %v10811_v0 = vadd.f32 %v13131_v15, %v10810_v25  ;;  %v16087_v25 = vpack.c.bf16 %v13155_v21, %v13154_v20 }
0x4877   : > { %15318 = vmatprep.subr.mxu0 %v16598_v11 }
0x487a   : > { %15319 = vmatpush3.msk.msra.mxu0 %vm6345_vm12, %v10811_v0  ;;  %v13156_v0 = vld [vmem:[%s19067_s9 + $0x1f0] sm:$0xff] }
0x487b   : > { %16080 = vmatprep.subr.bf16.mxu0 %v16596_v10 }
0x4933   : > { %v10898_v19 = vpop.f32.mrb[184].mxu1 }
0x4934   : > { %v10912_v12 = vmul.f32 0.25, %v10898_v19  ;;  %v15307_v30 = vpop.f32.mrb[185].mxu1  ;;  %v13157_v19 = vld [vmem:[%s19067_s9 + $0x1f8] sm:$0xff] }
0x4935   : > { %v13176_v30 = vld [vmem:[%s19070_s3 + $0x1c0] sm:$0xff] }
0x4936   : > { %v10915_v13 = vsel %vm6816_vm2, %v10912_v12, -inf }
0x4937   : > { %10916 = vmax.xlane.f32.xlu0 %v10915_v13  ;;  %v10903_v4 = vpop.f32.mrb[186].mxu1  ;;  %v13177_v13 = vld [vmem:[%s19070_s3 + $0x1c8] sm:$0xff] }
0x4938   : > { %v10913_v33 = vmul.f32 0.25, %v10903_v4  ;;  %v15310_v39 = vpop.f32.mrb[187].mxu1  ;;  %v16105_v4 = vpack.c.bf16 %v13177_v13, %v13176_v30 }
0x4939   : > { %v13179_v39 = vld [vmem:[%s19070_s3 + $0x1d8] sm:$0xff] }
0x493a   : > { %v10918_v57 = vsel %vm6816_vm2, %v10913_v33, -inf }
0x493b   : > { %10919 = vmax.xlane.f32.xlu1 %v10918_v57  ;;  %v10908_v36 = vpop.f32.mrb[188].mxu1 }
0x493c   : > { %v10914_v41 = vmul.f32 0.25, %v10908_v36  ;;  %v15313_v42 = vpop.f32.mrb[189].mxu1  ;;  %v13180_v36 = vld [vmem:[%s19070_s3 + $0x1e0] sm:$0xff] }
0x493e   : > { %v10921_v43 = vsel %vm6823_vm4, %v10914_v41, -inf }
0x493f   : > { %10922 = vmax.xlane.f32.xlu0 %v10921_v43  ;;  %v13182_v43 = vld [vmem:[%s19070_s3 + $0x1f0] sm:$0xff] }
0x49c4   : > { %v10917_v45 = vpop.xlane.xlu0 %10916 }
0x49c5   : > { %v10924_v1 = vsub.f32 %v10912_v12, %v10917_v45  ;;  %v16090_v12 = vpack.c.bf16 %v13157_v19, %v13156_v0  ;;  %v13183_v45 = vld [vmem:[%s19070_s3 + $0x1f8] sm:$0xff] }
0x49c7   : > { %v10927_v48 = vmul.f32 1.442695, %v10924_v1  ;;  %v16114_v1 = vpack.c.bf16 %v13183_v45, %v13182_v43 }
0x49c8   : > { %v10920_v49 = vpop.xlane.xlu1 %10919 }
0x49c9   : > { %16430 = vpow2.f32 %v10927_v48  ;;  %v10925_v50 = vsub.f32 %v10913_v33, %v10920_v49  ;;  %v13178_v33 = vld [vmem:[%s19070_s3 + $0x1d0] sm:$0xff]  ;;  %v13163_v48 = vld [vmem:[%s19068_s8 + $0x1c0] sm:$0xff]  ;;  %v13164_v49 = vld [vmem:[%s19068_s8 + $0x1c8] sm:$0xff] }
0x49ca   : > { %v16108_v57 = vpack.c.bf16 %v13179_v39, %v13178_v33 }
0x49cb   : > { %v10929_v51 = vmul.f32 1.442695, %v10925_v50  ;;  %v16093_v50 = vpack.c.bf16 %v13164_v49, %v13163_v48 }
0x49cc   : > { %v10923_v47 = vpop.xlane.xlu0 %10922 }
0x49cd   : > { %16432 = vpow2.f32 %v10929_v51  ;;  %v10926_v52 = vsub.f32 %v10914_v41, %v10923_v47  ;;  %v13181_v41 = vld [vmem:[%s19070_s3 + $0x1e8] sm:$0xff]  ;;  %v13165_v51 = vld [vmem:[%s19068_s8 + $0x1d0] sm:$0xff]  ;;  %v13166_v47 = vld [vmem:[%s19068_s8 + $0x1d8] sm:$0xff]  ;;  %s19086_s3 = sld [smem:[#allocation50_spill]] }
0x49ce   : > { %v16111_v42 = vpack.c.bf16 %v13181_v41, %v13180_v36  ;;  %v13172_v36 = vld [vmem:[%s19072_s12 + $0x7] ss:$0 sm:$0xff] }
0x49cf   : > { %v10931_v46 = vmul.f32 1.442695, %v10926_v52 }
0x49d1   : > { %16434 = vpow2.f32 %v10931_v46 }
0x49d3   : > { %v16431_v27 = vpop.eup %16430 }
0x49d4   : > { %v10933_v9 = vsel %vm6816_vm2, %v16431_v27, 0.0 }
0x49d5   : > { %10934 = vadd.xlane.f32.xlu1 %v10933_v9  ;;  %v13167_v9 = vld [vmem:[%s19068_s8 + $0x1e0] sm:$0xff] }
0x49d7   : > { %v16433_v22 = vpop.eup %16432 }
0x49d8   : > { %v10936_v37 = vsel %vm6816_vm2, %v16433_v22, 0.0 }
0x49d9   : > { %10937 = vadd.xlane.f32.xlu0 %v10936_v37 }
0x49db   : > { %v16435_v8 = vpop.eup %16434 }
0x49dc   : > { %v10939_v14 = vsel %vm6823_vm4, %v16435_v8, 0.0 }
0x49dd   : > { %10940 = vadd.xlane.f32.xlu1 %v10939_v14 }
0x4a62   : > { %v10935_v6 = vpop.xlane.xlu1 %10934 }
0x4a63   : > { %16436 = vrcp.f32 %v10935_v6 }
0x4a66   : > { %v10938_v58 = vpop.xlane.xlu0 %10937 }
0x4a67   : > { %16438 = vrcp.f32 %v10938_v58  ;;  %v16102_v58 = vpack.c.bf16 %v13170_v55, %v13169_v35 }
0x4a6a   : > { %v10941_v60 = vpop.xlane.xlu1 %10940 }
0x4a6b   : > { %16440 = vrcp.f32 %v10941_v60 }
0x4a6d   : > { %v16437_v5 = vpop.eup %16436 }
0x4a6e   : > { %v10945_v7 = vmul.f32 %v16437_v5, %v16431_v27  ;;  %v16096_v27 = vpack.c.bf16 %v13166_v47, %v13165_v51 }
0x4a70   : > { %15321 = vmatmul.mubr.msk.f32.vlgmr.msra.gmra.mrb[174].mxu0 %vm6816_vm2, %v10945_v7 }
0x4a71   : > { %v16439_v15 = vpop.eup %16438  ;;  %16082 = vmatpush3.bf16.msra.mxu0 %v16081_v26  ;;  %15323 = vmatprep.mubr.msk.f32.mxu0 %vm16597_vm1, %v16598_v11 }
0x4a72   : > { %16083 = vmatprep.subr.bf16.mxu0 %v16596_v10  ;;  %v10946_v18 = vmul.f32 %v16439_v15, %v16433_v22  ;;  %v13168_v22 = vld [vmem:[%s19068_s8 + $0x1e8] sm:$0xff]  ;;  %s19087_s8 = sand.u32 1, %s16536_s10  }
0x4a73   : > { %v16099_v14 = vpack.c.bf16 %v13168_v22, %v13167_v9  ;;  %s18889_s9 = scalar_lea.sflag [#allocation3], %s19087_s8 }
0x4a74   : > { %15324 = vmatmul.mubr.msk.f32.gmra.mrb[176].mxu0 %vm6816_vm2, %v10946_v18 }
0x4a75   : > { %v16441_v38 = vpop.eup %16440  ;;  %16085 = vmatpush3.bf16.msra.mxu0 %v16084_v44  ;;  %15326 = vmatprep.mubr.msk.f32.mxu0 %vm16597_vm1, %v16598_v11 }
0x4a76   : > { %16086 = vmatprep.subr.bf16.mxu0 %v16596_v10  ;;  %v10947_v62 = vmul.f32 %v16441_v38, %v16435_v8 }
0x4a78   : > { %15327 = vmatmul.mubr.msk.f32.gmra.mrb[178].mxu0 %vm6816_vm2, %v10947_v62 }
0x4a79   : > { %16088 = vmatpush3.bf16.msra.mxu0 %v16087_v25  ;;  %15358 = vmatprep.mubr.msk.f32.mxu0 %vm16597_vm1, %v16598_v11 }
0x4a7a   : > { %16089 = vmatprep.subr.bf16.mxu0 %v16596_v10 }
0x4a7d   : > { %16091 = vmatpush3.bf16.msra.mxu0 %v16090_v12 }
0x4a7e   : > { %16104 = vmatprep.subr.bf16.mxu0 %v16596_v10 }
0x4a80   : > { %15359 = vmatmul.mubr.msk.f32.vlgmr.msra.gmra.mrb[180].mxu0 %vm6361_vm13, %v18236_v16 }
0x4a81   : > { %16106 = vmatpush3.bf16.msra.mxu0 %v16105_v4  ;;  %15361 = vmatprep.mubr.msk.f32.mxu0 %vm16597_vm1, %v16598_v11 }
0x4a82   : > { %16107 = vmatprep.subr.bf16.mxu0 %v16596_v10 }
0x4a84   : > { %15362 = vmatmul.mubr.msk.f32.gmra.mrb[182].mxu0 %vm6361_vm13, %v18247_v53 }
0x4a85   : > { %16109 = vmatpush3.bf16.msra.mxu0 %v16108_v57  ;;  %15364 = vmatprep.mubr.msk.f32.mxu0 %vm16597_vm1, %v16598_v11 }
0x4a86   : > { %16110 = vmatprep.subr.bf16.mxu0 %v16596_v10 }
0x4a88   : > { %15365 = vmatmul.mubr.msk.f32.gmra.mrb[184].mxu0 %vm6361_vm13, %v18261_v54 }
0x4a89   : > { %16112 = vmatpush3.bf16.msra.mxu0 %v16111_v42  ;;  %15408 = vmatprep.mubr.msk.f32.mxu0 %vm16597_vm1, %v16598_v11 }
0x4a8a   : > { %16113 = vmatprep.subr.bf16.mxu0 %v16596_v10 }
0x4a8d   : > { %16115 = vmatpush3.bf16.msra.mxu0 %v16114_v1 }
0x4a8e   : > { %16120 = vmatprep.subr.bf16.mxu0 %v16596_v10 }
0x4a90   : > { %15409 = vmatmul.mubr.msk.f32.vlgmr.msra.gmra.mrb[186].mxu0 %vm6361_vm13, %v18236_v16 }
0x4a91   : > { %15411 = vmatprep.mubr.msk.f32.mxu0 %vm16597_vm1, %v16598_v11 }
0x4a94   : > { %15412 = vmatmul.mubr.msk.f32.gmra.mrb[188].mxu0 %vm6361_vm13, %v18247_v53 }
0x4a95   : > { %15414 = vmatprep.mubr.msk.f32.mxu0 %vm16597_vm1, %v16598_v11 }
0x4a98   : > { %15415 = vmatmul.mubr.msk.f32.gmra.mrb[190].mxu0 %vm6361_vm13, %v18261_v54 }
0x4a99   : > { %15438 = vmatprep.mubr.msk.f32.mxu0 %vm16597_vm1, %v16598_v11 }
0x4b43   : > { %v11026_v52 = vpop.f32.mrb[174].mxu0 }
0x4b44   : > { %v15322_v46 = vpop.f32.mrb[175].mxu0  ;;  %15334 = vmatmul.mubr.msk.f32.vlgmr.msra.gmra.mrb[190].mxu1 %vm1619_vm3, %v11026_v52 }
0x4b45   : > { %16094 = vmatpush3.bf16.msra.mxu1 %v16093_v50  ;;  %15336 = vmatprep.mubr.msk.f32.mxu1 %vm16597_vm1, %v16598_v11 }
0x4b46   : > { %16095 = vmatprep.subr.bf16.mxu1 %v16596_v10 }
0x4b47   : > { %v11031_v37 = vpop.f32.mrb[176].mxu0 }
0x4b48   : > { %v15325_v8 = vpop.f32.mrb[177].mxu0  ;;  %15337 = vmatmul.mubr.msk.f32.gmra.mrb[192].mxu1 %vm1619_vm3, %v11031_v37 }
0x4b49   : > { %16097 = vmatpush3.bf16.msra.mxu1 %v16096_v27  ;;  %15339 = vmatprep.mubr.msk.f32.mxu1 %vm16597_vm1, %v16598_v11 }
0x4b4a   : > { %16098 = vmatprep.subr.bf16.mxu1 %v16596_v10 }
0x4b4b   : > { %v11036_v29 = vpop.f32.mrb[178].mxu0 }
0x4b4c   : > { %v15328_v6 = vpop.f32.mrb[179].mxu0  ;;  %15340 = vmatmul.mubr.msk.f32.gmra.mrb[194].mxu1 %vm1619_vm3, %v11036_v29 }
0x4b4d   : > { %16100 = vmatpush3.bf16.msra.mxu1 %v16099_v14  ;;  %15383 = vmatprep.mubr.msk.f32.mxu1 %vm16597_vm1, %v16598_v11 }
0x4b4e   : > { %16101 = vmatprep.subr.bf16.mxu1 %v16596_v10 }
0x4b51   : > { %16103 = vmatpush3.bf16.msra.mxu1 %v16102_v58 }
0x4b52   : > { %16116 = vmatprep.subr.bf16.mxu1 %v16596_v10 }
0x4b53   : > { %v11218_v60 = vpop.f32.mrb[180].mxu0 }
0x4b54   : > { %v15360_v2 = vpop.f32.mrb[181].mxu0  ;;  %15384 = vmatmul.mubr.msk.f32.vlgmr.msra.gmra.mrb[196].mxu1 %vm6361_vm13, %v18236_v16 }
0x4b55   : > { %15386 = vmatprep.mubr.msk.f32.mxu1 %vm16597_vm1, %v16598_v11 }
0x4b57   : > { %v11223_v59 = vpop.f32.mrb[182].mxu0 }
0x4b58   : > { %v15363_v5 = vpop.f32.mrb[183].mxu0  ;;  %15387 = vmatmul.mubr.msk.f32.gmra.mrb[198].mxu1 %vm6361_vm13, %v18247_v53 }
0x4b59   : > { %15389 = vmatprep.mubr.msk.f32.mxu1 %vm16597_vm1, %v16598_v11 }
0x4b5b   : > { %v11228_v26 = vpop.f32.mrb[184].mxu0 }
0x4b5c   : > { %v15366_v7 = vpop.f32.mrb[185].mxu0  ;;  %15390 = vmatmul.mubr.msk.f32.gmra.mrb[200].mxu1 %vm6361_vm13, %v18261_v54 }
0x4b5d   : > { %15423 = vmatprep.mubr.msk.f32.mxu1 %vm16597_vm1, %v16598_v11 }
0x4b63   : > { %v11412_v16 = vpop.f32.mrb[186].mxu0 }
0x4b64   : > { %v15410_v61 = vpop.f32.mrb[187].mxu0  ;;  %v11413_v44 = vadd.f32 %v13185_v28, %v11412_v16 }
0x4b67   : > { %v11417_v15 = vpop.f32.mrb[188].mxu0 }
0x4b68   : > { %v11418_v18 = vadd.f32 %v13185_v28, %v11417_v15  ;;  %v15413_v20 = vpop.f32.mrb[189].mxu0 }
0x4b69   : > { %v13199_v20 = vld [vmem:[%s19077_s19 + $0x70] sm:$0xff] }
0x4b6a   : > { %v16121_v21 = vpack.c.bf16 %v11418_v18, %v11413_v44 }
0x4b6b   : > { %v11422_v53 = vpop.f32.mrb[190].mxu0 }
0x4b6c   : > { %v15416_v38 = vpop.f32.mrb[191].mxu0  ;;  %16122 = vmatpush3.bf16.msra.mxu0 %v16121_v21  ;;  %v11423_v25 = vadd.f32 %v13185_v28, %v11422_v53  ;;  %v13200_v21 = vld [vmem:[%s19077_s19 + $0x78] sm:$0xff] }
0x4b6d   : > { %15436 = vmatprep.subr.mxu0 %v16598_v11  ;;  %v16124_v53 = vpack.c.bf16 %v13200_v21, %v13199_v20  ;;  %v13217_v20 = vld [vmem:[%s19079_s22 + $0xb8] sm:$0xff] }
0x4b70   : > { %15437 = vmatpush3.msk.msra.mxu0 %vm6345_vm12, %v11423_v25 }
0x4c17   : > { %v11118_v54 = vpop.f32.mrb[190].mxu1 }
0x4c18   : > { %v18692_v62 = vadd.f32 %v11118_v54, %v18569_v32  ;;  %v15335_v0 = vpop.f32.mrb[191].mxu1 }
0x4c1b   : > { %v11123_v19 = vpop.f32.mrb[192].mxu1 }
0x4c1c   : > { %v18695_v12 = vadd.f32 %v11123_v19, %v18571_v31  ;;  %v15338_v30 = vpop.f32.mrb[193].mxu1  ;;  %v13159_v31 = vld [vmem:[%s19073_s14 + $0x7] ss:$0 sm:$0xff] }
0x4c1d   : > { %v11224_v50 = vadd.f32 %v13159_v31, %v11223_v59  ;;  %v11229_v56 = vadd.f32 %v13159_v31, %v11228_v26 }
0x4c1f   : > { %v11128_v13 = vpop.f32.mrb[194].mxu1 }
0x4c20   : > { %v18698_v4 = vadd.f32 %v11128_v13, %v18573_v34  ;;  %v15341_v33 = vpop.f32.mrb[195].mxu1  ;;  %v11219_v34 = vadd.f32 %v13159_v31, %v11218_v60  ;;  %v13205_v31 = vld [vmem:[%s19078_s21 + $0x1] ss:$0 sm:$0xff] }
0x4c27   : > { %v11315_v39 = vpop.f32.mrb[196].mxu1 }
0x4c28   : > { %v15385_v57 = vpop.f32.mrb[197].mxu1  ;;  %v11316_v42 = vadd.f32 %v13172_v36, %v11315_v39 }
0x4c2b   : > { %v11320_v41 = vpop.f32.mrb[198].mxu1 }
0x4c2c   : > { %v11321_v43 = vadd.f32 %v13172_v36, %v11320_v41  ;;  %v15388_v32 = vpop.f32.mrb[199].mxu1 }
0x4c2e   : > { %v16117_v45 = vpack.c.bf16 %v11321_v43, %v11316_v42 }
0x4c2f   : > { %v11325_v1 = vpop.f32.mrb[200].mxu1 }
0x4c30   : > { %v15391_v48 = vpop.f32.mrb[201].mxu1  ;;  %16119 = vmatpush3.bf16.xpose.msk.msra.mxu1 %vm17610_vm15, %v16117_v45  ;;  %v11326_v49 = vadd.f32 %v13172_v36, %v11325_v1 }
0x4c31   : > { %15421 = vmatprep.subr.mxu1 %v16598_v11 }
0x4c38   : > { %15422 = vmatpush3.xpose.msk.msra.mxu1 %vm1619_vm3, %v11326_v49 }
0x4c39   : > { %16123 = vmatprep.subr.bf16.mxu1 %v16596_v10 }
0x4c3b   : > { %15424 = vmatmul.mubr.msk.f32.vlgmr.msra.gmra.mrb[202].mxu1 %vm1619_vm3, %v11219_v34 }
0x4c3c   : > { %15426 = vmatprep.mubr.msk.f32.mxu1 %vm16597_vm1, %v16598_v11  ;;  %16125 = vmatpush3.bf16.msra.mxu1 %v16124_v53  ;;  %v13214_v53 = vld [vmem:[%s19079_s22 + $0xa0] sm:$0xff] }
0x4c3f   : > { %15427 = vmatmul.mubr.msk.f32.gmra.mrb[204].mxu1 %vm1619_vm3, %v11224_v50 }
0x4c40   : > { %15429 = vmatprep.mubr.msk.f32.mxu1 %vm16597_vm1, %v16598_v11 }
0x4c43   : > { %15430 = vmatmul.mubr.msk.f32.gmra.mrb[206].mxu1 %vm1619_vm3, %v11229_v56 }
0x4c44   : > { %15451 = vmatprep.mubr.msk.f32.mxu1 %vm16597_vm1, %v16598_v11 }
0x4d0e   : > { %v11510_v51 = vpop.f32.mrb[202].mxu1 }
0x4d0f   : > { %v11524_v47 = vmul.f32 0.25, %v11510_v51  ;;  %v15425_v52 = vpop.f32.mrb[203].mxu1 }
0x4d11   : > { %v11527_v46 = vsel %vm6816_vm2, %v11524_v47, -inf }
0x4d12   : > { %11528 = vmax.xlane.f32.xlu0 %v11527_v46  ;;  %v11515_v27 = vpop.f32.mrb[204].mxu1 }
0x4d13   : > { %v11525_v9 = vmul.f32 0.25, %v11515_v27  ;;  %v15428_v22 = vpop.f32.mrb[205].mxu1 }
0x4d15   : > { %v11530_v37 = vsel %vm6816_vm2, %v11525_v9, -inf }
0x4d16   : > { %11531 = vmax.xlane.f32.xlu1 %v11530_v37  ;;  %v11520_v8 = vpop.f32.mrb[206].mxu1 }
0x4d17   : > { %v11526_v14 = vmul.f32 0.25, %v11520_v8  ;;  %v15431_v35 = vpop.f32.mrb[207].mxu1 }
0x4d19   : > { %v11533_v55 = vsel %vm6823_vm4, %v11526_v14, -inf }
0x4d1a   : > { %11534 = vmax.xlane.f32.xlu0 %v11533_v55 }
0x4d9f   : > { %v11529_v29 = vpop.xlane.xlu0 %11528 }
0x4da0   : > { %v11536_v6 = vsub.f32 %v11524_v47, %v11529_v29 }
0x4da2   : > { %v11539_v58 = vmul.f32 1.442695, %v11536_v6 }
0x4da3   : > { %v11532_v60 = vpop.xlane.xlu1 %11531 }
0x4da4   : > { %16442 = vpow2.f32 %v11539_v58  ;;  %v11537_v2 = vsub.f32 %v11525_v9, %v11532_v60 }
0x4da6   : > { %v11541_v59 = vmul.f32 1.442695, %v11537_v2 }
0x4da7   : > { %v11535_v5 = vpop.xlane.xlu0 %11534 }
0x4da8   : > { %16444 = vpow2.f32 %v11541_v59  ;;  %v11538_v26 = vsub.f32 %v11526_v14, %v11535_v5 }
0x4daa   : > { %v11543_v7 = vmul.f32 1.442695, %v11538_v26 }
0x4dac   : > { %16446 = vpow2.f32 %v11543_v7  ;;  %v13211_v7 = vld [vmem:[%s19079_s22 + $0x88] sm:$0xff] }
0x4dae   : > { %v16443_v16 = vpop.eup %16442 }
0x4daf   : > { %v11545_v61 = vsel %vm6816_vm2, %v16443_v16, 0.0 }
0x4db0   : > { %11546 = vadd.xlane.f32.xlu1 %v11545_v61 }
0x4db2   : > { %v16445_v28 = vpop.eup %16444 }
0x4db3   : > { %v11548_v15 = vsel %vm6816_vm2, %v16445_v28, 0.0 }
0x4db4   : > { %11549 = vadd.xlane.f32.xlu0 %v11548_v15  ;;  %v13212_v15 = vld [vmem:[%s19079_s22 + $0x90] sm:$0xff] }
0x4db6   : > { %v16447_v44 = vpop.eup %16446 }
0x4db7   : > { %v11551_v18 = vsel %vm6823_vm4, %v16447_v44, 0.0 }
0x4db8   : > { %11552 = vadd.xlane.f32.xlu1 %v11551_v18  ;;  %v13215_v18 = vld [vmem:[%s19079_s22 + $0xa8] sm:$0xff] }
0x4db9   : > { %v16130_v21 = vpack.c.bf16 %v13217_v20, %v13215_v18  ;;  %v13234_v18 = vld [vmem:[%s19080_s24 + $0x120] sm:$0xff]  ;;  %v13235_v20 = vld [vmem:[%s19080_s24 + $0x128] sm:$0xff] }
0x4e3d   : > { %v11547_v38 = vpop.xlane.xlu1 %11546 }
0x4e3e   : > { %16448 = vrcp.f32 %v11547_v38  ;;  %v13216_v38 = vld [vmem:[%s19079_s22 + $0xb0] sm:$0xff] }
0x4e41   : > { %v11550_v25 = vpop.xlane.xlu0 %11549 }
0x4e42   : > { %16450 = vrcp.f32 %v11550_v25  ;;  %v16132_v25 = vpack.c.bf16 %v13216_v38, %v13214_v53  ;;  %v13252_v53 = vld [vmem:[%s19080_s24 + $0x1b0] sm:$0xff]  ;;  %v13253_v38 = vld [vmem:[%s19080_s24 + $0x1b8] sm:$0xff] }
0x4e45   : > { %v11553_v54 = vpop.xlane.xlu1 %11552 }
0x4e46   : > { %16452 = vrcp.f32 %v11553_v54  ;;  %v13219_v54 = vld [vmem:[%s19079_s22 + $0xc8] sm:$0xff] }
0x4e48   : > { %v16449_v0 = vpop.eup %16448 }
0x4e49   : > { %v11557_v19 = vmul.f32 %v16449_v0, %v16443_v16  ;;  %v13213_v16 = vld [vmem:[%s19079_s22 + $0x98] sm:$0xff] }
0x4e4a   : > { %v16126_v61 = vpack.c.bf16 %v13213_v16, %v13211_v7  ;;  %v13221_v0 = vld [vmem:[%s19079_s22 + $0xd8] sm:$0xff] }
0x4e4b   : > { %15439 = vmatmul.mubr.msk.f32.vlgmr.msra.gmra.mrb[192].mxu0 %vm6816_vm2, %v11557_v19  ;;  %v16134_v19 = vpack.c.bf16 %v13221_v0, %v13219_v54  ;;  %v13233_v16 = vld [vmem:[%s19080_s24 + $0x118] sm:$0xff]  ;;  %v13236_v54 = vld [vmem:[%s19080_s24 + $0x130] sm:$0xff] }
0x4e4c   : > { %v16451_v30 = vpop.eup %16450  ;;  %15441 = vmatprep.mubr.msk.f32.mxu0 %vm16597_vm1, %v16598_v11  ;;  %16127 = vmatprep.subr.bf16.mxu0 %v16126_v61  ;;  %v13237_v0 = vld [vmem:[%s19080_s24 + $0x138] sm:$0xff] }
0x4e4d   : > { %v11558_v13 = vmul.f32 %v16451_v30, %v16445_v28  ;;  %v13210_v28 = vld [vmem:[%s19079_s22 + $0x80] sm:$0xff] }
0x4e4e   : > { %v13218_v30 = vld [vmem:[%s19079_s22 + $0xc0] sm:$0xff] }
0x4e4f   : > { %15442 = vmatmul.mubr.msk.f32.gmra.mrb[194].mxu0 %vm6816_vm2, %v11558_v13  ;;  %v13220_v13 = vld [vmem:[%s19079_s22 + $0xd0] sm:$0xff] }
0x4e50   : > { %v16453_v33 = vpop.eup %16452  ;;  %15444 = vmatprep.mubr.msk.f32.mxu0 %vm16597_vm1, %v16598_v11 }
0x4e51   : > { %v11559_v39 = vmul.f32 %v16453_v33, %v16447_v44  ;;  %v16128_v44 = vpack.c.bf16 %v13212_v15, %v13210_v28  ;;  %v16136_v33 = vpack.c.bf16 %v13220_v13, %v13218_v30  ;;  %v13250_v28 = vld [vmem:[%s19080_s24 + $0x1a0] sm:$0xff]  ;;  %v13251_v15 = vld [vmem:[%s19080_s24 + $0x1a8] sm:$0xff] }
0x4e52   : > { %v13254_v30 = vld [vmem:[%s19080_s24 + $0x1c0] sm:$0xff]  ;;  %v13255_v13 = vld [vmem:[%s19080_s24 + $0x1c8] sm:$0xff] }
0x4e53   : > { %15445 = vmatmul.mubr.msk.f32.gmra.mrb[196].mxu0 %vm6816_vm2, %v11559_v39  ;;  %v13223_v39 = vld [vmem:[%s19079_s22 + $0xe8] sm:$0xff] }
0x4e54   : > { %11925 = vmatprep.mubr.f32.mxu0 %v16598_v11  ;;  %16129 = vmatpush1.bf16.msra.mxu0 %v16128_v44  ;;  %v16150_v44 = vpack.c.bf16 %v13251_v15, %v13250_v28 }
0x4e55   : > { %16131 = vmatprep.subr.bf16.mxu0 %v16130_v21  ;;  %v16152_v21 = vpack.c.bf16 %v13235_v20, %v13234_v18 }
0x4e58   : > { %16133 = vmatpush1.bf16.msra.mxu0 %v16132_v25  ;;  %v16154_v25 = vpack.c.bf16 %v13253_v38, %v13252_v53 }
0x4e59   : > { %16135 = vmatprep.subr.bf16.mxu0 %v16134_v19  ;;  %v16156_v19 = vpack.c.bf16 %v13237_v0, %v13236_v54 }
0x4e5c   : > { %16137 = vmatpush1.bf16.msra.mxu0 %v16136_v33  ;;  %v16158_v33 = vpack.c.bf16 %v13255_v13, %v13254_v30 }
0x4f1e   : > { %v11638_v57 = vpop.f32.mrb[192].mxu0 }
0x4f1f   : > { %v15440_v36 = vpop.f32.mrb[193].mxu0  ;;  %15452 = vmatmul.mubr.msk.f32.vlgmr.msra.gmra.mrb[208].mxu1 %vm1619_vm3, %v11638_v57  ;;  %v13225_v57 = vld [vmem:[%s19079_s22 + $0xf8] sm:$0xff] }
0x4f20   : > { %15454 = vmatprep.mubr.msk.f32.mxu1 %vm16597_vm1, %v16598_v11  ;;  %v16138_v36 = vpack.c.bf16 %v13225_v57, %v13223_v39  ;;  %v13238_v39 = vld [vmem:[%s19080_s24 + $0x140] sm:$0xff]  ;;  %v13239_v57 = vld [vmem:[%s19080_s24 + $0x148] sm:$0xff] }
0x4f22   : > { %v11643_v41 = vpop.f32.mrb[194].mxu0  ;;  %16139 = vmatprep.subr.bf16.mxu0 %v16138_v36  ;;  %v16160_v36 = vpack.c.bf16 %v13239_v57, %v13238_v39 }
0x4f23   : > { %v15443_v42 = vpop.f32.mrb[195].mxu0  ;;  %15455 = vmatmul.mubr.msk.f32.gmra.mrb[210].mxu1 %vm1619_vm3, %v11643_v41  ;;  %v13222_v41 = vld [vmem:[%s19079_s22 + $0xe0] sm:$0xff] }
0x4f24   : > { %15457 = vmatprep.mubr.msk.f32.mxu1 %vm16597_vm1, %v16598_v11  ;;  %v13224_v42 = vld [vmem:[%s19079_s22 + $0xf0] sm:$0xff] }
0x4f26   : > { %v11648_v43 = vpop.f32.mrb[196].mxu0 }
0x4f27   : > { %v15446_v32 = vpop.f32.mrb[197].mxu0  ;;  %15458 = vmatmul.mubr.msk.f32.gmra.mrb[212].mxu1 %vm1619_vm3, %v11648_v43  ;;  %v16140_v43 = vpack.c.bf16 %v13224_v42, %v13222_v41  ;;  %v13256_v41 = vld [vmem:[%s19080_s24 + $0x1d0] sm:$0xff]  ;;  %v13257_v42 = vld [vmem:[%s19080_s24 + $0x1d8] sm:$0xff]  ;;  %vm12285_vm3 = vcmask 261121  }
0x4f28   : > { %v13246_v32 = vld [vmem:[%s19080_s24 + $0x180] sm:$0xff] }
0x4f29   : > { %16141 = vmatpush1.bf16.msra.mxu0 %v16140_v43  ;;  %v16162_v43 = vpack.c.bf16 %v13257_v42, %v13256_v41 }
0x4f2a   : > { %16174 = vmatprep.subr.bf16.mxu0 %v16596_v10 }
0x4ff2   : > { %v11730_v45 = vpop.f32.mrb[208].mxu1 }
0x4ff3   : > { %v11744_v1 = vadd.f32 %v11730_v45, %v18692_v62  ;;  %v15453_v48 = vpop.f32.mrb[209].mxu1  ;;  %v13247_v45 = vld [vmem:[%s19080_s24 + $0x188] sm:$0xff] }
0x4ff4   : > { %v16142_v48 = vpack.c.bf16 %v13247_v45, %v13246_v32  ;;  %v13240_v32 = vld [vmem:[%s19080_s24 + $0x150] sm:$0xff]  ;;  %v13241_v45 = vld [vmem:[%s19080_s24 + $0x158] sm:$0xff] }
0x4ff5   : > { %v11747_v49 = vadd.f32 %v11744_v1, %v18175_v3  ;;  %v13230_v1 = vld [vmem:[%s19080_s24 + $0x100] sm:$0xff] }
0x4ff6   : > { %v11735_v34 = vpop.f32.mrb[210].mxu1  ;;  %16143 = vmatprep.subr.bf16.mxu1 %v16142_v48  ;;  %v13258_v48 = vld [vmem:[%s19080_s24 + $0x1e0] sm:$0xff] }
0x4ff7   : > { %v18742_v50 = vadd.f32 %v13205_v31, %v11747_v49  ;;  %v11745_v56 = vadd.f32 %v11735_v34, %v18695_v12  ;;  %v15456_v51 = vpop.f32.mrb[211].mxu1 }
0x4ff9   : > { %v11748_v47 = vadd.f32 %v11745_v56, %v18180_v40  ;;  %v11765_v52 = vsel %vm6361_vm13, %v18742_v50, 0.0 }
0x4ffa   : > { %11766 = vadd.xlane.f32.xlu0 %v11765_v52  ;;  %v11740_v46 = vpop.f32.mrb[212].mxu1 }
0x4ffb   : > { %v18748_v27 = vadd.f32 %v13205_v31, %v11748_v47  ;;  %v11746_v62 = vadd.f32 %v11740_v46, %v18698_v4  ;;  %v15459_v9 = vpop.f32.mrb[213].mxu1 }
0x4ffd   : > { %v11749_v3 = vadd.f32 %v11746_v62, %v18185_v63  ;;  %v11768_v22 = vsel %vm6361_vm13, %v18748_v27, 0.0 }
0x4ffe   : > { %11769 = vadd.xlane.f32.xlu1 %v11768_v22 }
0x4fff   : > { %v18754_v12 = vadd.f32 %v13205_v31, %v11749_v3  ;;  %v13231_v31 = vld [vmem:[%s19080_s24 + $0x108] sm:$0xff] }
0x5000   : > { %v16144_v49 = vpack.c.bf16 %v13231_v31, %v13230_v1  ;;  %v16164_v1 = vpack.c.bf16 %v13241_v45, %v13240_v32  ;;  %v13259_v31 = vld [vmem:[%s19080_s24 + $0x1e8] sm:$0xff] }
0x5001   : > { %v11771_v40 = vsel %vm6368_vm14, %v18754_v12, 0.0 }
0x5002   : > { %11772 = vadd.xlane.f32.xlu0 %v11771_v40  ;;  %16145 = vmatpush3.bf16.msra.mxu1 %v16144_v49  ;;  %v13208_v40 = vld [vmem:[%s19081_s25 + $0x1] ss:$0 sm:$0xff]  ;;  %v16166_v49 = vpack.c.bf16 %v13259_v31, %v13258_v48 }
0x5087   : > { %v11767_v37 = vpop.xlane.xlu0 %11766 }
0x5088   : > { %v11774_v8 = vmul.f32 0.015625, %v11767_v37 }
0x508a   : > { %v18759_v14 = vsub.f32 %v18742_v50, %v11774_v8  ;;  %v13209_v8 = vld [vmem:[%s19082_s29 + $0x1] ss:$0 sm:$0xff] }
0x508b   : > { %v11770_v4 = vpop.xlane.xlu1 %11769 }
0x508c   : > { %v11775_v35 = vmul.f32 0.015625, %v11770_v4  ;;  %v11780_v63 = vmul.f32 %v18759_v14, %v18759_v14 }
0x508e   : > { %v18764_v55 = vsub.f32 %v18748_v27, %v11775_v35  ;;  %v11783_v29 = vsel %vm6361_vm13, %v11780_v63, 0.0 }
0x508f   : > { %11784 = vadd.xlane.f32.xlu1 %v11783_v29  ;;  %v11773_v6 = vpop.xlane.xlu0 %11772 }
0x5090   : > { %v11776_v58 = vmul.f32 0.015625, %v11773_v6  ;;  %v11781_v60 = vmul.f32 %v18764_v55, %v18764_v55 }
0x5092   : > { %v18770_v2 = vsub.f32 %v18754_v12, %v11776_v58  ;;  %v11786_v59 = vsel %vm6361_vm13, %v11781_v60, 0.0 }
0x5093   : > { %11787 = vadd.xlane.f32.xlu0 %v11786_v59 }
0x5094   : > { %v11782_v5 = vmul.f32 %v18770_v2, %v18770_v2 }
0x5096   : > { %v11789_v26 = vsel %vm6368_vm14, %v11782_v5, 0.0  ;;  %v13248_v5 = vld [vmem:[%s19080_s24 + $0x190] sm:$0xff] }
0x5097   : > { %11790 = vadd.xlane.f32.xlu1 %v11789_v26  ;;  %v13249_v26 = vld [vmem:[%s19080_s24 + $0x198] sm:$0xff] }
0x5098   : > { %v16146_v7 = vpack.c.bf16 %v13249_v26, %v13248_v5 }
0x509a   : > { %16147 = vmatprep.subr.bf16.mxu1 %v16146_v7 }
0x511c   : > { %v11785_v34 = vpop.xlane.xlu1 %11784 }
0x511d   : > { %v11792_v56 = vmul.f32 0.015625, %v11785_v34  ;;  %v13242_v34 = vld [vmem:[%s19080_s24 + $0x160] sm:$0xff] }
0x511f   : > { %v11795_v51 = vadd.f32 1e-05, %v11792_v56  ;;  %v13243_v56 = vld [vmem:[%s19080_s24 + $0x168] sm:$0xff] }
0x5120   : > { %v11788_v47 = vpop.xlane.xlu0 %11787 }
0x5121   : > { %16454 = vrsqrt.f32 %v11795_v51  ;;  %v11793_v52 = vmul.f32 0.015625, %v11788_v47  ;;  %v16168_v51 = vpack.c.bf16 %v13243_v56, %v13242_v34  ;;  %v13260_v47 = vld [vmem:[%s19080_s24 + $0x1f0] sm:$0xff] }
0x5123   : > { %v11796_v46 = vadd.f32 1e-05, %v11793_v52  ;;  %v13261_v52 = vld [vmem:[%s19080_s24 + $0x1f8] sm:$0xff] }
0x5124   : > { %v11791_v62 = vpop.xlane.xlu1 %11790 }
0x5125   : > { %16456 = vrsqrt.f32 %v11796_v46  ;;  %v11794_v9 = vmul.f32 0.015625, %v11791_v62  ;;  %v16170_v46 = vpack.c.bf16 %v13261_v52, %v13260_v47  ;;  %v13244_v62 = vld [vmem:[%s19080_s24 + $0x170] sm:$0xff] }
0x5127   : > { %v11797_v3 = vadd.f32 1e-05, %v11794_v9  ;;  %v13245_v9 = vld [vmem:[%s19080_s24 + $0x178] sm:$0xff] }
0x5129   : > { %16458 = vrsqrt.f32 %v11797_v3  ;;  %v16172_v3 = vpack.c.bf16 %v13245_v9, %v13244_v62 }
0x512b   : > { %v16455_v22 = vpop.eup %16454 }
0x512c   : > { %v11801_v37 = vmul.f32 %v16455_v22, %v18759_v14  ;;  %v13226_v22 = vld [vmem:[%s19083_s30 + $0x2] sm:$0x3] }
0x512e   : > { %v11810_v4 = vmul.f32 %v13208_v40, %v11801_v37  ;;  %v11849_v37 = vrot.slane %v13226_v22, %v8963_v24 }
0x512f   : > { %v16457_v35 = vpop.eup %16456 }
0x5130   : > { %v11819_v63 = vadd.f32 %v13209_v8, %v11810_v4  ;;  %v11802_v29 = vmul.f32 %v16457_v35, %v18764_v55 }
0x5132   : > { %13227 = vmatmul.mubr.msk.f32.vlgmr.msra.gmra.mrb[198].mxu0 %vm6361_vm13, %v11819_v63  ;;  %v11811_v6 = vmul.f32 %v13208_v40, %v11802_v29 }
0x5133   : > { %v16459_v58 = vpop.eup %16458  ;;  %11931 = vmatprep.mubr.f32.mxu0 %v16598_v11 }
0x5134   : > { %v11820_v60 = vadd.f32 %v13209_v8, %v11811_v6  ;;  %v11803_v14 = vmul.f32 %v16459_v58, %v18770_v2  ;;  %v13232_v2 = vld [vmem:[%s19080_s24 + $0x110] sm:$0xff] }
0x5135   : > { %v16148_v61 = vpack.c.bf16 %v13233_v16, %v13232_v2 }
0x5136   : > { %13228 = vmatmul.mubr.msk.f32.gmra.mrb[200].mxu0 %vm6361_vm13, %v11820_v60  ;;  %v11812_v59 = vmul.f32 %v13208_v40, %v11803_v14  ;;  %v11845_v40 = vrot.slane %v13226_v22, %v8959_v23 }
0x5137   : > { %11937 = vmatprep.mubr.f32.mxu0 %v16598_v11  ;;  %16149 = vmatpush3.bf16.msra.mxu1 %v16148_v61 }
0x5138   : > { %v11821_v55 = vadd.f32 %v13209_v8, %v11812_v59  ;;  %16151 = vmatprep.subr.bf16.mxu1 %v16150_v44 }
0x513a   : > { %13229 = vmatmul.mubr.msk.f32.gmra.mrb[202].mxu0 %vm6361_vm13, %v11821_v55 }
0x513b   : > { %15476 = vmatprep.mubr.msk.f32.mxu0 %vm16597_vm1, %v16598_v11  ;;  %16153 = vmatpush3.bf16.msra.mxu1 %v16152_v21 }
0x513c   : > { %16155 = vmatprep.subr.bf16.mxu1 %v16154_v25 }
0x513f   : > { %16157 = vmatpush3.bf16.msra.mxu1 %v16156_v19 }
0x5140   : > { %16159 = vmatprep.subr.bf16.mxu1 %v16158_v33 }
0x5143   : > { %16161 = vmatpush3.bf16.msra.mxu1 %v16160_v36 }
0x5144   : > { %16163 = vmatprep.subr.bf16.mxu1 %v16162_v43 }
0x5147   : > { %16165 = vmatpush3.bf16.msra.mxu1 %v16164_v1 }
0x5148   : > { %16167 = vmatprep.subr.bf16.mxu1 %v16166_v49 }
0x514b   : > { %16169 = vmatpush3.bf16.msra.mxu1 %v16168_v51 }
0x514c   : > { %16171 = vmatprep.subr.bf16.mxu1 %v16170_v46 }
0x514f   : > { %16173 = vmatpush3.bf16.msra.mxu1 %v16172_v3 }
0x5205   : > { %v11927_v8 = vpop.f32.mrb[198].mxu0 }
0x5206   : > { %v11928_v4 = vadd.f32 %v11927_v8, %v11845_v40  ;;  %v11929_v35 = vpop.f32.mrb[199].mxu0 }
0x5207   : > { %v11930_v63 = vadd.f32 %v11929_v35, %v11849_v37 }
0x5208   : > { %v11950_v29 = vmul.f32 %v11928_v4, %v11928_v4  ;;  %v11944_v34 = vmul.f32 0.5, %v11928_v4 }
0x5209   : > { %v11951_v6 = vmul.f32 %v11930_v63, %v11930_v63  ;;  %v11933_v58 = vpop.f32.mrb[200].mxu0  ;;  %v11945_v31 = vmul.f32 0.5, %v11930_v63 }
0x520a   : > { %v11956_v60 = vmul.f32 %v11950_v29, %v11928_v4  ;;  %v11934_v14 = vadd.f32 %v11933_v58, %v11845_v40  ;;  %v11935_v59 = vpop.f32.mrb[201].mxu0 }
0x520b   : > { %v11957_v55 = vmul.f32 %v11951_v6, %v11930_v63  ;;  %v11936_v5 = vadd.f32 %v11935_v59, %v11849_v37  ;;  %v13263_v59 = vld [vmem:[%s19084_s26 + $0x1] ss:$0 sm:$0xff] }
0x520c   : > { %v11962_v26 = vmul.f32 0.044715, %v11956_v60  ;;  %v11952_v7 = vmul.f32 %v11934_v14, %v11934_v14  ;;  %v11946_v3 = vmul.f32 0.5, %v11934_v14 }
0x520d   : > { %v11963_v2 = vmul.f32 0.044715, %v11957_v55  ;;  %v11953_v16 = vmul.f32 %v11936_v5, %v11936_v5  ;;  %v11939_v23 = vpop.f32.mrb[202].mxu0  ;;  %v11947_v62 = vmul.f32 0.5, %v11936_v5 }
0x520e   : > { %v11968_v61 = vadd.f32 %v11962_v26, %v11928_v4  ;;  %v11958_v17 = vmul.f32 %v11952_v7, %v11934_v14  ;;  %v11940_v24 = vadd.f32 %v11939_v23, %v11845_v40  ;;  %v11941_v28 = vpop.f32.mrb[203].mxu0 }
0x520f   : > { %v11969_v15 = vadd.f32 %v11963_v2, %v11930_v63  ;;  %v11959_v44 = vmul.f32 %v11953_v16, %v11936_v5  ;;  %v11942_v18 = vadd.f32 %v11941_v28, %v11849_v37 }
0x5210   : > { %v11974_v20 = vmul.f32 0.7978846, %v11968_v61  ;;  %v11964_v21 = vmul.f32 0.044715, %v11958_v17  ;;  %v11954_v53 = vmul.f32 %v11940_v24, %v11940_v24  ;;  %v11948_v4 = vmul.f32 0.5, %v11940_v24 }
0x5211   : > { %v11975_v38 = vmul.f32 0.7978846, %v11969_v15  ;;  %v11965_v25 = vmul.f32 0.044715, %v11959_v44  ;;  %v11955_v54 = vmul.f32 %v11942_v18, %v11942_v18  ;;  %v11949_v63 = vmul.f32 0.5, %v11942_v18 }
0x5212   : > { %16460 = vtanh.f32 %v11974_v20  ;;  %v11970_v0 = vadd.f32 %v11964_v21, %v11934_v14  ;;  %v11960_v19 = vmul.f32 %v11954_v53, %v11940_v24 }
0x5213   : > { %v11971_v30 = vadd.f32 %v11965_v25, %v11936_v5  ;;  %v11961_v13 = vmul.f32 %v11955_v54, %v11942_v18  ;;  %16462 = vtanh.f32 %v11975_v38 }
0x5214   : > { %v11976_v33 = vmul.f32 0.7978846, %v11970_v0  ;;  %v11966_v39 = vmul.f32 0.044715, %v11960_v19 }
0x5215   : > { %v11977_v57 = vmul.f32 0.7978846, %v11971_v30  ;;  %v11967_v36 = vmul.f32 0.044715, %v11961_v13 }
0x5216   : > { %v11972_v41 = vadd.f32 %v11966_v39, %v11940_v24  ;;  %16464 = vtanh.f32 %v11976_v33 }
0x5217   : > { %v11973_v42 = vadd.f32 %v11967_v36, %v11942_v18  ;;  %16466 = vtanh.f32 %v11977_v57 }
0x5218   : > { %v11978_v43 = vmul.f32 0.7978846, %v11972_v41  ;;  %v12181_v41 = vld [vmem:[%s19035_s13] sm:$0xff] }
0x5219   : > { %v11979_v32 = vmul.f32 0.7978846, %v11973_v42  ;;  %v12182_v42 = vld [vmem:[%s19035_s13 + $0x8] sm:$0xff] }
0x521a   : > { %16468 = vtanh.f32 %v11978_v43  ;;  %v16175_v43 = vpack.c.bf16 %v12182_v42, %v12181_v41 }
0x521b   : > { %16470 = vtanh.f32 %v11979_v32  ;;  %v12183_v32 = vld [vmem:[%s19035_s13 + $0x10] sm:$0xff] }
0x521c   : > { %v16461_v45 = vpop.eup %16460  ;;  %16176 = vmatpush3.bf16.msra.mxu0 %v16175_v43 }
0x521d   : > { %v16463_v1 = vpop.eup %16462  ;;  %v11986_v48 = vadd.f32 1.0, %v16461_v45  ;;  %16177 = vmatprep.subr.bf16.mxu0 %v16596_v10  ;;  %v12184_v45 = vld [vmem:[%s19035_s13 + $0x18] sm:$0xff] }
0x521e   : > { %v11987_v49 = vadd.f32 1.0, %v16463_v1  ;;  %v16178_v1 = vpack.c.bf16 %v12184_v45, %v12183_v32 }
0x521f   : > { %v11992_v52 = vmul.f32 %v11986_v48, %v11944_v34  ;;  %v12185_v48 = vld [vmem:[%s19035_s13 + $0x20] sm:$0xff]  ;;  %v12187_v34 = vld [vmem:[%s19035_s13 + $0x30] sm:$0xff] }
0x5220   : > { %v16465_v56 = vpop.eup %16464  ;;  %v11993_v51 = vmul.f32 %v11987_v49, %v11945_v31  ;;  %16179 = vmatpush3.bf16.msra.mxu0 %v16178_v1  ;;  %v12186_v31 = vld [vmem:[%s19035_s13 + $0x28] sm:$0xff] }
0x5221   : > { %v16467_v47 = vpop.eup %16466  ;;  %v11988_v46 = vadd.f32 1.0, %v16465_v56  ;;  %16180 = vmatprep.subr.bf16.mxu0 %v16596_v10  ;;  %v16181_v49 = vpack.c.bf16 %v12186_v31, %v12185_v48  ;;  %v12188_v56 = vld [vmem:[%s19035_s13 + $0x38] sm:$0xff]  ;;  %s16599_s13 = smov [#allocation2]  }
0x5222   : > { %12103 = vmatprep.mubr.f32.mxu1 %v11993_v51  ;;  %v11989_v9 = vadd.f32 1.0, %v16467_v47  ;;  %v16184_v51 = vpack.c.bf16 %v12188_v56, %v12187_v34  ;;  %s16486_s14 = sshll.u32 %s16599_s13, 4  ;;  %s16487_s14 = int_to_ptr.vmem [resolvable:$false] %s16486_s14 }
0x5223   : > { %12104 = vmatmul.mubr.f32.vlgmr.msra.gmra.mrb[214].mxu1 %v11992_v52  ;;  %v11994_v8 = vmul.f32 %v11988_v46, %v11946_v3 }
0x5224   : > { %v16469_v22 = vpop.eup %16468  ;;  %v11995_v40 = vmul.f32 %v11989_v9, %v11947_v62  ;;  %16182 = vmatpush3.bf16.msra.mxu0 %v16181_v49 }
0x5225   : > { %v16471_v37 = vpop.eup %16470  ;;  %v11990_v35 = vadd.f32 1.0, %v16469_v22  ;;  %16183 = vmatprep.subr.bf16.mxu0 %v16596_v10  ;;  %v13264_v10 = vld [vmem:[%s19085_s2] ss:$0 sm:$0xff] }
0x5226   : > { %12108 = vmatprep.mubr.f32.mxu1 %v11995_v40  ;;  %v11991_v29 = vadd.f32 1.0, %v16471_v37 }
0x5227   : > { %12109 = vmatmul.mubr.f32.gmra.mrb[216].mxu1 %v11994_v8  ;;  %v11996_v58 = vmul.f32 %v11990_v35, %v11948_v4 }
0x5228   : > { %v11997_v6 = vmul.f32 %v11991_v29, %v11949_v63  ;;  %16185 = vmatpush3.bf16.msra.mxu0 %v16184_v51  ;;  %v13265_v63 = vld [vmem:[%s19086_s3] ss:$0 sm:$0xff]  ;;  %s18982_s3 = sand.u32 1, %s16536_s10  }
0x5229   : > { %s12523_s2 = sshll.u32 %s18982_s3, 4 }
0x522a   : > { %12113 = vmatprep.mubr.f32.mxu1 %v11997_v6  ;;  %s1484_s6 = scalar_lea.vmem [#allocation2], %s12523_s2  ;;  %s13280_s2 = sshll.u32 %s16878_s0, 8 }
0x522b   : > { %12114 = vmatmul.mubr.f32.gmra.mrb[218].mxu1 %v11996_v58  ;;  %s18885_s3 = scalar_lea.hbm %s16850_s27, %s13280_s2 }
0x52f6   : > { %v13984_v60 = vpop.f32.mrb[214].mxu1 }
0x52f7   : > { %v13985_v55 = vpop.f32.mrb[215].mxu1 }
0x52f8   : > { %v13986_v5 = vadd.f32 %v13985_v55, %v13984_v60 }
0x52fa   : > { %v12106_v14 = vadd.f32 %v13986_v5, %v13263_v59  ;;  %v13987_v26 = vpop.f32.mrb[216].mxu1 }
0x52fb   : > { %v13988_v7 = vpop.f32.mrb[217].mxu1 }
0x52fc   : > { %v13989_v2 = vadd.f32 %v13988_v7, %v13987_v26  ;;  %v12119_v16 = vadd.f32 %v12106_v14, %v18742_v50  ;;  %v16478_v7 = vld [vmem:[%s16915_s23 + $0x8] sm:$0xff] }
0x52fe   : > { %v12111_v23 = vadd.f32 %v13989_v2, %v13263_v59  ;;  %v13990_v61 = vpop.f32.mrb[218].mxu1  ;;  %v12124_v17 = vsel %vm6361_vm13, %v12119_v16, 0.0  ;;  %v12297_v2 = vrot.slane %v16478_v7, 7 }
0x52ff   : > { %v13991_v28 = vpop.f32.mrb[219].mxu1  ;;  %12125 = vadd.xlane.f32.xlu0 %v12124_v17  ;;  %v13266_v17 = vld [vmem:[%s16845_s20] ss:$0 sm:$0xff] }
0x5300   : > { %v13992_v24 = vadd.f32 %v13991_v28, %v13990_v61  ;;  %v12120_v15 = vadd.f32 %v12111_v23, %v18748_v27 }
0x5302   : > { %v12116_v44 = vadd.f32 %v13992_v24, %v13263_v59  ;;  %v12127_v18 = vsel %vm6361_vm13, %v12120_v15, 0.0 }
0x5303   : > { %12128 = vadd.xlane.f32.xlu1 %v12127_v18 }
0x5304   : > { %v12121_v20 = vadd.f32 %v12116_v44, %v18754_v12 }
0x5306   : > { %v12130_v21 = vsel %vm6368_vm14, %v12121_v20, 0.0 }
0x5307   : > { %12131 = vadd.xlane.f32.xlu0 %v12130_v21 }
0x538c   : > { %v12126_v53 = vpop.xlane.xlu0 %12125 }
0x538d   : > { %v12133_v50 = vmul.f32 0.015625, %v12126_v53 }
0x538f   : > { %v12136_v38 = vsub.f32 %v12119_v16, %v12133_v50  ;;  %v16479_v16 = vld [vmem:[%s16915_s23] sm:$0xff]  ;;  %s12356_s23 = sshll.u32 %s1484_s6, 4  ;;  %s18881_s23 = int_to_ptr.vmem [resolvable:$true] %s12356_s23 }
0x5390   : > { %v12129_v25 = vpop.xlane.xlu1 %12128  ;;  %v12296_v23 = vrot.slane %v16479_v16, 7  ;;  %s16482_s12 = scalar_lea.vmem %s18881_s23, 256  ;;  %p16489_p0 = scmp.lt.s32.totalorder %s18881_s23, %s16487_s14 }
0x5391   : > { %v12134_v54 = vmul.f32 0.015625, %v12129_v25  ;;  %v12139_v0 = vmul.f32 %v12136_v38, %v12136_v38  ;;  %p16483_p11 = scmp.ne.s32.totalorder %s18881_s23, %s16482_s12 }
0x5392   : > { %v12298_v61 = vsel %vm6345_vm12, %v12296_v23, %v12297_v2 }
0x5393   : > { %v12137_v19 = vsub.f32 %v12120_v15, %v12134_v54  ;;  %v12142_v27 = vsel %vm6361_vm13, %v12139_v0, 0.0  ;;  %p16484_p12 = pnand %p16483_p11, %p16895_p5 }
0x5394   : > { %12143 = vadd.xlane.f32.xlu1 %v12142_v27  ;;  %v12132_v30 = vpop.xlane.xlu0 %12131 }
0x5395   : > { %v12135_v13 = vmul.f32 0.015625, %v12132_v30  ;;  %v12140_v12 = vmul.f32 %v12137_v19, %v12137_v19  ;;  %p16485_p13 = pneg %p16484_p12 }
0x5397   : > { %v12138_v33 = vsub.f32 %v12121_v20, %v12135_v13  ;;  %v12145_v39 = vsel %vm6361_vm13, %v12140_v12, 0.0 }
0x5398   : > { %12146 = vadd.xlane.f32.xlu0 %v12145_v39 }
0x5399   : > { %v12141_v57 = vmul.f32 %v12138_v33, %v12138_v33 }
0x539b   : > { %v12148_v36 = vsel %vm6368_vm14, %v12141_v57, 0.0 }
0x539c   : > { %12149 = vadd.xlane.f32.xlu1 %v12148_v36 }
0x5421   : > { %v12144_v47 = vpop.xlane.xlu1 %12143 }
0x5422   : > { %v12151_v52 = vmul.f32 0.015625, %v12144_v47 }
0x5424   : > { %v12154_v46 = vadd.f32 1e-05, %v12151_v52 }
0x5425   : > { %v12147_v62 = vpop.xlane.xlu0 %12146 }
0x5426   : > { %16472 = vrsqrt.f32 %v12154_v46  ;;  %v12152_v9 = vmul.f32 0.015625, %v12147_v62 }
0x5428   : > { %v12155_v3 = vadd.f32 1e-05, %v12152_v9 }
0x5429   : > { %v12150_v22 = vpop.xlane.xlu1 %12149 }
0x542a   : > { %16474 = vrsqrt.f32 %v12155_v3  ;;  %v12153_v40 = vmul.f32 0.015625, %v12150_v22 }
0x542c   : > { %v12156_v37 = vadd.f32 1e-05, %v12153_v40 }
0x542e   : > { %16476 = vrsqrt.f32 %v12156_v37 }
0x5430   : > { %v16473_v8 = vpop.eup %16472 }
0x5431   : > { %v12160_v35 = vmul.f32 %v16473_v8, %v12136_v38 }
0x5433   : > { %v12169_v29 = vmul.f32 %v13264_v10, %v12160_v35 }
0x5434   : > { %v16475_v4 = vpop.eup %16474 }
0x5435   : > { %v12178_v6 = vadd.f32 %v13265_v63, %v12169_v29  ;;  %v12161_v58 = vmul.f32 %v16475_v4, %v12137_v19 }
0x5437   : > { %15477 = vmatmul.mubr.msk.f32.vlgmr.msra.gmra.mrb[204].mxu0 %vm6361_vm13, %v12178_v6  ;;  %v12170_v60 = vmul.f32 %v13264_v10, %v12161_v58 }
0x5438   : > { %v16477_v59 = vpop.eup %16476  ;;  %15479 = vmatprep.mubr.msk.f32.mxu0 %vm16597_vm1, %v16598_v11 }
0x5439   : > { %v12179_v55 = vadd.f32 %v13265_v63, %v12170_v60  ;;  %v12162_v5 = vmul.f32 %v16477_v59, %v12138_v33 }
0x543b   : > { %15480 = vmatmul.mubr.msk.f32.gmra.mrb[206].mxu0 %vm6361_vm13, %v12179_v55  ;;  %v12171_v14 = vmul.f32 %v13264_v10, %v12162_v5 }
0x543c   : > { %15482 = vmatprep.mubr.msk.f32.mxu0 %vm16597_vm1, %v16598_v11  ;;  %vm12288_vm1 = vcmask 253952  }
0x543d   : > { %v12180_v26 = vadd.f32 %v13265_v63, %v12171_v14 }
0x543f   : > { %15483 = vmatmul.mubr.msk.f32.gmra.mrb[208].mxu0 %vm6361_vm13, %v12180_v26 }
0x550a   : > { %v12271_v28 = vpop.f32.mrb[204].mxu0 }
0x550b   : > { %v12272_v24 = vadd.f32 %v13266_v17, %v12271_v28  ;;  %v15478_v15 = vpop.f32.mrb[205].mxu0 }
0x550d   : > { %v12302_v44 = vsub.f32 %v12272_v24, %v12296_v23  ;;  %12286 = vst.msk [vmem:[%s1484_s6 - $0x1] sm:$0xfe] %vm12285_vm3, %v12272_v24 }
0x550e   : > { %v12276_v18 = vpop.f32.mrb[206].mxu0 }
0x550f   : > { %v12305_v20 = vmul.f32 %v12302_v44, %v12302_v44  ;;  %v12277_v21 = vadd.f32 %v13266_v17, %v12276_v18  ;;  %v15481_v53 = vpop.f32.mrb[207].mxu0 }
0x5511   : > { %12287 = vst.msk [vmem:[%s1484_s6 + $0x7] sm:$0xff] %vm1524_vm0, %v12277_v21  ;;  %v12303_v50 = vsub.f32 %v12277_v21, %v12298_v61  ;;  %v12308_v38 = vsel %vm12285_vm3, %v12305_v20, 0.0 }
0x5512   : > { %12309 = vadd.xlane.f32.xlu0 %v12308_v38  ;;  %v12281_v25 = vpop.f32.mrb[208].mxu0 }
0x5513   : > { %v12306_v54 = vmul.f32 %v12303_v50, %v12303_v50  ;;  %v12282_v0 = vadd.f32 %v13266_v17, %v12281_v25  ;;  %v15484_v19 = vpop.f32.mrb[209].mxu0 }
0x5515   : > { %v12304_v27 = vsub.f32 %v12282_v0, %v12297_v2  ;;  %v12311_v30 = vsel %vm1524_vm0, %v12306_v54, 0.0  ;;  %12289 = vst.msk [vmem:[%s1484_s6 + $0xf] sm:$0x1] %vm12288_vm1, %v12282_v0  ;;  %s16488_s6 = scalar_lea.vmem %s16487_s14, 512 }
0x5516   : > { %12312 = vadd.xlane.f32.xlu1 %v12311_v30  ;;  %p16490_p1 = scmp.lt.s32.totalorder %s16488_s6, %s16482_s12 }
0x5517   : > { %v12307_v13 = vmul.f32 %v12304_v27, %v12304_v27 }
0x5518   : > { %p16491_p2 = por %p16490_p1, %p16489_p0 }
0x5519   : > { %v12314_v12 = vsel %vm12288_vm1, %v12307_v13, 0.0 }
0x551a   : > { %12315 = vadd.xlane.f32.xlu0 %v12314_v12  ;;  %p16492_p3 = pnand %p16491_p2, %p16485_p13 }
0x551c   : > { %16495 = shalt.err (!%p16492_p3)
}
0x551d   : > { %s16496_s0 = scalar_lea.hbm %s18885_s3, 256  ;;  %s16500_s13 = scalar_lea.hbm %s16850_s27, 512 }
0x551e   : > { %p16497_p4 = scmp.ne.s32.totalorder %s18885_s3, %s16496_s0  ;;  %p16501_p9 = scmp.lt.u32.totalorder %s18885_s3, %s16850_s27 }
0x551f   : > { %p16502_p10 = scmp.lt.u32.totalorder %s16500_s13, %s16496_s0  ;;  %p16504_p12 = scmp.lt.u32.totalorder %s16496_s0, %s18885_s3 }
0x5520   : > { %p16498_p7 = pnand %p16497_p4, %p16895_p5 }
0x5521   : > { %p16503_p11 = por %p16502_p10, %p16501_p9 }
0x5522   : > { %p16499_p8 = pneg %p16498_p7 }
0x5523   : > { %p16505_p0 = por %p16504_p12, %p16503_p11 }
0x5525   : > { %p16506_p13 = pnand %p16505_p0, %p16499_p8 }
0x5527   : > { %16509 = shalt.err (!%p16506_p13)
}
0x5528   : > { %s16600_s14 = smov 128   ;;  %s16601_s12 = smov 8   ;;  %v16480_v33 = vld [vmem:[%s17465_s5] sm:$0xff]  ;;  %v16481_v39 = vld [vmem:[%s17465_s5 + $0x8] sm:$0xff]  ;;  %vm12331_vm6 = vcmask 7169   ;;  %vm12333_vm7 = vcmask 7168  }
0x5529   : > { %16186 = dma.vmem_to_hbm [thread:$0]  (%p16895_p5), %s18881_s23, 256, %s18885_s3, %s18889_s9, %s16600_s14, %s16600_s14, %s16601_s12   ;;  %vm12290_vm0 = vcmp.ge.s32.totalorder %v16480_v33, 4  ;;  %vm12291_vm5 = vcmp.ge.s32.totalorder %v16481_v39, 4  ;;  %vm12335_vm8 = vcmask 0  }
0x552a   : > { %v13270_v57 = vsel %vm12290_vm0, 1.0, %v16598_v11  ;;  %v13271_v36 = vsel %vm12291_vm5, 1.0, %v16598_v11  ;;  %s1510_s8 = scalar_lea.vmem %s16855_s4, %s16911_s16 }
0x552b   : > { %v12322_v41 = vrot.slane %v13270_v57, 7  ;;  %v12323_v42 = vrot.slane %v13271_v36, 7 }
0x552d   : > { %v12324_v1 = vsel %vm6345_vm12, %v12322_v41, %v12323_v42 }
0x559f   : > { %v12310_v43 = vpop.xlane.xlu0 %12309 }
0x55a0   : > { %v12317_v32 = vmul.f32 0.03125, %v12310_v43 }
0x55a2   : > { %v12328_v45 = vmul.f32 %v12322_v41, %v12317_v32 }
0x55a3   : > { %v12313_v48 = vpop.xlane.xlu1 %12312 }
0x55a4   : > { %12332 = vst.msk [vmem:[%s1510_s8 - $0x1] sm:$0xfe] %vm12331_vm6, %v12328_v45  ;;  %v12318_v31 = vmul.f32 0.03125, %v12313_v48 }
0x55a6   : > { %v12329_v49 = vmul.f32 %v12324_v1, %v12318_v31 }
0x55a7   : > { %v12316_v34 = vpop.xlane.xlu0 %12315 }
0x55a8   : > { %12334 = vst.msk [vmem:[%s1510_s8 + $0x7] sm:$0xff] %vm12333_vm7, %v12329_v49  ;;  %v12319_v56 = vmul.f32 0.03125, %v12316_v34 }
0x55aa   : > { %v12330_v51 = vmul.f32 %v12323_v42, %v12319_v56 }
0x55ac   : > { %12336 = vst.msk [vmem:[%s1510_s8 + $0xf] sm:$0x1] %vm12335_vm8, %v12330_v51 }
0x55ad PF: > { %p16192_p5 = scmp.ge.s32.totalorder %s16544_s15, 2  ;;  %s12374_s5 = sand.u32 1, %s16532_s7  }
0x55ae   : > { %s12375_s28 = scalar_lea.sflag [#allocation3], %s12374_s5 }
0x55af   : > { %p16189_p1 = pnand %p16192_p5, %p16899_p6 }
0x55b1   : > { %16527 = dma.done.wait (!%p16189_p1), %s12375_s28, 256  }
0x55b2   : > { %16529 = vsyncadd (!%p16189_p1), %s12375_s28, 4294967040  ;;  %s19088_s16 = sld [smem:[#allocation52_spill]]  ;;  %p110_p2 = scmp.ge.s32.totalorder %s16882_s18, 4  }
0x55b3   : > { %s19089_s7 = smov %s16536_s10  ;;  %s19090_s10 = smov %s16540_s11 }
0x55b4   : > { %s19092_s15 = smov %s16882_s18  ;;  %112 = sbr.rel (!%p110_p2) target bundleno = 117 (0x75), region = 430 }
0x55b8   : > { %s19091_s11 = smov %s19088_s16 }
0x55bb   :  { %12388 = vsyncpa [#allocation3], 1 }
0x55bc   :  { %12390 = vsyncpa [#allocation3 + $0x1], 1 }

</bundles_post_ra>
